<compile_context>
chip_gen: v7x
topology: tpu7x:2x2x1
jax: 0.10.0
libtpu: 0.0.40
codegen_flags: <defaults>
</compile_context>

<pallas_src>
from functools import partial

import numpy as np
import jax
import jax.numpy as jnp
from jax import lax
from jax.experimental import pallas as pl
from jax.experimental.pallas import tpu as pltpu

# ---------------------------------------------------------------------------
# Static network geometry (AtariNet hard-codes 64*7*7 => 84x84 inputs, 4 frames)
# ---------------------------------------------------------------------------
N_ATOMS = 51
CIN, HIN = 4, 84
K1, S1, C1, H1 = 8, 4, 32, 20            # conv1: 4->32,  8x8 stride 4, out 20x20
K2, S2, C2, H2 = 4, 2, 64, 9             # conv2: 32->64, 4x4 stride 2, out 9x9
K3, S3, C3, H3 = 3, 1, 64, 7             # conv3: 64->64, 3x3 stride 1, out 7x7
BLK2 = 88                                # conv2 rows per tap (81 valid, padded to 88)
BLK3 = 64                                # conv3 rows per tap (49 valid, padded to 64)
FC_IN_PAD = BLK3 * C3                    # 4096 (padded flatten; 3136 real features)
FC_HIDDEN = 512


def _const_spec(shape):
    """BlockSpec for an operand that is fully resident (same block every step)."""
    n = len(shape)
    return pl.BlockSpec(tuple(shape), lambda *_: (0,) * n)


def _conv_batch_tile(B):
    """Images per conv-kernel grid step; keep >=2 grid steps so megacore splits."""
    for t in (8, 4, 2):
        if B % t == 0 and B // t >= 2:
            return t
    return 1


def _fc_batch_tile(B):
    """Rows per fc-head grid step (must be a multiple of 8 or the full batch)."""
    if B <= 256:
        return B
    for t in (256, 128, 64, 32, 16, 8):
        if B % t == 0:
            return t
    return B


# ---------------------------------------------------------------------------
# Kernel 1: fused conv stack (conv1 -> relu -> conv2 -> relu -> conv3 -> relu)
# ---------------------------------------------------------------------------
def _conv_stack_kernel(p_ref, w1_ref, b1_ref, g2_ref, w2_ref, b2_ref,
                       g3_ref, w3_ref, b3_ref, o_ref):
    bt = p_ref.shape[0]                                               # images this step
    nt2, nt3 = K2 * K2, K3 * K3

    # conv1 as one im2col GEMM over all bt images stacked along M.  Patches are
    # uint8 (4x less DMA); /255 is folded into w1.  u8 values are exact in bf16.
    x = p_ref[...].astype(jnp.float32).astype(jnp.bfloat16)
    x = x.reshape(bt * H1 * H1, CIN * K1 * K1)                        # (bt*400, 256)
    a1 = jnp.dot(x, w1_ref[...], preferred_element_type=jnp.float32) + b1_ref[...]
    a1 = jnp.maximum(a1, 0.0).astype(jnp.bfloat16)                    # (bt*400, 32)

    # conv2 (4x4, stride 2): per image gather all 16 strided taps with one 0/1
    # matmul, lay the taps out along lanes (K-concat), then ONE K=512 weight GEMM
    # for all images together.
    p2_rows = []
    for b in range(bt):
        a1_b = a1[b * H1 * H1:(b + 1) * H1 * H1, :]                   # (400, 32)
        g = jnp.dot(g2_ref[...], a1_b, preferred_element_type=jnp.float32)  # (16*88, 32)
        p2_rows.append(jnp.concatenate(
            [g[t * BLK2:(t + 1) * BLK2, :] for t in range(nt2)], axis=1))   # (88, 512)
    p2 = (p2_rows[0] if bt == 1 else jnp.concatenate(p2_rows, axis=0)).astype(jnp.bfloat16)
    a2 = jnp.dot(p2, w2_ref[...], preferred_element_type=jnp.float32) + b2_ref[...]
    a2 = jnp.maximum(a2, 0.0)                                         # (bt*88, 64) f32

    # conv3 (3x3, stride 1): same trick, 9 taps, one K=576 weight GEMM.
    p3_rows = []
    for b in range(bt):
        a2_b = a2[b * BLK2:(b + 1) * BLK2, :].astype(jnp.bfloat16)    # (88, 64)
        g = jnp.dot(g3_ref[...], a2_b, preferred_element_type=jnp.float32)  # (9*64, 64)
        p3_rows.append(jnp.concatenate(
            [g[t * BLK3:(t + 1) * BLK3, :] for t in range(nt3)], axis=1))   # (64, 576)
    p3 = (p3_rows[0] if bt == 1 else jnp.concatenate(p3_rows, axis=0)).astype(jnp.bfloat16)
    a3 = jnp.dot(p3, w3_ref[...], preferred_element_type=jnp.float32) + b3_ref[...]
    a3 = jnp.maximum(a3, 0.0)                                         # (bt*64, 64); rows >=49/img unused

    # bf16 output halves the only inter-kernel HBM hop.
    o_ref[...] = a3.astype(jnp.bfloat16).reshape(bt, BLK3, C3)


def conv_stack(patches_u8, prep):
    """patches_u8: (B, 400, 256) uint8 -> (B, 64, 64) bf16 (rows >= 49 are padding)."""
    B = patches_u8.shape[0]
    bt = _conv_batch_tile(B)
    nt2, nt3 = K2 * K2, K3 * K3
    flops = 2 * B * (H1 * H1 * (CIN * K1 * K1) * C1
                     + nt2 * BLK2 * (H1 * H1) * C1
                     + BLK2 * (nt2 * C1) * C2
                     + nt3 * BLK3 * BLK2 * C2
                     + BLK3 * (nt3 * C2) * C3)
    bytes_accessed = (B * (H1 * H1 * CIN * K1 * K1 + BLK3 * C3 * 2)
                      + 2 * (CIN * K1 * K1 * C1 + nt2 * BLK2 * H1 * H1
                             + nt2 * C1 * C2 + nt3 * BLK3 * BLK2 + nt3 * C2 * C3)
                      + 4 * (C1 + C2 + C3))
    return pl.pallas_call(
        _conv_stack_kernel,
        out_shape=jax.ShapeDtypeStruct((B, BLK3, C3), jnp.bfloat16),
        grid=(B // bt,),
        in_specs=[
            pl.BlockSpec((bt, H1 * H1, CIN * K1 * K1), lambda b: (b, 0, 0)),
            _const_spec(prep["w1"].shape),
            _const_spec(prep["b1"].shape),
            _const_spec(prep["g2"].shape),
            _const_spec(prep["w2"].shape),
            _const_spec(prep["b2"].shape),
            _const_spec(prep["g3"].shape),
            _const_spec(prep["w3"].shape),
            _const_spec(prep["b3"].shape),
        ],
        out_specs=pl.BlockSpec((bt, BLK3, C3), lambda b: (b, 0, 0)),
        compiler_params=pltpu.CompilerParams(
            dimension_semantics=("parallel",),
            vmem_limit_bytes=32 * 1024 * 1024),
        cost_estimate=pl.CostEstimate(flops=flops, transcendentals=0,
                                      bytes_accessed=bytes_accessed),
    )(patches_u8, prep["w1"], prep["b1"], prep["g2"], prep["w2"], prep["b2"],
      prep["g3"], prep["w3"], prep["b3"])


# ---------------------------------------------------------------------------
# Kernel 2: fused head (fc1 -> relu -> fc2 -> optional C51 per-action softmax)
# ---------------------------------------------------------------------------
def _fc_head_kernel(x_ref, w1_ref, b1_ref, w2_ref, b2_ref, *rest,
                    action_no, distributional):
    if distributional:
        sup_ref, o_ref = rest
    else:
        (o_ref,) = rest
    x = x_ref[...]                                                    # (bt, 4096) bf16
    h = jnp.dot(x, w1_ref[...], preferred_element_type=jnp.float32) + b1_ref[...]
    h = jnp.maximum(h, 0.0).astype(jnp.bfloat16)                      # (bt, 512)
    qs = jnp.dot(h, w2_ref[...], preferred_element_type=jnp.float32) + b2_ref[...]
    if not distributional:
        o_ref[...] = qs
        return
    # C51: per-action softmax expectation with a per-group max (matches the
    # reference exactly; a row-global max could underflow an entire group).
    sup = sup_ref[...]                                                # (1, 51)
    cols = []
    for a in range(action_no):
        g = qs[:, a * N_ATOMS:(a + 1) * N_ATOMS]                      # (bt, 51)
        e = jnp.exp(g - jnp.max(g, axis=-1, keepdims=True))
        num = jnp.sum(e * sup, axis=-1, keepdims=True)
        den = jnp.sum(e, axis=-1, keepdims=True)
        cols.append(num * pl.reciprocal(den, approx=True))
    o_ref[...] = jnp.concatenate(cols, axis=1)                        # (bt, action_no)


def fc_head(flat, prep, *, action_no, distributional):
    B = flat.shape[0]
    bt = _fc_batch_tile(B)
    out_size = prep["wfc2"].shape[1]
    args = [flat, prep["wfc1"], prep["bfc1"], prep["wfc2"], prep["bfc2"]]
    in_specs = [pl.BlockSpec((bt, FC_IN_PAD), lambda i: (i, 0)),
                _const_spec(prep["wfc1"].shape),
                _const_spec(prep["bfc1"].shape),
                _const_spec(prep["wfc2"].shape),
                _const_spec(prep["bfc2"].shape)]
    if distributional:
        args.append(prep["support"])
        in_specs.append(_const_spec(prep["support"].shape))
    flops = 2 * B * (FC_IN_PAD * FC_HIDDEN + FC_HIDDEN * out_size)
    transcendentals = B * out_size if distributional else 0
    bytes_accessed = (2 * B * FC_IN_PAD + 4 * B * action_no
                      + 2 * (FC_IN_PAD * FC_HIDDEN + FC_HIDDEN * out_size)
                      + 4 * (FC_HIDDEN + out_size)
                      + (4 * N_ATOMS if distributional else 0))
    return pl.pallas_call(
        partial(_fc_head_kernel, action_no=action_no, distributional=distributional),
        out_shape=jax.ShapeDtypeStruct((B, action_no), jnp.float32),
        grid=(B // bt,),
        in_specs=in_specs,
        out_specs=pl.BlockSpec((bt, action_no), lambda i: (i, 0)),
        compiler_params=pltpu.CompilerParams(
            dimension_semantics=("parallel",),
            vmem_limit_bytes=32 * 1024 * 1024),
        cost_estimate=pl.CostEstimate(flops=flops, transcendentals=transcendentals,
                                      bytes_accessed=bytes_accessed),
    )(*args)


# ---------------------------------------------------------------------------
# One-time parameter preparation (all per-forward weight prep hoisted here)
# ---------------------------------------------------------------------------
def _gather_matrix(w_in, k, s, h_out, w_out, blk, n_cols):
    """0/1 matrix selecting conv patches: block t=kh*k+kw, row n=oh*w_out+ow."""
    g = np.zeros((k * k * blk, n_cols), np.float32)
    for kh in range(k):
        for kw in range(k):
            t = kh * k + kw
            for oh in range(h_out):
                for ow in range(w_out):
                    g[t * blk + oh * w_out + ow, (s * oh + kh) * w_in + (s * ow + kw)] = 1.0
    return jnp.asarray(g, jnp.bfloat16)


def prepare_params(params, action_no, distributional):
    f32, bf16 = jnp.float32, jnp.bfloat16
    prep = {}
    # conv1: (Cin*k*k, Cout) with the /255 input scale folded in.
    prep["w1"] = (params["c1_w"].reshape(C1, CIN * K1 * K1).T.astype(f32) / 255.0).astype(bf16)
    prep["b1"] = params["c1_b"].reshape(1, C1).astype(f32)
    # conv2 / conv3: tap-concatenated weights -> single K=512 / K=576 GEMMs.
    prep["w2"] = jnp.transpose(params["c2_w"], (2, 3, 1, 0)).reshape(K2 * K2 * C1, C2).astype(bf16)
    prep["b2"] = params["c2_b"].reshape(1, C2).astype(f32)
    prep["w3"] = jnp.transpose(params["c3_w"], (2, 3, 1, 0)).reshape(K3 * K3 * C2, C3).astype(bf16)
    prep["b3"] = params["c3_b"].reshape(1, C3).astype(f32)
    # fc1: permuted to the kernel flatten order (p = h*7+w, c) and zero-padded to
    # 4096 rows so the padded conv-output rows (>=49) contribute nothing.
    w = params["fc1_w"].reshape(FC_HIDDEN, C3, H3 * H3)               # (512, 64, 49)
    w = jnp.transpose(w, (2, 1, 0))                                   # (49, 64, 512)
    w = jnp.pad(w, ((0, BLK3 - H3 * H3), (0, 0), (0, 0)))             # (64, 64, 512)
    prep["wfc1"] = w.reshape(FC_IN_PAD, FC_HIDDEN).astype(bf16)
    prep["bfc1"] = params["fc1_b"].reshape(1, FC_HIDDEN).astype(f32)
    out_size = params["fc2_w"].shape[0]
    prep["wfc2"] = params["fc2_w"].T.astype(bf16)
    prep["bfc2"] = params["fc2_b"].reshape(1, out_size).astype(f32)
    # Patch-gather matrices for the stride-2 and stride-1 convs.
    prep["g2"] = _gather_matrix(H1, K2, S2, H2, H2, BLK2, H1 * H1)    # (1408, 400)
    prep["g3"] = _gather_matrix(H2, K3, S3, H3, H3, BLK3, BLK2)       # (576, 88)
    if distributional:
        prep["support"] = jnp.asarray(params["support"], f32).reshape(1, N_ATOMS)
    return prep


# ---------------------------------------------------------------------------
# Forward pass
# ---------------------------------------------------------------------------
def _im2col_u8(x, k, s):
    """(B, C, H, W) uint8 -> (B, Ho*Wo, C*k*k) uint8, K ordered (c, kh, kw)."""
    B, C, H, W = x.shape
    Ho = (H - k) // s + 1
    Wo = (W - k) // s + 1
    ii = (jnp.arange(Ho) * s)[:, None] + jnp.arange(k)[None, :]
    jj = (jnp.arange(Wo) * s)[:, None] + jnp.arange(k)[None, :]
    p = x[:, :, ii[:, :, None, None], jj[None, None, :, :]]   # (B, C, Ho, k, Wo, k)
    p = p.transpose(0, 2, 4, 1, 3, 5)                         # (B, Ho, Wo, C, k, k)
    return p.reshape(B, Ho * Wo, C * k * k)


@partial(jax.jit, static_argnames=("action_no", "distributional"))
def atari_net_forward(prep, x_uint8, *, action_no, distributional=False):
    assert x_uint8.dtype == jnp.uint8, "The model expects states of type uint8"
    B = x_uint8.shape[0]
    patches = _im2col_u8(x_uint8, K1, S1)                     # (B, 400, 256) uint8
    act3 = conv_stack(patches, prep)                          # (B, 64, 64) bf16
    flat = act3.reshape(B, FC_IN_PAD)                         # (B, 4096); pad rows hit zero weights
    return fc_head(flat, prep, action_no=action_no, distributional=distributional)


# ---------------------------------------------------------------------------
# Pure-JAX reference and synthetic init
# ---------------------------------------------------------------------------
def reference_forward(params, x_uint8, *, action_no, distributional=False):
    x = x_uint8.astype(jnp.float32) / 255.0

    def conv(x, w, b, s):
        y = lax.conv_general_dilated(
            x, w, (s, s), "VALID", dimension_numbers=("NCHW", "OIHW", "NCHW"))
        return jax.nn.relu(y + b[None, :, None, None])

    x = conv(x, params["c1_w"], params["c1_b"], 4)
    x = conv(x, params["c2_w"], params["c2_b"], 2)
    x = conv(x, params["c3_w"], params["c3_b"], 1)
    flat = x.reshape(x.shape[0], -1)
    h = jax.nn.relu(flat @ params["fc1_w"].T + params["fc1_b"])
    qs = h @ params["fc2_w"].T + params["fc2_b"]
    if distributional:
        logits = qs.reshape(qs.shape[0], action_no, N_ATOMS)
        probs = jax.nn.softmax(logits, axis=2)
        return (probs * params["support"]).sum(axis=2)
    return qs


def init_params(key, action_no, distributional=False):
    def uinit(k, shape, fan_in):
        bound = 1.0 / float(fan_in) ** 0.5
        return jax.random.uniform(k, shape, jnp.float32, -bound, bound)

    ks = jax.random.split(key, 10)
    out_size = action_no * N_ATOMS if distributional else action_no
    p = {
        "c1_w": uinit(ks[0], (32, 4, 8, 8), 4 * 8 * 8),
        "c1_b": uinit(ks[1], (32,), 4 * 8 * 8),
        "c2_w": uinit(ks[2], (64, 32, 4, 4), 32 * 4 * 4),
        "c2_b": uinit(ks[3], (64,), 32 * 4 * 4),
        "c3_w": uinit(ks[4], (64, 64, 3, 3), 64 * 3 * 3),
        "c3_b": uinit(ks[5], (64,), 64 * 3 * 3),
        "fc1_w": uinit(ks[6], (512, 64 * 7 * 7), 64 * 7 * 7),
        "fc1_b": uinit(ks[7], (512,), 64 * 7 * 7),
        "fc2_w": uinit(ks[8], (out_size, 512), 512),
        "fc2_b": uinit(ks[9], (out_size,), 512),
    }
    if distributional:
        p["support"] = jnp.linspace(-10.0, 10.0, N_ATOMS).astype(jnp.float32)
    return p


if __name__ == "__main__":
    key = jax.random.PRNGKey(0)
    k_x, k_p = jax.random.split(key)

    B, action_no = 2, 6
    # AtariNet's head hard-codes 64*7*7 -> 84x84 inputs with 4 stacked frames.
    x = jax.random.randint(k_x, (B, 4, 84, 84), 0, 256, dtype=jnp.int32).astype(jnp.uint8)

    # --- plain DQN head ---
    params = init_params(k_p, action_no, distributional=False)
    prep = prepare_params(params, action_no, distributional=False)
    qs = jax.block_until_ready(
        atari_net_forward(prep, x, action_no=action_no, distributional=False))
    ref = reference_forward(params, x, action_no=action_no, distributional=False)
    assert qs.shape == (B, action_no)
    assert bool(jnp.allclose(qs, ref, atol=5e-2, rtol=5e-2)), "non-distributional mismatch"

    # --- distributional (C51) head ---
    params_d = init_params(k_p, action_no, distributional=True)
    prep_d = prepare_params(params_d, action_no, distributional=True)
    qd = jax.block_until_ready(
        atari_net_forward(prep_d, x, action_no=action_no, distributional=True))
    ref_d = reference_forward(params_d, x, action_no=action_no, distributional=True)
    assert qd.shape == (B, action_no)
    assert bool(jnp.allclose(qd, ref_d, atol=5e-2, rtol=5e-2)), "distributional mismatch"

    print("KERNEL_OK")
</pallas_src>

<mosaic_0001>
module attributes {stable_mosaic.version = 11 : i64} {
  func.func @_conv_stack_kernel(%arg0: i32, %arg1: memref<1x400x256xi8, #tpu.memory_space<vmem>>, %arg2: memref<256x32xbf16, #tpu.memory_space<vmem>>, %arg3: memref<1x32xf32, #tpu.memory_space<vmem>>, %arg4: memref<1408x400xbf16, #tpu.memory_space<vmem>>, %arg5: memref<512x64xbf16, #tpu.memory_space<vmem>>, %arg6: memref<1x64xf32, #tpu.memory_space<vmem>>, %arg7: memref<576x88xbf16, #tpu.memory_space<vmem>>, %arg8: memref<576x64xbf16, #tpu.memory_space<vmem>>, %arg9: memref<1x64xf32, #tpu.memory_space<vmem>>, %arg10: memref<1x64x64xbf16, #tpu.memory_space<vmem>>) attributes {dimension_semantics = [#tpu.dimension_semantics<parallel>], iteration_bounds = array<i64: 2>, scalar_prefetch = 0 : i64, scratch_operands = 0 : i64, tpu.core_type = #tpu.core_type<tc>, window_params = [{transform_indices = @transform_0, window_bounds = array<i64: 1, 400, 256>}, {pipeline_mode = #tpu.pipeline_mode<synchronous>, transform_indices = @transform_1, window_bounds = array<i64: 256, 32>}, {pipeline_mode = #tpu.pipeline_mode<synchronous>, transform_indices = @transform_2, window_bounds = array<i64: 1, 32>}, {pipeline_mode = #tpu.pipeline_mode<synchronous>, transform_indices = @transform_3, window_bounds = array<i64: 1408, 400>}, {pipeline_mode = #tpu.pipeline_mode<synchronous>, transform_indices = @transform_4, window_bounds = array<i64: 512, 64>}, {pipeline_mode = #tpu.pipeline_mode<synchronous>, transform_indices = @transform_5, window_bounds = array<i64: 1, 64>}, {pipeline_mode = #tpu.pipeline_mode<synchronous>, transform_indices = @transform_6, window_bounds = array<i64: 576, 88>}, {pipeline_mode = #tpu.pipeline_mode<synchronous>, transform_indices = @transform_7, window_bounds = array<i64: 576, 64>}, {pipeline_mode = #tpu.pipeline_mode<synchronous>, transform_indices = @transform_8, window_bounds = array<i64: 1, 64>}, {transform_indices = @transform_9, window_bounds = array<i64: 1, 64, 64>}]} {
    %c0 = arith.constant 0 : index
    %c0_0 = arith.constant 0 : index
    %c0_1 = arith.constant 0 : index
    %0 = vector.load %arg1[%c0, %c0_0, %c0_1] : memref<1x400x256xi8, #tpu.memory_space<vmem>>, vector<1x400x256xi8>
    %1 = arith.uitofp %0 : vector<1x400x256xi8> to vector<1x400x256xf32>
    %2 = arith.truncf %1 : vector<1x400x256xf32> to vector<1x400x256xbf16>
    %3 = vector.shape_cast %2 : vector<1x400x256xbf16> to vector<400x256xbf16>
    %c0_2 = arith.constant 0 : index
    %c0_3 = arith.constant 0 : index
    %4 = vector.load %arg2[%c0_2, %c0_3] : memref<256x32xbf16, #tpu.memory_space<vmem>>, vector<256x32xbf16>
    %cst = arith.constant dense<0.000000e+00> : vector<400x32xf32>
    %5 = tpu.matmul %3, %4, %cst {dimension_numbers = #tpu.dot_dimension_numbers<[1], [0], [0], [1], [0, 0, 1, 1], [], []>} : vector<400x256xbf16>, vector<256x32xbf16>, vector<400x32xf32> -> vector<400x32xf32>
    %c0_4 = arith.constant 0 : index
    %c0_5 = arith.constant 0 : index
    %6 = vector.load %arg3[%c0_4, %c0_5] : memref<1x32xf32, #tpu.memory_space<vmem>>, vector<1x32xf32>
    %7 = vector.broadcast %6 : vector<1x32xf32> to vector<400x32xf32>
    %8 = arith.addf %5, %7 : vector<400x32xf32>
    %cst_6 = arith.constant 0.000000e+00 : f32
    %9 = vector.broadcast %cst_6 : f32 to vector<400x32xf32>
    %10 = arith.maximumf %8, %9 : vector<400x32xf32>
    %11 = arith.truncf %10 : vector<400x32xf32> to vector<400x32xbf16>
    %c0_7 = arith.constant 0 : index
    %c0_8 = arith.constant 0 : index
    %12 = vector.load %arg4[%c0_7, %c0_8] : memref<1408x400xbf16, #tpu.memory_space<vmem>>, vector<1408x400xbf16>
    %cst_9 = arith.constant dense<0.000000e+00> : vector<1408x32xf32>
    %13 = tpu.matmul %12, %11, %cst_9 {dimension_numbers = #tpu.dot_dimension_numbers<[1], [0], [0], [1], [0, 0, 1, 1], [], []>} : vector<1408x400xbf16>, vector<400x32xbf16>, vector<1408x32xf32> -> vector<1408x32xf32>
    %14 = vector.extract_strided_slice %13 {offsets = [0, 0], sizes = [88, 32], strides = [1, 1]} : vector<1408x32xf32> to vector<88x32xf32>
    %15 = vector.extract_strided_slice %13 {offsets = [88, 0], sizes = [88, 32], strides = [1, 1]} : vector<1408x32xf32> to vector<88x32xf32>
    %16 = vector.extract_strided_slice %13 {offsets = [176, 0], sizes = [88, 32], strides = [1, 1]} : vector<1408x32xf32> to vector<88x32xf32>
    %17 = vector.extract_strided_slice %13 {offsets = [264, 0], sizes = [88, 32], strides = [1, 1]} : vector<1408x32xf32> to vector<88x32xf32>
    %18 = vector.extract_strided_slice %13 {offsets = [352, 0], sizes = [88, 32], strides = [1, 1]} : vector<1408x32xf32> to vector<88x32xf32>
    %19 = vector.extract_strided_slice %13 {offsets = [440, 0], sizes = [88, 32], strides = [1, 1]} : vector<1408x32xf32> to vector<88x32xf32>
    %20 = vector.extract_strided_slice %13 {offsets = [528, 0], sizes = [88, 32], strides = [1, 1]} : vector<1408x32xf32> to vector<88x32xf32>
    %21 = vector.extract_strided_slice %13 {offsets = [616, 0], sizes = [88, 32], strides = [1, 1]} : vector<1408x32xf32> to vector<88x32xf32>
    %22 = vector.extract_strided_slice %13 {offsets = [704, 0], sizes = [88, 32], strides = [1, 1]} : vector<1408x32xf32> to vector<88x32xf32>
    %23 = vector.extract_strided_slice %13 {offsets = [792, 0], sizes = [88, 32], strides = [1, 1]} : vector<1408x32xf32> to vector<88x32xf32>
    %24 = vector.extract_strided_slice %13 {offsets = [880, 0], sizes = [88, 32], strides = [1, 1]} : vector<1408x32xf32> to vector<88x32xf32>
    %25 = vector.extract_strided_slice %13 {offsets = [968, 0], sizes = [88, 32], strides = [1, 1]} : vector<1408x32xf32> to vector<88x32xf32>
    %26 = vector.extract_strided_slice %13 {offsets = [1056, 0], sizes = [88, 32], strides = [1, 1]} : vector<1408x32xf32> to vector<88x32xf32>
    %27 = vector.extract_strided_slice %13 {offsets = [1144, 0], sizes = [88, 32], strides = [1, 1]} : vector<1408x32xf32> to vector<88x32xf32>
    %28 = vector.extract_strided_slice %13 {offsets = [1232, 0], sizes = [88, 32], strides = [1, 1]} : vector<1408x32xf32> to vector<88x32xf32>
    %29 = vector.extract_strided_slice %13 {offsets = [1320, 0], sizes = [88, 32], strides = [1, 1]} : vector<1408x32xf32> to vector<88x32xf32>
    %30 = tpu.concatenate %14, %15, %16, %17, %18, %19, %20, %21, %22, %23, %24, %25, %26, %27, %28, %29 in 1 : vector<88x32xf32>, vector<88x32xf32>, vector<88x32xf32>, vector<88x32xf32>, vector<88x32xf32>, vector<88x32xf32>, vector<88x32xf32>, vector<88x32xf32>, vector<88x32xf32>, vector<88x32xf32>, vector<88x32xf32>, vector<88x32xf32>, vector<88x32xf32>, vector<88x32xf32>, vector<88x32xf32>, vector<88x32xf32> -> vector<88x512xf32>
    %31 = arith.truncf %30 : vector<88x512xf32> to vector<88x512xbf16>
    %c0_10 = arith.constant 0 : index
    %c0_11 = arith.constant 0 : index
    %32 = vector.load %arg5[%c0_10, %c0_11] : memref<512x64xbf16, #tpu.memory_space<vmem>>, vector<512x64xbf16>
    %cst_12 = arith.constant dense<0.000000e+00> : vector<88x64xf32>
    %33 = tpu.matmul %31, %32, %cst_12 {dimension_numbers = #tpu.dot_dimension_numbers<[1], [0], [0], [1], [0, 0, 1, 1], [], []>} : vector<88x512xbf16>, vector<512x64xbf16>, vector<88x64xf32> -> vector<88x64xf32>
    %c0_13 = arith.constant 0 : index
    %c0_14 = arith.constant 0 : index
    %34 = vector.load %arg6[%c0_13, %c0_14] : memref<1x64xf32, #tpu.memory_space<vmem>>, vector<1x64xf32>
    %35 = vector.broadcast %34 : vector<1x64xf32> to vector<88x64xf32>
    %36 = arith.addf %33, %35 : vector<88x64xf32>
    %cst_15 = arith.constant 0.000000e+00 : f32
    %37 = vector.broadcast %cst_15 : f32 to vector<88x64xf32>
    %38 = arith.maximumf %36, %37 : vector<88x64xf32>
    %39 = arith.truncf %38 : vector<88x64xf32> to vector<88x64xbf16>
    %c0_16 = arith.constant 0 : index
    %c0_17 = arith.constant 0 : index
    %40 = vector.load %arg7[%c0_16, %c0_17] : memref<576x88xbf16, #tpu.memory_space<vmem>>, vector<576x88xbf16>
    %cst_18 = arith.constant dense<0.000000e+00> : vector<576x64xf32>
    %41 = tpu.matmul %40, %39, %cst_18 {dimension_numbers = #tpu.dot_dimension_numbers<[1], [0], [0], [1], [0, 0, 1, 1], [], []>} : vector<576x88xbf16>, vector<88x64xbf16>, vector<576x64xf32> -> vector<576x64xf32>
    %42 = vector.extract_strided_slice %41 {offsets = [0, 0], sizes = [64, 64], strides = [1, 1]} : vector<576x64xf32> to vector<64x64xf32>
    %43 = vector.extract_strided_slice %41 {offsets = [64, 0], sizes = [64, 64], strides = [1, 1]} : vector<576x64xf32> to vector<64x64xf32>
    %44 = vector.extract_strided_slice %41 {offsets = [128, 0], sizes = [64, 64], strides = [1, 1]} : vector<576x64xf32> to vector<64x64xf32>
    %45 = vector.extract_strided_slice %41 {offsets = [192, 0], sizes = [64, 64], strides = [1, 1]} : vector<576x64xf32> to vector<64x64xf32>
    %46 = vector.extract_strided_slice %41 {offsets = [256, 0], sizes = [64, 64], strides = [1, 1]} : vector<576x64xf32> to vector<64x64xf32>
    %47 = vector.extract_strided_slice %41 {offsets = [320, 0], sizes = [64, 64], strides = [1, 1]} : vector<576x64xf32> to vector<64x64xf32>
    %48 = vector.extract_strided_slice %41 {offsets = [384, 0], sizes = [64, 64], strides = [1, 1]} : vector<576x64xf32> to vector<64x64xf32>
    %49 = vector.extract_strided_slice %41 {offsets = [448, 0], sizes = [64, 64], strides = [1, 1]} : vector<576x64xf32> to vector<64x64xf32>
    %50 = vector.extract_strided_slice %41 {offsets = [512, 0], sizes = [64, 64], strides = [1, 1]} : vector<576x64xf32> to vector<64x64xf32>
    %51 = tpu.concatenate %42, %43, %44, %45, %46, %47, %48, %49, %50 in 1 : vector<64x64xf32>, vector<64x64xf32>, vector<64x64xf32>, vector<64x64xf32>, vector<64x64xf32>, vector<64x64xf32>, vector<64x64xf32>, vector<64x64xf32>, vector<64x64xf32> -> vector<64x576xf32>
    %52 = arith.truncf %51 : vector<64x576xf32> to vector<64x576xbf16>
    %c0_19 = arith.constant 0 : index
    %c0_20 = arith.constant 0 : index
    %53 = vector.load %arg8[%c0_19, %c0_20] : memref<576x64xbf16, #tpu.memory_space<vmem>>, vector<576x64xbf16>
    %cst_21 = arith.constant dense<0.000000e+00> : vector<64x64xf32>
    %54 = tpu.matmul %52, %53, %cst_21 {dimension_numbers = #tpu.dot_dimension_numbers<[1], [0], [0], [1], [0, 0, 1, 1], [], []>} : vector<64x576xbf16>, vector<576x64xbf16>, vector<64x64xf32> -> vector<64x64xf32>
    %c0_22 = arith.constant 0 : index
    %c0_23 = arith.constant 0 : index
    %55 = vector.load %arg9[%c0_22, %c0_23] : memref<1x64xf32, #tpu.memory_space<vmem>>, vector<1x64xf32>
    %56 = vector.broadcast %55 : vector<1x64xf32> to vector<64x64xf32>
    %57 = arith.addf %54, %56 : vector<64x64xf32>
    %cst_24 = arith.constant 0.000000e+00 : f32
    %58 = vector.broadcast %cst_24 : f32 to vector<64x64xf32>
    %59 = arith.maximumf %57, %58 : vector<64x64xf32>
    %60 = arith.truncf %59 : vector<64x64xf32> to vector<64x64xbf16>
    %61 = vector.shape_cast %60 : vector<64x64xbf16> to vector<1x64x64xbf16>
    %c0_25 = arith.constant 0 : index
    %c0_26 = arith.constant 0 : index
    %c0_27 = arith.constant 0 : index
    %62 = vector.load %arg10[%c0_25, %c0_26, %c0_27] : memref<1x64x64xbf16, #tpu.memory_space<vmem>>, vector<1x64x64xbf16>
    tpu.vector_store %arg10[%c0_25, %c0_26, %c0_27], %61 {strides = array<i32>} : memref<1x64x64xbf16, #tpu.memory_space<vmem>>, vector<1x64x64xbf16>,
    return
  }
  func.func @transform_0(%arg0: i32) -> (i32, i32, i32) {
    %c0_i32 = arith.constant 0 : i32
    %c0_i32_0 = arith.constant 0 : i32
    %c0_i32_1 = arith.constant 0 : i32
    return %arg0, %c0_i32, %c0_i32_0 : i32, i32, i32
  }
  func.func @transform_1(%arg0: i32) -> (i32, i32) {
    %c0_i32 = arith.constant 0 : i32
    %c0_i32_0 = arith.constant 0 : i32
    %c0_i32_1 = arith.constant 0 : i32
    return %c0_i32, %c0_i32_0 : i32, i32
  }
  func.func @transform_2(%arg0: i32) -> (i32, i32) {
    %c0_i32 = arith.constant 0 : i32
    %c0_i32_0 = arith.constant 0 : i32
    %c0_i32_1 = arith.constant 0 : i32
    return %c0_i32, %c0_i32_0 : i32, i32
  }
  func.func @transform_3(%arg0: i32) -> (i32, i32) {
    %c0_i32 = arith.constant 0 : i32
    %c0_i32_0 = arith.constant 0 : i32
    %c0_i32_1 = arith.constant 0 : i32
    return %c0_i32, %c0_i32_0 : i32, i32
  }
  func.func @transform_4(%arg0: i32) -> (i32, i32) {
    %c0_i32 = arith.constant 0 : i32
    %c0_i32_0 = arith.constant 0 : i32
    %c0_i32_1 = arith.constant 0 : i32
    return %c0_i32, %c0_i32_0 : i32, i32
  }
  func.func @transform_5(%arg0: i32) -> (i32, i32) {
    %c0_i32 = arith.constant 0 : i32
    %c0_i32_0 = arith.constant 0 : i32
    %c0_i32_1 = arith.constant 0 : i32
    return %c0_i32, %c0_i32_0 : i32, i32
  }
  func.func @transform_6(%arg0: i32) -> (i32, i32) {
    %c0_i32 = arith.constant 0 : i32
    %c0_i32_0 = arith.constant 0 : i32
    %c0_i32_1 = arith.constant 0 : i32
    return %c0_i32, %c0_i32_0 : i32, i32
  }
  func.func @transform_7(%arg0: i32) -> (i32, i32) {
    %c0_i32 = arith.constant 0 : i32
    %c0_i32_0 = arith.constant 0 : i32
    %c0_i32_1 = arith.constant 0 : i32
    return %c0_i32, %c0_i32_0 : i32, i32
  }
  func.func @transform_8(%arg0: i32) -> (i32, i32) {
    %c0_i32 = arith.constant 0 : i32
    %c0_i32_0 = arith.constant 0 : i32
    %c0_i32_1 = arith.constant 0 : i32
    return %c0_i32, %c0_i32_0 : i32, i32
  }
  func.func @transform_9(%arg0: i32) -> (i32, i32, i32) {
    %c0_i32 = arith.constant 0 : i32
    %c0_i32_0 = arith.constant 0 : i32
    %c0_i32_1 = arith.constant 0 : i32
    return %arg0, %c0_i32, %c0_i32_0 : i32, i32, i32
  }
}

module attributes {stable_mosaic.version = 11 : i64} {
  func.func @_fc_head_kernel(%arg0: i32, %arg1: memref<2x4096xbf16, #tpu.memory_space<vmem>>, %arg2: memref<4096x512xbf16, #tpu.memory_space<vmem>>, %arg3: memref<1x512xf32, #tpu.memory_space<vmem>>, %arg4: memref<512x6xbf16, #tpu.memory_space<vmem>>, %arg5: memref<1x6xf32, #tpu.memory_space<vmem>>, %arg6: memref<2x6xf32, #tpu.memory_space<vmem>>) attributes {dimension_semantics = [#tpu.dimension_semantics<parallel>], iteration_bounds = array<i64: 1>, scalar_prefetch = 0 : i64, scratch_operands = 0 : i64, tpu.core_type = #tpu.core_type<tc>, window_params = [{transform_indices = @transform_0, window_bounds = array<i64: 2, 4096>}, {pipeline_mode = #tpu.pipeline_mode<synchronous>, transform_indices = @transform_1, window_bounds = array<i64: 4096, 512>}, {pipeline_mode = #tpu.pipeline_mode<synchronous>, transform_indices = @transform_2, window_bounds = array<i64: 1, 512>}, {pipeline_mode = #tpu.pipeline_mode<synchronous>, transform_indices = @transform_3, window_bounds = array<i64: 512, 6>}, {pipeline_mode = #tpu.pipeline_mode<synchronous>, transform_indices = @transform_4, window_bounds = array<i64: 1, 6>}, {transform_indices = @transform_5, window_bounds = array<i64: 2, 6>}]} {
    %c0 = arith.constant 0 : index
    %c0_0 = arith.constant 0 : index
    %0 = vector.load %arg1[%c0, %c0_0] : memref<2x4096xbf16, #tpu.memory_space<vmem>>, vector<2x4096xbf16>
    %c0_1 = arith.constant 0 : index
    %c0_2 = arith.constant 0 : index
    %1 = vector.load %arg2[%c0_1, %c0_2] : memref<4096x512xbf16, #tpu.memory_space<vmem>>, vector<4096x512xbf16>
    %cst = arith.constant dense<0.000000e+00> : vector<2x512xf32>
    %2 = tpu.matmul %0, %1, %cst {dimension_numbers = #tpu.dot_dimension_numbers<[1], [0], [0], [1], [0, 0, 1, 1], [], []>} : vector<2x4096xbf16>, vector<4096x512xbf16>, vector<2x512xf32> -> vector<2x512xf32>
    %c0_3 = arith.constant 0 : index
    %c0_4 = arith.constant 0 : index
    %3 = vector.load %arg3[%c0_3, %c0_4] : memref<1x512xf32, #tpu.memory_space<vmem>>, vector<1x512xf32>
    %4 = vector.broadcast %3 : vector<1x512xf32> to vector<2x512xf32>
    %5 = arith.addf %2, %4 : vector<2x512xf32>
    %cst_5 = arith.constant 0.000000e+00 : f32
    %6 = vector.broadcast %cst_5 : f32 to vector<2x512xf32>
    %7 = arith.maximumf %5, %6 : vector<2x512xf32>
    %8 = arith.truncf %7 : vector<2x512xf32> to vector<2x512xbf16>
    %c0_6 = arith.constant 0 : index
    %c0_7 = arith.constant 0 : index
    %9 = vector.load %arg4[%c0_6, %c0_7] : memref<512x6xbf16, #tpu.memory_space<vmem>>, vector<512x6xbf16>
    %cst_8 = arith.constant dense<0.000000e+00> : vector<2x6xf32>
    %10 = tpu.matmul %8, %9, %cst_8 {dimension_numbers = #tpu.dot_dimension_numbers<[1], [0], [0], [1], [0, 0, 1, 1], [], []>} : vector<2x512xbf16>, vector<512x6xbf16>, vector<2x6xf32> -> vector<2x6xf32>
    %c0_9 = arith.constant 0 : index
    %c0_10 = arith.constant 0 : index
    %11 = vector.load %arg5[%c0_9, %c0_10] : memref<1x6xf32, #tpu.memory_space<vmem>>, vector<1x6xf32>
    %12 = vector.broadcast %11 : vector<1x6xf32> to vector<2x6xf32>
    %13 = arith.addf %10, %12 : vector<2x6xf32>
    %c0_11 = arith.constant 0 : index
    %c0_12 = arith.constant 0 : index
    %14 = vector.load %arg6[%c0_11, %c0_12] : memref<2x6xf32, #tpu.memory_space<vmem>>, vector<2x6xf32>
    tpu.vector_store %arg6[%c0_11, %c0_12], %13 {strides = array<i32>} : memref<2x6xf32, #tpu.memory_space<vmem>>, vector<2x6xf32>,
    return
  }
  func.func @transform_0(%arg0: i32) -> (i32, i32) {
    %c0_i32 = arith.constant 0 : i32
    %c0_i32_0 = arith.constant 0 : i32
    return %arg0, %c0_i32 : i32, i32
  }
  func.func @transform_1(%arg0: i32) -> (i32, i32) {
    %c0_i32 = arith.constant 0 : i32
    %c0_i32_0 = arith.constant 0 : i32
    %c0_i32_1 = arith.constant 0 : i32
    return %c0_i32, %c0_i32_0 : i32, i32
  }
  func.func @transform_2(%arg0: i32) -> (i32, i32) {
    %c0_i32 = arith.constant 0 : i32
    %c0_i32_0 = arith.constant 0 : i32
    %c0_i32_1 = arith.constant 0 : i32
    return %c0_i32, %c0_i32_0 : i32, i32
  }
  func.func @transform_3(%arg0: i32) -> (i32, i32) {
    %c0_i32 = arith.constant 0 : i32
    %c0_i32_0 = arith.constant 0 : i32
    %c0_i32_1 = arith.constant 0 : i32
    return %c0_i32, %c0_i32_0 : i32, i32
  }
  func.func @transform_4(%arg0: i32) -> (i32, i32) {
    %c0_i32 = arith.constant 0 : i32
    %c0_i32_0 = arith.constant 0 : i32
    %c0_i32_1 = arith.constant 0 : i32
    return %c0_i32, %c0_i32_0 : i32, i32
  }
  func.func @transform_5(%arg0: i32) -> (i32, i32) {
    %c0_i32 = arith.constant 0 : i32
    %c0_i32_0 = arith.constant 0 : i32
    return %arg0, %c0_i32 : i32, i32
  }
}

</mosaic_0001>

<bundles_post_ra>
// kernel: atari_net_forward.2
= control target key start
LH: loop header
LB: loop body
LE: loop exit
PB: predicated region body
PF: predicated region fallthrough
CT: control target
= control target key end

     0   :  { %s9911_s30 = smov 0   ;;  %s12847_s0 = inlined_call_operand.vmem [shape: u8[2,400,256], index: 0, kind: input, shape index: {}]   ;;  %s12848_s1 = inlined_call_operand.vmem [shape: bf16[256,32], index: 1, kind: input, shape index: {}]   ;;  %s12849_s2 = inlined_call_operand.vmem [shape: f32[1,32], index: 2, kind: input, shape index: {}]   ;;  %s12850_s3 = inlined_call_operand.vmem [shape: bf16[1408,400], index: 3, kind: input, shape index: {}]   ;;  %s12851_s4 = inlined_call_operand.vmem [shape: bf16[512,64], index: 4, kind: input, shape index: {}]   ;;  %s12852_s5 = inlined_call_operand.vmem [shape: f32[1,64], index: 5, kind: input, shape index: {}]   ;;  %s12853_s6 = inlined_call_operand.vmem [shape: bf16[576,88], index: 6, kind: input, shape index: {}]   ;;  %s12854_s7 = inlined_call_operand.vmem [shape: bf16[576,64], index: 7, kind: input, shape index: {}]   ;;  %s12855_s8 = inlined_call_operand.vmem [shape: f32[1,64], index: 8, kind: input, shape index: {}]   ;;  %s12856_s9 = inlined_call_operand.vmem [shape: bf16[2,64,64], index: 9, kind: output, shape index: {}]  }
   0x1 LB: > { %s7489_s10 = sadd.s32 4294967295, %s9855_s30   ;;  %p7493_p0 = scmp.ge.s32.totalorder %s9855_s30, 1  ;;  %s9855_s30 = sphi %s9911_s30, %s19_s30  }
   0x2   : > { %p287_p1 = scmp.lt.s32.totalorder %s9855_s30, 3 }
   0x4   : > { %p288_p2 = pnand %p7493_p0, %p287_p1 }
   0x6   : > { %291 = sbr.rel (%p288_p2) target bundleno = 2661 (0xa65), region = 56 }
   0xd   : > { %v9201_v0 = vld [vmem:[%s12848_s1] sm:$0xff]   ;;  %v9857_v1 = vmov 0   ;;  %p323_p3 = scmp.lt.s32.totalorder %s7489_s10, 1  ;;  %v9202_v2 = vld [vmem:[%s12848_s1 + $0x8] sm:$0xff]   ;;  %v9203_v3 = vld [vmem:[%s12848_s1 + $0x10] sm:$0xff]   ;;  %vm3151_vm0 = vcmask 130048  }
   0xe   : > { %819 = vmatprep.subr.bf16.mxu0 %v9857_v1  ;;  %8503 = vmatprep.subr.bf16.mxu1 %v9857_v1  ;;  %v9204_v4 = vld [vmem:[%s12848_s1 + $0x18] sm:$0xff]   ;;  %v9205_v5 = vld [vmem:[%s12848_s1 + $0x20] sm:$0xff]   ;;  %v9206_v10 = vld [vmem:[%s12848_s1 + $0x28] sm:$0xff]   ;;  %s9858_s26 = smov 32   ;;  %s9859_s12 = smov 64   ;;  %vm5418_vm1 = vcmask 261120  }
   0xf   : > { %820 = vmatpush1.bf16.msra.mxu0 %v9201_v0  ;;  %s12914_s10 = smov (!%p323_p3, %s7489_s10), 1  ;;  %v9207_v12 = vld [vmem:[%s12848_s1 + $0x30] sm:$0xff]   ;;  %v9208_v13 = vld [vmem:[%s12848_s1 + $0x38] sm:$0xff]   ;;  %v9209_v14 = vld [vmem:[%s12848_s1 + $0x40] sm:$0xff]   ;;  %s9860_s19 = smov 96   ;;  %vm5430_vm2 = vcmask 523264  }
  0x10   : > { %821 = vmatprep.subr.bf16.mxu0 %v9857_v1  ;;  %s8778_s17 = smul.u32 200, %s12914_s10  ;;  %v9210_v15 = vld [vmem:[%s12848_s1 + $0x48] sm:$0xff]   ;;  %v9211_v16 = vld [vmem:[%s12848_s1 + $0x50] sm:$0xff]   ;;  %v9212_v17 = vld [vmem:[%s12848_s1 + $0x58] sm:$0xff]   ;;  %vm5442_vm3 = vcmask 785408   ;;  %vm6269_vm4 = vcmask 719872  }
  0x11   : > { %v9213_v18 = vld [vmem:[%s12848_s1 + $0x60] sm:$0xff]   ;;  %v9214_v19 = vld [vmem:[%s12848_s1 + $0x68] sm:$0xff]   ;;  %v9215_v20 = vld [vmem:[%s12848_s1 + $0x70] sm:$0xff]   ;;  %vm6378_vm5 = vcmask 1043456   ;;  %vm7425_vm6 = vcmask 519168  }
  0x12   : > { %s9942_s22 = scalar_lea.vmem %s12847_s0, %s8778_s17  ;;  %v9216_v23 = vld [vmem:[%s12848_s1 + $0x78] sm:$0xff]  }
  0x13   : > { %822 = vmatpush1.bf16.msra.mxu0 %v9202_v2  ;;  %v334_v6 = vld [vmem:[%s9942_s22] sm:$0xf]  ;;  %v335_v7 = vld [vmem:[%s9942_s22 + $0x4] sm:$0xf]  ;;  %v336_v21 = vld [vmem:[%s9942_s22 + $0x8] sm:$0xf] }
  0x14   : > { %823 = vmatprep.subr.bf16.mxu0 %v9857_v1  ;;  %v384_v8 = vunpack.c.l.u8.bf16 %v334_v6  ;;  %v385_v9 = vunpack.c.l.u8.bf16 %v335_v7  ;;  %v337_v22 = vld [vmem:[%s9942_s22 + $0xc] sm:$0xf]  ;;  %v386_v24 = vunpack.c.l.u8.bf16 %v336_v21  ;;  %v338_v27 = vld [vmem:[%s9942_s22 + $0x10] sm:$0xf]  ;;  %v339_v28 = vld [vmem:[%s9942_s22 + $0x14] sm:$0xf] }
  0x15   : > { %v387_v25 = vunpack.c.l.u8.bf16 %v337_v22  ;;  %v388_v30 = vunpack.c.l.u8.bf16 %v338_v27  ;;  %v389_v31 = vunpack.c.l.u8.bf16 %v339_v28  ;;  %v340_v33 = vld [vmem:[%s9942_s22 + $0x18] sm:$0xf]  ;;  %v341_v34 = vld [vmem:[%s9942_s22 + $0x1c] sm:$0xf]  ;;  %v342_v39 = vld [vmem:[%s9942_s22 + $0x20] sm:$0xf] }
  0x16   : > { %v7499_v11 = vcombine.high %v384_v8, %v385_v9  ;;  %v7498_v26 = vcombine.low %v384_v8, %v385_v9  ;;  %v390_v36 = vunpack.c.l.u8.bf16 %v340_v33  ;;  %v391_v37 = vunpack.c.l.u8.bf16 %v341_v34  ;;  %v343_v40 = vld [vmem:[%s9942_s22 + $0x24] sm:$0xf]  ;;  %v344_v45 = vld [vmem:[%s9942_s22 + $0x28] sm:$0xf]  ;;  %v345_v46 = vld [vmem:[%s9942_s22 + $0x2c] sm:$0xf] }
  0x17   : > { %824 = vmatpush1.bf16.msra.mxu0 %v9203_v3  ;;  %v7501_v29 = vcombine.high %v386_v24, %v387_v25  ;;  %v7500_v32 = vcombine.low %v386_v24, %v387_v25  ;;  %v7503_v35 = vcombine.high %v388_v30, %v389_v31  ;;  %v7502_v38 = vcombine.low %v388_v30, %v389_v31  ;;  %v346_v51 = vld [vmem:[%s9942_s22 + $0x30] sm:$0xf]  ;;  %v347_v52 = vld [vmem:[%s9942_s22 + $0x34] sm:$0xf]  ;;  %v348_v57 = vld [vmem:[%s9942_s22 + $0x38] sm:$0xf] }
  0x18   : > { %825 = vmatprep.subr.bf16.mxu0 %v9857_v1  ;;  %851 = vmatprep.mubr.bf16.mxu0 %v7499_v11  ;;  %v7505_v41 = vcombine.high %v390_v36, %v391_v37  ;;  %v392_v42 = vunpack.c.l.u8.bf16 %v342_v39  ;;  %v393_v43 = vunpack.c.l.u8.bf16 %v343_v40  ;;  %v7504_v44 = vcombine.low %v390_v36, %v391_v37  ;;  %v349_v58 = vld [vmem:[%s9942_s22 + $0x3c] sm:$0xf]  ;;  %v350_v63 = vld [vmem:[%s9942_s22 + $0x40] sm:$0xf]  ;;  %v351_v0 = vld [vmem:[%s9942_s22 + $0x44] sm:$0xf] }
  0x19   : > { %v394_v48 = vunpack.c.l.u8.bf16 %v344_v45  ;;  %v395_v49 = vunpack.c.l.u8.bf16 %v345_v46  ;;  %v396_v54 = vunpack.c.l.u8.bf16 %v346_v51  ;;  %v397_v55 = vunpack.c.l.u8.bf16 %v347_v52  ;;  %v352_v6 = vld [vmem:[%s9942_s22 + $0x48] sm:$0xf]  ;;  %v353_v7 = vld [vmem:[%s9942_s22 + $0x4c] sm:$0xf]  ;;  %v358_v24 = vld [vmem:[%s9942_s22 + $0x60] sm:$0xf] }
  0x1a   : > { %v7507_v47 = vcombine.high %v392_v42, %v393_v43  ;;  %v7506_v50 = vcombine.low %v392_v42, %v393_v43  ;;  %v398_v60 = vunpack.c.l.u8.bf16 %v348_v57  ;;  %v399_v61 = vunpack.c.l.u8.bf16 %v349_v58  ;;  %v359_v25 = vld [vmem:[%s9942_s22 + $0x64] sm:$0xf]  ;;  %v360_v30 = vld [vmem:[%s9942_s22 + $0x68] sm:$0xf]  ;;  %v361_v31 = vld [vmem:[%s9942_s22 + $0x6c] sm:$0xf] }
  0x1b   : > { %826 = vmatpush1.bf16.msra.mxu0 %v9204_v4  ;;  %v7509_v53 = vcombine.high %v394_v48, %v395_v49  ;;  %v7508_v56 = vcombine.low %v394_v48, %v395_v49  ;;  %v7511_v59 = vcombine.high %v396_v54, %v397_v55  ;;  %v7510_v62 = vcombine.low %v396_v54, %v397_v55  ;;  %v362_v36 = vld [vmem:[%s9942_s22 + $0x70] sm:$0xf]  ;;  %v363_v37 = vld [vmem:[%s9942_s22 + $0x74] sm:$0xf]  ;;  %v364_v42 = vld [vmem:[%s9942_s22 + $0x78] sm:$0xf] }
  0x1c   : > { %827 = vmatprep.subr.bf16.mxu0 %v9857_v1  ;;  %v7513_v2 = vcombine.high %v398_v60, %v399_v61  ;;  %v400_v3 = vunpack.c.l.u8.bf16 %v350_v63  ;;  %v401_v4 = vunpack.c.l.u8.bf16 %v351_v0  ;;  %v402_v9 = vunpack.c.l.u8.bf16 %v352_v6  ;;  %v365_v43 = vld [vmem:[%s9942_s22 + $0x7c] sm:$0xf]  ;;  %v366_v48 = vld [vmem:[%s9942_s22 + $0x80] sm:$0xf]  ;;  %v367_v49 = vld [vmem:[%s9942_s22 + $0x84] sm:$0xf] }
  0x1d   : > { %v408_v27 = vunpack.c.l.u8.bf16 %v358_v24  ;;  %v409_v28 = vunpack.c.l.u8.bf16 %v359_v25  ;;  %v410_v33 = vunpack.c.l.u8.bf16 %v360_v30  ;;  %v411_v34 = vunpack.c.l.u8.bf16 %v361_v31  ;;  %v368_v55 = vld [vmem:[%s9942_s22 + $0x88] sm:$0xf]  ;;  %v379_v24 = vld [vmem:[%s9942_s22 + $0xb4] sm:$0xf]  ;;  %v381_v30 = vld [vmem:[%s9942_s22 + $0xbc] sm:$0xf] }
  0x1e   : > { %v7515_v8 = vcombine.high %v400_v3, %v401_v4  ;;  %v7514_v11 = vcombine.low %v400_v3, %v401_v4  ;;  %v412_v39 = vunpack.c.l.u8.bf16 %v362_v36  ;;  %v413_v40 = vunpack.c.l.u8.bf16 %v363_v37  ;;  %v372_v3 = vld [vmem:[%s9942_s22 + $0x98] sm:$0xf]  ;;  %v373_v4 = vld [vmem:[%s9942_s22 + $0x9c] sm:$0xf] }
  0x1f   : > { %828 = vmatpush1.bf16.msra.mxu0 %v9205_v5  ;;  %v7512_v5 = vcombine.low %v398_v60, %v399_v61  ;;  %v414_v45 = vunpack.c.l.u8.bf16 %v364_v42  ;;  %v415_v46 = vunpack.c.l.u8.bf16 %v365_v43  ;;  %v416_v51 = vunpack.c.l.u8.bf16 %v366_v48  ;;  %v370_v60 = vld [vmem:[%s9942_s22 + $0x90] sm:$0xf]  ;;  %v371_v61 = vld [vmem:[%s9942_s22 + $0x94] sm:$0xf] }
  0x20   : > { %829 = vmatprep.subr.bf16.mxu0 %v9857_v1  ;;  %v417_v52 = vunpack.c.l.u8.bf16 %v367_v49  ;;  %v418_v57 = vunpack.c.l.u8.bf16 %v368_v55  ;;  %v420_v63 = vunpack.c.l.u8.bf16 %v370_v60  ;;  %v421_v0 = vunpack.c.l.u8.bf16 %v371_v61  ;;  %v382_v61 = vld [vmem:[%s9942_s22 + $0xc0] sm:$0xf] }
  0x21   : > { %v422_v6 = vunpack.c.l.u8.bf16 %v372_v3 }
  0x22   : > { %v7531_v54 = vcombine.high %v416_v51, %v417_v52 }
  0x23   : > { %830 = vmatpush1.bf16.msra.mxu0 %v9206_v10  ;;  %v403_v10 = vunpack.c.l.u8.bf16 %v353_v7  ;;  %v423_v7 = vunpack.c.l.u8.bf16 %v373_v4 }
  0x24   : > { %831 = vmatprep.subr.bf16.mxu0 %v9857_v1 }
  0x27   : > { %832 = vmatpush1.bf16.msra.mxu0 %v9207_v12  ;;  %v354_v12 = vld [vmem:[%s9942_s22 + $0x50] sm:$0xf] }
  0x28   : > { %833 = vmatprep.subr.bf16.mxu0 %v9857_v1 }
  0x2b   : > { %834 = vmatpush1.bf16.msra.mxu0 %v9208_v13  ;;  %v355_v13 = vld [vmem:[%s9942_s22 + $0x54] sm:$0xf] }
  0x2c   : > { %835 = vmatprep.subr.bf16.mxu0 %v9857_v1 }
  0x2f   : > { %836 = vmatpush1.bf16.msra.mxu0 %v9209_v14  ;;  %v7517_v14 = vcombine.high %v402_v9, %v403_v10 }
  0x30   : > { %837 = vmatprep.subr.bf16.mxu0 %v9857_v1 }
  0x33   : > { %838 = vmatpush1.bf16.msra.mxu0 %v9210_v15  ;;  %v404_v15 = vunpack.c.l.u8.bf16 %v354_v12 }
  0x34   : > { %839 = vmatprep.subr.bf16.mxu0 %v9857_v1 }
  0x37   : > { %840 = vmatpush1.bf16.msra.mxu0 %v9211_v16  ;;  %v405_v16 = vunpack.c.l.u8.bf16 %v355_v13 }
  0x38   : > { %841 = vmatprep.subr.bf16.mxu0 %v9857_v1 }
  0x3b   : > { %842 = vmatpush1.bf16.msra.mxu0 %v9212_v17  ;;  %v7516_v17 = vcombine.low %v402_v9, %v403_v10  ;;  %v374_v9 = vld [vmem:[%s9942_s22 + $0xa0] sm:$0xf]  ;;  %v375_v10 = vld [vmem:[%s9942_s22 + $0xa4] sm:$0xf] }
  0x3c   : > { %843 = vmatprep.subr.bf16.mxu0 %v9857_v1  ;;  %v424_v12 = vunpack.c.l.u8.bf16 %v374_v9  ;;  %v425_v13 = vunpack.c.l.u8.bf16 %v375_v10 }
  0x3f   : > { %844 = vmatpush1.bf16.msra.mxu0 %v9213_v18  ;;  %v356_v18 = vld [vmem:[%s9942_s22 + $0x58] sm:$0xf] }
  0x40   : > { %845 = vmatprep.subr.bf16.mxu0 %v9857_v1  ;;  %v406_v21 = vunpack.c.l.u8.bf16 %v356_v18 }
  0x43   : > { %846 = vmatpush1.bf16.msra.mxu0 %v9214_v19  ;;  %v357_v19 = vld [vmem:[%s9942_s22 + $0x5c] sm:$0xf] }
  0x44   : > { %847 = vmatprep.subr.bf16.mxu0 %v9857_v1  ;;  %v407_v22 = vunpack.c.l.u8.bf16 %v357_v19 }
  0x47   : > { %848 = vmatpush1.bf16.msra.mxu0 %v9215_v20  ;;  %v7519_v20 = vcombine.high %v404_v15, %v405_v16 }
  0x48   : > { %849 = vmatprep.subr.bf16.mxu0 %v9857_v1 }
  0x4b   : > { %850 = vmatpush1.bf16.msra.mxu0 %v9216_v23  ;;  %v7518_v23 = vcombine.low %v404_v15, %v405_v16  ;;  %v376_v15 = vld [vmem:[%s9942_s22 + $0xa8] sm:$0xf]  ;;  %v377_v16 = vld [vmem:[%s9942_s22 + $0xac] sm:$0xf] }
  0x4c   : > { %3416 = vmatprep.subr.bf16.mxu0 %v9857_v1  ;;  %v426_v18 = vunpack.c.l.u8.bf16 %v376_v15  ;;  %v427_v19 = vunpack.c.l.u8.bf16 %v377_v16 }
  0x4e   : > { %852 = vmatmul.mubr.bf16.vlgmr.msra.gmra.mrb[0].mxu0 %v7498_v26  ;;  %v7521_v26 = vcombine.high %v406_v21, %v407_v22 }
  0x4f   : > { %859 = vmatprep.mubr.bf16.mxu0 %v7501_v29  ;;  %v7520_v29 = vcombine.low %v406_v21, %v407_v22  ;;  %v7541_v21 = vcombine.high %v426_v18, %v427_v19  ;;  %v7540_v22 = vcombine.low %v426_v18, %v427_v19 }
  0x56   : > { %860 = vmatmul.mubr.bf16.gmra.mrb[4].mxu0 %v7500_v32  ;;  %v7523_v32 = vcombine.high %v408_v27, %v409_v28 }
  0x57   : > { %867 = vmatprep.mubr.bf16.mxu0 %v7503_v35  ;;  %v7522_v35 = vcombine.low %v408_v27, %v409_v28 }
  0x5e   : > { %868 = vmatmul.mubr.bf16.gmra.mrb[8].mxu0 %v7502_v38  ;;  %v7525_v38 = vcombine.high %v410_v33, %v411_v34 }
  0x5f   : > { %875 = vmatprep.mubr.bf16.mxu0 %v7505_v41  ;;  %v7524_v41 = vcombine.low %v410_v33, %v411_v34  ;;  %v10044_v33 = vld [vmem:[%s12849_s2] ss:$0 sm:$0xff] }
  0x66   : > { %876 = vmatmul.mubr.bf16.gmra.mrb[12].mxu0 %v7504_v44  ;;  %v7527_v44 = vcombine.high %v412_v39, %v413_v40 }
  0x67   : > { %883 = vmatprep.mubr.bf16.mxu0 %v7507_v47  ;;  %v7526_v47 = vcombine.low %v412_v39, %v413_v40  ;;  %v9219_v39 = vld [vmem:[%s12850_s3 + $0x6e4] ss:$16 sps:$4 sm:$0xff]  }
  0x68   : > { %3888 = vmatprep.mubr.bf16.mxu1 %v9219_v39 }
  0x6e   : > { %884 = vmatmul.mubr.bf16.gmra.mrb[16].mxu0 %v7506_v50  ;;  %v7529_v50 = vcombine.high %v414_v45, %v415_v46 }
  0x6f   : > { %891 = vmatprep.mubr.bf16.mxu0 %v7509_v53  ;;  %v7528_v53 = vcombine.low %v414_v45, %v415_v46 }
  0x76   : > { %892 = vmatmul.mubr.bf16.gmra.mrb[20].mxu0 %v7508_v56  ;;  %v369_v56 = vld [vmem:[%s9942_s22 + $0x8c] sm:$0xf] }
  0x77   : > { %899 = vmatprep.mubr.bf16.mxu0 %v7511_v59  ;;  %v419_v58 = vunpack.c.l.u8.bf16 %v369_v56  ;;  %v7530_v59 = vcombine.low %v416_v51, %v417_v52 }
  0x7e   : > { %900 = vmatmul.mubr.bf16.gmra.mrb[24].mxu0 %v7510_v62  ;;  %v7533_v62 = vcombine.high %v418_v57, %v419_v58 }
  0x7f   : > { %907 = vmatprep.mubr.bf16.mxu0 %v7513_v2  ;;  %v7532_v2 = vcombine.low %v418_v57, %v419_v58 }
  0x86   : > { %908 = vmatmul.mubr.bf16.gmra.mrb[28].mxu0 %v7512_v5  ;;  %v7535_v5 = vcombine.high %v420_v63, %v421_v0 }
  0x87   : > { %915 = vmatprep.mubr.bf16.mxu0 %v7515_v8  ;;  %v7534_v8 = vcombine.low %v420_v63, %v421_v0 }
  0x8e   : > { %916 = vmatmul.mubr.bf16.gmra.mrb[32].mxu0 %v7514_v11  ;;  %v7537_v11 = vcombine.high %v422_v6, %v423_v7 }
  0x8f   : > { %923 = vmatprep.mubr.bf16.mxu0 %v7517_v14  ;;  %v7536_v14 = vcombine.low %v422_v6, %v423_v7 }
  0x96   : > { %924 = vmatmul.mubr.bf16.gmra.mrb[36].mxu0 %v7516_v17  ;;  %v7539_v17 = vcombine.high %v424_v12, %v425_v13 }
  0x97   : > { %931 = vmatprep.mubr.bf16.mxu0 %v7519_v20  ;;  %v7538_v20 = vcombine.low %v424_v12, %v425_v13 }
  0x9e   : > { %932 = vmatmul.mubr.bf16.gmra.mrb[40].mxu0 %v7518_v23  ;;  %v378_v23 = vld [vmem:[%s9942_s22 + $0xb0] sm:$0xf] }
  0x9f   : > { %939 = vmatprep.mubr.bf16.mxu0 %v7521_v26  ;;  %v428_v25 = vunpack.c.l.u8.bf16 %v378_v23  ;;  %v429_v26 = vunpack.c.l.u8.bf16 %v379_v24 }
  0xa1   : > { %v7543_v27 = vcombine.high %v428_v25, %v429_v26  ;;  %v7542_v28 = vcombine.low %v428_v25, %v429_v26 }
  0xa6   : > { %940 = vmatmul.mubr.bf16.gmra.mrb[44].mxu0 %v7520_v29  ;;  %v380_v29 = vld [vmem:[%s9942_s22 + $0xb8] sm:$0xf] }
  0xa7   : > { %947 = vmatprep.mubr.bf16.mxu0 %v7523_v32  ;;  %v430_v31 = vunpack.c.l.u8.bf16 %v380_v29  ;;  %v431_v32 = vunpack.c.l.u8.bf16 %v381_v30 }
  0xa9   : > { %v7545_v34 = vcombine.high %v430_v31, %v431_v32 }
  0xae   : > { %948 = vmatmul.mubr.bf16.gmra.mrb[48].mxu0 %v7522_v35  ;;  %v7544_v35 = vcombine.low %v430_v31, %v431_v32 }
  0xaf   : > { %955 = vmatprep.mubr.bf16.mxu0 %v7525_v38 }
  0xb6   : > { %956 = vmatmul.mubr.bf16.gmra.mrb[52].mxu0 %v7524_v41 }
  0xb7   : > { %963 = vmatprep.mubr.bf16.mxu0 %v7527_v44 }
  0xbe   : > { %964 = vmatmul.mubr.bf16.gmra.mrb[56].mxu0 %v7526_v47 }
  0xbf   : > { %971 = vmatprep.mubr.bf16.mxu0 %v7529_v50 }
  0xc6   : > { %972 = vmatmul.mubr.bf16.gmra.mrb[60].mxu0 %v7528_v53 }
  0xc7   : > { %979 = vmatprep.mubr.bf16.mxu0 %v7531_v54 }
  0xce   : > { %980 = vmatmul.mubr.bf16.gmra.mrb[64].mxu0 %v7530_v59 }
  0xcf   : > { %987 = vmatprep.mubr.bf16.mxu0 %v7533_v62  ;;  %v383_v62 = vld [vmem:[%s9942_s22 + $0xc4] sm:$0xf] }
  0xd0   : > { %v433_v3 = vunpack.c.l.u8.bf16 %v383_v62 }
  0xd6   : > { %988 = vmatmul.mubr.bf16.gmra.mrb[68].mxu0 %v7532_v2  ;;  %v432_v2 = vunpack.c.l.u8.bf16 %v382_v61 }
  0xd7   : > { %995 = vmatprep.mubr.bf16.mxu0 %v7535_v5 }
  0xd8   : > { %v7547_v5 = vcombine.high %v432_v2, %v433_v3  ;;  %v7546_v7 = vcombine.low %v432_v2, %v433_v3 }
  0xde   : > { %996 = vmatmul.mubr.bf16.gmra.mrb[72].mxu0 %v7534_v8 }
  0xdf   : > { %1003 = vmatprep.mubr.bf16.mxu0 %v7537_v11 }
  0xe6   : > { %1004 = vmatmul.mubr.bf16.gmra.mrb[76].mxu0 %v7536_v14 }
  0xe7   : > { %1011 = vmatprep.mubr.bf16.mxu0 %v7539_v17 }
  0xee   : > { %1012 = vmatmul.mubr.bf16.gmra.mrb[80].mxu0 %v7538_v20 }
  0xef   : > { %1019 = vmatprep.mubr.bf16.mxu0 %v7541_v21 }
  0xf6   : > { %1020 = vmatmul.mubr.bf16.gmra.mrb[84].mxu0 %v7540_v22 }
  0xf7   : > { %1027 = vmatprep.mubr.bf16.mxu0 %v7543_v27 }
  0xfe   : > { %1028 = vmatmul.mubr.bf16.gmra.mrb[88].mxu0 %v7542_v28 }
  0xff   : > { %1035 = vmatprep.mubr.bf16.mxu0 %v7545_v34 }
 0x106   : > { %1036 = vmatmul.mubr.bf16.gmra.mrb[92].mxu0 %v7544_v35 }
 0x107   : > { %1043 = vmatprep.mubr.bf16.mxu0 %v7547_v5 }
 0x10e   : > { %1044 = vmatmul.mubr.bf16.gmra.mrb[96].mxu0 %v7546_v7 }
 0x121   : > { %v853_v36 = vpop.f32.mrb[0].mxu0 }
 0x122   : > { %v854_v37 = vadd.f32 %v10044_v33, %v853_v36  ;;  %v855_v38 = vpop.f32.mrb[1].mxu0 }
 0x123   : > { %v856_v40 = vpop.f32.mrb[2].mxu0 }
 0x124   : > { %v857_v41 = vadd.f32 %v10044_v33, %v856_v40  ;;  %v858_v42 = vpop.f32.mrb[3].mxu0  ;;  %v1052_v43 = vmax.f32 %v854_v37, 0.0 }
 0x126   : > { %v1053_v44 = vmax.f32 %v857_v41, 0.0 }
 0x128   : > { %v1102_v45 = vpack.c.bf16 %v1053_v44, %v1052_v43 }
 0x129   : > { %v861_v46 = vpop.f32.mrb[4].mxu0 }
 0x12a   : > { %v862_v47 = vadd.f32 %v10044_v33, %v861_v46  ;;  %v863_v48 = vpop.f32.mrb[5].mxu0  ;;  %3417 = vmatpush1.bf16.msra.mxu0 %v1102_v45  ;;  %8519 = vmatpush1.bf16.msra.mxu1 %v1102_v45 }
 0x12b   : > { %v864_v49 = vpop.f32.mrb[6].mxu0  ;;  %3418 = vmatprep.subr.bf16.mxu0 %v9857_v1  ;;  %8504 = vmatprep.subr.bf16.mxu1 %v9857_v1 }
 0x12c   : > { %v865_v50 = vadd.f32 %v10044_v33, %v864_v49  ;;  %v866_v51 = vpop.f32.mrb[7].mxu0  ;;  %v1054_v52 = vmax.f32 %v862_v47, 0.0 }
 0x12e   : > { %v1055_v53 = vmax.f32 %v865_v50, 0.0 }
 0x130   : > { %v1103_v54 = vpack.c.bf16 %v1055_v53, %v1054_v52 }
 0x131   : > { %v869_v55 = vpop.f32.mrb[8].mxu0 }
 0x132   : > { %v870_v56 = vadd.f32 %v10044_v33, %v869_v55  ;;  %v871_v57 = vpop.f32.mrb[9].mxu0  ;;  %3419 = vmatpush1.bf16.msra.mxu0 %v1103_v54  ;;  %8520 = vmatpush1.bf16.msra.mxu1 %v1103_v54 }
 0x133   : > { %v872_v58 = vpop.f32.mrb[10].mxu0  ;;  %3420 = vmatprep.subr.bf16.mxu0 %v9857_v1  ;;  %8505 = vmatprep.subr.bf16.mxu1 %v9857_v1 }
 0x134   : > { %v873_v59 = vadd.f32 %v10044_v33, %v872_v58  ;;  %v874_v60 = vpop.f32.mrb[11].mxu0  ;;  %v1056_v63 = vmax.f32 %v870_v56, 0.0 }
 0x136   : > { %v1057_v0 = vmax.f32 %v873_v59, 0.0 }
 0x138   : > { %v1104_v4 = vpack.c.bf16 %v1057_v0, %v1056_v63 }
 0x139   : > { %v877_v6 = vpop.f32.mrb[12].mxu0 }
 0x13a   : > { %v878_v8 = vadd.f32 %v10044_v33, %v877_v6  ;;  %v879_v9 = vpop.f32.mrb[13].mxu0  ;;  %3421 = vmatpush1.bf16.msra.mxu0 %v1104_v4  ;;  %8521 = vmatpush1.bf16.msra.mxu1 %v1104_v4 }
 0x13b   : > { %v880_v10 = vpop.f32.mrb[14].mxu0  ;;  %3422 = vmatprep.subr.bf16.mxu0 %v9857_v1  ;;  %8506 = vmatprep.subr.bf16.mxu1 %v9857_v1 }
 0x13c   : > { %v881_v11 = vadd.f32 %v10044_v33, %v880_v10  ;;  %v882_v12 = vpop.f32.mrb[15].mxu0  ;;  %v1058_v13 = vmax.f32 %v878_v8, 0.0 }
 0x13e   : > { %v1059_v14 = vmax.f32 %v881_v11, 0.0 }
 0x140   : > { %v1105_v15 = vpack.c.bf16 %v1059_v14, %v1058_v13 }
 0x141   : > { %v885_v16 = vpop.f32.mrb[16].mxu0 }
 0x142   : > { %v886_v17 = vadd.f32 %v10044_v33, %v885_v16  ;;  %v887_v18 = vpop.f32.mrb[17].mxu0  ;;  %3423 = vmatpush1.bf16.msra.mxu0 %v1105_v15  ;;  %8522 = vmatpush1.bf16.msra.mxu1 %v1105_v15 }
 0x143   : > { %v888_v19 = vpop.f32.mrb[18].mxu0  ;;  %3424 = vmatprep.subr.bf16.mxu0 %v9857_v1  ;;  %8507 = vmatprep.subr.bf16.mxu1 %v9857_v1 }
 0x144   : > { %v889_v20 = vadd.f32 %v10044_v33, %v888_v19  ;;  %v890_v21 = vpop.f32.mrb[19].mxu0  ;;  %v1060_v22 = vmax.f32 %v886_v17, 0.0 }
 0x146   : > { %v1061_v23 = vmax.f32 %v889_v20, 0.0 }
 0x148   : > { %v1106_v24 = vpack.c.bf16 %v1061_v23, %v1060_v22 }
 0x149   : > { %v893_v25 = vpop.f32.mrb[20].mxu0 }
 0x14a   : > { %v894_v26 = vadd.f32 %v10044_v33, %v893_v25  ;;  %v895_v27 = vpop.f32.mrb[21].mxu0  ;;  %3425 = vmatpush1.bf16.msra.mxu0 %v1106_v24  ;;  %8523 = vmatpush1.bf16.msra.mxu1 %v1106_v24 }
 0x14b   : > { %v896_v28 = vpop.f32.mrb[22].mxu0  ;;  %3426 = vmatprep.subr.bf16.mxu0 %v9857_v1  ;;  %8508 = vmatprep.subr.bf16.mxu1 %v9857_v1 }
 0x14c   : > { %v897_v29 = vadd.f32 %v10044_v33, %v896_v28  ;;  %v898_v30 = vpop.f32.mrb[23].mxu0  ;;  %v1062_v31 = vmax.f32 %v894_v26, 0.0 }
 0x14e   : > { %v1063_v32 = vmax.f32 %v897_v29, 0.0 }
 0x150   : > { %v1107_v34 = vpack.c.bf16 %v1063_v32, %v1062_v31 }
 0x151   : > { %v901_v35 = vpop.f32.mrb[24].mxu0 }
 0x152   : > { %v902_v36 = vadd.f32 %v10044_v33, %v901_v35  ;;  %v903_v37 = vpop.f32.mrb[25].mxu0  ;;  %3427 = vmatpush1.bf16.msra.mxu0 %v1107_v34  ;;  %8524 = vmatpush1.bf16.msra.mxu1 %v1107_v34 }
 0x153   : > { %v904_v38 = vpop.f32.mrb[26].mxu0  ;;  %3428 = vmatprep.subr.bf16.mxu0 %v9857_v1  ;;  %8509 = vmatprep.subr.bf16.mxu1 %v9857_v1 }
 0x154   : > { %v905_v39 = vadd.f32 %v10044_v33, %v904_v38  ;;  %v906_v40 = vpop.f32.mrb[27].mxu0  ;;  %v1064_v41 = vmax.f32 %v902_v36, 0.0 }
 0x156   : > { %v1065_v42 = vmax.f32 %v905_v39, 0.0 }
 0x158   : > { %v1108_v43 = vpack.c.bf16 %v1065_v42, %v1064_v41 }
 0x159   : > { %v909_v44 = vpop.f32.mrb[28].mxu0 }
 0x15a   : > { %v910_v45 = vadd.f32 %v10044_v33, %v909_v44  ;;  %v911_v46 = vpop.f32.mrb[29].mxu0  ;;  %3429 = vmatpush1.bf16.msra.mxu0 %v1108_v43  ;;  %8525 = vmatpush1.bf16.msra.mxu1 %v1108_v43 }
 0x15b   : > { %v912_v47 = vpop.f32.mrb[30].mxu0  ;;  %3430 = vmatprep.subr.bf16.mxu0 %v9857_v1  ;;  %8510 = vmatprep.subr.bf16.mxu1 %v9857_v1 }
 0x15c   : > { %v913_v48 = vadd.f32 %v10044_v33, %v912_v47  ;;  %v914_v49 = vpop.f32.mrb[31].mxu0  ;;  %v1066_v50 = vmax.f32 %v910_v45, 0.0 }
 0x15e   : > { %v1067_v51 = vmax.f32 %v913_v48, 0.0 }
 0x160   : > { %v1109_v52 = vpack.c.bf16 %v1067_v51, %v1066_v50 }
 0x161   : > { %v917_v53 = vpop.f32.mrb[32].mxu0 }
 0x162   : > { %v918_v54 = vadd.f32 %v10044_v33, %v917_v53  ;;  %v919_v55 = vpop.f32.mrb[33].mxu0  ;;  %3431 = vmatpush1.bf16.msra.mxu0 %v1109_v52  ;;  %8526 = vmatpush1.bf16.msra.mxu1 %v1109_v52 }
 0x163   : > { %v920_v56 = vpop.f32.mrb[34].mxu0  ;;  %3432 = vmatprep.subr.bf16.mxu0 %v9857_v1  ;;  %8511 = vmatprep.subr.bf16.mxu1 %v9857_v1 }
 0x164   : > { %v921_v57 = vadd.f32 %v10044_v33, %v920_v56  ;;  %v922_v58 = vpop.f32.mrb[35].mxu0  ;;  %v1068_v59 = vmax.f32 %v918_v54, 0.0 }
 0x166   : > { %v1069_v60 = vmax.f32 %v921_v57, 0.0 }
 0x168   : > { %v1110_v61 = vpack.c.bf16 %v1069_v60, %v1068_v59 }
 0x169   : > { %v925_v62 = vpop.f32.mrb[36].mxu0 }
 0x16a   : > { %v926_v63 = vadd.f32 %v10044_v33, %v925_v62  ;;  %v927_v0 = vpop.f32.mrb[37].mxu0  ;;  %3433 = vmatpush1.bf16.msra.mxu0 %v1110_v61  ;;  %8527 = vmatpush1.bf16.msra.mxu1 %v1110_v61 }
 0x16b   : > { %v928_v2 = vpop.f32.mrb[38].mxu0  ;;  %3434 = vmatprep.subr.bf16.mxu0 %v9857_v1  ;;  %8512 = vmatprep.subr.bf16.mxu1 %v9857_v1  ;;  %v9217_v0 = vld [vmem:[%s12850_s3 + $0x6e0] ss:$16 sps:$4 sm:$0xff]  }
 0x16c   : > { %v929_v3 = vadd.f32 %v10044_v33, %v928_v2  ;;  %v930_v4 = vpop.f32.mrb[39].mxu0  ;;  %v1070_v5 = vmax.f32 %v926_v63, 0.0 }
 0x16d   : > { %v9220_v4 = vld [vmem:[%s12850_s3 + $0x704] ss:$16 sps:$4 sm:$0xff]  }
 0x16e   : > { %v1071_v6 = vmax.f32 %v929_v3, 0.0 }
 0x170   : > { %v1111_v7 = vpack.c.bf16 %v1071_v6, %v1070_v5 }
 0x171   : > { %v933_v8 = vpop.f32.mrb[40].mxu0 }
 0x172   : > { %v934_v9 = vadd.f32 %v10044_v33, %v933_v8  ;;  %v935_v10 = vpop.f32.mrb[41].mxu0  ;;  %3435 = vmatpush1.bf16.msra.mxu0 %v1111_v7  ;;  %8528 = vmatpush1.bf16.msra.mxu1 %v1111_v7 }
 0x173   : > { %v936_v11 = vpop.f32.mrb[42].mxu0  ;;  %3436 = vmatprep.subr.bf16.mxu0 %v9857_v1  ;;  %8513 = vmatprep.subr.bf16.mxu1 %v9857_v1 }
 0x174   : > { %v937_v12 = vadd.f32 %v10044_v33, %v936_v11  ;;  %v938_v13 = vpop.f32.mrb[43].mxu0  ;;  %v1072_v14 = vmax.f32 %v934_v9, 0.0  ;;  %v9222_v11 = vld [vmem:[%s12850_s3 + $0x700] ss:$16 sps:$4 sm:$0xff]  }
 0x175   : > { %v9223_v13 = vld [vmem:[%s12850_s3 + $0x724] ss:$16 sps:$4 sm:$0xff]  }
 0x176   : > { %v1073_v15 = vmax.f32 %v937_v12, 0.0 }
 0x178   : > { %v1112_v16 = vpack.c.bf16 %v1073_v15, %v1072_v14 }
 0x179   : > { %v941_v17 = vpop.f32.mrb[44].mxu0 }
 0x17a   : > { %v942_v18 = vadd.f32 %v10044_v33, %v941_v17  ;;  %v943_v19 = vpop.f32.mrb[45].mxu0  ;;  %3437 = vmatpush1.bf16.msra.mxu0 %v1112_v16  ;;  %8529 = vmatpush1.bf16.msra.mxu1 %v1112_v16 }
 0x17b   : > { %v944_v20 = vpop.f32.mrb[46].mxu0  ;;  %3438 = vmatprep.subr.bf16.mxu0 %v9857_v1  ;;  %8514 = vmatprep.subr.bf16.mxu1 %v9857_v1 }
 0x17c   : > { %v945_v21 = vadd.f32 %v10044_v33, %v944_v20  ;;  %v946_v22 = vpop.f32.mrb[47].mxu0  ;;  %v1074_v23 = vmax.f32 %v942_v18, 0.0 }
 0x17d   : > { %v9225_v22 = vld [vmem:[%s12850_s3 + $0x720] ss:$16 sps:$4 sm:$0xff]  }
 0x17e   : > { %v1075_v24 = vmax.f32 %v945_v21, 0.0 }
 0x180   : > { %v1113_v25 = vpack.c.bf16 %v1075_v24, %v1074_v23  ;;  %v9226_v24 = vld [vmem:[%s12850_s3 + $0x744] ss:$16 sps:$4 sm:$0xff]  }
 0x181   : > { %v949_v26 = vpop.f32.mrb[48].mxu0 }
 0x182   : > { %v950_v27 = vadd.f32 %v10044_v33, %v949_v26  ;;  %v951_v28 = vpop.f32.mrb[49].mxu0  ;;  %3439 = vmatpush1.bf16.msra.mxu0 %v1113_v25  ;;  %8530 = vmatpush1.bf16.msra.mxu1 %v1113_v25 }
 0x183   : > { %v952_v29 = vpop.f32.mrb[50].mxu0  ;;  %3440 = vmatprep.subr.bf16.mxu0 %v9857_v1  ;;  %8515 = vmatprep.subr.bf16.mxu1 %v9857_v1 }
 0x184   : > { %v953_v30 = vadd.f32 %v10044_v33, %v952_v29  ;;  %v954_v31 = vpop.f32.mrb[51].mxu0  ;;  %v1076_v32 = vmax.f32 %v950_v27, 0.0 }
 0x186   : > { %v1077_v34 = vmax.f32 %v953_v30, 0.0 }
 0x188   : > { %v1114_v35 = vpack.c.bf16 %v1077_v34, %v1076_v32  ;;  %v9228_v34 = vld [vmem:[%s12850_s3 + $0x740] ss:$16 sps:$4 sm:$0xff]  }
 0x189   : > { %v957_v36 = vpop.f32.mrb[52].mxu0 }
 0x18a   : > { %v958_v37 = vadd.f32 %v10044_v33, %v957_v36  ;;  %v959_v38 = vpop.f32.mrb[53].mxu0  ;;  %3441 = vmatpush1.bf16.msra.mxu0 %v1114_v35  ;;  %8531 = vmatpush1.bf16.msra.mxu1 %v1114_v35  ;;  %v9229_v36 = vld [vmem:[%s12850_s3 + $0x764] ss:$16 sps:$4 sm:$0xff]  }
 0x18b   : > { %v960_v39 = vpop.f32.mrb[54].mxu0  ;;  %3442 = vmatprep.subr.bf16.mxu0 %v9857_v1  ;;  %8516 = vmatprep.subr.bf16.mxu1 %v9857_v1 }
 0x18c   : > { %v961_v40 = vadd.f32 %v10044_v33, %v960_v39  ;;  %v962_v41 = vpop.f32.mrb[55].mxu0  ;;  %v1078_v42 = vmax.f32 %v958_v37, 0.0 }
 0x18e   : > { %v1079_v43 = vmax.f32 %v961_v40, 0.0 }
 0x190   : > { %v1115_v44 = vpack.c.bf16 %v1079_v43, %v1078_v42 }
 0x191   : > { %v965_v45 = vpop.f32.mrb[56].mxu0 }
 0x192   : > { %v966_v46 = vadd.f32 %v10044_v33, %v965_v45  ;;  %v967_v47 = vpop.f32.mrb[57].mxu0  ;;  %3443 = vmatpush1.bf16.msra.mxu0 %v1115_v44  ;;  %8532 = vmatpush1.bf16.msra.mxu1 %v1115_v44  ;;  %v9231_v45 = vld [vmem:[%s12850_s3 + $0x760] ss:$16 sps:$4 sm:$0xff]  }
 0x193   : > { %v968_v48 = vpop.f32.mrb[58].mxu0  ;;  %3444 = vmatprep.subr.bf16.mxu0 %v9857_v1  ;;  %8517 = vmatprep.subr.bf16.mxu1 %v9857_v1  ;;  %v9232_v47 = vld [vmem:[%s12850_s3 + $0x784] ss:$16 sps:$4 sm:$0xff]  }
 0x194   : > { %v969_v49 = vadd.f32 %v10044_v33, %v968_v48  ;;  %v970_v50 = vpop.f32.mrb[59].mxu0  ;;  %v1080_v51 = vmax.f32 %v966_v46, 0.0 }
 0x196   : > { %v1081_v52 = vmax.f32 %v969_v49, 0.0 }
 0x198   : > { %v1116_v53 = vpack.c.bf16 %v1081_v52, %v1080_v51 }
 0x199   : > { %v973_v54 = vpop.f32.mrb[60].mxu0 }
 0x19a   : > { %v974_v55 = vadd.f32 %v10044_v33, %v973_v54  ;;  %v975_v56 = vpop.f32.mrb[61].mxu0  ;;  %3445 = vmatpush1.bf16.msra.mxu0 %v1116_v53  ;;  %8533 = vmatpush1.bf16.msra.mxu1 %v1116_v53 }
 0x19b   : > { %v976_v57 = vpop.f32.mrb[62].mxu0  ;;  %3446 = vmatprep.subr.bf16.mxu0 %v9857_v1  ;;  %8518 = vmatprep.subr.bf16.mxu1 %v9857_v1  ;;  %v9234_v56 = vld [vmem:[%s12850_s3 + $0x780] ss:$16 sps:$4 sm:$0xff]  }
 0x19c   : > { %v977_v58 = vadd.f32 %v10044_v33, %v976_v57  ;;  %v978_v59 = vpop.f32.mrb[63].mxu0  ;;  %v1082_v60 = vmax.f32 %v974_v55, 0.0 }
 0x19e   : > { %v1083_v61 = vmax.f32 %v977_v58, 0.0  ;;  %v9235_v58 = vld [vmem:[%s12850_s3 + $0x7a4] ss:$16 sps:$4 sm:$0xff]  }
 0x1a0   : > { %v1117_v62 = vpack.c.bf16 %v1083_v61, %v1082_v60 }
 0x1a1   : > { %v981_v63 = vpop.f32.mrb[64].mxu0 }
 0x1a2   : > { %v982_v2 = vadd.f32 %v10044_v33, %v981_v63  ;;  %v983_v3 = vpop.f32.mrb[65].mxu0  ;;  %3447 = vmatpush1.bf16.msra.mxu0 %v1117_v62  ;;  %8534 = vmatpush1.bf16.msra.mxu1 %v1117_v62 }
 0x1a3   : > { %v984_v5 = vpop.f32.mrb[66].mxu0  ;;  %4153 = vmatprep.subr.bf16.mxu1 %v9857_v1 }
 0x1a4   : > { %v1084_v6 = vmax.f32 %v982_v2, 0.0  ;;  %v985_v7 = vadd.f32 %v10044_v33, %v984_v5  ;;  %v986_v8 = vpop.f32.mrb[67].mxu0  ;;  %v9238_v5 = vld [vmem:[%s12850_s3 + $0x7c4] ss:$16 sps:$4 sm:$0xff]  }
 0x1a5   : > { %3889 = vmatmul.mubr.bf16.vlgmr.msra.gmra.mrb[0].mxu1 %v9217_v0  ;;  %v9241_v8 = vld [vmem:[%s12850_s3 + $0x7e4] ss:$16 sps:$4 sm:$0xff]  }
 0x1a6   : > { %v1085_v9 = vmax.f32 %v985_v7, 0.0  ;;  %3896 = vmatprep.mubr.bf16.mxu1 %v9220_v4  ;;  %v9237_v4 = vld [vmem:[%s12850_s3 + $0x7a0] ss:$16 sps:$4 sm:$0xff]  }
 0x1a8   : > { %v1118_v10 = vpack.c.bf16 %v1085_v9, %v1084_v6  ;;  %v9240_v6 = vld [vmem:[%s12850_s3 + $0x7c0] ss:$16 sps:$4 sm:$0xff]  }
 0x1a9   : > { %v989_v12 = vpop.f32.mrb[68].mxu0 }
 0x1aa   : > { %4154 = vmatpush1.bf16.msra.mxu1 %v1118_v10  ;;  %v990_v14 = vadd.f32 %v10044_v33, %v989_v12  ;;  %v991_v15 = vpop.f32.mrb[69].mxu0 }
 0x1ab   : > { %v992_v16 = vpop.f32.mrb[70].mxu0  ;;  %4155 = vmatprep.subr.bf16.mxu1 %v9857_v1 }
 0x1ac   : > { %v1086_v17 = vmax.f32 %v990_v14, 0.0  ;;  %v993_v18 = vadd.f32 %v10044_v33, %v992_v16  ;;  %v994_v19 = vpop.f32.mrb[71].mxu0 }
 0x1ad   : > { %3897 = vmatmul.mubr.bf16.gmra.mrb[4].mxu1 %v9222_v11  ;;  %v9246_v19 = vld [vmem:[%s12850_s3 + $0x800] ss:$16 sps:$4 sm:$0xff]  }
 0x1ae   : > { %3904 = vmatprep.mubr.bf16.mxu1 %v9223_v13  ;;  %v1087_v20 = vmax.f32 %v993_v18, 0.0  ;;  %v9244_v18 = vld [vmem:[%s12850_s3 + $0x804] ss:$16 sps:$4 sm:$0xff]  }
 0x1b0   : > { %v1119_v21 = vpack.c.bf16 %v1087_v20, %v1086_v17  ;;  %v9243_v17 = vld [vmem:[%s12850_s3 + $0x7e0] ss:$16 sps:$4 sm:$0xff]   ;;  %v9247_v20 = vld [vmem:[%s12850_s3 + $0x824] ss:$16 sps:$4 sm:$0xff]  }
 0x1b1   : > { %v997_v23 = vpop.f32.mrb[72].mxu0 }
 0x1b2   : > { %4156 = vmatpush1.bf16.msra.mxu1 %v1119_v21  ;;  %v998_v25 = vadd.f32 %v10044_v33, %v997_v23  ;;  %v999_v26 = vpop.f32.mrb[73].mxu0  ;;  %v9249_v21 = vld [vmem:[%s12850_s3 + $0x820] ss:$16 sps:$4 sm:$0xff]  }
 0x1b3   : > { %v1000_v27 = vpop.f32.mrb[74].mxu0  ;;  %4157 = vmatprep.subr.bf16.mxu1 %v9857_v1 }
 0x1b4   : > { %v1088_v28 = vmax.f32 %v998_v25, 0.0  ;;  %v1001_v29 = vadd.f32 %v10044_v33, %v1000_v27  ;;  %v1002_v30 = vpop.f32.mrb[75].mxu0 }
 0x1b5   : > { %3905 = vmatmul.mubr.bf16.gmra.mrb[8].mxu1 %v9225_v22  ;;  %v9250_v22 = vld [vmem:[%s12850_s3 + $0x844] ss:$16 sps:$4 sm:$0xff]   ;;  %v9252_v30 = vld [vmem:[%s12850_s3 + $0x840] ss:$16 sps:$4 sm:$0xff]  }
 0x1b6   : > { %3912 = vmatprep.mubr.bf16.mxu1 %v9226_v24  ;;  %v1089_v31 = vmax.f32 %v1001_v29, 0.0 }
 0x1b8   : > { %v1120_v32 = vpack.c.bf16 %v1089_v31, %v1088_v28  ;;  %v9253_v31 = vld [vmem:[%s12850_s3 + $0x864] ss:$16 sps:$4 sm:$0xff]  }
 0x1b9   : > { %v1005_v35 = vpop.f32.mrb[76].mxu0 }
 0x1ba   : > { %4158 = vmatpush1.bf16.msra.mxu1 %v1120_v32  ;;  %v1006_v37 = vadd.f32 %v10044_v33, %v1005_v35  ;;  %v1007_v38 = vpop.f32.mrb[77].mxu0  ;;  %v9255_v35 = vld [vmem:[%s12850_s3 + $0x860] ss:$16 sps:$4 sm:$0xff]  }
 0x1bb   : > { %v1008_v39 = vpop.f32.mrb[78].mxu0  ;;  %4159 = vmatprep.subr.bf16.mxu1 %v9857_v1  ;;  %v9259_v38 = vld [vmem:[%s12850_s3 + $0x8a4] ss:$16 sps:$4 sm:$0xff]  }
 0x1bc   : > { %v1090_v40 = vmax.f32 %v1006_v37, 0.0  ;;  %v1009_v41 = vadd.f32 %v10044_v33, %v1008_v39  ;;  %v1010_v42 = vpop.f32.mrb[79].mxu0  ;;  %v9258_v37 = vld [vmem:[%s12850_s3 + $0x880] ss:$16 sps:$4 sm:$0xff]  }
 0x1bd   : > { %3913 = vmatmul.mubr.bf16.gmra.mrb[12].mxu1 %v9228_v34  ;;  %v9261_v39 = vld [vmem:[%s12850_s3 + $0x8a0] ss:$16 sps:$4 sm:$0xff]   ;;  %v9262_v42 = vld [vmem:[%s12850_s3 + $0x8c4] ss:$16 sps:$4 sm:$0xff]  }
 0x1be   : > { %3920 = vmatprep.mubr.bf16.mxu1 %v9229_v36  ;;  %v1091_v43 = vmax.f32 %v1009_v41, 0.0  ;;  %v9256_v36 = vld [vmem:[%s12850_s3 + $0x884] ss:$16 sps:$4 sm:$0xff]  }
 0x1c0   : > { %v1121_v44 = vpack.c.bf16 %v1091_v43, %v1090_v40 }
 0x1c1   : > { %v1013_v46 = vpop.f32.mrb[80].mxu0 }
 0x1c2   : > { %4160 = vmatpush1.bf16.msra.mxu1 %v1121_v44  ;;  %v1014_v48 = vadd.f32 %v10044_v33, %v1013_v46  ;;  %v1015_v49 = vpop.f32.mrb[81].mxu0 }
 0x1c3   : > { %v1016_v50 = vpop.f32.mrb[82].mxu0  ;;  %4161 = vmatprep.subr.bf16.mxu1 %v9857_v1  ;;  %v9264_v49 = vld [vmem:[%s12850_s3 + $0x8c0] ss:$16 sps:$4 sm:$0xff]  }
 0x1c4   : > { %v1092_v51 = vmax.f32 %v1014_v48, 0.0  ;;  %v1017_v52 = vadd.f32 %v10044_v33, %v1016_v50  ;;  %v1018_v53 = vpop.f32.mrb[83].mxu0  ;;  %v9265_v50 = vld [vmem:[%s12850_s3 + $0x8e4] ss:$16 sps:$4 sm:$0xff]  }
 0x1c5   : > { %3921 = vmatmul.mubr.bf16.gmra.mrb[16].mxu1 %v9231_v45  ;;  %v9318_v53 = vld [vmem:[%s12850_s3 + $0x4] ss:$16 sps:$4 sm:$0xff]  }
 0x1c6   : > { %3928 = vmatprep.mubr.bf16.mxu1 %v9232_v47  ;;  %v1093_v54 = vmax.f32 %v1017_v52, 0.0  ;;  %v9316_v52 = vld [vmem:[%s12850_s3] ss:$16 sps:$4 sm:$0xff]   ;;  %3448 = vmatprep.mubr.bf16.mxu0 %v9318_v53 }
 0x1c7   : > { %3449 = vmatmul.mubr.bf16.vlgmr.msra.gmra.mrb[100].mxu0 %v9316_v52  ;;  %v9412_v52 = vld [vmem:[%s12850_s3 + $0x204] ss:$16 sps:$4 sm:$0xff]   ;;  %v9416_v53 = vld [vmem:[%s12850_s3 + $0x200] ss:$16 sps:$4 sm:$0xff]  }
 0x1c8   : > { %v1122_v55 = vpack.c.bf16 %v1093_v54, %v1092_v51  ;;  %v9268_v51 = vld [vmem:[%s12850_s3 + $0x904] ss:$16 sps:$4 sm:$0xff]   ;;  %v9270_v54 = vld [vmem:[%s12850_s3 + $0x900] ss:$16 sps:$4 sm:$0xff]  }
 0x1c9   : > { %v1021_v57 = vpop.f32.mrb[84].mxu0 }
 0x1ca   : > { %4162 = vmatpush1.bf16.msra.mxu1 %v1122_v55  ;;  %v1022_v59 = vadd.f32 %v10044_v33, %v1021_v57  ;;  %v1023_v60 = vpop.f32.mrb[85].mxu0  ;;  %v9271_v55 = vld [vmem:[%s12850_s3 + $0x924] ss:$16 sps:$4 sm:$0xff]   ;;  %v9326_v57 = vld [vmem:[%s12850_s3 + $0x20] ss:$16 sps:$4 sm:$0xff]  }
 0x1cb   : > { %v1024_v61 = vpop.f32.mrb[86].mxu0  ;;  %4163 = vmatprep.subr.bf16.mxu1 %v9857_v1  ;;  %v9328_v60 = vld [vmem:[%s12850_s3 + $0x44] ss:$16 sps:$4 sm:$0xff]  }
 0x1cc   : > { %v1094_v62 = vmax.f32 %v1022_v59, 0.0  ;;  %v1025_v63 = vadd.f32 %v10044_v33, %v1024_v61  ;;  %v1026_v0 = vpop.f32.mrb[87].mxu0  ;;  %v9274_v59 = vld [vmem:[%s12850_s3 + $0x944] ss:$16 sps:$4 sm:$0xff]   ;;  %v9332_v61 = vld [vmem:[%s12850_s3 + $0x40] ss:$16 sps:$4 sm:$0xff]  }
 0x1cd   : > { %3929 = vmatmul.mubr.bf16.gmra.mrb[20].mxu1 %v9234_v56  ;;  %v9322_v56 = vld [vmem:[%s12850_s3 + $0x24] ss:$16 sps:$4 sm:$0xff]  }
 0x1ce   : > { %3936 = vmatprep.mubr.bf16.mxu1 %v9235_v58  ;;  %v1095_v2 = vmax.f32 %v1025_v63, 0.0  ;;  %3456 = vmatprep.mubr.bf16.mxu0 %v9322_v56  ;;  %v9273_v58 = vld [vmem:[%s12850_s3 + $0x920] ss:$16 sps:$4 sm:$0xff]   ;;  %v9277_v63 = vld [vmem:[%s12850_s3 + $0x964] ss:$16 sps:$4 sm:$0xff]  }
 0x1cf   : > { %3457 = vmatmul.mubr.bf16.gmra.mrb[104].mxu0 %v9326_v57  ;;  %v9334_v0 = vld [vmem:[%s12850_s3 + $0x64] ss:$16 sps:$4 sm:$0xff]   ;;  %v9422_v57 = vld [vmem:[%s12850_s3 + $0x220] ss:$16 sps:$4 sm:$0xff]  }
 0x1d0   : > { %v1123_v3 = vpack.c.bf16 %v1095_v2, %v1094_v62  ;;  %3464 = vmatprep.mubr.bf16.mxu0 %v9328_v60  ;;  %v9276_v62 = vld [vmem:[%s12850_s3 + $0x940] ss:$16 sps:$4 sm:$0xff]   ;;  %v9418_v56 = vld [vmem:[%s12850_s3 + $0x224] ss:$16 sps:$4 sm:$0xff]  }
 0x1d1   : > { %v1029_v7 = vpop.f32.mrb[88].mxu0  ;;  %v9338_v2 = vld [vmem:[%s12850_s3 + $0x60] ss:$16 sps:$4 sm:$0xff]   ;;  %v9424_v60 = vld [vmem:[%s12850_s3 + $0x244] ss:$16 sps:$4 sm:$0xff]  }
 0x1d2   : > { %4164 = vmatpush1.bf16.msra.mxu1 %v1123_v3  ;;  %v1030_v9 = vadd.f32 %v10044_v33, %v1029_v7  ;;  %v1031_v10 = vpop.f32.mrb[89].mxu0  ;;  %v9279_v3 = vld [vmem:[%s12850_s3 + $0x960] ss:$16 sps:$4 sm:$0xff]  }
 0x1d3   : > { %4165 = vmatprep.subr.bf16.mxu1 %v9857_v1  ;;  %v1032_v11 = vpop.f32.mrb[90].mxu0  ;;  %v9282_v7 = vld [vmem:[%s12850_s3 + $0x980] ss:$16 sps:$4 sm:$0xff]  }
 0x1d4   : > { %v1096_v12 = vmax.f32 %v1030_v9, 0.0  ;;  %v1033_v13 = vadd.f32 %v10044_v33, %v1032_v11  ;;  %v1034_v14 = vpop.f32.mrb[91].mxu0  ;;  %v9346_v9 = vld [vmem:[%s12850_s3 + $0xa4] ss:$16 sps:$4 sm:$0xff]   ;;  %v9350_v10 = vld [vmem:[%s12850_s3 + $0xa0] ss:$16 sps:$4 sm:$0xff]  }
 0x1d5   : > { %3937 = vmatmul.mubr.bf16.gmra.mrb[24].mxu1 %v9237_v4  ;;  %v9280_v4 = vld [vmem:[%s12850_s3 + $0x984] ss:$16 sps:$4 sm:$0xff]   ;;  %v9285_v11 = vld [vmem:[%s12850_s3 + $0x9a0] ss:$16 sps:$4 sm:$0xff]  }
 0x1d6   : > { %3944 = vmatprep.mubr.bf16.mxu1 %v9238_v5  ;;  %v1097_v15 = vmax.f32 %v1033_v13, 0.0  ;;  %v9340_v5 = vld [vmem:[%s12850_s3 + $0x84] ss:$16 sps:$4 sm:$0xff]   ;;  %v9356_v14 = vld [vmem:[%s12850_s3 + $0xc0] ss:$16 sps:$4 sm:$0xff]  }
 0x1d7   : > { %3465 = vmatmul.mubr.bf16.gmra.mrb[108].mxu0 %v9332_v61  ;;  %v9352_v13 = vld [vmem:[%s12850_s3 + $0xc4] ss:$16 sps:$4 sm:$0xff]   ;;  %v9428_v61 = vld [vmem:[%s12850_s3 + $0x240] ss:$16 sps:$4 sm:$0xff]  }
 0x1d8   : > { %v1124_v16 = vpack.c.bf16 %v1097_v15, %v1096_v12  ;;  %3472 = vmatprep.mubr.bf16.mxu0 %v9334_v0  ;;  %v9286_v12 = vld [vmem:[%s12850_s3 + $0x9c4] ss:$16 sps:$4 sm:$0xff]   ;;  %v9288_v15 = vld [vmem:[%s12850_s3 + $0x9c0] ss:$16 sps:$4 sm:$0xff]  }
 0x1d9   : > { %v1037_v23 = vpop.f32.mrb[92].mxu0  ;;  %v9430_v0 = vld [vmem:[%s12850_s3 + $0x264] ss:$16 sps:$4 sm:$0xff]  }
 0x1da   : > { %4166 = vmatpush1.bf16.msra.mxu1 %v1124_v16  ;;  %v1038_v24 = vadd.f32 %v10044_v33, %v1037_v23  ;;  %v1039_v25 = vpop.f32.mrb[93].mxu0  ;;  %v9289_v16 = vld [vmem:[%s12850_s3 + $0x9e4] ss:$16 sps:$4 sm:$0xff]   ;;  %v9294_v23 = vld [vmem:[%s12850_s3 + $0xa00] ss:$16 sps:$4 sm:$0xff]  }
 0x1db   : > { %4167 = vmatprep.subr.bf16.mxu1 %v9857_v1  ;;  %v1040_v26 = vpop.f32.mrb[94].mxu0  ;;  %v9370_v25 = vld [vmem:[%s12850_s3 + $0x124] ss:$16 sps:$4 sm:$0xff]  }
 0x1dc   : > { %v1098_v27 = vmax.f32 %v1038_v24, 0.0  ;;  %v1041_v28 = vadd.f32 %v10044_v33, %v1040_v26  ;;  %v1042_v29 = vpop.f32.mrb[95].mxu0  ;;  %v9295_v24 = vld [vmem:[%s12850_s3 + $0xa24] ss:$16 sps:$4 sm:$0xff]   ;;  %v9374_v26 = vld [vmem:[%s12850_s3 + $0x120] ss:$16 sps:$4 sm:$0xff]  }
 0x1dd   : > { %3945 = vmatmul.mubr.bf16.gmra.mrb[28].mxu1 %v9240_v6  ;;  %v9344_v6 = vld [vmem:[%s12850_s3 + $0x80] ss:$16 sps:$4 sm:$0xff]   ;;  %v9376_v29 = vld [vmem:[%s12850_s3 + $0x144] ss:$16 sps:$4 sm:$0xff]  }
 0x1de   : > { %3952 = vmatprep.mubr.bf16.mxu1 %v9241_v8  ;;  %v1099_v32 = vmax.f32 %v1041_v28, 0.0  ;;  %v9283_v8 = vld [vmem:[%s12850_s3 + $0x9a4] ss:$16 sps:$4 sm:$0xff]  }
 0x1df   : > { %3473 = vmatmul.mubr.bf16.gmra.mrb[112].mxu0 %v9338_v2  ;;  %v9298_v28 = vld [vmem:[%s12850_s3 + $0xa44] ss:$16 sps:$4 sm:$0xff]   ;;  %v9434_v2 = vld [vmem:[%s12850_s3 + $0x260] ss:$16 sps:$4 sm:$0xff]  }
 0x1e0   : > { %v1125_v34 = vpack.c.bf16 %v1099_v32, %v1098_v27  ;;  %3480 = vmatprep.mubr.bf16.mxu0 %v9340_v5  ;;  %v9297_v27 = vld [vmem:[%s12850_s3 + $0xa20] ss:$16 sps:$4 sm:$0xff]   ;;  %v9301_v32 = vld [vmem:[%s12850_s3 + $0xa64] ss:$16 sps:$4 sm:$0xff]  }
 0x1e1   : > { %v9436_v5 = vld [vmem:[%s12850_s3 + $0x284] ss:$16 sps:$4 sm:$0xff]  }
 0x1e2   : > { %4168 = vmatpush1.bf16.msra.mxu1 %v1125_v34  ;;  %v9382_v34 = vld [vmem:[%s12850_s3 + $0x164] ss:$16 sps:$4 sm:$0xff]  }
 0x1e3   : > { %4169 = vmatprep.subr.bf16.mxu1 %v9857_v1  ;;  %v1045_v1 = vpop.f32.mrb[96].mxu0 }
 0x1e4   : > { %v1046_v40 = vadd.f32 %v10044_v33, %v1045_v1  ;;  %v1047_v41 = vpop.f32.mrb[97].mxu0  ;;  %v9392_v1 = vld [vmem:[%s12850_s3 + $0x180] ss:$16 sps:$4 sm:$0xff]  }
 0x1e5   : > { %3953 = vmatmul.mubr.bf16.gmra.mrb[32].mxu1 %v9243_v17  ;;  %v1048_v43 = vpop.f32.mrb[98].mxu0  ;;  %v9358_v17 = vld [vmem:[%s12850_s3 + $0xe4] ss:$16 sps:$4 sm:$0xff]  }
 0x1e6   : > { %3960 = vmatprep.mubr.bf16.mxu1 %v9244_v18  ;;  %v1100_v44 = vmax.f32 %v1046_v40, 0.0  ;;  %v1049_v45 = vadd.f32 %v10044_v33, %v1048_v43  ;;  %v1050_v46 = vpop.f32.mrb[99].mxu0  ;;  %v9267_v33 = vld [vmem:[%s12850_s3 + $0x8e0] ss:$16 sps:$4 sm:$0xff]   ;;  %v9307_v40 = vld [vmem:[%s12850_s3 + $0xaa4] ss:$16 sps:$4 sm:$0xff]  }
 0x1e7   : > { %3481 = vmatmul.mubr.bf16.gmra.mrb[116].mxu0 %v9344_v6  ;;  %v9362_v18 = vld [vmem:[%s12850_s3 + $0xe0] ss:$16 sps:$4 sm:$0xff]   ;;  %v9394_v41 = vld [vmem:[%s12850_s3 + $0x1a4] ss:$16 sps:$4 sm:$0xff]  }
 0x1e8   : > { %v1101_v47 = vmax.f32 %v1049_v45, 0.0  ;;  %3488 = vmatprep.mubr.bf16.mxu0 %v9346_v9  ;;  %v9309_v43 = vld [vmem:[%s12850_s3 + $0xaa0] ss:$16 sps:$4 sm:$0xff]   ;;  %v9400_v45 = vld [vmem:[%s12850_s3 + $0x1c4] ss:$16 sps:$4 sm:$0xff]  }
 0x1e9   : > { %v9404_v46 = vld [vmem:[%s12850_s3 + $0x1c0] ss:$16 sps:$4 sm:$0xff]   ;;  %v9442_v9 = vld [vmem:[%s12850_s3 + $0x2a4] ss:$16 sps:$4 sm:$0xff]  }
 0x1ea   : > { %v1126_v48 = vpack.c.bf16 %v1101_v47, %v1100_v44  ;;  %v9310_v44 = vld [vmem:[%s12850_s3 + $0xac4] ss:$16 sps:$4 sm:$0xff]   ;;  %v9312_v47 = vld [vmem:[%s12850_s3 + $0xac0] ss:$16 sps:$4 sm:$0xff]  }
 0x1eb   : > { %v9440_v6 = vld [vmem:[%s12850_s3 + $0x280] ss:$16 sps:$4 sm:$0xff]  }
 0x1ec   : > { %4170 = vmatpush1.bf16.msra.mxu1 %v1126_v48  ;;  %v9313_v48 = vld [vmem:[%s12850_s3 + $0xae4] ss:$16 sps:$4 sm:$0xff]  }
 0x1ed   : > { %3961 = vmatmul.mubr.bf16.gmra.mrb[36].mxu1 %v9246_v19  ;;  %v9291_v19 = vld [vmem:[%s12850_s3 + $0x9e0] ss:$16 sps:$4 sm:$0xff]  }
 0x1ee   : > { %3968 = vmatprep.mubr.bf16.mxu1 %v9247_v20  ;;  %v9292_v20 = vld [vmem:[%s12850_s3 + $0xa04] ss:$16 sps:$4 sm:$0xff]  }
 0x1ef   : > { %3489 = vmatmul.mubr.bf16.gmra.mrb[120].mxu0 %v9350_v10  ;;  %v9446_v10 = vld [vmem:[%s12850_s3 + $0x2a0] ss:$16 sps:$4 sm:$0xff]  }
 0x1f0   : > { %3496 = vmatprep.mubr.bf16.mxu0 %v9352_v13  ;;  %v9448_v13 = vld [vmem:[%s12850_s3 + $0x2c4] ss:$16 sps:$4 sm:$0xff]  }
 0x1f5   : > { %3969 = vmatmul.mubr.bf16.gmra.mrb[40].mxu1 %v9249_v21  ;;  %v9364_v21 = vld [vmem:[%s12850_s3 + $0x104] ss:$16 sps:$4 sm:$0xff]  }
 0x1f6   : > { %3976 = vmatprep.mubr.bf16.mxu1 %v9250_v22  ;;  %v9368_v22 = vld [vmem:[%s12850_s3 + $0x100] ss:$16 sps:$4 sm:$0xff]  }
 0x1f7   : > { %3497 = vmatmul.mubr.bf16.gmra.mrb[124].mxu0 %v9356_v14  ;;  %v9452_v14 = vld [vmem:[%s12850_s3 + $0x2c0] ss:$16 sps:$4 sm:$0xff]  }
 0x1f8   : > { %3504 = vmatprep.mubr.bf16.mxu0 %v9358_v17  ;;  %v9454_v17 = vld [vmem:[%s12850_s3 + $0x2e4] ss:$16 sps:$4 sm:$0xff]  }
 0x1fd   : > { %3977 = vmatmul.mubr.bf16.gmra.mrb[44].mxu1 %v9252_v30  ;;  %v9380_v30 = vld [vmem:[%s12850_s3 + $0x140] ss:$16 sps:$4 sm:$0xff]  }
 0x1fe   : > { %3984 = vmatprep.mubr.bf16.mxu1 %v9253_v31  ;;  %v9300_v31 = vld [vmem:[%s12850_s3 + $0xa40] ss:$16 sps:$4 sm:$0xff]  }
 0x1ff   : > { %3505 = vmatmul.mubr.bf16.gmra.mrb[128].mxu0 %v9362_v18  ;;  %v9458_v18 = vld [vmem:[%s12850_s3 + $0x2e0] ss:$16 sps:$4 sm:$0xff]  }
 0x200   : > { %3512 = vmatprep.mubr.bf16.mxu0 %v9364_v21  ;;  %v9460_v21 = vld [vmem:[%s12850_s3 + $0x304] ss:$16 sps:$4 sm:$0xff]  }
 0x205   : > { %3985 = vmatmul.mubr.bf16.gmra.mrb[48].mxu1 %v9255_v35  ;;  %v9386_v35 = vld [vmem:[%s12850_s3 + $0x160] ss:$16 sps:$4 sm:$0xff]  }
 0x206   : > { %3992 = vmatprep.mubr.bf16.mxu1 %v9256_v36  ;;  %v9303_v36 = vld [vmem:[%s12850_s3 + $0xa60] ss:$16 sps:$4 sm:$0xff]  }
 0x207   : > { %3513 = vmatmul.mubr.bf16.gmra.mrb[132].mxu0 %v9368_v22  ;;  %v9464_v22 = vld [vmem:[%s12850_s3 + $0x300] ss:$16 sps:$4 sm:$0xff]  }
 0x208   : > { %3520 = vmatprep.mubr.bf16.mxu0 %v9370_v25  ;;  %v9466_v25 = vld [vmem:[%s12850_s3 + $0x324] ss:$16 sps:$4 sm:$0xff]  }
 0x20d   : > { %3993 = vmatmul.mubr.bf16.gmra.mrb[52].mxu1 %v9258_v37  ;;  %v9304_v37 = vld [vmem:[%s12850_s3 + $0xa84] ss:$16 sps:$4 sm:$0xff]  }
 0x20e   : > { %4000 = vmatprep.mubr.bf16.mxu1 %v9259_v38  ;;  %v9388_v38 = vld [vmem:[%s12850_s3 + $0x184] ss:$16 sps:$4 sm:$0xff]  }
 0x20f   : > { %3521 = vmatmul.mubr.bf16.gmra.mrb[136].mxu0 %v9374_v26  ;;  %v9470_v26 = vld [vmem:[%s12850_s3 + $0x320] ss:$16 sps:$4 sm:$0xff]  }
 0x210   : > { %3528 = vmatprep.mubr.bf16.mxu0 %v9376_v29  ;;  %v9472_v29 = vld [vmem:[%s12850_s3 + $0x344] ss:$16 sps:$4 sm:$0xff]  }
 0x215   : > { %4001 = vmatmul.mubr.bf16.gmra.mrb[56].mxu1 %v9261_v39  ;;  %v9306_v39 = vld [vmem:[%s12850_s3 + $0xa80] ss:$16 sps:$4 sm:$0xff]  }
 0x216   : > { %4008 = vmatprep.mubr.bf16.mxu1 %v9262_v42  ;;  %v9398_v42 = vld [vmem:[%s12850_s3 + $0x1a0] ss:$16 sps:$4 sm:$0xff]  }
 0x217   : > { %3529 = vmatmul.mubr.bf16.gmra.mrb[140].mxu0 %v9380_v30  ;;  %v9476_v30 = vld [vmem:[%s12850_s3 + $0x340] ss:$16 sps:$4 sm:$0xff]  }
 0x218   : > { %3536 = vmatprep.mubr.bf16.mxu0 %v9382_v34 }
 0x21d   : > { %4009 = vmatmul.mubr.bf16.gmra.mrb[60].mxu1 %v9264_v49  ;;  %v9406_v49 = vld [vmem:[%s12850_s3 + $0x1e4] ss:$16 sps:$4 sm:$0xff]  }
 0x21e   : > { %4016 = vmatprep.mubr.bf16.mxu1 %v9265_v50  ;;  %v9410_v50 = vld [vmem:[%s12850_s3 + $0x1e0] ss:$16 sps:$4 sm:$0xff]  }
 0x21f   : > { %3537 = vmatmul.mubr.bf16.gmra.mrb[144].mxu0 %v9386_v35 }
 0x220   : > { %3544 = vmatprep.mubr.bf16.mxu0 %v9388_v38  ;;  %v9390_v38 = vld [vmem:[%s12850_s3 + $0x18c] ss:$16 sps:$4 sm:$0xff]  }
 0x225   : > { %4017 = vmatmul.mubr.bf16.gmra.mrb[64].mxu1 %v9267_v33  ;;  %v9315_v33 = vld [vmem:[%s12850_s3 + $0xae0] ss:$16 sps:$4 sm:$0xff]  }
 0x226   : > { %4024 = vmatprep.mubr.bf16.mxu1 %v9268_v51  ;;  %v9321_v51 = vld [vmem:[%s12850_s3 + $0xc] ss:$16 sps:$4 sm:$0xff]  }
 0x227   : > { %3545 = vmatmul.mubr.bf16.gmra.mrb[148].mxu0 %v9392_v1  ;;  %v9478_v1 = vld [vmem:[%s12850_s3 + $0x364] ss:$16 sps:$4 sm:$0xff]  }
 0x228   : > { %3552 = vmatprep.mubr.bf16.mxu0 %v9394_v41 }
 0x22d   : > { %4025 = vmatmul.mubr.bf16.gmra.mrb[68].mxu1 %v9270_v54  ;;  %v9319_v54 = vld [vmem:[%s12850_s3 + $0x8] ss:$16 sps:$4 sm:$0xff]  }
 0x22e   : > { %4032 = vmatprep.mubr.bf16.mxu1 %v9271_v55  ;;  %v9324_v55 = vld [vmem:[%s12850_s3 + $0x2c] ss:$16 sps:$4 sm:$0xff]  }
 0x22f   : > { %3553 = vmatmul.mubr.bf16.gmra.mrb[152].mxu0 %v9398_v42 }
 0x230   : > { %3560 = vmatprep.mubr.bf16.mxu0 %v9400_v45  ;;  %v9396_v45 = vld [vmem:[%s12850_s3 + $0x1ac] ss:$16 sps:$4 sm:$0xff]  }
 0x235   : > { %4033 = vmatmul.mubr.bf16.gmra.mrb[72].mxu1 %v9273_v58  ;;  %v9327_v58 = vld [vmem:[%s12850_s3 + $0x28] ss:$16 sps:$4 sm:$0xff]  }
 0x236   : > { %4040 = vmatprep.mubr.bf16.mxu1 %v9274_v59  ;;  %v9330_v59 = vld [vmem:[%s12850_s3 + $0x4c] ss:$16 sps:$4 sm:$0xff]  }
 0x237   : > { %3561 = vmatmul.mubr.bf16.gmra.mrb[156].mxu0 %v9404_v46  ;;  %v9484_v46 = vld [vmem:[%s12850_s3 + $0x384] ss:$16 sps:$4 sm:$0xff]  }
 0x238   : > { %3568 = vmatprep.mubr.bf16.mxu0 %v9406_v49 }
 0x23d   : > { %4041 = vmatmul.mubr.bf16.gmra.mrb[76].mxu1 %v9276_v62  ;;  %v9333_v62 = vld [vmem:[%s12850_s3 + $0x48] ss:$16 sps:$4 sm:$0xff]  }
 0x23e   : > { %4048 = vmatprep.mubr.bf16.mxu1 %v9277_v63  ;;  %v9336_v63 = vld [vmem:[%s12850_s3 + $0x6c] ss:$16 sps:$4 sm:$0xff]  }
 0x23f   : > { %3569 = vmatmul.mubr.bf16.gmra.mrb[160].mxu0 %v9410_v50 }
 0x240   : > { %3576 = vmatprep.mubr.bf16.mxu0 %v9412_v52  ;;  %v9402_v52 = vld [vmem:[%s12850_s3 + $0x1cc] ss:$16 sps:$4 sm:$0xff]  }
 0x245   : > { %4049 = vmatmul.mubr.bf16.gmra.mrb[80].mxu1 %v9279_v3  ;;  %v9339_v3 = vld [vmem:[%s12850_s3 + $0x68] ss:$16 sps:$4 sm:$0xff]  }
 0x246   : > { %4056 = vmatprep.mubr.bf16.mxu1 %v9280_v4  ;;  %v9342_v4 = vld [vmem:[%s12850_s3 + $0x8c] ss:$16 sps:$4 sm:$0xff]  }
 0x247   : > { %3577 = vmatmul.mubr.bf16.gmra.mrb[164].mxu0 %v9416_v53  ;;  %v9490_v53 = vld [vmem:[%s12850_s3 + $0x3a4] ss:$16 sps:$4 sm:$0xff]  }
 0x248   : > { %3584 = vmatprep.mubr.bf16.mxu0 %v9418_v56 }
 0x24d   : > { %4057 = vmatmul.mubr.bf16.gmra.mrb[84].mxu1 %v9282_v7  ;;  %v9345_v7 = vld [vmem:[%s12850_s3 + $0x88] ss:$16 sps:$4 sm:$0xff]  }
 0x24e   : > { %4064 = vmatprep.mubr.bf16.mxu1 %v9283_v8  ;;  %v9348_v8 = vld [vmem:[%s12850_s3 + $0xac] ss:$16 sps:$4 sm:$0xff]  }
 0x24f   : > { %3585 = vmatmul.mubr.bf16.gmra.mrb[168].mxu0 %v9422_v57 }
 0x250   : > { %3592 = vmatprep.mubr.bf16.mxu0 %v9424_v60  ;;  %v9408_v60 = vld [vmem:[%s12850_s3 + $0x1ec] ss:$16 sps:$4 sm:$0xff]  }
 0x255   : > { %4065 = vmatmul.mubr.bf16.gmra.mrb[88].mxu1 %v9285_v11  ;;  %v9351_v11 = vld [vmem:[%s12850_s3 + $0xa8] ss:$16 sps:$4 sm:$0xff]  }
 0x256   : > { %4072 = vmatprep.mubr.bf16.mxu1 %v9286_v12  ;;  %v9354_v12 = vld [vmem:[%s12850_s3 + $0xcc] ss:$16 sps:$4 sm:$0xff]  }
 0x257   : > { %3593 = vmatmul.mubr.bf16.gmra.mrb[172].mxu0 %v9428_v61  ;;  %v9496_v61 = vld [vmem:[%s12850_s3 + $0x3c4] ss:$16 sps:$4 sm:$0xff]  }
 0x258   : > { %3600 = vmatprep.mubr.bf16.mxu0 %v9430_v0 }
 0x25d   : > { %4073 = vmatmul.mubr.bf16.gmra.mrb[92].mxu1 %v9288_v15  ;;  %v9357_v15 = vld [vmem:[%s12850_s3 + $0xc8] ss:$16 sps:$4 sm:$0xff]  }
 0x25e   : > { %4080 = vmatprep.mubr.bf16.mxu1 %v9289_v16  ;;  %v9360_v16 = vld [vmem:[%s12850_s3 + $0xec] ss:$16 sps:$4 sm:$0xff]  }
 0x25f   : > { %3601 = vmatmul.mubr.bf16.gmra.mrb[176].mxu0 %v9434_v2 }
 0x260   : > { %3608 = vmatprep.mubr.bf16.mxu0 %v9436_v5  ;;  %v9414_v5 = vld [vmem:[%s12850_s3 + $0x20c] ss:$16 sps:$4 sm:$0xff]  }
 0x265   : > { %4081 = vmatmul.mubr.bf16.gmra.mrb[96].mxu1 %v9291_v19  ;;  %v9363_v19 = vld [vmem:[%s12850_s3 + $0xe8] ss:$16 sps:$4 sm:$0xff]  }
 0x266   : > { %4088 = vmatprep.mubr.bf16.mxu1 %v9292_v20  ;;  %v9366_v20 = vld [vmem:[%s12850_s3 + $0x10c] ss:$16 sps:$4 sm:$0xff]  }
 0x267   : > { %3609 = vmatmul.mubr.bf16.gmra.mrb[180].mxu0 %v9440_v6  ;;  %v9502_v6 = vld [vmem:[%s12850_s3 + $0x3e4] ss:$16 sps:$4 sm:$0xff]  }
 0x268   : > { %3616 = vmatprep.mubr.bf16.mxu0 %v9442_v9 }
 0x26d   : > { %4089 = vmatmul.mubr.bf16.gmra.mrb[100].mxu1 %v9294_v23  ;;  %v9369_v23 = vld [vmem:[%s12850_s3 + $0x108] ss:$16 sps:$4 sm:$0xff]  }
 0x26e   : > { %4096 = vmatprep.mubr.bf16.mxu1 %v9295_v24  ;;  %v9372_v24 = vld [vmem:[%s12850_s3 + $0x12c] ss:$16 sps:$4 sm:$0xff]  }
 0x26f   : > { %3617 = vmatmul.mubr.bf16.gmra.mrb[184].mxu0 %v9446_v10 }
 0x270   : > { %3624 = vmatprep.mubr.bf16.mxu0 %v9448_v13  ;;  %v9420_v13 = vld [vmem:[%s12850_s3 + $0x22c] ss:$16 sps:$4 sm:$0xff]  }
 0x275   : > { %4097 = vmatmul.mubr.bf16.gmra.mrb[104].mxu1 %v9297_v27  ;;  %v9375_v27 = vld [vmem:[%s12850_s3 + $0x128] ss:$16 sps:$4 sm:$0xff]  }
 0x276   : > { %4104 = vmatprep.mubr.bf16.mxu1 %v9298_v28  ;;  %v9378_v28 = vld [vmem:[%s12850_s3 + $0x14c] ss:$16 sps:$4 sm:$0xff]  }
 0x277   : > { %3625 = vmatmul.mubr.bf16.gmra.mrb[188].mxu0 %v9452_v14  ;;  %v9508_v14 = vld [vmem:[%s12850_s3 + $0x404] ss:$16 sps:$4 sm:$0xff]  }
 0x278   : > { %3632 = vmatprep.mubr.bf16.mxu0 %v9454_v17 }
 0x27d   : > { %4105 = vmatmul.mubr.bf16.gmra.mrb[108].mxu1 %v9300_v31  ;;  %v9381_v31 = vld [vmem:[%s12850_s3 + $0x148] ss:$16 sps:$4 sm:$0xff]  }
 0x27e   : > { %4112 = vmatprep.mubr.bf16.mxu1 %v9301_v32  ;;  %v9384_v32 = vld [vmem:[%s12850_s3 + $0x16c] ss:$16 sps:$4 sm:$0xff]  }
 0x27f   : > { %3633 = vmatmul.mubr.bf16.gmra.mrb[192].mxu0 %v9458_v18 }
 0x280   : > { %3640 = vmatprep.mubr.bf16.mxu0 %v9460_v21  ;;  %v9426_v21 = vld [vmem:[%s12850_s3 + $0x24c] ss:$16 sps:$4 sm:$0xff]  }
 0x285   : > { %4113 = vmatmul.mubr.bf16.gmra.mrb[112].mxu1 %v9303_v36  ;;  %v9387_v36 = vld [vmem:[%s12850_s3 + $0x168] ss:$16 sps:$4 sm:$0xff]  }
 0x286   : > { %4120 = vmatprep.mubr.bf16.mxu1 %v9304_v37 }
 0x287   : > { %3641 = vmatmul.mubr.bf16.gmra.mrb[196].mxu0 %v9464_v22  ;;  %v9514_v22 = vld [vmem:[%s12850_s3 + $0x424] ss:$16 sps:$4 sm:$0xff]  }
 0x288   : > { %3648 = vmatprep.mubr.bf16.mxu0 %v9466_v25 }
 0x28d   : > { %4121 = vmatmul.mubr.bf16.gmra.mrb[116].mxu1 %v9306_v39 }
 0x28e   : > { %4128 = vmatprep.mubr.bf16.mxu1 %v9307_v40  ;;  %v9482_v40 = vld [vmem:[%s12850_s3 + $0x360] ss:$16 sps:$4 sm:$0xff]  }
 0x28f   : > { %3649 = vmatmul.mubr.bf16.gmra.mrb[200].mxu0 %v9470_v26 }
 0x290   : > { %3656 = vmatprep.mubr.bf16.mxu0 %v9472_v29  ;;  %v9432_v29 = vld [vmem:[%s12850_s3 + $0x26c] ss:$16 sps:$4 sm:$0xff]  }
 0x295   : > { %4129 = vmatmul.mubr.bf16.gmra.mrb[120].mxu1 %v9309_v43  ;;  %v9393_v43 = vld [vmem:[%s12850_s3 + $0x188] ss:$16 sps:$4 sm:$0xff]  }
 0x296   : > { %4136 = vmatprep.mubr.bf16.mxu1 %v9310_v44 }
 0x297   : > { %3657 = vmatmul.mubr.bf16.gmra.mrb[204].mxu0 %v9476_v30  ;;  %v9520_v30 = vld [vmem:[%s12850_s3 + $0x444] ss:$16 sps:$4 sm:$0xff]  }
 0x298   : > { %3664 = vmatprep.mubr.bf16.mxu0 %v9478_v1 }
 0x29a   : > { %v10577_v34 = vpop.f32.mrb[100].mxu0 }
 0x29b   : > { %v3452_v35 = vpop.f32.mrb[101].mxu0 }
 0x29c   : > { %v10583_v37 = vpop.f32.mrb[102].mxu0 }
 0x29d   : > { %4137 = vmatmul.mubr.bf16.gmra.mrb[124].mxu1 %v9312_v47  ;;  %v3455_v39 = vpop.f32.mrb[103].mxu0 }
 0x29e   : > { %4144 = vmatprep.mubr.bf16.mxu1 %v9313_v48  ;;  %v9488_v48 = vld [vmem:[%s12850_s3 + $0x380] ss:$16 sps:$4 sm:$0xff]   ;;  %v9438_v39 = vld [vmem:[%s12850_s3 + $0x28c] ss:$16 sps:$4 sm:$0xff]  }
 0x29f   : > { %3665 = vmatmul.mubr.bf16.gmra.mrb[208].mxu0 %v9482_v40  ;;  %v9526_v40 = vld [vmem:[%s12850_s3 + $0x464] ss:$16 sps:$4 sm:$0xff]  }
 0x2a0   : > { %3672 = vmatprep.mubr.bf16.mxu0 %v9484_v46 }
 0x2a2   : > { %v10594_v41 = vpop.f32.mrb[104].mxu0 }
 0x2a3   : > { %v3460_v42 = vpop.f32.mrb[105].mxu0 }
 0x2a4   : > { %v10600_v44 = vpop.f32.mrb[106].mxu0 }
 0x2a5   : > { %4145 = vmatmul.mubr.bf16.gmra.mrb[128].mxu1 %v9315_v33  ;;  %v3463_v47 = vpop.f32.mrb[107].mxu0  ;;  %v9399_v33 = vld [vmem:[%s12850_s3 + $0x1a8] ss:$16 sps:$4 sm:$0xff]  }
 0x2a6   : > { %7916 = vmatprep.mubr.msk.bf16.mxu1 %vm3151_vm0, %v9321_v51  ;;  %v9441_v47 = vld [vmem:[%s12850_s3 + $0x288] ss:$16 sps:$4 sm:$0xff]  }
 0x2a7   : > { %3673 = vmatmul.mubr.bf16.gmra.mrb[212].mxu0 %v9488_v48 }
 0x2a8   : > { %3680 = vmatprep.mubr.bf16.mxu0 %v9490_v53  ;;  %v9537_v53 = vld [vmem:[%s12850_s3 + $0x480] ss:$16 sps:$4 sm:$0xff]  }
 0x2aa   : > { %v10611_v49 = vpop.f32.mrb[108].mxu0 }
 0x2ab   : > { %v3468_v50 = vpop.f32.mrb[109].mxu0 }
 0x2ac   : > { %v10617_v51 = vpop.f32.mrb[110].mxu0  ;;  %v9444_v50 = vld [vmem:[%s12850_s3 + $0x2ac] ss:$16 sps:$4 sm:$0xff]  }
 0x2ad   : > { %4186 = vmatmul.mubr.bf16.vlgmr.msra.gmra.mrb[132].mxu1 %v9319_v54  ;;  %v3471_v54 = vpop.f32.mrb[111].mxu0 }
 0x2ae   : > { %7917 = vmatprep.mubr.msk.bf16.mxu1 %vm3151_vm0, %v9324_v55  ;;  %v9494_v55 = vld [vmem:[%s12850_s3 + $0x3a0] ss:$16 sps:$4 sm:$0xff]  }
 0x2af   : > { %3681 = vmatmul.mubr.bf16.gmra.mrb[216].mxu0 %v9494_v55 }
 0x2b0   : > { %3688 = vmatprep.mubr.bf16.mxu0 %v9496_v61  ;;  %v9538_v61 = vld [vmem:[%s12850_s3 + $0x4a4] ss:$16 sps:$4 sm:$0xff]  }
 0x2b2   : > { %v10628_v56 = vpop.f32.mrb[112].mxu0 }
 0x2b3   : > { %v3476_v57 = vpop.f32.mrb[113].mxu0 }
 0x2b4   : > { %v9447_v57 = vld [vmem:[%s12850_s3 + $0x2a8] ss:$16 sps:$4 sm:$0xff]  }
 0x2b5   : > { %4194 = vmatmul.mubr.bf16.gmra.mrb[136].mxu1 %v9327_v58  ;;  %v9405_v58 = vld [vmem:[%s12850_s3 + $0x1c8] ss:$16 sps:$4 sm:$0xff]  }
 0x2b6   : > { %7918 = vmatprep.mubr.msk.bf16.mxu1 %vm3151_vm0, %v9330_v59  ;;  %v10634_v59 = vpop.f32.mrb[114].mxu0 }
 0x2bd   : > { %4202 = vmatmul.mubr.bf16.gmra.mrb[140].mxu1 %v9333_v62  ;;  %v3479_v62 = vpop.f32.mrb[115].mxu0 }
 0x2be   : > { %7919 = vmatprep.mubr.msk.bf16.mxu1 %vm3151_vm0, %v9336_v63  ;;  %v9500_v63 = vld [vmem:[%s12850_s3 + $0x3c0] ss:$16 sps:$4 sm:$0xff]   ;;  %v10645_v0 = vpop.f32.mrb[116].mxu0 }
 0x2bf   : > { %3689 = vmatmul.mubr.bf16.gmra.mrb[220].mxu0 %v9500_v63  ;;  %v3484_v2 = vpop.f32.mrb[117].mxu0  ;;  %v9543_v63 = vld [vmem:[%s12850_s3 + $0x4a0] ss:$16 sps:$4 sm:$0xff]  }
 0x2c0   : > { %3696 = vmatprep.mubr.bf16.mxu0 %v9502_v6 }
 0x2c5   : > { %4210 = vmatmul.mubr.bf16.gmra.mrb[144].mxu1 %v9339_v3  ;;  %v9411_v3 = vld [vmem:[%s12850_s3 + $0x1e8] ss:$16 sps:$4 sm:$0xff]  }
 0x2c6   : > { %7920 = vmatprep.mubr.msk.bf16.mxu1 %vm3151_vm0, %v9342_v4  ;;  %v10651_v4 = vpop.f32.mrb[118].mxu0 }
 0x2cd   : > { %4218 = vmatmul.mubr.bf16.gmra.mrb[148].mxu1 %v9345_v7  ;;  %v3487_v7 = vpop.f32.mrb[119].mxu0 }
 0x2ce   : > { %7921 = vmatprep.mubr.msk.bf16.mxu1 %vm3151_vm0, %v9348_v8  ;;  %v9507_v8 = vld [vmem:[%s12850_s3 + $0x3e0] ss:$16 sps:$4 sm:$0xff]   ;;  %v10662_v9 = vpop.f32.mrb[120].mxu0  ;;  %v9456_v7 = vld [vmem:[%s12850_s3 + $0x2ec] ss:$16 sps:$4 sm:$0xff]  }
 0x2cf   : > { %3697 = vmatmul.mubr.bf16.gmra.mrb[224].mxu0 %v9507_v8  ;;  %v3492_v10 = vpop.f32.mrb[121].mxu0  ;;  %v9544_v8 = vld [vmem:[%s12850_s3 + $0x4c4] ss:$16 sps:$4 sm:$0xff]  }
 0x2d0   : > { %3704 = vmatprep.mubr.bf16.mxu0 %v9508_v14 }
 0x2d5   : > { %4226 = vmatmul.mubr.bf16.gmra.mrb[152].mxu1 %v9351_v11  ;;  %v9417_v11 = vld [vmem:[%s12850_s3 + $0x208] ss:$16 sps:$4 sm:$0xff]  }
 0x2d6   : > { %7922 = vmatprep.mubr.msk.bf16.mxu1 %vm3151_vm0, %v9354_v12  ;;  %v10668_v12 = vpop.f32.mrb[122].mxu0 }
 0x2dd   : > { %4234 = vmatmul.mubr.bf16.gmra.mrb[156].mxu1 %v9357_v15  ;;  %v3495_v15 = vpop.f32.mrb[123].mxu0 }
 0x2de   : > { %7923 = vmatprep.mubr.msk.bf16.mxu1 %vm3151_vm0, %v9360_v16  ;;  %v9513_v16 = vld [vmem:[%s12850_s3 + $0x400] ss:$16 sps:$4 sm:$0xff]   ;;  %v10679_v17 = vpop.f32.mrb[124].mxu0  ;;  %v9459_v15 = vld [vmem:[%s12850_s3 + $0x2e8] ss:$16 sps:$4 sm:$0xff]  }
 0x2df   : > { %3705 = vmatmul.mubr.bf16.gmra.mrb[228].mxu0 %v9513_v16  ;;  %v3500_v18 = vpop.f32.mrb[125].mxu0 }
 0x2e0   : > { %3712 = vmatprep.mubr.bf16.mxu0 %v9514_v22  ;;  %v9462_v18 = vld [vmem:[%s12850_s3 + $0x30c] ss:$16 sps:$4 sm:$0xff]   ;;  %v9550_v22 = vld [vmem:[%s12850_s3 + $0x4e0] ss:$16 sps:$4 sm:$0xff]  }
 0x2e5   : > { %4242 = vmatmul.mubr.bf16.gmra.mrb[160].mxu1 %v9363_v19  ;;  %v9423_v19 = vld [vmem:[%s12850_s3 + $0x228] ss:$16 sps:$4 sm:$0xff]  }
 0x2e6   : > { %7924 = vmatprep.mubr.msk.bf16.mxu1 %vm3151_vm0, %v9366_v20  ;;  %v10685_v20 = vpop.f32.mrb[126].mxu0 }
 0x2ed   : > { %4250 = vmatmul.mubr.bf16.gmra.mrb[164].mxu1 %v9369_v23  ;;  %v3503_v23 = vpop.f32.mrb[127].mxu0 }
 0x2ee   : > { %7925 = vmatprep.mubr.msk.bf16.mxu1 %vm3151_vm0, %v9372_v24  ;;  %v9519_v24 = vld [vmem:[%s12850_s3 + $0x420] ss:$16 sps:$4 sm:$0xff]   ;;  %v10696_v25 = vpop.f32.mrb[128].mxu0 }
 0x2ef   : > { %3713 = vmatmul.mubr.bf16.gmra.mrb[232].mxu0 %v9519_v24  ;;  %v3508_v26 = vpop.f32.mrb[129].mxu0 }
 0x2f0   : > { %3720 = vmatprep.mubr.bf16.mxu0 %v9520_v30  ;;  %v9465_v26 = vld [vmem:[%s12850_s3 + $0x308] ss:$16 sps:$4 sm:$0xff]   ;;  %v9558_v30 = vld [vmem:[%s12850_s3 + $0x504] ss:$16 sps:$4 sm:$0xff]  }
 0x2f5   : > { %4258 = vmatmul.mubr.bf16.gmra.mrb[168].mxu1 %v9375_v27  ;;  %v9429_v27 = vld [vmem:[%s12850_s3 + $0x248] ss:$16 sps:$4 sm:$0xff]  }
 0x2f6   : > { %7926 = vmatprep.mubr.msk.bf16.mxu1 %vm3151_vm0, %v9378_v28  ;;  %v10702_v28 = vpop.f32.mrb[130].mxu0 }
 0x2fd   : > { %4266 = vmatmul.mubr.bf16.gmra.mrb[172].mxu1 %v9381_v31  ;;  %v3511_v31 = vpop.f32.mrb[131].mxu0 }
 0x2fe   : > { %7927 = vmatprep.mubr.msk.bf16.mxu1 %vm3151_vm0, %v9384_v32  ;;  %v9525_v32 = vld [vmem:[%s12850_s3 + $0x440] ss:$16 sps:$4 sm:$0xff]   ;;  %v10713_v35 = vpop.f32.mrb[132].mxu0 }
 0x2ff   : > { %3721 = vmatmul.mubr.bf16.gmra.mrb[236].mxu0 %v9525_v32  ;;  %v9556_v32 = vld [vmem:[%s12850_s3 + $0x500] ss:$16 sps:$4 sm:$0xff]  }
 0x300   : > { %3728 = vmatprep.mubr.bf16.mxu0 %v9526_v40 }
 0x305   : > { %4274 = vmatmul.mubr.bf16.gmra.mrb[176].mxu1 %v9387_v36  ;;  %v3516_v36 = vpop.f32.mrb[133].mxu0 }
 0x306   : > { %7928 = vmatprep.mubr.msk.bf16.mxu1 %vm3151_vm0, %v9390_v38  ;;  %v9435_v38 = vld [vmem:[%s12850_s3 + $0x268] ss:$16 sps:$4 sm:$0xff]   ;;  %v10719_v1 = vpop.f32.mrb[134].mxu0 }
 0x307   : > { %v3519_v42 = vpop.f32.mrb[135].mxu0 }
 0x308   : > { %v9474_v42 = vld [vmem:[%s12850_s3 + $0x34c] ss:$16 sps:$4 sm:$0xff]  }
 0x30d   : > { %4282 = vmatmul.mubr.bf16.gmra.mrb[180].mxu1 %v9393_v43  ;;  %v9531_v43 = vld [vmem:[%s12850_s3 + $0x460] ss:$16 sps:$4 sm:$0xff]  }
 0x30e   : > { %7929 = vmatprep.mubr.msk.bf16.mxu1 %vm3151_vm0, %v9396_v45  ;;  %3729 = vmatmul.mubr.bf16.gmra.mrb[240].mxu0 %v9531_v43  ;;  %v10730_v45 = vpop.f32.mrb[136].mxu0  ;;  %v9564_v43 = vld [vmem:[%s12850_s3 + $0x524] ss:$16 sps:$4 sm:$0xff]  }
 0x30f   : > { %v3524_v46 = vpop.f32.mrb[137].mxu0 }
 0x310   : > { %v10736_v48 = vpop.f32.mrb[138].mxu0 }
 0x315   : > { %4290 = vmatmul.mubr.bf16.gmra.mrb[184].mxu1 %v9399_v33  ;;  %v9532_v33 = vld [vmem:[%s12850_s3 + $0x484] ss:$16 sps:$4 sm:$0xff]  }
 0x316   : > { %7930 = vmatprep.mubr.msk.bf16.mxu1 %vm3151_vm0, %v9402_v52  ;;  %v3527_v52 = vpop.f32.mrb[139].mxu0  ;;  %3736 = vmatprep.mubr.bf16.mxu0 %v9532_v33 }
 0x317   : > { %3737 = vmatmul.mubr.bf16.gmra.mrb[244].mxu0 %v9537_v53  ;;  %v10747_v54 = vpop.f32.mrb[140].mxu0  ;;  %v9477_v52 = vld [vmem:[%s12850_s3 + $0x348] ss:$16 sps:$4 sm:$0xff]  }
 0x318   : > { %v3532_v55 = vpop.f32.mrb[141].mxu0  ;;  %3744 = vmatprep.mubr.bf16.mxu0 %v9538_v61  ;;  %v9568_v61 = vld [vmem:[%s12850_s3 + $0x540] ss:$16 sps:$4 sm:$0xff]  }
 0x319   : > { %v9480_v55 = vld [vmem:[%s12850_s3 + $0x36c] ss:$16 sps:$4 sm:$0xff]  }
 0x31d   : > { %4298 = vmatmul.mubr.bf16.gmra.mrb[188].mxu1 %v9405_v58  ;;  %v10753_v58 = vpop.f32.mrb[142].mxu0 }
 0x31e   : > { %7931 = vmatprep.mubr.msk.bf16.mxu1 %vm3151_vm0, %v9408_v60  ;;  %v9450_v60 = vld [vmem:[%s12850_s3 + $0x2cc] ss:$16 sps:$4 sm:$0xff]   ;;  %v3535_v62 = vpop.f32.mrb[143].mxu0 }
 0x31f   : > { %3745 = vmatmul.mubr.bf16.gmra.mrb[248].mxu0 %v9543_v63  ;;  %v10764_v2 = vpop.f32.mrb[144].mxu0 }
 0x320   : > { %3752 = vmatprep.mubr.bf16.mxu0 %v9544_v8  ;;  %v9483_v8 = vld [vmem:[%s12850_s3 + $0x368] ss:$16 sps:$4 sm:$0xff]  }
 0x325   : > { %4306 = vmatmul.mubr.bf16.gmra.mrb[192].mxu1 %v9411_v3  ;;  %v3540_v3 = vpop.f32.mrb[145].mxu0 }
 0x326   : > { %7932 = vmatprep.mubr.msk.bf16.mxu1 %vm3151_vm0, %v9414_v5  ;;  %v9453_v5 = vld [vmem:[%s12850_s3 + $0x2c8] ss:$16 sps:$4 sm:$0xff]   ;;  %v10770_v6 = vpop.f32.mrb[146].mxu0 }
 0x327   : > { %v3543_v10 = vpop.f32.mrb[147].mxu0 }
 0x32d   : > { %4314 = vmatmul.mubr.bf16.gmra.mrb[196].mxu1 %v9417_v11  ;;  %v9549_v11 = vld [vmem:[%s12850_s3 + $0x4c0] ss:$16 sps:$4 sm:$0xff]  }
 0x32e   : > { %7933 = vmatprep.mubr.msk.bf16.mxu1 %vm3151_vm0, %v9420_v13  ;;  %3753 = vmatmul.mubr.bf16.gmra.mrb[252].mxu0 %v9549_v11  ;;  %v10782_v13 = vpop.f32.mrb[148].mxu0 }
 0x32f   : > { %v3548_v14 = vpop.f32.mrb[149].mxu0 }
 0x330   : > { %v10787_v16 = vpop.f32.mrb[150].mxu0  ;;  %v9486_v14 = vld [vmem:[%s12850_s3 + $0x38c] ss:$16 sps:$4 sm:$0xff]  }
 0x335   : > { %4322 = vmatmul.mubr.bf16.gmra.mrb[200].mxu1 %v9423_v19  ;;  %v9552_v19 = vld [vmem:[%s12850_s3 + $0x4e4] ss:$16 sps:$4 sm:$0xff]  }
 0x336   : > { %7934 = vmatprep.mubr.msk.bf16.mxu1 %vm3151_vm0, %v9426_v21  ;;  %v3551_v21 = vpop.f32.mrb[151].mxu0  ;;  %3760 = vmatprep.mubr.bf16.mxu0 %v9552_v19 }
 0x337   : > { %3761 = vmatmul.mubr.bf16.gmra.mrb[0].mxu0 %v9550_v22  ;;  %v10799_v23 = vpop.f32.mrb[152].mxu0  ;;  %v9574_v21 = vld [vmem:[%s12850_s3 + $0x560] ss:$16 sps:$4 sm:$0xff]  }
 0x338   : > { %v3556_v24 = vpop.f32.mrb[153].mxu0  ;;  %3768 = vmatprep.mubr.bf16.mxu0 %v9558_v30 }
 0x33d   : > { %4330 = vmatmul.mubr.bf16.gmra.mrb[204].mxu1 %v9429_v27  ;;  %v10804_v27 = vpop.f32.mrb[154].mxu0 }
 0x33e   : > { %7935 = vmatprep.mubr.msk.bf16.mxu1 %vm3151_vm0, %v9432_v29  ;;  %v9468_v29 = vld [vmem:[%s12850_s3 + $0x32c] ss:$16 sps:$4 sm:$0xff]   ;;  %v3559_v31 = vpop.f32.mrb[155].mxu0 }
 0x33f   : > { %3769 = vmatmul.mubr.bf16.gmra.mrb[4].mxu0 %v9556_v32  ;;  %v10816_v36 = vpop.f32.mrb[156].mxu0 }
 0x340   : > { %3776 = vmatprep.mubr.bf16.mxu0 %v9564_v43 }
 0x345   : > { %4338 = vmatmul.mubr.bf16.gmra.mrb[208].mxu1 %v9435_v38  ;;  %v3564_v38 = vpop.f32.mrb[157].mxu0 }
 0x346   : > { %7936 = vmatprep.mubr.msk.bf16.mxu1 %vm3151_vm0, %v9438_v39  ;;  %v9471_v39 = vld [vmem:[%s12850_s3 + $0x328] ss:$16 sps:$4 sm:$0xff]   ;;  %v10821_v40 = vpop.f32.mrb[158].mxu0  ;;  %v9492_v38 = vld [vmem:[%s12850_s3 + $0x3ac] ss:$16 sps:$4 sm:$0xff]  }
 0x347   : > { %v3567_v46 = vpop.f32.mrb[159].mxu0 }
 0x348   : > { %v9580_v46 = vld [vmem:[%s12850_s3 + $0x580] ss:$16 sps:$4 sm:$0xff]  }
 0x34d   : > { %4346 = vmatmul.mubr.bf16.gmra.mrb[212].mxu1 %v9441_v47  ;;  %v9562_v47 = vld [vmem:[%s12850_s3 + $0x520] ss:$16 sps:$4 sm:$0xff]  }
 0x34e   : > { %7937 = vmatprep.mubr.msk.bf16.mxu1 %vm3151_vm0, %v9444_v50  ;;  %3777 = vmatmul.mubr.bf16.gmra.mrb[8].mxu0 %v9562_v47  ;;  %v10832_v50 = vpop.f32.mrb[160].mxu0 }
 0x34f   : > { %v3572_v33 = vpop.f32.mrb[161].mxu0 }
 0x350   : > { %v10838_v53 = vpop.f32.mrb[162].mxu0 }
 0x355   : > { %4354 = vmatmul.mubr.bf16.gmra.mrb[216].mxu1 %v9447_v57  ;;  %v9570_v57 = vld [vmem:[%s12850_s3 + $0x544] ss:$16 sps:$4 sm:$0xff]  }
 0x356   : > { %7938 = vmatprep.mubr.msk.bf16.mxu1 %vm3151_vm0, %v9450_v60  ;;  %v3575_v60 = vpop.f32.mrb[163].mxu0  ;;  %3784 = vmatprep.mubr.bf16.mxu0 %v9570_v57 }
 0x357   : > { %3785 = vmatmul.mubr.bf16.gmra.mrb[12].mxu0 %v9568_v61  ;;  %v10849_v62 = vpop.f32.mrb[164].mxu0 }
 0x358   : > { %v3580_v63 = vpop.f32.mrb[165].mxu0 }
 0x359   : > { %v10858_v10 = vpop.f32.mrb[166].mxu0  ;;  %v9498_v63 = vld [vmem:[%s12850_s3 + $0x3cc] ss:$16 sps:$4 sm:$0xff]  }
 0x35d   : > { %4362 = vmatmul.mubr.bf16.gmra.mrb[220].mxu1 %v9453_v5 }
 0x35e   : > { %7939 = vmatprep.mubr.msk.bf16.mxu1 %vm3151_vm0, %v9456_v7 }
 0x365   : > { %4370 = vmatmul.mubr.bf16.gmra.mrb[224].mxu1 %v9459_v15  ;;  %v9576_v15 = vld [vmem:[%s12850_s3 + $0x564] ss:$16 sps:$4 sm:$0xff]  }
 0x366   : > { %7940 = vmatprep.mubr.msk.bf16.mxu1 %vm3151_vm0, %v9462_v18  ;;  %v3583_v18 = vpop.f32.mrb[167].mxu0  ;;  %3792 = vmatprep.mubr.bf16.mxu0 %v9576_v15 }
 0x367   : > { %3793 = vmatmul.mubr.bf16.gmra.mrb[16].mxu0 %v9574_v21  ;;  %v10872_v22 = vpop.f32.mrb[168].mxu0 }
 0x368   : > { %v3588_v24 = vpop.f32.mrb[169].mxu0 }
 0x369   : > { %v10881_v31 = vpop.f32.mrb[170].mxu0 }
 0x36d   : > { %4378 = vmatmul.mubr.bf16.gmra.mrb[228].mxu1 %v9465_v26 }
 0x36e   : > { %7941 = vmatprep.mubr.msk.bf16.mxu1 %vm3151_vm0, %v9468_v29 }
 0x375   : > { %4386 = vmatmul.mubr.bf16.gmra.mrb[232].mxu1 %v9471_v39  ;;  %v9582_v39 = vld [vmem:[%s12850_s3 + $0x584] ss:$16 sps:$4 sm:$0xff]  }
 0x376   : > { %7942 = vmatprep.mubr.msk.bf16.mxu1 %vm3151_vm0, %v9474_v42  ;;  %v3591_v42 = vpop.f32.mrb[171].mxu0  ;;  %3800 = vmatprep.mubr.bf16.mxu0 %v9582_v39  ;;  %v9592_v39 = vld [vmem:[%s12850_s3 + $0x5c0] ss:$16 sps:$4 sm:$0xff]  }
 0x377   : > { %3801 = vmatmul.mubr.bf16.gmra.mrb[20].mxu0 %v9580_v46  ;;  %v10895_v47 = vpop.f32.mrb[172].mxu0 }
 0x378   : > { %v3596_v33 = vpop.f32.mrb[173].mxu0 }
 0x379   : > { %v10904_v60 = vpop.f32.mrb[174].mxu0 }
 0x37d   : > { %4394 = vmatmul.mubr.bf16.gmra.mrb[236].mxu1 %v9477_v52 }
 0x37e   : > { %7943 = vmatprep.mubr.msk.bf16.mxu1 %vm3151_vm0, %v9480_v55 }
 0x380   : > { %v4187_v3 = vpop.f32.mrb[132].mxu1 }
 0x381   : > { %v10853_v5 = vadd.f32 %v4187_v3, %v10577_v34  ;;  %v4189_v7 = vpop.f32.mrb[133].mxu1  ;;  %v9588_v3 = vld [vmem:[%s12850_s3 + $0x5a4] ss:$16 sps:$4 sm:$0xff]  }
 0x382   : > { %v4190_v11 = vpop.f32.mrb[134].mxu1  ;;  %v3599_v7 = vpop.f32.mrb[175].mxu0  ;;  %3808 = vmatprep.mubr.bf16.mxu0 %v9588_v3 }
 0x383   : > { %v10867_v34 = vadd.f32 %v4190_v11, %v10583_v37  ;;  %v4192_v19 = vpop.f32.mrb[135].mxu1  ;;  %v9489_v37 = vld [vmem:[%s12850_s3 + $0x388] ss:$16 sps:$4 sm:$0xff]   ;;  %v9586_v11 = vld [vmem:[%s12850_s3 + $0x5a0] ss:$16 sps:$4 sm:$0xff]  }
 0x384   : > { %3809 = vmatmul.mubr.bf16.gmra.mrb[24].mxu0 %v9586_v11 }
 0x385   : > { %4402 = vmatmul.mubr.bf16.gmra.mrb[240].mxu1 %v9483_v8 }
 0x386   : > { %7944 = vmatprep.mubr.msk.bf16.mxu1 %vm3151_vm0, %v9486_v14  ;;  %v10918_v14 = vpop.f32.mrb[176].mxu0 }
 0x387   : > { %v3604_v15 = vpop.f32.mrb[177].mxu0 }
 0x388   : > { %v4195_v26 = vpop.f32.mrb[136].mxu1  ;;  %v10927_v24 = vpop.f32.mrb[178].mxu0 }
 0x389   : > { %v10876_v29 = vadd.f32 %v4195_v26, %v10594_v41  ;;  %v4197_v30 = vpop.f32.mrb[137].mxu1 }
 0x38a   : > { %v4198_v32 = vpop.f32.mrb[138].mxu1  ;;  %v9506_v30 = vld [vmem:[%s12850_s3 + $0x3ec] ss:$16 sps:$4 sm:$0xff]  }
 0x38b   : > { %v10890_v41 = vadd.f32 %v4198_v32, %v10600_v44  ;;  %v4200_v43 = vpop.f32.mrb[139].mxu1  ;;  %v9495_v44 = vld [vmem:[%s12850_s3 + $0x3a8] ss:$16 sps:$4 sm:$0xff]   ;;  %v3607_v32 = vpop.f32.mrb[179].mxu0 }
 0x38c   : > { %v10941_v42 = vpop.f32.mrb[180].mxu0  ;;  %v9606_v32 = vld [vmem:[%s12850_s3 + $0x604] ss:$16 sps:$4 sm:$0xff]  }
 0x38d   : > { %4410 = vmatmul.mubr.bf16.gmra.mrb[244].mxu1 %v9489_v37  ;;  %v9594_v37 = vld [vmem:[%s12850_s3 + $0x5c4] ss:$16 sps:$4 sm:$0xff]   ;;  %v3612_v43 = vpop.f32.mrb[181].mxu0 }
 0x38e   : > { %7945 = vmatprep.mubr.msk.bf16.mxu1 %vm3151_vm0, %v9492_v38  ;;  %3816 = vmatprep.mubr.bf16.mxu0 %v9594_v37 }
 0x38f   : > { %3817 = vmatmul.mubr.bf16.gmra.mrb[28].mxu0 %v9592_v39  ;;  %v9604_v39 = vld [vmem:[%s12850_s3 + $0x600] ss:$16 sps:$4 sm:$0xff]  }
 0x390   : > { %v4203_v52 = vpop.f32.mrb[140].mxu1 }
 0x391   : > { %v10899_v55 = vadd.f32 %v4203_v52, %v10611_v49  ;;  %v4205_v57 = vpop.f32.mrb[141].mxu1 }
 0x392   : > { %v4206_v61 = vpop.f32.mrb[142].mxu1  ;;  %v10950_v57 = vpop.f32.mrb[182].mxu0 }
 0x393   : > { %v10913_v49 = vadd.f32 %v4206_v61, %v10617_v51  ;;  %v4208_v8 = vpop.f32.mrb[143].mxu1  ;;  %v9501_v51 = vld [vmem:[%s12850_s3 + $0x3c8] ss:$16 sps:$4 sm:$0xff]   ;;  %v9512_v61 = vld [vmem:[%s12850_s3 + $0x40c] ss:$16 sps:$4 sm:$0xff]   ;;  %v3615_v3 = vpop.f32.mrb[183].mxu0 }
 0x394   : > { %v9598_v8 = vld [vmem:[%s12850_s3 + $0x5e0] ss:$16 sps:$4 sm:$0xff]   ;;  %v10965_v15 = vpop.f32.mrb[184].mxu0  ;;  %v9524_v3 = vld [vmem:[%s12850_s3 + $0x44c] ss:$16 sps:$4 sm:$0xff]  }
 0x395   : > { %4418 = vmatmul.mubr.bf16.gmra.mrb[248].mxu1 %v9495_v44 }
 0x396   : > { %7946 = vmatprep.mubr.msk.bf16.mxu1 %vm3151_vm0, %v9498_v63  ;;  %v9600_v63 = vld [vmem:[%s12850_s3 + $0x5e4] ss:$16 sps:$4 sm:$0xff]  }
 0x397   : > { %3824 = vmatprep.mubr.bf16.mxu0 %v9600_v63 }
 0x398   : > { %v4211_v18 = vpop.f32.mrb[144].mxu1  ;;  %3825 = vmatmul.mubr.bf16.gmra.mrb[32].mxu0 %v9598_v8  ;;  %v9612_v8 = vld [vmem:[%s12850_s3 + $0x624] ss:$16 sps:$4 sm:$0xff]  }
 0x399   : > { %v10922_v19 = vadd.f32 %v4211_v18, %v10628_v56  ;;  %v4213_v21 = vpop.f32.mrb[145].mxu1  ;;  %3832 = vmatprep.mubr.bf16.mxu0 %v9606_v32 }
 0x39a   : > { %v4214_v26 = vpop.f32.mrb[146].mxu1 }
 0x39b   : > { %12858 = vst [vmem:[#allocation2_spill] sm:$0xff] %v10922_v19  ;;  %v10936_v56 = vadd.f32 %v4214_v26, %v10634_v59  ;;  %v4216_v38 = vpop.f32.mrb[147].mxu1  ;;  %v9504_v59 = vld [vmem:[%s12850_s3 + $0x3e8] ss:$16 sps:$4 sm:$0xff]  }
 0x39d   : > { %12859 = vst [vmem:[#allocation3_spill] sm:$0xff] %v10936_v56  ;;  %4426 = vmatmul.mubr.bf16.gmra.mrb[252].mxu1 %v9501_v51  ;;  %v3620_v51 = vpop.f32.mrb[185].mxu0 }
 0x39e   : > { %7947 = vmatprep.mubr.msk.bf16.mxu1 %vm3151_vm0, %v9506_v30  ;;  %v9518_v30 = vld [vmem:[%s12850_s3 + $0x42c] ss:$16 sps:$4 sm:$0xff]   ;;  %v10976_v37 = vpop.f32.mrb[186].mxu0 }
 0x39f   : > { %v3623_v43 = vpop.f32.mrb[187].mxu0 }
 0x3a0   : > { %v4219_v46 = vpop.f32.mrb[148].mxu1  ;;  %3833 = vmatmul.mubr.bf16.gmra.mrb[36].mxu0 %v9604_v39  ;;  %v9530_v43 = vld [vmem:[%s12850_s3 + $0x46c] ss:$16 sps:$4 sm:$0xff]  }
 0x3a1   : > { %v10945_v33 = vadd.f32 %v4219_v46, %v10645_v0  ;;  %v4221_v52 = vpop.f32.mrb[149].mxu1  ;;  %3840 = vmatprep.mubr.bf16.mxu0 %v9612_v8 }
 0x3a2   : > { %v4222_v44 = vpop.f32.mrb[150].mxu1  ;;  %v10986_v52 = vpop.f32.mrb[188].mxu0 }
 0x3a3   : > { %12860 = vst [vmem:[#allocation4_spill] sm:$0xff] %v10945_v33  ;;  %v10959_v0 = vadd.f32 %v4222_v44, %v10651_v4  ;;  %v4224_v7 = vpop.f32.mrb[151].mxu1  ;;  %v9510_v4 = vld [vmem:[%s12850_s3 + $0x408] ss:$16 sps:$4 sm:$0xff]  }
 0x3a4   : > { %v9516_v44 = vld [vmem:[%s12850_s3 + $0x428] ss:$16 sps:$4 sm:$0xff]  }
 0x3a5   : > { %12861 = vst [vmem:[#allocation5_spill] sm:$0xff] %v10959_v0  ;;  %4434 = vmatmul.mubr.bf16.gmra.mrb[132].mxu1 %v9504_v59  ;;  %v9589_v33 = vld [vmem:[%s12850_s3 + $0x5a8] ss:$16 sps:$4 sm:$0xff]  }
 0x3a6   : > { %7948 = vmatprep.mubr.msk.bf16.mxu1 %vm3151_vm0, %v9512_v61  ;;  %v3628_v61 = vpop.f32.mrb[189].mxu0 }
 0x3a7   : > { %v10995_v7 = vpop.f32.mrb[190].mxu0 }
 0x3a8   : > { %v4227_v11 = vpop.f32.mrb[152].mxu1  ;;  %v3631_v51 = vpop.f32.mrb[191].mxu0 }
 0x3a9   : > { %v10968_v18 = vadd.f32 %v4227_v11, %v10662_v9  ;;  %v4229_v21 = vpop.f32.mrb[153].mxu1  ;;  %v9536_v51 = vld [vmem:[%s12850_s3 + $0x48c] ss:$16 sps:$4 sm:$0xff]  }
 0x3aa   : > { %v4230_v26 = vpop.f32.mrb[154].mxu1 }
 0x3ab   : > { %12862 = vst [vmem:[#allocation6_spill] sm:$0xff] %v10968_v18  ;;  %v4232_v38 = vpop.f32.mrb[155].mxu1  ;;  %v4231_v9 = vadd.f32 %v4230_v26, %v10668_v12 }
 0x3ad   : > { %4442 = vmatmul.mubr.bf16.gmra.mrb[136].mxu1 %v9510_v4 }
 0x3ae   : > { %7949 = vmatprep.mubr.msk.bf16.mxu1 %vm3151_vm0, %v9518_v30  ;;  %v11006_v30 = vpop.f32.mrb[192].mxu0 }
 0x3b0   : > { %v4235_v46 = vpop.f32.mrb[156].mxu1 }
 0x3b1   : > { %v4237_v59 = vpop.f32.mrb[157].mxu1  ;;  %v4236_v12 = vadd.f32 %v4235_v46, %v10679_v17  ;;  %v9610_v17 = vld [vmem:[%s12850_s3 + $0x620] ss:$16 sps:$4 sm:$0xff]  }
 0x3b2   : > { %v4238_v63 = vpop.f32.mrb[158].mxu1  ;;  %3841 = vmatmul.mubr.bf16.gmra.mrb[40].mxu0 %v9610_v17  ;;  %v9618_v59 = vld [vmem:[%s12850_s3 + $0x644] ss:$16 sps:$4 sm:$0xff]  }
 0x3b3   : > { %v4240_v11 = vpop.f32.mrb[159].mxu1  ;;  %v8791_v21 = vpack.i.bf16 %v4236_v12, %v4231_v9  ;;  %v4239_v4 = vadd.f32 %v4238_v63, %v10685_v20  ;;  %v9522_v20 = vld [vmem:[%s12850_s3 + $0x448] ss:$16 sps:$4 sm:$0xff]   ;;  %v3636_v9 = vpop.f32.mrb[193].mxu0  ;;  %3848 = vmatprep.mubr.bf16.mxu0 %v9618_v59 }
 0x3b4   : > { %v11015_v46 = vpop.f32.mrb[194].mxu0  ;;  %v9622_v9 = vld [vmem:[%s12850_s3 + $0x660] ss:$16 sps:$4 sm:$0xff]  }
 0x3b5   : > { %4450 = vmatmul.mubr.bf16.gmra.mrb[140].mxu1 %v9516_v44  ;;  %8792 = vrot.lane.b32.xlu0 %v8791_v21, %s9858_s26  ;;  %v3639_v63 = vpop.f32.mrb[195].mxu0  ;;  %v9528_v21 = vld [vmem:[%s12850_s3 + $0x468] ss:$16 sps:$4 sm:$0xff]  }
 0x3b6   : > { %7950 = vmatprep.mubr.msk.bf16.mxu1 %vm3151_vm0, %v9524_v3  ;;  %v11026_v8 = vpop.f32.mrb[196].mxu0 }
 0x3b8   : > { %v4243_v26 = vpop.f32.mrb[160].mxu1 }
 0x3b9   : > { %v4245_v32 = vpop.f32.mrb[161].mxu1  ;;  %v4244_v38 = vadd.f32 %v4243_v26, %v10696_v25  ;;  %v9616_v25 = vld [vmem:[%s12850_s3 + $0x640] ss:$16 sps:$4 sm:$0xff]  }
 0x3ba   : > { %v4246_v39 = vpop.f32.mrb[162].mxu1  ;;  %3849 = vmatmul.mubr.bf16.gmra.mrb[44].mxu0 %v9616_v25  ;;  %v9624_v32 = vld [vmem:[%s12850_s3 + $0x664] ss:$16 sps:$4 sm:$0xff]  }
 0x3bb   : > { %v4247_v44 = vadd.f32 %v4246_v39, %v10702_v28  ;;  %v4248_v12 = vpop.f32.mrb[163].mxu1  ;;  %v8796_v61 = vpack.i.bf16 %v4244_v38, %v4239_v4  ;;  %v3644_v4 = vpop.f32.mrb[197].mxu0  ;;  %3856 = vmatprep.mubr.bf16.mxu0 %v9624_v32 }
 0x3bc   : > { %v11035_v26 = vpop.f32.mrb[198].mxu0 }
 0x3bd   : > { %4458 = vmatmul.mubr.bf16.gmra.mrb[144].mxu1 %v9522_v20  ;;  %8797 = vrot.lane.b32.xlu1 %v8796_v61, %s9858_s26  ;;  %v3647_v39 = vpop.f32.mrb[199].mxu0 }
 0x3be   : > { %7951 = vmatprep.mubr.msk.bf16.mxu1 %vm3151_vm0, %v9530_v43  ;;  %v11045_v43 = vpop.f32.mrb[200].mxu0  ;;  %v9548_v39 = vld [vmem:[%s12850_s3 + $0x4cc] ss:$16 sps:$4 sm:$0xff]  }
 0x3bf   : > { %v3652_v59 = vpop.f32.mrb[201].mxu0 }
 0x3c0   : > { %v4251_v3 = vpop.f32.mrb[164].mxu1  ;;  %v11052_v25 = vpop.f32.mrb[202].mxu0 }
 0x3c1   : > { %v4252_v11 = vadd.f32 %v4251_v3, %v10713_v35  ;;  %v4253_v28 = vpop.f32.mrb[165].mxu1  ;;  %v9542_v3 = vld [vmem:[%s12850_s3 + $0x4ac] ss:$16 sps:$4 sm:$0xff]  }
 0x3c2   : > { %v4254_v17 = vpop.f32.mrb[166].mxu1  ;;  %3857 = vmatmul.mubr.bf16.gmra.mrb[48].mxu0 %v9622_v9  ;;  %v3655_v28 = vpop.f32.mrb[203].mxu0 }
 0x3c3   : > { %v4255_v20 = vadd.f32 %v4254_v17, %v10719_v1  ;;  %v4256_v35 = vpop.f32.mrb[167].mxu1  ;;  %v8801_v38 = vpack.i.bf16 %v4252_v11, %v4247_v44  ;;  %v9534_v44 = vld [vmem:[%s12850_s3 + $0x488] ss:$16 sps:$4 sm:$0xff]   ;;  %v9630_v11 = vld [vmem:[%s12850_s3 + $0x684] ss:$16 sps:$4 sm:$0xff]  }
 0x3c4   : > { %v9628_v17 = vld [vmem:[%s12850_s3 + $0x680] ss:$16 sps:$4 sm:$0xff]   ;;  %3864 = vmatprep.mubr.bf16.mxu0 %v9630_v11 }
 0x3c5   : > { %4466 = vmatmul.mubr.bf16.gmra.mrb[148].mxu1 %v9528_v21  ;;  %8802 = vrot.lane.b32.xlu1 %v8801_v38, %s9858_s26 }
 0x3c6   : > { %7952 = vmatprep.mubr.msk.bf16.mxu1 %vm3151_vm0, %v9536_v51  ;;  %v11067_v51 = vpop.f32.mrb[204].mxu0 }
 0x3c7   : > { %v3660_v32 = vpop.f32.mrb[205].mxu0 }
 0x3c8   : > { %v4259_v12 = vpop.f32.mrb[168].mxu1  ;;  %v11079_v59 = vpop.f32.mrb[206].mxu0  ;;  %v9555_v32 = vld [vmem:[%s12850_s3 + $0x4ec] ss:$16 sps:$4 sm:$0xff]  }
 0x3c9   : > { %v4260_v1 = vadd.f32 %v4259_v12, %v10730_v45  ;;  %v4261_v61 = vpop.f32.mrb[169].mxu1  ;;  %v9636_v12 = vld [vmem:[%s12850_s3 + $0x6a4] ss:$16 sps:$4 sm:$0xff]  }
 0x3ca   : > { %v4262_v63 = vpop.f32.mrb[170].mxu1  ;;  %3865 = vmatmul.mubr.bf16.gmra.mrb[52].mxu0 %v9628_v17  ;;  %v9634_v61 = vld [vmem:[%s12850_s3 + $0x6a0] ss:$16 sps:$4 sm:$0xff]  }
 0x3cb   : > { %v11061_v21 = vadd.f32 %v4262_v63, %v10736_v48  ;;  %v4264_v45 = vpop.f32.mrb[171].mxu1  ;;  %v8806_v4 = vpack.i.bf16 %v4260_v1, %v4255_v20  ;;  %v9540_v20 = vld [vmem:[%s12850_s3 + $0x4a8] ss:$16 sps:$4 sm:$0xff]   ;;  %3872 = vmatprep.mubr.bf16.mxu0 %v9636_v12 }
 0x3cc   : > { %v9546_v45 = vld [vmem:[%s12850_s3 + $0x4c8] ss:$16 sps:$4 sm:$0xff]  }
 0x3cd   : > { %4474 = vmatmul.mubr.bf16.gmra.mrb[152].mxu1 %v9534_v44  ;;  %8807 = vrot.lane.b32.xlu1 %v8806_v4, %s9858_s26  ;;  %v3663_v44 = vpop.f32.mrb[207].mxu0  ;;  %v9583_v63 = vld [vmem:[%s12850_s3 + $0x588] ss:$16 sps:$4 sm:$0xff]  }
 0x3ce   : > { %7953 = vmatprep.mubr.msk.bf16.mxu1 %vm3151_vm0, %v9542_v3  ;;  %v11093_v11 = vpop.f32.mrb[208].mxu0 }
 0x3cf   : > { %v3668_v4 = vpop.f32.mrb[209].mxu0 }
 0x3d0   : > { %v4267_v35 = vpop.f32.mrb[172].mxu1 }
 0x3d1   : > { %v11071_v48 = vadd.f32 %v4267_v35, %v10747_v54  ;;  %v4269_v38 = vpop.f32.mrb[173].mxu1  ;;  %v11102_v35 = vpop.f32.mrb[210].mxu0 }
 0x3d2   : > { %v4270_v9 = vpop.f32.mrb[174].mxu1  ;;  %3873 = vmatmul.mubr.bf16.gmra.mrb[56].mxu0 %v9634_v61  ;;  %v9642_v38 = vld [vmem:[%s12850_s3 + $0x6c4] ss:$16 sps:$4 sm:$0xff]  }
 0x3d3   : > { %v11085_v1 = vadd.f32 %v4270_v9, %v10753_v58  ;;  %v4272_v54 = vpop.f32.mrb[175].mxu1  ;;  %v9640_v9 = vld [vmem:[%s12850_s3 + $0x6c0] ss:$16 sps:$4 sm:$0xff]   ;;  %3880 = vmatprep.mubr.bf16.mxu0 %v9642_v38 }
 0x3d5   : > { %4482 = vmatmul.mubr.bf16.gmra.mrb[156].mxu1 %v9540_v20 }
 0x3d6   : > { %7954 = vmatprep.mubr.msk.bf16.mxu1 %vm3151_vm0, %v9548_v39  ;;  %v3671_v39 = vpop.f32.mrb[211].mxu0 }
 0x3d7   : > { %v11113_v61 = vpop.f32.mrb[212].mxu0 }
 0x3d8   : > { %v4275_v3 = vpop.f32.mrb[176].mxu1 }
 0x3d9   : > { %v4276_v58 = vadd.f32 %v4275_v3, %v10764_v2  ;;  %v4277_v28 = vpop.f32.mrb[177].mxu1  ;;  %v9553_v3 = vld [vmem:[%s12850_s3 + $0x4e8] ss:$16 sps:$4 sm:$0xff]  }
 0x3da   : > { %v4278_v17 = vpop.f32.mrb[178].mxu1  ;;  %3881 = vmatmul.mubr.bf16.gmra.mrb[60].mxu0 %v9640_v9  ;;  %v3676_v28 = vpop.f32.mrb[213].mxu0 }
 0x3db   : > { %v4279_v20 = vadd.f32 %v4278_v17, %v10770_v6  ;;  %v4280_v2 = vpop.f32.mrb[179].mxu1 }
 0x3dd   : > { %4490 = vmatmul.mubr.bf16.gmra.mrb[160].mxu1 %v9546_v45  ;;  %v8811_v12 = vpack.i.bf16 %v4279_v20, %v4276_v58  ;;  %v9561_v58 = vld [vmem:[%s12850_s3 + $0x50c] ss:$16 sps:$4 sm:$0xff]   ;;  %v11122_v45 = vpop.f32.mrb[214].mxu0 }
 0x3de   : > { %7955 = vmatprep.mubr.msk.bf16.mxu1 %vm3151_vm0, %v9555_v32  ;;  %v3679_v38 = vpop.f32.mrb[215].mxu0 }
 0x3df   : > { %8812 = vrot.lane.b32.xlu1 %v8811_v12, %s9859_s12  ;;  %v11127_v2 = vpop.f32.mrb[216].mxu0  ;;  %v9559_v12 = vld [vmem:[%s12850_s3 + $0x508] ss:$16 sps:$4 sm:$0xff]  }
 0x3e0   : > { %v4283_v54 = vpop.f32.mrb[180].mxu1 }
 0x3e1   : > { %v4284_v6 = vadd.f32 %v4283_v54, %v10782_v13  ;;  %v4285_v44 = vpop.f32.mrb[181].mxu1  ;;  %v3684_v54 = vpop.f32.mrb[217].mxu0 }
 0x3e2   : > { %v4286_v4 = vpop.f32.mrb[182].mxu1  ;;  %v11136_v44 = vpop.f32.mrb[218].mxu0 }
 0x3e3   : > { %v4287_v17 = vadd.f32 %v4286_v4, %v10787_v16  ;;  %v4288_v32 = vpop.f32.mrb[183].mxu1  ;;  %v3687_v4 = vpop.f32.mrb[219].mxu0 }
 0x3e5   : > { %4498 = vmatmul.mubr.bf16.gmra.mrb[164].mxu1 %v9553_v3  ;;  %v8816_v20 = vpack.i.bf16 %v4287_v17, %v4284_v6  ;;  %v9567_v6 = vld [vmem:[%s12850_s3 + $0x52c] ss:$16 sps:$4 sm:$0xff]   ;;  %v11141_v17 = vpop.f32.mrb[220].mxu0 }
 0x3e6   : > { %7956 = vmatprep.mubr.msk.bf16.mxu1 %vm3151_vm0, %v9561_v58 }
 0x3e7   : > { %8817 = vrot.lane.b32.xlu1 %v8816_v20, %s9859_s12  ;;  %v9565_v20 = vld [vmem:[%s12850_s3 + $0x528] ss:$16 sps:$4 sm:$0xff]  }
 0x3e8   : > { %v4291_v13 = vpop.f32.mrb[184].mxu1 }
 0x3e9   : > { %v4292_v9 = vadd.f32 %v4291_v13, %v10799_v23  ;;  %v4293_v39 = vpop.f32.mrb[185].mxu1 }
 0x3ea   : > { %v4294_v16 = vpop.f32.mrb[186].mxu1 }
 0x3eb   : > { %v4295_v3 = vadd.f32 %v4294_v16, %v10804_v27  ;;  %v4296_v28 = vpop.f32.mrb[187].mxu1  ;;  %v3692_v27 = vpop.f32.mrb[221].mxu0 }
 0x3ec   : > { %v11152_v39 = vpop.f32.mrb[222].mxu0 }
 0x3ed   : > { %4506 = vmatmul.mubr.bf16.gmra.mrb[168].mxu1 %v9559_v12  ;;  %v8821_v58 = vpack.i.bf16 %v4295_v3, %v4292_v9  ;;  %v9573_v9 = vld [vmem:[%s12850_s3 + $0x54c] ss:$16 sps:$4 sm:$0xff]   ;;  %v3695_v16 = vpop.f32.mrb[223].mxu0 }
 0x3ee   : > { %7957 = vmatprep.mubr.msk.bf16.mxu1 %vm3151_vm0, %v9567_v6  ;;  %v11160_v3 = vpop.f32.mrb[224].mxu0 }
 0x3ef   : > { %8822 = vrot.lane.b32.xlu1 %v8821_v58, %s9859_s12  ;;  %v3700_v58 = vpop.f32.mrb[225].mxu0 }
 0x3f0   : > { %v4299_v23 = vpop.f32.mrb[188].mxu1 }
 0x3f1   : > { %v11144_v32 = vadd.f32 %v4299_v23, %v10816_v36  ;;  %v4301_v38 = vpop.f32.mrb[189].mxu1 }
 0x3f2   : > { %v4302_v13 = vpop.f32.mrb[190].mxu1  ;;  %v9579_v38 = vld [vmem:[%s12850_s3 + $0x56c] ss:$16 sps:$4 sm:$0xff]  }
 0x3f3   : > { %v11155_v12 = vadd.f32 %v4302_v13, %v10821_v40  ;;  %v4304_v54 = vpop.f32.mrb[191].mxu1  ;;  %v9571_v40 = vld [vmem:[%s12850_s3 + $0x548] ss:$16 sps:$4 sm:$0xff]  }
 0x3f5   : > { %4514 = vmatmul.mubr.bf16.gmra.mrb[172].mxu1 %v9565_v20  ;;  %v11171_v20 = vpop.f32.mrb[226].mxu0 }
 0x3f6   : > { %7958 = vmatprep.mubr.msk.bf16.mxu1 %vm3151_vm0, %v9573_v9  ;;  %v3703_v9 = vpop.f32.mrb[227].mxu0 }
 0x3f7   : > { %v11179_v16 = vpop.f32.mrb[228].mxu0 }
 0x3f8   : > { %v4307_v6 = vpop.f32.mrb[192].mxu1  ;;  %v3708_v58 = vpop.f32.mrb[229].mxu0 }
 0x3f9   : > { %v11163_v28 = vadd.f32 %v4307_v6, %v10832_v50  ;;  %v4309_v4 = vpop.f32.mrb[193].mxu1 }
 0x3fa   : > { %v4310_v23 = vpop.f32.mrb[194].mxu1 }
 0x3fb   : > { %v11174_v27 = vadd.f32 %v4310_v23, %v10838_v53  ;;  %v4312_v13 = vpop.f32.mrb[195].mxu1  ;;  %v9577_v53 = vld [vmem:[%s12850_s3 + $0x568] ss:$16 sps:$4 sm:$0xff]  }
 0x3fc   : > { %v11190_v13 = vpop.f32.mrb[230].mxu0 }
 0x3fd   : > { %4522 = vmatmul.mubr.bf16.gmra.mrb[176].mxu1 %v9571_v40  ;;  %v9585_v40 = vld [vmem:[%s12850_s3 + $0x58c] ss:$16 sps:$4 sm:$0xff]   ;;  %v3711_v50 = vpop.f32.mrb[231].mxu0 }
 0x3fe   : > { %7959 = vmatprep.mubr.msk.bf16.mxu1 %vm3151_vm0, %v9579_v38 }
 0x400   : > { %v4315_v54 = vpop.f32.mrb[196].mxu1 }
 0x401   : > { %v11182_v6 = vadd.f32 %v4315_v54, %v10849_v62  ;;  %v4317_v4 = vpop.f32.mrb[197].mxu1  ;;  %v11194_v54 = vpop.f32.mrb[232].mxu0 }
 0x402   : > { %v4318_v23 = vpop.f32.mrb[198].mxu1  ;;  %v3716_v36 = vpop.f32.mrb[233].mxu0 }
 0x403   : > { %v4319_v38 = vadd.f32 %v4318_v23, %v10858_v10  ;;  %v4320_v9 = vpop.f32.mrb[199].mxu1  ;;  %v9591_v10 = vld [vmem:[%s12850_s3 + $0x5ac] ss:$16 sps:$4 sm:$0xff]   ;;  %v11203_v50 = vpop.f32.mrb[234].mxu0 }
 0x404   : > { %v3719_v9 = vpop.f32.mrb[235].mxu0 }
 0x405   : > { %4530 = vmatmul.mubr.bf16.gmra.mrb[180].mxu1 %v9577_v53  ;;  %v11208_v36 = vpop.f32.mrb[236].mxu0 }
 0x406   : > { %7960 = vmatprep.mubr.msk.bf16.mxu1 %vm3151_vm0, %v9585_v40 }
 0x408   : > { %v4323_v62 = vpop.f32.mrb[200].mxu1 }
 0x409   : > { %v4324_v4 = vadd.f32 %v4323_v62, %v10872_v22  ;;  %v4325_v58 = vpop.f32.mrb[201].mxu1 }
 0x40a   : > { %v4326_v18 = vpop.f32.mrb[202].mxu1 }
 0x40b   : > { %v4327_v53 = vadd.f32 %v4326_v18, %v10881_v31  ;;  %v4328_v23 = vpop.f32.mrb[203].mxu1  ;;  %v8826_v40 = vpack.i.bf16 %v4324_v4, %v4319_v38  ;;  %v3724_v31 = vpop.f32.mrb[237].mxu0 }
 0x40c   : > { %v11217_v38 = vpop.f32.mrb[238].mxu0  ;;  %v9595_v31 = vld [vmem:[%s12850_s3 + $0x5c8] ss:$16 sps:$4 sm:$0xff]  }
 0x40d   : > { %4538 = vmatmul.mubr.bf16.gmra.mrb[184].mxu1 %v9583_v63  ;;  %8827 = vrot.lane.b32.xlu1 %v8826_v40, %s9860_s19  ;;  %v9597_v63 = vld [vmem:[%s12850_s3 + $0x5cc] ss:$16 sps:$4 sm:$0xff]   ;;  %v3727_v40 = vpop.f32.mrb[239].mxu0 }
 0x40e   : > { %7961 = vmatprep.mubr.msk.bf16.mxu1 %vm3151_vm0, %v9591_v10  ;;  %v11222_v9 = vpop.f32.mrb[240].mxu0 }
 0x40f   : > { %v3732_v0 = vpop.f32.mrb[241].mxu0 }
 0x410   : > { %v4331_v22 = vpop.f32.mrb[204].mxu1 }
 0x411   : > { %v4332_v62 = vadd.f32 %v4331_v22, %v10895_v47  ;;  %v4333_v58 = vpop.f32.mrb[205].mxu1 }
 0x412   : > { %v4334_v18 = vpop.f32.mrb[206].mxu1 }
 0x413   : > { %v4335_v4 = vadd.f32 %v4334_v18, %v10904_v60  ;;  %v4336_v10 = vpop.f32.mrb[207].mxu1  ;;  %v8831_v23 = vpack.i.bf16 %v4332_v62, %v4327_v53  ;;  %v11231_v53 = vpop.f32.mrb[242].mxu0 }
 0x414   : > { %v3735_v10 = vpop.f32.mrb[243].mxu0 }
 0x415   : > { %4546 = vmatmul.mubr.bf16.gmra.mrb[188].mxu1 %v9589_v33  ;;  %8832 = vrot.lane.b32.xlu1 %v8831_v23, %s9860_s19  ;;  %v9603_v33 = vld [vmem:[%s12850_s3 + $0x5ec] ss:$16 sps:$4 sm:$0xff]   ;;  %v11238_v0 = vpop.f32.mrb[244].mxu0 }
 0x416   : > { %7962 = vmatprep.mubr.msk.bf16.mxu1 %vm3151_vm0, %v9597_v63 }
 0x418   : > { %v4339_v47 = vpop.f32.mrb[208].mxu1 }
 0x419   : > { %v4340_v22 = vadd.f32 %v4339_v47, %v10918_v14  ;;  %v4341_v58 = vpop.f32.mrb[209].mxu1  ;;  %v3740_v47 = vpop.f32.mrb[245].mxu0 }
 0x41a   : > { %v4342_v60 = vpop.f32.mrb[210].mxu1 }
 0x41b   : > { %v11234_v62 = vadd.f32 %v4342_v60, %v10927_v24  ;;  %v4344_v18 = vpop.f32.mrb[211].mxu1  ;;  %v8836_v63 = vpack.i.bf16 %v4340_v22, %v4335_v4  ;;  %v9601_v24 = vld [vmem:[%s12850_s3 + $0x5e8] ss:$16 sps:$4 sm:$0xff]   ;;  %v9609_v4 = vld [vmem:[%s12850_s3 + $0x60c] ss:$16 sps:$4 sm:$0xff]   ;;  %v11249_v22 = vpop.f32.mrb[246].mxu0 }
 0x41d   : > { %4554 = vmatmul.mubr.bf16.gmra.mrb[192].mxu1 %v9595_v31  ;;  %8837 = vrot.lane.b32.xlu1 %v8836_v63, %s9860_s19 }
 0x41e   : > { %7963 = vmatprep.mubr.msk.bf16.mxu1 %vm3151_vm0, %v9603_v33  ;;  %v3743_v33 = vpop.f32.mrb[247].mxu0 }
 0x41f   : > { %v11257_v63 = vpop.f32.mrb[248].mxu0 }
 0x420   : > { %v4347_v14 = vpop.f32.mrb[212].mxu1 }
 0x421   : > { %v11241_v23 = vadd.f32 %v4347_v14, %v10941_v42  ;;  %v4349_v40 = vpop.f32.mrb[213].mxu1 }
 0x422   : > { %v4350_v58 = vpop.f32.mrb[214].mxu1  ;;  %v3748_v40 = vpop.f32.mrb[249].mxu0 }
 0x423   : > { %v11252_v31 = vadd.f32 %v4350_v58, %v10950_v57  ;;  %v4352_v60 = vpop.f32.mrb[215].mxu1  ;;  %v9607_v57 = vld [vmem:[%s12850_s3 + $0x608] ss:$16 sps:$4 sm:$0xff]   ;;  %v9615_v58 = vld [vmem:[%s12850_s3 + $0x62c] ss:$16 sps:$4 sm:$0xff]  }
 0x425   : > { %4562 = vmatmul.mubr.bf16.gmra.mrb[196].mxu1 %v9601_v24  ;;  %v11268_v24 = vpop.f32.mrb[250].mxu0 }
 0x426   : > { %7964 = vmatprep.mubr.msk.bf16.mxu1 %vm3151_vm0, %v9609_v4  ;;  %v3751_v33 = vpop.f32.mrb[251].mxu0 }
 0x427   : > { %v9621_v33 = vld [vmem:[%s12850_s3 + $0x64c] ss:$16 sps:$4 sm:$0xff]  }
 0x428   : > { %v4355_v18 = vpop.f32.mrb[216].mxu1 }
 0x429   : > { %v11260_v10 = vadd.f32 %v4355_v18, %v10965_v15  ;;  %v4357_v14 = vpop.f32.mrb[217].mxu1 }
 0x42a   : > { %v4358_v47 = vpop.f32.mrb[218].mxu1  ;;  %v11276_v14 = vpop.f32.mrb[252].mxu0 }
 0x42b   : > { %v11271_v4 = vadd.f32 %v4358_v47, %v10976_v37  ;;  %v4360_v60 = vpop.f32.mrb[219].mxu1  ;;  %v9613_v37 = vld [vmem:[%s12850_s3 + $0x628] ss:$16 sps:$4 sm:$0xff]   ;;  %v3756_v47 = vpop.f32.mrb[253].mxu0 }
 0x42d   : > { %12863 = vst [vmem:[#allocation7_spill] sm:$0xff] %v11271_v4  ;;  %4570 = vmatmul.mubr.bf16.gmra.mrb[200].mxu1 %v9607_v57  ;;  %v11287_v57 = vpop.f32.mrb[254].mxu0 }
 0x42e   : > { %7965 = vmatprep.mubr.msk.bf16.mxu1 %vm3151_vm0, %v9615_v58 }
 0x430   : > { %v4363_v18 = vpop.f32.mrb[220].mxu1 }
 0x431   : > { %v11279_v40 = vadd.f32 %v4363_v18, %v10986_v52  ;;  %v4365_v42 = vpop.f32.mrb[221].mxu1  ;;  %v9676_v52 = vld [vmem:[%s12851_s4 + $0x40] sm:$0xff]   ;;  %v3759_v18 = vpop.f32.mrb[255].mxu0 }
 0x432   : > { %v4366_v60 = vpop.f32.mrb[222].mxu1  ;;  %v9677_v42 = vld [vmem:[%s12851_s4] sm:$0xff]   ;;  %8169 = vmatprep.subr.bf16.mxu0 %v9676_v52 }
 0x433   : > { %12864 = vst [vmem:[#allocation8_spill] sm:$0xff] %v11279_v40  ;;  %v11290_v58 = vadd.f32 %v4366_v60, %v10995_v7  ;;  %v4368_v15 = vpop.f32.mrb[223].mxu1  ;;  %8170 = vmatpush3.bf16.msra.mxu0 %v9677_v42  ;;  %v11299_v40 = vpop.f32.mrb[0].mxu0  ;;  %v9619_v60 = vld [vmem:[%s12850_s3 + $0x648] ss:$16 sps:$4 sm:$0xff]  }
 0x435   : > { %12865 = vst [vmem:[#allocation9_spill] sm:$0xff] %v11290_v58  ;;  %4578 = vmatmul.mubr.bf16.gmra.mrb[204].mxu1 %v9613_v37  ;;  %v3764_v58 = vpop.f32.mrb[1].mxu0  ;;  %v9627_v37 = vld [vmem:[%s12850_s3 + $0x66c] ss:$16 sps:$4 sm:$0xff]  }
 0x436   : > { %7966 = vmatprep.mubr.msk.bf16.mxu1 %vm3151_vm0, %v9621_v33  ;;  %v11310_v52 = vpop.f32.mrb[2].mxu0 }
 0x437   : > { %v3767_v18 = vpop.f32.mrb[3].mxu0 }
 0x438   : > { %v4371_v47 = vpop.f32.mrb[224].mxu1 }
 0x439   : > { %v11302_v7 = vadd.f32 %v4371_v47, %v11006_v30  ;;  %v4373_v15 = vpop.f32.mrb[225].mxu1  ;;  %v11316_v47 = vpop.f32.mrb[4].mxu0 }
 0x43a   : > { %v4374_v19 = vpop.f32.mrb[226].mxu1  ;;  %v3772_v56 = vpop.f32.mrb[5].mxu0 }
 0x43b   : > { %12866 = vst [vmem:[#allocation10_spill] sm:$0xff] %v11302_v7  ;;  %v11313_v33 = vadd.f32 %v4374_v19, %v11015_v46  ;;  %v4376_v42 = vpop.f32.mrb[227].mxu1  ;;  %v9625_v7 = vld [vmem:[%s12850_s3 + $0x668] ss:$16 sps:$4 sm:$0xff]   ;;  %v9633_v19 = vld [vmem:[%s12850_s3 + $0x68c] ss:$16 sps:$4 sm:$0xff]  }
 0x43c   : > { %v11327_v46 = vpop.f32.mrb[6].mxu0 }
 0x43d   : > { %12867 = vst [vmem:[#allocation11_spill] sm:$0xff] %v11313_v33  ;;  %4586 = vmatmul.mubr.bf16.gmra.mrb[208].mxu1 %v9619_v60  ;;  %v3775_v42 = vpop.f32.mrb[7].mxu0 }
 0x43e   : > { %7967 = vmatprep.mubr.msk.bf16.mxu1 %vm3151_vm0, %v9627_v37  ;;  %v11333_v18 = vpop.f32.mrb[8].mxu0 }
 0x440   : > { %v4379_v30 = vpop.f32.mrb[228].mxu1 }
 0x441   : > { %v11319_v58 = vadd.f32 %v4379_v30, %v11026_v8  ;;  %v4381_v15 = vpop.f32.mrb[229].mxu1 }
 0x442   : > { %v4382_v4 = vpop.f32.mrb[230].mxu1  ;;  %v9631_v15 = vld [vmem:[%s12850_s3 + $0x688] ss:$16 sps:$4 sm:$0xff]  }
 0x443   : > { %12868 = vst [vmem:[#allocation12_spill] sm:$0xff] %v11319_v58  ;;  %v11330_v60 = vadd.f32 %v4382_v4, %v11035_v26  ;;  %v4384_v37 = vpop.f32.mrb[231].mxu1  ;;  %v3780_v58 = vpop.f32.mrb[9].mxu0  ;;  %v9639_v26 = vld [vmem:[%s12850_s3 + $0x6ac] ss:$16 sps:$4 sm:$0xff]  }
 0x444   : > { %v11344_v4 = vpop.f32.mrb[10].mxu0 }
 0x445   : > { %12869 = vst [vmem:[#allocation13_spill] sm:$0xff] %v11330_v60  ;;  %4594 = vmatmul.mubr.bf16.gmra.mrb[212].mxu1 %v9625_v7  ;;  %v3783_v37 = vpop.f32.mrb[11].mxu0 }
 0x446   : > { %7968 = vmatprep.mubr.msk.bf16.mxu1 %vm3151_vm0, %v9633_v19  ;;  %v11350_v42 = vpop.f32.mrb[12].mxu0 }
 0x448   : > { %v4387_v8 = vpop.f32.mrb[232].mxu1 }
 0x449   : > { %v11336_v56 = vadd.f32 %v4387_v8, %v11045_v43  ;;  %v4389_v30 = vpop.f32.mrb[233].mxu1 }
 0x44a   : > { %v4390_v33 = vpop.f32.mrb[234].mxu1  ;;  %v9637_v30 = vld [vmem:[%s12850_s3 + $0x6a8] ss:$16 sps:$4 sm:$0xff]  }
 0x44b   : > { %12870 = vst [vmem:[#allocation14_spill] sm:$0xff] %v11336_v56  ;;  %v11347_v7 = vadd.f32 %v4390_v33, %v11052_v25  ;;  %v4392_v19 = vpop.f32.mrb[235].mxu1  ;;  %v9645_v25 = vld [vmem:[%s12850_s3 + $0x6cc] ss:$16 sps:$4 sm:$0xff]   ;;  %v3788_v33 = vpop.f32.mrb[13].mxu0 }
 0x44c   : > { %v11364_v19 = vpop.f32.mrb[14].mxu0 }
 0x44d   : > { %12871 = vst [vmem:[#allocation15_spill] sm:$0xff] %v11347_v7  ;;  %4602 = vmatmul.mubr.bf16.gmra.mrb[216].mxu1 %v9631_v15  ;;  %v3791_v37 = vpop.f32.mrb[15].mxu0 }
 0x44e   : > { %7969 = vmatprep.mubr.msk.bf16.mxu1 %vm3151_vm0, %v9639_v26 }
 0x450   : > { %v4395_v43 = vpop.f32.mrb[236].mxu1 }
 0x451   : > { %v11353_v58 = vadd.f32 %v4395_v43, %v11067_v51  ;;  %v4397_v8 = vpop.f32.mrb[237].mxu1  ;;  %v11367_v43 = vpop.f32.mrb[16].mxu0 }
 0x452   : > { %v4398_v56 = vpop.f32.mrb[238].mxu1  ;;  %12874 = vst [vmem:[#allocation18_spill] sm:$0xff] %v11367_v43  ;;  %v11369_v8 = vpop.permute.xlu1 %8797 }
 0x453   : > { %12872 = vst [vmem:[#allocation16_spill] sm:$0xff] %v11353_v58  ;;  %v11362_v15 = vadd.f32 %v4398_v56, %v11079_v59  ;;  %v4400_v26 = vpop.f32.mrb[239].mxu1  ;;  %v9643_v59 = vld [vmem:[%s12850_s3 + $0x6c8] ss:$16 sps:$4 sm:$0xff]   ;;  %v3796_v33 = vpop.f32.mrb[17].mxu0 }
 0x454   : > { %v11381_v37 = vpop.f32.mrb[18].mxu0 }
 0x455   : > { %12873 = vst [vmem:[#allocation17_spill] sm:$0xff] %v11362_v15  ;;  %4610 = vmatmul.mubr.bf16.gmra.mrb[220].mxu1 %v9637_v30  ;;  %v9646_v30 = vld [vmem:[%s12850_s3 + $0x6ec] ss:$16 sps:$4 sm:$0xff]   ;;  %12876 = vst [vmem:[#allocation20_spill] sm:$0xff] %v11381_v37  ;;  %v3799_v15 = vpop.f32.mrb[19].mxu0 }
 0x456   : > { %7970 = vmatprep.mubr.msk.bf16.mxu1 %vm3151_vm0, %v9645_v25  ;;  %v11383_v60 = vpop.permute.xlu1 %8802  ;;  %v9649_v15 = vld [vmem:[%s12850_s3 + $0x70c] ss:$16 sps:$4 sm:$0xff]  }
 0x458   : > { %v4403_v51 = vpop.f32.mrb[240].mxu1 }
 0x459   : > { %v11372_v58 = vadd.f32 %v4403_v51, %v11093_v11  ;;  %v4405_v7 = vpop.f32.mrb[241].mxu1 }
 0x45a   : > { %v4406_v56 = vpop.f32.mrb[242].mxu1  ;;  %v11386_v7 = vpop.f32.mrb[20].mxu0 }
 0x45b   : > { %12875 = vst [vmem:[#allocation19_spill] sm:$0xff] %v11372_v58  ;;  %v4407_v25 = vadd.f32 %v4406_v56, %v11102_v35  ;;  %v4408_v26 = vpop.f32.mrb[243].mxu1  ;;  %12877 = vst [vmem:[#allocation21_spill] sm:$0xff] %v11386_v7  ;;  %v11388_v51 = vpop.permute.xlu1 %8807  ;;  %v9648_v35 = vld [vmem:[%s12850_s3 + $0x6e8] ss:$16 sps:$4 sm:$0xff]  }
 0x45c   : > { %12878 = vst [vmem:[#allocation22_spill] sm:$0xff] %v11388_v51 }
 0x45d   : > { %4618 = vmatmul.mubr.bf16.gmra.mrb[224].mxu1 %v9643_v59  ;;  %v3804_v59 = vpop.f32.mrb[21].mxu0 }
 0x45e   : > { %7971 = vmatprep.mubr.msk.bf16.mxu1 %vm3151_vm0, %v9646_v30  ;;  %v11398_v7 = vpop.f32.mrb[22].mxu0 }
 0x45f   : > { %v3807_v51 = vpop.f32.mrb[23].mxu0 }
 0x460   : > { %v4411_v11 = vpop.f32.mrb[244].mxu1  ;;  %v9652_v51 = vld [vmem:[%s12850_s3 + $0x72c] ss:$16 sps:$4 sm:$0xff]  }
 0x461   : > { %v4412_v58 = vadd.f32 %v4411_v11, %v11113_v61  ;;  %v4413_v43 = vpop.f32.mrb[245].mxu1  ;;  %v11402_v61 = vpop.permute.xlu1 %8812 }
 0x462   : > { %v4414_v56 = vpop.f32.mrb[246].mxu1  ;;  %v11404_v11 = vpop.f32.mrb[24].mxu0 }
 0x463   : > { %v8841_v33 = vpack.i.bf16 %v4412_v58, %v4407_v25  ;;  %v4415_v30 = vadd.f32 %v4414_v56, %v11122_v45  ;;  %v4416_v26 = vpop.f32.mrb[247].mxu1  ;;  %12879 = vst [vmem:[#allocation23_spill] sm:$0xff] %v11404_v11  ;;  %v9651_v45 = vld [vmem:[%s12850_s3 + $0x708] ss:$16 sps:$4 sm:$0xff]   ;;  %v3812_v58 = vpop.f32.mrb[25].mxu0 }
 0x464   : > { %v11416_v56 = vpop.f32.mrb[26].mxu0  ;;  %v9700_v26 = vld [vmem:[%s12851_s4 + $0x8] sm:$0xff]  }
 0x465   : > { %4626 = vmatmul.mubr.bf16.gmra.mrb[0].mxu1 %v9648_v35  ;;  %8842 = vrot.lane.b32.xlu0 %v8841_v33, %s9858_s26  ;;  %v9699_v35 = vld [vmem:[%s12851_s4 + $0x48] sm:$0xff]   ;;  %12880 = vst [vmem:[#allocation24_spill] sm:$0xff] %v11416_v56 }
 0x466   : > { %7972 = vmatprep.mubr.msk.bf16.mxu1 %vm3151_vm0, %v9649_v15  ;;  %8171 = vmatprep.subr.bf16.mxu0 %v9699_v35 }
 0x467   : > { %8172 = vmatpush3.bf16.msra.mxu0 %v9700_v26 }
 0x468   : > { %v4419_v43 = vpop.f32.mrb[248].mxu1 }
 0x469   : > { %v4420_v37 = vadd.f32 %v4419_v43, %v11127_v2  ;;  %v4421_v59 = vpop.f32.mrb[249].mxu1  ;;  %v3815_v43 = vpop.f32.mrb[27].mxu0 }
 0x46a   : > { %v4422_v25 = vpop.f32.mrb[250].mxu1  ;;  %v11424_v59 = vpop.permute.xlu1 %8817 }
 0x46b   : > { %v8846_v15 = vpack.i.bf16 %v4420_v37, %v4415_v30  ;;  %v4423_v2 = vadd.f32 %v4422_v25, %v11136_v44  ;;  %v4424_v33 = vpop.f32.mrb[251].mxu1  ;;  %v11426_v56 = vpop.f32.mrb[28].mxu0  ;;  %v9654_v30 = vld [vmem:[%s12850_s3 + $0x728] ss:$16 sps:$4 sm:$0xff]  }
 0x46c   : > { %12881 = vst [vmem:[#allocation25_spill] sm:$0xff] %v11426_v56  ;;  %v3820_v25 = vpop.f32.mrb[29].mxu0 }
 0x46d   : > { %4634 = vmatmul.mubr.bf16.gmra.mrb[4].mxu1 %v9651_v45  ;;  %8847 = vrot.lane.b32.xlu0 %v8846_v15, %s9858_s26  ;;  %v9655_v45 = vld [vmem:[%s12850_s3 + $0x74c] ss:$16 sps:$4 sm:$0xff]  }
 0x46e   : > { %7973 = vmatprep.mubr.msk.bf16.mxu1 %vm3151_vm0, %v9652_v51  ;;  %v11435_v51 = vpop.f32.mrb[30].mxu0 }
 0x46f   : > { %v3823_v43 = vpop.f32.mrb[31].mxu0 }
 0x470   : > { %v4427_v58 = vpop.f32.mrb[252].mxu1  ;;  %v11442_v25 = vpop.f32.mrb[32].mxu0 }
 0x471   : > { %v4428_v44 = vadd.f32 %v4427_v58, %v11141_v17  ;;  %v4429_v37 = vpop.f32.mrb[253].mxu1  ;;  %v8793_v17 = vpop.permute.xlu0 %8792  ;;  %12882 = vst [vmem:[#allocation26_spill] sm:$0xff] %v11442_v25 }
 0x472   : > { %v4430_v35 = vpop.f32.mrb[254].mxu1  ;;  %v11440_v58 = vpop.permute.xlu1 %8822  ;;  %v8795_v25 = vunpack.i.h.bf16 %v8793_v17 }
 0x473   : > { %v8851_v15 = vpack.i.bf16 %v4428_v44, %v4423_v2  ;;  %v4431_v33 = vadd.f32 %v4430_v35, %v11152_v39  ;;  %v4432_v26 = vpop.f32.mrb[255].mxu1  ;;  %v9657_v39 = vld [vmem:[%s12850_s3 + $0x748] ss:$16 sps:$4 sm:$0xff]   ;;  %v3828_v2 = vpop.f32.mrb[33].mxu0 }
 0x474   : > { %v11451_v35 = vpop.f32.mrb[34].mxu0 }
 0x475   : > { %4642 = vmatmul.mubr.bf16.gmra.mrb[8].mxu1 %v9654_v30  ;;  %8852 = vrot.lane.b32.xlu0 %v8851_v15, %s9858_s26  ;;  %v9658_v30 = vld [vmem:[%s12850_s3 + $0x76c] ss:$16 sps:$4 sm:$0xff]   ;;  %v3831_v43 = vpop.f32.mrb[35].mxu0 }
 0x476   : > { %7974 = vmatprep.mubr.msk.bf16.mxu1 %vm3151_vm0, %v9655_v45  ;;  %v9660_v43 = vld [vmem:[%s12850_s3 + $0x768] ss:$16 sps:$4 sm:$0xff]  }
 0x478   : > { %v4435_v37 = vpop.f32.mrb[132].mxu1 }
 0x479   : > { %v4436_v56 = vadd.f32 %v4435_v37, %v11160_v3  ;;  %v4437_v11 = vpop.f32.mrb[133].mxu1  ;;  %v8794_v3 = vunpack.i.l.bf16 %v8793_v17  ;;  %v8814_v37 = vunpack.i.l.bf16 %v11402_v61 }
 0x47a   : > { %v4438_v44 = vpop.f32.mrb[134].mxu1  ;;  %v8815_v11 = vunpack.i.h.bf16 %v11402_v61 }
 0x47b   : > { %v8856_v45 = vpack.i.bf16 %v4436_v56, %v4431_v33  ;;  %v4439_v15 = vadd.f32 %v4438_v44, %v11171_v20  ;;  %v4440_v26 = vpop.f32.mrb[135].mxu1  ;;  %v5420_v20 = vsel %vm5418_vm1, %v10867_v34, %v8795_v25  ;;  %v5419_v56 = vsel %vm5418_vm1, %v10853_v5, %v8794_v3 }
 0x47c   : > { %v11462_v26 = vpop.f32.mrb[36].mxu0  ;;  %v5432_v61 = vsel %vm5430_vm2, %v5420_v20, %v8815_v11  ;;  %v9661_v11 = vld [vmem:[%s12850_s3 + $0x78c] ss:$16 sps:$4 sm:$0xff]  }
 0x47d   : > { %4650 = vmatmul.mubr.bf16.gmra.mrb[12].mxu1 %v9657_v39  ;;  %8857 = vrot.lane.b32.xlu0 %v8856_v45, %s9858_s26  ;;  %v5431_v39 = vsel %vm5430_vm2, %v5419_v56, %v8814_v37  ;;  %v3836_v34 = vpop.f32.mrb[37].mxu0 }
 0x47e   : > { %7975 = vmatprep.mubr.msk.bf16.mxu1 %vm3151_vm0, %v9658_v30  ;;  %v11479_v37 = vpop.f32.mrb[38].mxu0 }
 0x47f   : > { %v8828_v2 = vpop.permute.xlu1 %8827 }
 0x480   : > { %v8830_v33 = vunpack.i.h.bf16 %v8828_v2  ;;  %v8829_v17 = vunpack.i.l.bf16 %v8828_v2  ;;  %v4443_v44 = vpop.f32.mrb[136].mxu1 }
 0x481   : > { %v4444_v45 = vadd.f32 %v4443_v44, %v11179_v16  ;;  %v4445_v30 = vpop.f32.mrb[137].mxu1  ;;  %v8800_v44 = vunpack.i.h.bf16 %v11369_v8 }
 0x482   : > { %v11471_v25 = vsel %vm5442_vm3, %v5432_v61, %v8830_v33  ;;  %v11474_v5 = vsel %vm5442_vm3, %v5431_v39, %v8829_v17  ;;  %v4446_v3 = vpop.f32.mrb[138].mxu1  ;;  %v3839_v33 = vpop.f32.mrb[39].mxu0  ;;  %v8799_v17 = vunpack.i.l.bf16 %v11369_v8  ;;  %v8820_v61 = vunpack.i.h.bf16 %v11424_v59 }
 0x483   : > { %v5553_v16 = vpack.c.bf16 %v11471_v25, %v11474_v5  ;;  %v8876_v2 = vpack.i.bf16 %v4444_v45, %v4439_v15  ;;  %v11484_v20 = vadd.f32 %v4446_v3, %v11190_v13  ;;  %v4448_v56 = vpop.f32.mrb[139].mxu1  ;;  %v8819_v39 = vunpack.i.l.bf16 %v11424_v59  ;;  %v9745_v25 = vld [vmem:[%s12850_s3 + $0xa48] ss:$16 sps:$4 sm:$0xff]  }
 0x484   : > { %v5422_v15 = vsel %vm5418_vm1, %v10890_v41, %v8800_v44  ;;  %v5421_v45 = vsel %vm5418_vm1, %v10876_v29, %v8799_v17  ;;  %v9664_v17 = vld [vmem:[%s12850_s3 + $0x7ac] ss:$16 sps:$4 sm:$0xff]  }
 0x485   : > { %v8921_v30 = vpack.i.bf16 %v11085_v1, %v11484_v20  ;;  %4658 = vmatmul.mubr.bf16.gmra.mrb[16].mxu1 %v9660_v43  ;;  %8877 = vrot.lane.b32.xlu0 %v8876_v2, %s9858_s26  ;;  %v5434_v59 = vsel %vm5430_vm2, %v5422_v15, %v8820_v61  ;;  %v5433_v56 = vsel %vm5430_vm2, %v5421_v45, %v8819_v39  ;;  %v11504_v2 = vpop.f32.mrb[40].mxu0  ;;  %v8805_v45 = vunpack.i.h.bf16 %v11383_v60 }
 0x486   : > { %7976 = vmatprep.mubr.msk.bf16.mxu1 %vm3151_vm0, %v9661_v11  ;;  %v9663_v11 = vld [vmem:[%s12850_s3 + $0x788] ss:$16 sps:$4 sm:$0xff]   ;;  %v3844_v61 = vpop.f32.mrb[41].mxu0 }
 0x487   : > { %v8833_v13 = vpop.permute.xlu1 %8832  ;;  %v11518_v15 = vpop.f32.mrb[42].mxu0 }
 0x488   : > { %v8835_v8 = vunpack.i.h.bf16 %v8833_v13  ;;  %v8834_v34 = vunpack.i.l.bf16 %v8833_v13  ;;  %v4451_v3 = vpop.f32.mrb[140].mxu1 }
 0x489   : > { %v4452_v43 = vadd.f32 %v4451_v3, %v11194_v54  ;;  %v4453_v33 = vpop.f32.mrb[141].mxu1  ;;  %v8825_v3 = vunpack.i.h.bf16 %v11440_v58 }
 0x48a   : > { %v11507_v41 = vsel %vm5442_vm3, %v5434_v59, %v8835_v8  ;;  %v11510_v29 = vsel %vm5442_vm3, %v5433_v56, %v8834_v34  ;;  %v4454_v44 = vpop.f32.mrb[142].mxu1  ;;  %v8804_v8 = vunpack.i.l.bf16 %v11383_v60  ;;  %v3847_v34 = vpop.f32.mrb[43].mxu0  ;;  %v8824_v59 = vunpack.i.l.bf16 %v11440_v58 }
 0x48b   : > { %v5557_v54 = vpack.c.bf16 %v11507_v41, %v11510_v29  ;;  %v4455_v39 = vadd.f32 %v4454_v44, %v11203_v50  ;;  %v4456_v13 = vpop.f32.mrb[143].mxu1  ;;  %v5424_v50 = vsel %vm5418_vm1, %v10913_v49, %v8805_v45  ;;  %v9748_v41 = vld [vmem:[%s12850_s3 + $0xa68] ss:$16 sps:$4 sm:$0xff]  }
 0x48c   : > { %v5423_v44 = vsel %vm5418_vm1, %v10899_v55, %v8804_v8  ;;  %v5436_v34 = vsel %vm5430_vm2, %v5424_v50, %v8825_v3  ;;  %v9667_v8 = vld [vmem:[%s12850_s3 + $0x7cc] ss:$16 sps:$4 sm:$0xff]  }
 0x48d   : > { %v8861_v56 = vpack.i.bf16 %v4455_v39, %v4452_v43  ;;  %4666 = vmatmul.mubr.bf16.gmra.mrb[20].mxu1 %v9663_v11  ;;  %v5435_v58 = vsel %vm5430_vm2, %v5423_v44, %v8824_v59  ;;  %v11536_v39 = vpop.f32.mrb[44].mxu0 }
 0x48e   : > { %7977 = vmatprep.mubr.msk.bf16.mxu1 %vm3151_vm0, %v9664_v17  ;;  %v9666_v17 = vld [vmem:[%s12850_s3 + $0x7a8] ss:$16 sps:$4 sm:$0xff]   ;;  %v3852_v3 = vpop.f32.mrb[45].mxu0 }
 0x48f   : > { %v8838_v33 = vpop.permute.xlu1 %8837  ;;  %8862 = vrot.lane.b32.xlu1 %v8861_v56, %s9859_s12  ;;  %v11554_v50 = vpop.f32.mrb[46].mxu0  ;;  %v9722_v3 = vld [vmem:[%s12851_s4 + $0x50] sm:$0xff]  }
 0x490   : > { %v8840_v61 = vunpack.i.h.bf16 %v8838_v33  ;;  %v8839_v60 = vunpack.i.l.bf16 %v8838_v33  ;;  %v4459_v13 = vpop.f32.mrb[144].mxu1  ;;  %v12883_v33 = vpack.i.bf16 %v11155_v12, %v11144_v32  ;;  %v3855_v44 = vpop.f32.mrb[47].mxu0  ;;  %v9669_v32 = vld [vmem:[%s12850_s3 + $0x7c8] ss:$16 sps:$4 sm:$0xff]   ;;  %8173 = vmatprep.subr.bf16.mxu0 %v9722_v3  ;;  %v9678_v3 = vld [vmem:[%s12850_s3 + $0x82c] ss:$16 sps:$4 sm:$0xff]  }
 0x491   : > { %v4460_v43 = vadd.f32 %v4459_v13, %v11208_v36  ;;  %v4461_v11 = vpop.f32.mrb[145].mxu1 }
 0x492   : > { %v11539_v49 = vsel %vm5442_vm3, %v5436_v34, %v8840_v61  ;;  %v11542_v55 = vsel %vm5442_vm3, %v5435_v58, %v8839_v60  ;;  %v4462_v45 = vpop.f32.mrb[146].mxu1  ;;  %v12884_v60 = vpack.i.bf16 %v11241_v23, %v11234_v62 }
 0x493   : > { %v5561_v36 = vpack.c.bf16 %v11539_v49, %v11542_v55  ;;  %v4463_v59 = vadd.f32 %v4462_v45, %v11217_v38  ;;  %v4464_v56 = vpop.f32.mrb[147].mxu1  ;;  %8867 = vrot.lane.b32.xlu1 %v12883_v33, %s9859_s12  ;;  %v9672_v33 = vld [vmem:[%s12850_s3 + $0x7e8] ss:$16 sps:$4 sm:$0xff]  }
 0x494   : > { %v9751_v49 = vld [vmem:[%s12850_s3 + $0xa88] ss:$16 sps:$4 sm:$0xff]  }
 0x495   : > { %v8896_v61 = vpack.i.bf16 %v4463_v59, %v4460_v43  ;;  %4674 = vmatmul.mubr.bf16.gmra.mrb[24].mxu1 %v9666_v17  ;;  %v11566_v12 = vpop.f32.mrb[48].mxu0  ;;  %v9670_v43 = vld [vmem:[%s12850_s3 + $0x7ec] ss:$16 sps:$4 sm:$0xff]   ;;  %v9723_v59 = vld [vmem:[%s12851_s4 + $0x10] sm:$0xff]  }
 0x496   : > { %7978 = vmatprep.mubr.msk.bf16.mxu1 %vm3151_vm0, %v9667_v8  ;;  %v3860_v11 = vpop.f32.mrb[49].mxu0  ;;  %8174 = vmatpush3.bf16.msra.mxu0 %v9723_v59 }
 0x497   : > { %8872 = vrot.lane.b32.xlu1 %v12884_v60, %s9860_s19  ;;  %8897 = vrot.lane.b32.xlu0 %v8896_v61, %s9859_s12  ;;  %v11576_v17 = vpop.f32.mrb[50].mxu0  ;;  %v9724_v61 = vld [vmem:[%s12851_s4 + $0x58] sm:$0xff]   ;;  %v9729_v11 = vld [vmem:[%s12851_s4 + $0x60] sm:$0xff]  }
 0x498   : > { %v4467_v38 = vpop.f32.mrb[148].mxu1  ;;  %v3863_v45 = vpop.f32.mrb[51].mxu0  ;;  %8175 = vmatprep.subr.bf16.mxu0 %v9724_v61  ;;  %v9736_v61 = vld [vmem:[%s12851_s4 + $0x70] sm:$0xff]  }
 0x499   : > { %v4468_v13 = vadd.f32 %v4467_v38, %v11222_v9  ;;  %v4469_v34 = vpop.f32.mrb[149].mxu1  ;;  %v12885_v9 = vpack.i.bf16 %v11071_v48, %v11061_v21  ;;  %v12886_v21 = vpack.i.bf16 %v11174_v27, %v11163_v28  ;;  %v9673_v27 = vld [vmem:[%s12850_s3 + $0x80c] ss:$16 sps:$4 sm:$0xff]  }
 0x49a   : > { %v4470_v58 = vpop.f32.mrb[150].mxu1  ;;  %v12887_v34 = vpack.i.bf16 %v11260_v10, %v11252_v31  ;;  %v9731_v45 = vld [vmem:[%s12851_s4 + $0x68] sm:$0xff]  }
 0x49b   : > { %v4471_v62 = vadd.f32 %v4470_v58, %v11231_v53  ;;  %v4472_v23 = vpop.f32.mrb[151].mxu1  ;;  %8882 = vrot.lane.b32.xlu1 %v12885_v9, %s9858_s26 }
 0x49c   : > { %v9675_v23 = vld [vmem:[%s12850_s3 + $0x808] ss:$16 sps:$4 sm:$0xff]  }
 0x49d   : > { %v8901_v8 = vpack.i.bf16 %v4471_v62, %v4468_v13  ;;  %4682 = vmatmul.mubr.bf16.gmra.mrb[28].mxu1 %v9669_v32  ;;  %v11594_v44 = vpop.f32.mrb[52].mxu0 }
 0x49e   : > { %7979 = vmatprep.mubr.msk.bf16.mxu1 %vm3151_vm0, %v9670_v43  ;;  %v3868_v60 = vpop.f32.mrb[53].mxu0 }
 0x49f   : > { %8887 = vrot.lane.b32.xlu1 %v12886_v21, %s9859_s12  ;;  %8902 = vrot.lane.b32.xlu0 %v8901_v8, %s9859_s12  ;;  %v11610_v32 = vpop.f32.mrb[54].mxu0 }
 0x4a0   : > { %v4475_v48 = vpop.f32.mrb[152].mxu1  ;;  %v3871_v58 = vpop.f32.mrb[55].mxu0 }
 0x4a1   : > { %v4476_v53 = vadd.f32 %v4475_v48, %v11238_v0  ;;  %v4477_v56 = vpop.f32.mrb[153].mxu1  ;;  %v9725_v0 = vld [vmem:[%s12851_s4 + $0x18] sm:$0xff]  }
 0x4a2   : > { %v4478_v28 = vpop.f32.mrb[154].mxu1  ;;  %8176 = vmatpush3.bf16.msra.mxu0 %v9725_v0  ;;  %v9680_v0 = vld [vmem:[%s12850_s3 + $0x828] ss:$16 sps:$4 sm:$0xff]   ;;  %v9681_v58 = vld [vmem:[%s12850_s3 + $0x84c] ss:$16 sps:$4 sm:$0xff]  }
 0x4a3   : > { %v4479_v38 = vadd.f32 %v4478_v28, %v11249_v22  ;;  %v4480_v13 = vpop.f32.mrb[155].mxu1  ;;  %8892 = vrot.lane.b32.xlu1 %v12887_v34, %s9860_s19  ;;  %v9730_v22 = vld [vmem:[%s12851_s4 + $0x20] sm:$0xff]   ;;  %8177 = vmatprep.subr.bf16.mxu0 %v9729_v11  ;;  %v9737_v28 = vld [vmem:[%s12851_s4 + $0x30] sm:$0xff]  }
 0x4a4   : > { %v9738_v13 = vld [vmem:[%s12851_s4 + $0x78] sm:$0xff]  }
 0x4a5   : > { %v8906_v43 = vpack.i.bf16 %v4479_v38, %v4476_v53  ;;  %4690 = vmatmul.mubr.bf16.gmra.mrb[32].mxu1 %v9672_v33  ;;  %v11624_v9 = vpop.f32.mrb[56].mxu0 }
 0x4a6   : > { %7980 = vmatprep.mubr.msk.bf16.mxu1 %vm3151_vm0, %v9673_v27  ;;  %8178 = vmatpush3.bf16.msra.mxu0 %v9730_v22  ;;  %v3876_v59 = vpop.f32.mrb[57].mxu0 }
 0x4a7   : > { %8907 = vrot.lane.b32.xlu0 %v8906_v43, %s9859_s12  ;;  %v11636_v53 = vpop.f32.mrb[58].mxu0  ;;  %8179 = vmatprep.subr.bf16.mxu0 %v9731_v45 }
 0x4a8   : > { %v4483_v31 = vpop.f32.mrb[156].mxu1  ;;  %v3879_v56 = vpop.f32.mrb[59].mxu0 }
 0x4a9   : > { %v4484_v10 = vadd.f32 %v4483_v31, %v11257_v63  ;;  %v4485_v62 = vpop.f32.mrb[157].mxu1  ;;  %v9732_v63 = vld [vmem:[%s12851_s4 + $0x28] sm:$0xff]  }
 0x4aa   : > { %v4486_v8 = vpop.f32.mrb[158].mxu1  ;;  %8180 = vmatpush3.bf16.msra.mxu0 %v9732_v63 }
 0x4ab   : > { %v4487_v21 = vadd.f32 %v4486_v8, %v11268_v24  ;;  %v4488_v48 = vpop.f32.mrb[159].mxu1  ;;  %8181 = vmatprep.subr.bf16.mxu0 %v9736_v61  ;;  %v9687_v61 = vld [vmem:[%s12850_s3 + $0x88c] ss:$16 sps:$4 sm:$0xff]  }
 0x4ad   : > { %v8911_v33 = vpack.i.bf16 %v4487_v21, %v4484_v10  ;;  %4698 = vmatmul.mubr.bf16.gmra.mrb[36].mxu1 %v9675_v23  ;;  %v11650_v38 = vpop.f32.mrb[60].mxu0 }
 0x4ae   : > { %7981 = vmatprep.mubr.msk.bf16.mxu1 %vm3151_vm0, %v9678_v3  ;;  %8182 = vmatpush3.bf16.msra.mxu0 %v9737_v28  ;;  %v3884_v43 = vpop.f32.mrb[61].mxu0  ;;  %v9684_v3 = vld [vmem:[%s12850_s3 + $0x86c] ss:$16 sps:$4 sm:$0xff]  }
 0x4af   : > { %8912 = vrot.lane.b32.xlu0 %v8911_v33, %s9859_s12  ;;  %v11663_v10 = vpop.f32.mrb[62].mxu0  ;;  %8183 = vmatprep.subr.bf16.mxu0 %v9738_v13  ;;  %v9686_v33 = vld [vmem:[%s12850_s3 + $0x868] ss:$16 sps:$4 sm:$0xff]  }
 0x4b0   : > { %v4491_v24 = vpop.f32.mrb[160].mxu1  ;;  %v3887_v62 = vpop.f32.mrb[63].mxu0 }
 0x4b1   : > { %v4492_v27 = vadd.f32 %v4491_v24, %v11276_v14  ;;  %v4493_v60 = vpop.f32.mrb[161].mxu1  ;;  %v9739_v14 = vld [vmem:[%s12851_s4 + $0x38] sm:$0xff]  }
 0x4b2   : > { %v4494_v34 = vpop.f32.mrb[162].mxu1  ;;  %8184 = vmatpush3.bf16.msra.mxu0 %v9739_v14  ;;  %v9692_v14 = vld [vmem:[%s12850_s3 + $0x8a8] ss:$16 sps:$4 sm:$0xff]  }
 0x4b3   : > { %v8926_v11 = vpack.i.bf16 %v11182_v6, %v4492_v27  ;;  %v4495_v22 = vadd.f32 %v4494_v34, %v11287_v57  ;;  %v4496_v31 = vpop.f32.mrb[163].mxu1  ;;  %v9683_v6 = vld [vmem:[%s12850_s3 + $0x848] ss:$16 sps:$4 sm:$0xff]  }
 0x4b5   : > { %4706 = vmatmul.mubr.bf16.gmra.mrb[40].mxu1 %v9680_v0  ;;  %8927 = vrot.lane.b32.xlu1 %v8926_v11, %s9859_s12  ;;  %v9690_v0 = vld [vmem:[%s12850_s3 + $0x8ac] ss:$16 sps:$4 sm:$0xff]  }
 0x4b6   : > { %7982 = vmatprep.mubr.msk.bf16.mxu1 %vm3151_vm0, %v9681_v58 }
 0x4b8   : > { %v4499_v23 = vpop.f32.mrb[164].mxu1 }
 0x4b9   : > { %v4500_v45 = vadd.f32 %v4499_v23, %v11299_v40  ;;  %v4501_v8 = vpop.f32.mrb[165].mxu1  ;;  %v12888_v23 = vld [vmem:[#allocation18_spill] sm:$0xff] }
 0x4ba   : > { %v4502_v57 = vpop.f32.mrb[166].mxu1 }
 0x4bb   : > { %v8916_v59 = vpack.i.bf16 %v4500_v45, %v4495_v22  ;;  %v4503_v63 = vadd.f32 %v4502_v57, %v11310_v52  ;;  %v4504_v21 = vpop.f32.mrb[167].mxu1  ;;  %v9693_v22 = vld [vmem:[%s12850_s3 + $0x8cc] ss:$16 sps:$4 sm:$0xff]  }
 0x4bd   : > { %4714 = vmatmul.mubr.bf16.gmra.mrb[44].mxu1 %v9683_v6  ;;  %8917 = vrot.lane.b32.xlu0 %v8916_v59, %s9860_s19  ;;  %v9695_v6 = vld [vmem:[%s12850_s3 + $0x8c8] ss:$16 sps:$4 sm:$0xff]   ;;  %v12889_v59 = vld [vmem:[#allocation20_spill] sm:$0xff] }
 0x4be   : > { %7983 = vmatprep.mubr.msk.bf16.mxu1 %vm3151_vm0, %v9684_v3  ;;  %v9696_v3 = vld [vmem:[%s12850_s3 + $0x8ec] ss:$16 sps:$4 sm:$0xff]  }
 0x4c0   : > { %v4507_v40 = vpop.f32.mrb[168].mxu1 }
 0x4c1   : > { %v4508_v48 = vadd.f32 %v4507_v40, %v11316_v47  ;;  %v4509_v56 = vpop.f32.mrb[169].mxu1  ;;  %8922 = vrot.lane.b32.xlu0 %v8921_v30, %s9858_s26  ;;  %v9689_v30 = vld [vmem:[%s12850_s3 + $0x888] ss:$16 sps:$4 sm:$0xff]  }
 0x4c2   : > { %v4510_v52 = vpop.f32.mrb[170].mxu1  ;;  %v12890_v40 = vld [vmem:[#allocation7_spill] sm:$0xff] }
 0x4c3   : > { %v8931_v28 = vpack.i.bf16 %v4508_v48, %v4503_v63  ;;  %v4511_v24 = vadd.f32 %v4510_v52, %v11327_v46  ;;  %v4512_v27 = vpop.f32.mrb[171].mxu1 }
 0x4c4   : > { %v9701_v27 = vld [vmem:[%s12850_s3 + $0x90c] ss:$16 sps:$4 sm:$0xff]  }
 0x4c5   : > { %4722 = vmatmul.mubr.bf16.gmra.mrb[48].mxu1 %v9686_v33  ;;  %8932 = vrot.lane.b32.xlu0 %v8931_v28, %s9860_s19  ;;  %v12891_v33 = vld [vmem:[#allocation21_spill] sm:$0xff] }
 0x4c6   : > { %7984 = vmatprep.mubr.msk.bf16.mxu1 %vm3151_vm0, %v9687_v61  ;;  %v9698_v28 = vld [vmem:[%s12850_s3 + $0x8e8] ss:$16 sps:$4 sm:$0xff]  }
 0x4c8   : > { %v4515_v1 = vpop.f32.mrb[172].mxu1 }
 0x4c9   : > { %v4516_v47 = vadd.f32 %v4515_v1, %v11333_v18  ;;  %v4517_v20 = vpop.f32.mrb[173].mxu1 }
 0x4ca   : > { %v4518_v60 = vpop.f32.mrb[174].mxu1 }
 0x4cb   : > { %v8936_v46 = vpack.i.bf16 %v4516_v47, %v4511_v24  ;;  %v4519_v13 = vadd.f32 %v4518_v60, %v11344_v4  ;;  %v4520_v34 = vpop.f32.mrb[175].mxu1 }
 0x4cc   : > { %v9704_v34 = vld [vmem:[%s12850_s3 + $0x92c] ss:$16 sps:$4 sm:$0xff]  }
 0x4cd   : > { %4730 = vmatmul.mubr.bf16.gmra.mrb[52].mxu1 %v9689_v30  ;;  %8937 = vrot.lane.b32.xlu0 %v8936_v46, %s9860_s19  ;;  %v12892_v30 = vld [vmem:[#allocation23_spill] sm:$0xff] }
 0x4ce   : > { %7985 = vmatprep.mubr.msk.bf16.mxu1 %vm3151_vm0, %v9690_v0  ;;  %v9703_v46 = vld [vmem:[%s12850_s3 + $0x908] ss:$16 sps:$4 sm:$0xff]  }
 0x4d0   : > { %v4523_v18 = vpop.f32.mrb[176].mxu1 }
 0x4d1   : > { %v4524_v58 = vadd.f32 %v4523_v18, %v11350_v42  ;;  %v4525_v43 = vpop.f32.mrb[177].mxu1 }
 0x4d2   : > { %v4526_v11 = vpop.f32.mrb[178].mxu1 }
 0x4d3   : > { %v8941_v4 = vpack.i.bf16 %v4524_v58, %v4519_v13  ;;  %v4527_v31 = vadd.f32 %v4526_v11, %v11364_v19  ;;  %v4528_v62 = vpop.f32.mrb[179].mxu1 }
 0x4d4   : > { %v9707_v62 = vld [vmem:[%s12850_s3 + $0x94c] ss:$16 sps:$4 sm:$0xff]  }
 0x4d5   : > { %4738 = vmatmul.mubr.bf16.gmra.mrb[56].mxu1 %v9692_v14  ;;  %8942 = vrot.lane.b32.xlu0 %v8941_v4, %s9860_s19  ;;  %v12894_v14 = vld [vmem:[#allocation25_spill] sm:$0xff] }
 0x4d6   : > { %7986 = vmatprep.mubr.msk.bf16.mxu1 %vm3151_vm0, %v9693_v22  ;;  %v9706_v4 = vld [vmem:[%s12850_s3 + $0x928] ss:$16 sps:$4 sm:$0xff]  }
 0x4d8   : > { %v4531_v42 = vpop.f32.mrb[180].mxu1 }
 0x4d9   : > { %v4532_v45 = vadd.f32 %v4531_v42, %v12888_v23  ;;  %v4533_v8 = vpop.f32.mrb[181].mxu1 }
 0x4da   : > { %v4534_v57 = vpop.f32.mrb[182].mxu1  ;;  %v12895_v8 = vld [vmem:[#allocation26_spill] sm:$0xff] }
 0x4db   : > { %v8946_v19 = vpack.i.bf16 %v4532_v45, %v4527_v31  ;;  %v4535_v63 = vadd.f32 %v4534_v57, %v12889_v59  ;;  %v4536_v21 = vpop.f32.mrb[183].mxu1  ;;  %v9710_v59 = vld [vmem:[%s12850_s3 + $0x96c] ss:$16 sps:$4 sm:$0xff]  }
 0x4dd   : > { %v8951_v48 = vpack.i.bf16 %v12890_v40, %v4535_v63  ;;  %4746 = vmatmul.mubr.bf16.gmra.mrb[60].mxu1 %v9695_v6  ;;  %8947 = vrot.lane.b32.xlu0 %v8946_v19, %s9860_s19 }
 0x4de   : > { %7987 = vmatprep.mubr.msk.bf16.mxu1 %vm3151_vm0, %v9696_v3  ;;  %v9709_v3 = vld [vmem:[%s12850_s3 + $0x948] ss:$16 sps:$4 sm:$0xff]  }
 0x4e0   : > { %v4539_v56 = vpop.f32.mrb[184].mxu1 }
 0x4e1   : > { %v11723_v52 = vadd.f32 %v4539_v56, %v12891_v33  ;;  %v4541_v61 = vpop.f32.mrb[185].mxu1  ;;  %8952 = vrot.lane.b32.xlu0 %v8951_v48, %s9860_s19  ;;  %v9712_v33 = vld [vmem:[%s12850_s3 + $0x968] ss:$16 sps:$4 sm:$0xff]  }
 0x4e2   : > { %v4542_v24 = vpop.f32.mrb[186].mxu1 }
 0x4e3   : > { %v11733_v1 = vadd.f32 %v4542_v24, %v11398_v7  ;;  %v4544_v47 = vpop.f32.mrb[187].mxu1  ;;  %v12893_v7 = vld [vmem:[#allocation24_spill] sm:$0xff] }
 0x4e5   : > { %4754 = vmatmul.mubr.bf16.gmra.mrb[64].mxu1 %v9698_v28 }
 0x4e6   : > { %7988 = vmatprep.mubr.msk.bf16.mxu1 %vm3151_vm0, %v9701_v27 }
 0x4e8   : > { %v4547_v20 = vpop.f32.mrb[188].mxu1 }
 0x4e9   : > { %v11737_v60 = vadd.f32 %v4547_v20, %v12892_v30  ;;  %v4549_v0 = vpop.f32.mrb[189].mxu1 }
 0x4ea   : > { %v4550_v13 = vpop.f32.mrb[190].mxu1 }
 0x4eb   : > { %v11746_v18 = vadd.f32 %v4550_v13, %v12893_v7  ;;  %v4552_v58 = vpop.f32.mrb[191].mxu1 }
 0x4ec   : > { %v12897_v58 = vld [vmem:[#allocation3_spill] sm:$0xff] }
 0x4ed   : > { %4762 = vmatmul.mubr.bf16.gmra.mrb[68].mxu1 %v9703_v46 }
 0x4ee   : > { %7989 = vmatprep.mubr.msk.bf16.mxu1 %vm3151_vm0, %v9704_v34 }
 0x4f0   : > { %v4555_v43 = vpop.f32.mrb[192].mxu1 }
 0x4f1   : > { %v11750_v11 = vadd.f32 %v4555_v43, %v12894_v14  ;;  %v4557_v22 = vpop.f32.mrb[193].mxu1  ;;  %v12898_v14 = vld [vmem:[#allocation2_spill] sm:$0xff] }
 0x4f2   : > { %v4558_v31 = vpop.f32.mrb[194].mxu1 }
 0x4f3   : > { %v11759_v42 = vadd.f32 %v4558_v31, %v11435_v51  ;;  %v4560_v23 = vpop.f32.mrb[195].mxu1 }
 0x4f4   : > { %v11805_v23 = vpop.permute.xlu0 %8842 }
 0x4f5   : > { %4770 = vmatmul.mubr.bf16.gmra.mrb[72].mxu1 %v9706_v4 }
 0x4f6   : > { %7990 = vmatprep.mubr.msk.bf16.mxu1 %vm3151_vm0, %v9707_v62 }
 0x4f8   : > { %v4563_v45 = vpop.f32.mrb[196].mxu1 }
 0x4f9   : > { %v11763_v6 = vadd.f32 %v4563_v45, %v12895_v8  ;;  %v4565_v57 = vpop.f32.mrb[197].mxu1 }
 0x4fa   : > { %v4566_v19 = vpop.f32.mrb[198].mxu1 }
 0x4fb   : > { %v11772_v51 = vadd.f32 %v4566_v19, %v11451_v35  ;;  %v4568_v63 = vpop.f32.mrb[199].mxu1  ;;  %v9713_v35 = vld [vmem:[%s12850_s3 + $0x98c] ss:$16 sps:$4 sm:$0xff]  }
 0x4fd   : > { %4778 = vmatmul.mubr.bf16.gmra.mrb[76].mxu1 %v9709_v3 }
 0x4fe   : > { %7991 = vmatprep.mubr.msk.bf16.mxu1 %vm3151_vm0, %v9710_v59 }
 0x500   : > { %v4571_v21 = vpop.f32.mrb[200].mxu1 }
 0x501   : > { %v11776_v40 = vadd.f32 %v4571_v21, %v11462_v26  ;;  %v4573_v48 = vpop.f32.mrb[201].mxu1  ;;  %v11778_v56 = vpop.permute.xlu1 %8862  ;;  %v12896_v26 = vld [vmem:[#allocation22_spill] sm:$0xff] }
 0x502   : > { %v4574_v61 = vpop.f32.mrb[202].mxu1  ;;  %v8810_v47 = vunpack.i.h.bf16 %v12896_v26  ;;  %v8809_v20 = vunpack.i.l.bf16 %v12896_v26  ;;  %v11819_v48 = vpop.permute.xlu0 %8847 }
 0x503   : > { %v11787_v28 = vadd.f32 %v4574_v61, %v11479_v37  ;;  %v4576_v24 = vpop.f32.mrb[203].mxu1  ;;  %v9715_v37 = vld [vmem:[%s12850_s3 + $0x988] ss:$16 sps:$4 sm:$0xff]  }
 0x504   : > { %v5426_v43 = vsel %vm5418_vm1, %v12897_v58, %v8810_v47  ;;  %v5425_v22 = vsel %vm5418_vm1, %v12898_v14, %v8809_v20  ;;  %v9718_v24 = vld [vmem:[%s12850_s3 + $0x9a8] ss:$16 sps:$4 sm:$0xff]   ;;  %v9719_v20 = vld [vmem:[%s12850_s3 + $0x9cc] ss:$16 sps:$4 sm:$0xff]   ;;  %v12900_v14 = vld [vmem:[#allocation4_spill] sm:$0xff] }
 0x505   : > { %4786 = vmatmul.mubr.bf16.gmra.mrb[80].mxu1 %v9712_v33  ;;  %v8868_v27 = vpop.permute.xlu1 %8867  ;;  %v12899_v58 = vld [vmem:[#allocation5_spill] sm:$0xff] }
 0x506   : > { %7992 = vmatprep.mubr.msk.bf16.mxu1 %vm3151_vm0, %v9713_v35  ;;  %v8870_v30 = vunpack.i.h.bf16 %v8868_v27  ;;  %v8869_v0 = vunpack.i.l.bf16 %v8868_v27 }
 0x508   : > { %v4579_v46 = vpop.f32.mrb[204].mxu1  ;;  %v5438_v45 = vsel %vm5430_vm2, %v5426_v43, %v8870_v30  ;;  %v5437_v8 = vsel %vm5430_vm2, %v5425_v22, %v8869_v0  ;;  %v11828_v30 = vpop.permute.xlu0 %8852 }
 0x509   : > { %v11793_v13 = vadd.f32 %v4579_v46, %v11504_v2  ;;  %v4581_v34 = vpop.f32.mrb[205].mxu1  ;;  %v8873_v7 = vpop.permute.xlu1 %8872  ;;  %v9716_v2 = vld [vmem:[%s12850_s3 + $0x9ac] ss:$16 sps:$4 sm:$0xff]  }
 0x50a   : > { %v8875_v4 = vunpack.i.h.bf16 %v8873_v7  ;;  %v8874_v31 = vunpack.i.l.bf16 %v8873_v7  ;;  %v4582_v62 = vpop.f32.mrb[206].mxu1 }
 0x50b   : > { %v4583_v57 = vadd.f32 %v4582_v62, %v11518_v15  ;;  %v4584_v3 = vpop.f32.mrb[207].mxu1 }
 0x50c   : > { %v11811_v19 = vsel %vm5442_vm3, %v5437_v8, %v8874_v31  ;;  %v11814_v59 = vsel %vm5442_vm3, %v5438_v45, %v8875_v4  ;;  %v11837_v62 = vpop.permute.xlu0 %8857 }
 0x50d   : > { %v5565_v63 = vpack.c.bf16 %v11814_v59, %v11811_v19  ;;  %4794 = vmatmul.mubr.bf16.gmra.mrb[84].mxu1 %v9715_v37  ;;  %v8883_v21 = vpop.permute.xlu1 %8882 }
 0x50e   : > { %7993 = vmatprep.mubr.msk.bf16.mxu1 %vm3151_vm0, %v9716_v2  ;;  %v8885_v27 = vunpack.i.h.bf16 %v8883_v21  ;;  %v8884_v26 = vunpack.i.l.bf16 %v8883_v21 }
 0x510   : > { %v4587_v33 = vpop.f32.mrb[208].mxu1  ;;  %v5428_v43 = vsel %vm5418_vm1, %v12899_v58, %v8885_v27  ;;  %v5427_v22 = vsel %vm5418_vm1, %v12900_v14, %v8884_v26 }
 0x511   : > { %v4588_v61 = vadd.f32 %v4587_v33, %v11536_v39  ;;  %v4589_v15 = vpop.f32.mrb[209].mxu1  ;;  %v8888_v35 = vpop.permute.xlu1 %8887 }
 0x512   : > { %v4590_v47 = vpop.f32.mrb[210].mxu1  ;;  %v8890_v46 = vunpack.i.h.bf16 %v8888_v35  ;;  %v8889_v34 = vunpack.i.l.bf16 %v8888_v35  ;;  %v9726_v35 = vld [vmem:[%s12850_s3 + $0x9ec] ss:$16 sps:$4 sm:$0xff]  }
 0x513   : > { %v8956_v0 = vpack.i.bf16 %v4588_v61, %v4583_v57  ;;  %v4591_v39 = vadd.f32 %v4590_v47, %v11554_v50  ;;  %v4592_v7 = vpop.f32.mrb[211].mxu1  ;;  %v9721_v61 = vld [vmem:[%s12850_s3 + $0x9c8] ss:$16 sps:$4 sm:$0xff]  }
 0x514   : > { %v5439_v2 = vsel %vm5430_vm2, %v5427_v22, %v8889_v34  ;;  %v5440_v50 = vsel %vm5430_vm2, %v5428_v43, %v8890_v46  ;;  %v9728_v34 = vld [vmem:[%s12850_s3 + $0x9e8] ss:$16 sps:$4 sm:$0xff]  }
 0x515   : > { %4802 = vmatmul.mubr.bf16.gmra.mrb[88].mxu1 %v9718_v24  ;;  %v8893_v37 = vpop.permute.xlu1 %8892  ;;  %8957 = vrot.lane.b32.xlu0 %v8956_v0, %s9858_s26  ;;  %v11856_v24 = vpop.permute.xlu0 %8877 }
 0x516   : > { %v8895_v4 = vunpack.i.h.bf16 %v8893_v37  ;;  %v8894_v31 = vunpack.i.l.bf16 %v8893_v37  ;;  %7994 = vmatprep.mubr.msk.bf16.mxu1 %vm3151_vm0, %v9719_v20 }
 0x518   : > { %v11842_v45 = vsel %vm5442_vm3, %v5439_v2, %v8894_v31  ;;  %v11845_v8 = vsel %vm5442_vm3, %v5440_v50, %v8895_v4  ;;  %v4595_v57 = vpop.f32.mrb[212].mxu1  ;;  %v9735_v31 = vld [vmem:[%s12850_s3 + $0xa08] ss:$16 sps:$4 sm:$0xff]  }
 0x519   : > { %v5569_v3 = vpack.c.bf16 %v11845_v8, %v11842_v45  ;;  %v4596_v21 = vadd.f32 %v4595_v57, %v11566_v12  ;;  %v4597_v33 = vpop.f32.mrb[213].mxu1  ;;  %v11861_v12 = vpop.permute.xlu0 %8897  ;;  %v9758_v45 = vld [vmem:[%s12850_s3 + $0xaec] ss:$16 sps:$4 sm:$0xff]  }
 0x51a   : > { %v4598_v15 = vpop.f32.mrb[214].mxu1  ;;  %v8845_v33 = vunpack.i.h.bf16 %v11805_v23 }
 0x51b   : > { %v8961_v27 = vpack.i.bf16 %v4596_v21, %v4591_v39  ;;  %v4599_v26 = vadd.f32 %v4598_v15, %v11576_v17  ;;  %v4600_v47 = vpop.f32.mrb[215].mxu1  ;;  %v9733_v17 = vld [vmem:[%s12850_s3 + $0xa0c] ss:$16 sps:$4 sm:$0xff]   ;;  %v8865_v15 = vunpack.i.h.bf16 %v11778_v56 }
 0x51d   : > { %4810 = vmatmul.mubr.bf16.gmra.mrb[92].mxu1 %v9721_v61  ;;  %8962 = vrot.lane.b32.xlu0 %v8961_v27, %s9858_s26  ;;  %v11870_v39 = vpop.permute.xlu0 %8902  ;;  %v8844_v61 = vunpack.i.l.bf16 %v11805_v23 }
 0x51e   : > { %7995 = vmatprep.mubr.msk.bf16.mxu1 %vm3151_vm0, %v9726_v35  ;;  %v8864_v35 = vunpack.i.l.bf16 %v11778_v56 }
 0x520   : > { %v4603_v20 = vpop.f32.mrb[216].mxu1 }
 0x521   : > { %v4604_v0 = vadd.f32 %v4603_v20, %v11594_v44  ;;  %v4605_v46 = vpop.f32.mrb[217].mxu1  ;;  %v11877_v44 = vpop.permute.xlu0 %8907  ;;  %v12902_v20 = vld [vmem:[#allocation8_spill] sm:$0xff] }
 0x522   : > { %v4606_v7 = vpop.f32.mrb[218].mxu1 }
 0x523   : > { %v8966_v37 = vpack.i.bf16 %v4604_v0, %v4599_v26  ;;  %v11873_v58 = vadd.f32 %v4606_v7, %v11610_v32  ;;  %v4608_v43 = vpop.f32.mrb[219].mxu1  ;;  %v9740_v32 = vld [vmem:[%s12850_s3 + $0xa2c] ss:$16 sps:$4 sm:$0xff]  }
 0x524   : > { %v12901_v26 = vld [vmem:[#allocation9_spill] sm:$0xff] }
 0x525   : > { %4818 = vmatmul.mubr.bf16.gmra.mrb[96].mxu1 %v9728_v34  ;;  %8967 = vrot.lane.b32.xlu0 %v8966_v37, %s9858_s26  ;;  %v11888_v50 = vpop.permute.xlu0 %8912  ;;  %v5455_v47 = vsel %vm5418_vm1, %v12901_v26, %v8845_v33  ;;  %v9742_v37 = vld [vmem:[%s12850_s3 + $0xa28] ss:$16 sps:$4 sm:$0xff]  }
 0x526   : > { %7996 = vmatprep.mubr.msk.bf16.mxu1 %vm3151_vm0, %v9733_v17  ;;  %v5466_v7 = vsel %vm5430_vm2, %v5455_v47, %v8865_v15  ;;  %v8849_v15 = vunpack.i.l.bf16 %v11819_v48  ;;  %v12903_v26 = vld [vmem:[#allocation11_spill] sm:$0xff] }
 0x528   : > { %v4611_v14 = vpop.f32.mrb[220].mxu1 }
 0x529   : > { %v11880_v22 = vadd.f32 %v4611_v14, %v11624_v9  ;;  %v4613_v4 = vpop.f32.mrb[221].mxu1 }
 0x52a   : > { %v4614_v2 = vpop.f32.mrb[222].mxu1 }
 0x52b   : > { %v9041_v57 = vpack.i.bf16 %v11880_v22, %v11873_v58  ;;  %v11893_v21 = vadd.f32 %v4614_v2, %v11636_v53  ;;  %v4616_v9 = vpop.f32.mrb[223].mxu1  ;;  %v5454_v53 = vsel %vm5418_vm1, %v12902_v20, %v8844_v61  ;;  %v8850_v61 = vunpack.i.h.bf16 %v11819_v48  ;;  %v12904_v20 = vld [vmem:[#allocation10_spill] sm:$0xff] }
 0x52c   : > { %v5465_v23 = vsel %vm5430_vm2, %v5454_v53, %v8864_v35  ;;  %v8900_v35 = vunpack.i.h.bf16 %v11861_v12  ;;  %v5456_v53 = vsel %vm5418_vm1, %v12904_v20, %v8849_v15  ;;  %v12905_v15 = vld [vmem:[#allocation13_spill] sm:$0xff] }
 0x52d   : > { %4826 = vmatmul.mubr.bf16.gmra.mrb[100].mxu1 %v9735_v31  ;;  %v9743_v31 = vld [vmem:[%s12850_s3 + $0xa4c] ss:$16 sps:$4 sm:$0xff]   ;;  %v5457_v47 = vsel %vm5418_vm1, %v12903_v26, %v8850_v61 }
 0x52e   : > { %7997 = vmatprep.mubr.msk.bf16.mxu1 %vm3151_vm0, %v9740_v32 }
 0x52f   : > { %v8918_v27 = vpop.permute.xlu0 %8917 }
 0x530   : > { %v8920_v0 = vunpack.i.h.bf16 %v8918_v27  ;;  %v8919_v46 = vunpack.i.l.bf16 %v8918_v27  ;;  %v4619_v34 = vpop.f32.mrb[224].mxu1  ;;  %v8899_v27 = vunpack.i.l.bf16 %v11861_v12  ;;  %v5468_v12 = vsel %vm5430_vm2, %v5457_v47, %v8900_v35 }
 0x531   : > { %v11907_v17 = vadd.f32 %v4619_v34, %v11650_v38  ;;  %v4621_v56 = vpop.f32.mrb[225].mxu1 }
 0x532   : > { %v4622_v43 = vpop.f32.mrb[226].mxu1  ;;  %v5476_v14 = vsel %vm5442_vm3, %v5465_v23, %v8919_v46  ;;  %v5477_v4 = vsel %vm5442_vm3, %v5466_v7, %v8920_v0  ;;  %v5467_v34 = vsel %vm5430_vm2, %v5456_v53, %v8899_v27  ;;  %v12906_v27 = vld [vmem:[#allocation12_spill] sm:$0xff] }
 0x533   : > { %v9076_v2 = vpack.i.bf16 %v11907_v17, %v11893_v21  ;;  %v11920_v38 = vadd.f32 %v4622_v43, %v11663_v10  ;;  %v4624_v32 = vpop.f32.mrb[227].mxu1  ;;  %v11922_v9 = vpop.permute.xlu0 %8922  ;;  %v5554_v33 = vpack.c.bf16 %v5477_v4, %v5476_v14  ;;  %v9746_v14 = vld [vmem:[%s12850_s3 + $0xa6c] ss:$16 sps:$4 sm:$0xff]   ;;  %v8855_v4 = vunpack.i.h.bf16 %v11828_v30 }
 0x534   : > { %v8905_v32 = vunpack.i.h.bf16 %v11870_v39  ;;  %v8925_v19 = vunpack.i.h.bf16 %v11922_v9 }
 0x535   : > { %4834 = vmatmul.mubr.bf16.gmra.mrb[104].mxu1 %v9742_v37  ;;  %5872 = vmatprep.mubr.bf16.mxu0 %v5554_v33  ;;  %v8904_v33 = vunpack.i.l.bf16 %v11870_v39  ;;  %v5459_v35 = vsel %vm5418_vm1, %v12905_v15, %v8855_v4 }
 0x536   : > { %5873 = vmatmul.mubr.bf16.vlgmr.msra.gmra.mrb[64].mxu0 %v5553_v16  ;;  %7998 = vmatprep.mubr.msk.bf16.mxu1 %vm3151_vm0, %v9743_v31  ;;  %v8854_v31 = vunpack.i.l.bf16 %v11828_v30  ;;  %v5470_v47 = vsel %vm5430_vm2, %v5459_v35, %v8905_v32 }
 0x537   : > { %v8933_v10 = vpop.permute.xlu0 %8932 }
 0x538   : > { %v8935_v48 = vunpack.i.h.bf16 %v8933_v10  ;;  %v8934_v0 = vunpack.i.l.bf16 %v8933_v10  ;;  %v4627_v46 = vpop.f32.mrb[0].mxu1  ;;  %v5458_v30 = vsel %vm5418_vm1, %v12906_v27, %v8854_v31 }
 0x539   : > { %v4629_v7 = vpop.f32.mrb[1].mxu1  ;;  %v5469_v20 = vsel %vm5430_vm2, %v5458_v30, %v8904_v33  ;;  %v9752_v30 = vld [vmem:[%s12850_s3 + $0xaac] ss:$16 sps:$4 sm:$0xff]  }
 0x53a   : > { %v4630_v5 = vpop.f32.mrb[2].mxu1  ;;  %v5478_v16 = vsel %vm5442_vm3, %v5467_v34, %v8934_v0  ;;  %v5479_v23 = vsel %vm5442_vm3, %v5468_v12, %v8935_v48  ;;  %v9749_v34 = vld [vmem:[%s12850_s3 + $0xa8c] ss:$16 sps:$4 sm:$0xff]   ;;  %v8860_v7 = vunpack.i.h.bf16 %v11837_v62 }
 0x53b   : > { %v8971_v56 = vpack.i.bf16 %v4630_v5, %v4627_v46  ;;  %v4632_v37 = vpop.f32.mrb[3].mxu1  ;;  %v5558_v43 = vpack.c.bf16 %v5479_v23, %v5478_v16  ;;  %v8910_v5 = vunpack.i.h.bf16 %v11877_v44  ;;  %v8909_v16 = vunpack.i.l.bf16 %v11877_v44 }
 0x53d   : > { %4842 = vmatmul.mubr.bf16.gmra.mrb[108].mxu1 %v9745_v25  ;;  %5880 = vmatprep.mubr.bf16.mxu0 %v5558_v43  ;;  %v8859_v25 = vunpack.i.l.bf16 %v11837_v62  ;;  %v12908_v43 = vld [vmem:[#allocation14_spill] sm:$0xff] }
 0x53e   : > { %8972 = vrot.lane.b32.xlu0 %v8971_v56, %s9859_s12  ;;  %5881 = vmatmul.mubr.bf16.gmra.mrb[68].mxu0 %v5557_v54  ;;  %v12907_v56 = vld [vmem:[#allocation15_spill] sm:$0xff] }
 0x53f   : > { %v8938_v61 = vpop.permute.xlu0 %8937  ;;  %7999 = vmatprep.mubr.msk.bf16.mxu1 %vm3151_vm0, %v9746_v14  ;;  %v5461_v37 = vsel %vm5418_vm1, %v12907_v56, %v8860_v7  ;;  %v5460_v62 = vsel %vm5418_vm1, %v12908_v43, %v8859_v25  ;;  %v12911_v7 = vld [vmem:[#allocation19_spill] sm:$0xff] }
 0x540   : > { %v8940_v10 = vunpack.i.h.bf16 %v8938_v61  ;;  %v8939_v26 = vunpack.i.l.bf16 %v8938_v61  ;;  %v4635_v39 = vpop.f32.mrb[4].mxu1  ;;  %v5472_v31 = vsel %vm5430_vm2, %v5461_v37, %v8910_v5  ;;  %v5471_v32 = vsel %vm5430_vm2, %v5460_v62, %v8909_v16  ;;  %v9755_v56 = vld [vmem:[%s12850_s3 + $0xacc] ss:$16 sps:$4 sm:$0xff]  }
 0x541   : > { %v4637_v53 = vpop.f32.mrb[5].mxu1 }
 0x542   : > { %v4638_v29 = vpop.f32.mrb[6].mxu1  ;;  %v5480_v54 = vsel %vm5442_vm3, %v5469_v20, %v8939_v26  ;;  %v5481_v48 = vsel %vm5442_vm3, %v5470_v47, %v8940_v10  ;;  %v8880_v10 = vunpack.i.h.bf16 %v11856_v24  ;;  %v8879_v26 = vunpack.i.l.bf16 %v11856_v24 }
 0x543   : > { %v8976_v0 = vpack.i.bf16 %v4638_v29, %v4635_v39  ;;  %v4640_v46 = vpop.f32.mrb[7].mxu1  ;;  %v5562_v12 = vpack.c.bf16 %v5481_v48, %v5480_v54  ;;  %v8915_v39 = vunpack.i.h.bf16 %v11888_v50  ;;  %v8914_v47 = vunpack.i.l.bf16 %v11888_v50  ;;  %v12910_v29 = vld [vmem:[#allocation16_spill] sm:$0xff]  ;;  %v8928_v50 = vpop.permute.xlu1 %8927 }
 0x544   : > { %v8924_v20 = vunpack.i.l.bf16 %v11922_v9  ;;  %v5462_v54 = vsel %vm5418_vm1, %v12910_v29, %v8879_v26  ;;  %v8929_v37 = vunpack.i.l.bf16 %v8928_v50 }
 0x545   : > { %4850 = vmatmul.mubr.bf16.gmra.mrb[112].mxu1 %v9748_v41  ;;  %5888 = vmatprep.mubr.bf16.mxu0 %v5562_v12  ;;  %v12909_v41 = vld [vmem:[#allocation17_spill] sm:$0xff] }
 0x546   : > { %8977 = vrot.lane.b32.xlu0 %v8976_v0, %s9859_s12  ;;  %5889 = vmatmul.mubr.bf16.gmra.mrb[72].mxu0 %v5561_v36  ;;  %v5463_v24 = vsel %vm5418_vm1, %v12909_v41, %v8880_v10  ;;  %v5464_v25 = vsel %vm5418_vm1, %v12911_v7, %v8924_v20  ;;  %v9760_v20 = vld [vmem:[%s12850_s3 + $0xae8] ss:$16 sps:$4 sm:$0xff]  }
 0x547   : > { %v8943_v23 = vpop.permute.xlu0 %8942  ;;  %8000 = vmatprep.mubr.msk.bf16.mxu1 %vm3151_vm0, %v9749_v34  ;;  %v5474_v12 = vsel %vm5430_vm2, %v5463_v24, %v8915_v39  ;;  %v5473_v34 = vsel %vm5430_vm2, %v5462_v54, %v8914_v47 }
 0x548   : > { %v8945_v14 = vunpack.i.h.bf16 %v8943_v23  ;;  %v8944_v4 = vunpack.i.l.bf16 %v8943_v23  ;;  %v4643_v44 = vpop.f32.mrb[8].mxu1 }
 0x549   : > { %v4645_v33 = vpop.f32.mrb[9].mxu1 }
 0x54a   : > { %v4646_v55 = vpop.f32.mrb[10].mxu1  ;;  %v5482_v36 = vsel %vm5442_vm3, %v5471_v32, %v8944_v4  ;;  %v5483_v61 = vsel %vm5442_vm3, %v5472_v31, %v8945_v14  ;;  %v5475_v33 = vsel %vm5430_vm2, %v5464_v25, %v8929_v37 }
 0x54b   : > { %v8981_v15 = vpack.i.bf16 %v4646_v55, %v4643_v44  ;;  %v4648_v35 = vpop.f32.mrb[11].mxu1  ;;  %v5566_v27 = vpack.c.bf16 %v5483_v61, %v5482_v36  ;;  %v12912_v44 = vld [vmem:[#allocation6_spill] sm:$0xff] }
 0x54c   : > { %v5429_v31 = vsel %vm5418_vm1, %v12912_v44, %v8925_v19 }
 0x54d   : > { %4858 = vmatmul.mubr.bf16.gmra.mrb[116].mxu1 %v9751_v49  ;;  %5896 = vmatprep.mubr.bf16.mxu0 %v5566_v27  ;;  %v8930_v49 = vunpack.i.h.bf16 %v8928_v50 }
 0x54e   : > { %8982 = vrot.lane.b32.xlu0 %v8981_v15, %s9859_s12  ;;  %5897 = vmatmul.mubr.bf16.gmra.mrb[76].mxu0 %v5565_v63  ;;  %v9754_v63 = vld [vmem:[%s12850_s3 + $0xaa8] ss:$16 sps:$4 sm:$0xff]  }
 0x54f   : > { %v8948_v53 = vpop.permute.xlu0 %8947  ;;  %8001 = vmatprep.mubr.msk.bf16.mxu1 %vm3151_vm0, %v9752_v30  ;;  %v5441_v61 = vsel %vm5430_vm2, %v5429_v31, %v8930_v49  ;;  %v9757_v30 = vld [vmem:[%s12850_s3 + $0xac8] ss:$16 sps:$4 sm:$0xff]  }
 0x550   : > { %v8950_v48 = vunpack.i.h.bf16 %v8948_v53  ;;  %v8949_v0 = vunpack.i.l.bf16 %v8948_v53  ;;  %v12006_v46 = vpop.f32.mrb[12].mxu1 }
 0x551   : > { %v4653_v59 = vpop.f32.mrb[13].mxu1 }
 0x552   : > { %v12016_v5 = vpop.f32.mrb[14].mxu1  ;;  %v5484_v16 = vsel %vm5442_vm3, %v5473_v34, %v8949_v0  ;;  %v5485_v23 = vsel %vm5442_vm3, %v5474_v12, %v8950_v48 }
 0x553   : > { %v9056_v9 = vpack.i.bf16 %v12016_v5, %v12006_v46  ;;  %v4656_v43 = vpop.f32.mrb[15].mxu1  ;;  %v8953_v62 = vpop.permute.xlu0 %8952  ;;  %v5570_v14 = vpack.c.bf16 %v5485_v23, %v5484_v16 }
 0x554   : > { %v8954_v4 = vunpack.i.l.bf16 %v8953_v62  ;;  %v8955_v32 = vunpack.i.h.bf16 %v8953_v62 }
 0x555   : > { %4866 = vmatmul.mubr.bf16.gmra.mrb[120].mxu1 %v9754_v63  ;;  %5904 = vmatprep.mubr.bf16.mxu0 %v5570_v14 }
 0x556   : > { %5905 = vmatmul.mubr.bf16.gmra.mrb[80].mxu0 %v5569_v3  ;;  %v5486_v55 = vsel %vm5442_vm3, %v5475_v33, %v8954_v4  ;;  %8002 = vmatprep.mubr.msk.bf16.mxu1 %vm3151_vm0, %v9755_v56  ;;  %v5453_v35 = vsel %vm5442_vm3, %v5441_v61, %v8955_v32 }
 0x557   : > { %v5574_v36 = vpack.c.bf16 %v5486_v55, %v5486_v55  ;;  %v5573_v26 = vpack.c.bf16 %v5453_v35, %v5453_v35 }
 0x558   : > { %v4659_v15 = vpop.f32.mrb[16].mxu1 }
 0x559   : > { %v4661_v27 = vpop.f32.mrb[17].mxu1  ;;  %5912 = vmatprep.mubr.bf16.mxu0 %v5574_v36 }
 0x55a   : > { %v4662_v10 = vpop.f32.mrb[18].mxu1 }
 0x55b   : > { %v9091_v8 = vpack.i.bf16 %v4662_v10, %v4659_v15  ;;  %v4664_v3 = vpop.f32.mrb[19].mxu1 }
 0x55d   : > { %4874 = vmatmul.mubr.bf16.gmra.mrb[124].mxu1 %v9757_v30 }
 0x55e   : > { %5913 = vmatmul.mubr.bf16.gmra.mrb[84].mxu0 %v5573_v26  ;;  %8003 = vmatprep.mubr.msk.bf16.mxu1 %vm3151_vm0, %v9758_v45 }
 0x560   : > { %v12042_v39 = vpop.f32.mrb[20].mxu1 }
 0x561   : > { %v4669_v47 = vpop.f32.mrb[21].mxu1 }
 0x562   : > { %v4670_v53 = vpop.f32.mrb[22].mxu1 }
 0x563   : > { %v4672_v41 = vpop.f32.mrb[23].mxu1 }
 0x565   : > { %4882 = vmatmul.mubr.bf16.gmra.mrb[128].mxu1 %v9760_v20 }
 0x568   : > { %v4675_v24 = vpop.f32.mrb[24].mxu1 }
 0x569   : > { %v8986_v29 = vpack.i.bf16 %v4675_v24, %v4670_v53  ;;  %v4677_v54 = vpop.f32.mrb[25].mxu1 }
 0x56a   : > { %v4678_v50 = vpop.f32.mrb[26].mxu1 }
 0x56b   : > { %v4680_v48 = vpop.f32.mrb[27].mxu1  ;;  %8987 = vrot.lane.b32.xlu0 %v8986_v29, %s9860_s19 }
 0x570   : > { %v4683_v0 = vpop.f32.mrb[28].mxu1 }
 0x571   : > { %v8991_v46 = vpack.i.bf16 %v4683_v0, %v4678_v50  ;;  %v4685_v12 = vpop.f32.mrb[29].mxu1 }
 0x572   : > { %v4686_v34 = vpop.f32.mrb[30].mxu1 }
 0x573   : > { %v4688_v19 = vpop.f32.mrb[31].mxu1  ;;  %8992 = vrot.lane.b32.xlu0 %v8991_v46, %s9860_s19 }
 0x578   : > { %v4691_v59 = vpop.f32.mrb[32].mxu1 }
 0x579   : > { %v8996_v63 = vpack.i.bf16 %v4691_v59, %v4686_v34  ;;  %v4693_v7 = vpop.f32.mrb[33].mxu1 }
 0x57a   : > { %v4694_v25 = vpop.f32.mrb[34].mxu1 }
 0x57b   : > { %v4696_v5 = vpop.f32.mrb[35].mxu1  ;;  %8997 = vrot.lane.b32.xlu0 %v8996_v63, %s9860_s19 }
 0x57f   : > { %9042 = vrot.lane.b32.xlu0 %v9041_v57, %s9858_s26 }
 0x580   : > { %v4699_v16 = vpop.f32.mrb[36].mxu1 }
 0x581   : > { %v9061_v23 = vpack.i.bf16 %v4699_v16, %v4694_v25  ;;  %v4701_v56 = vpop.f32.mrb[37].mxu1 }
 0x582   : > { %v4702_v37 = vpop.f32.mrb[38].mxu1 }
 0x583   : > { %v4704_v43 = vpop.f32.mrb[39].mxu1  ;;  %9057 = vrot.lane.b32.xlu0 %v9056_v9, %s9859_s12 }
 0x587   : > { %9062 = vrot.lane.b32.xlu0 %v9061_v23, %s9860_s19  ;;  %v8958_v50 = vpop.permute.xlu0 %8957 }
 0x588   : > { %v4707_v62 = vpop.f32.mrb[40].mxu1 }
 0x589   : > { %v9096_v14 = vpack.i.bf16 %v4707_v62, %v4702_v37  ;;  %v4709_v4 = vpop.f32.mrb[41].mxu1 }
 0x58a   : > { %v12056_v44 = vpop.f32.mrb[42].mxu1  ;;  %v8960_v4 = vunpack.i.h.bf16 %v8958_v50 }
 0x58b   : > { %v4712_v31 = vpop.f32.mrb[43].mxu1  ;;  %9077 = vrot.lane.b32.xlu0 %v9076_v2, %s9858_s26 }
 0x58c   : > { %v8959_v31 = vunpack.i.l.bf16 %v8958_v50 }
 0x58f   : > { %9092 = vrot.lane.b32.xlu0 %v9091_v8, %s9859_s12  ;;  %v8963_v0 = vpop.permute.xlu0 %8962 }
 0x590   : > { %v12063_v58 = vpop.f32.mrb[44].mxu1 }
 0x591   : > { %v4717_v22 = vpop.f32.mrb[45].mxu1 }
 0x592   : > { %v12065_v57 = vpop.f32.mrb[46].mxu1 }
 0x593   : > { %v4720_v9 = vpop.f32.mrb[47].mxu1  ;;  %9097 = vrot.lane.b32.xlu0 %v9096_v14, %s9860_s19 }
 0x597   : > { %v12088_v59 = vpop.permute.xlu0 %8967 }
 0x598   : > { %v12068_v32 = vpop.f32.mrb[48].mxu1 }
 0x599   : > { %v4725_v33 = vpop.f32.mrb[49].mxu1 }
 0x59a   : > { %v12070_v49 = vpop.f32.mrb[50].mxu1 }
 0x59b   : > { %v4728_v55 = vpop.f32.mrb[51].mxu1 }
 0x5a0   : > { %v12072_v36 = vpop.f32.mrb[52].mxu1 }
 0x5a1   : > { %v4733_v21 = vpop.f32.mrb[53].mxu1 }
 0x5a2   : > { %v12074_v17 = vpop.f32.mrb[54].mxu1 }
 0x5a3   : > { %v4736_v2 = vpop.f32.mrb[55].mxu1 }
 0x5a4   : > { %v5488_v2 = vsel %vm5418_vm1, %v11733_v1, %v8960_v4 }
 0x5a8   : > { %v12076_v61 = vpop.f32.mrb[56].mxu1 }
 0x5a9   : > { %v4741_v15 = vpop.f32.mrb[57].mxu1 }
 0x5aa   : > { %v12078_v35 = vpop.f32.mrb[58].mxu1  ;;  %v5487_v15 = vsel %vm5418_vm1, %v11723_v52, %v8959_v31  ;;  %v8970_v31 = vunpack.i.h.bf16 %v12088_v59 }
 0x5ab   : > { %v4744_v27 = vpop.f32.mrb[59].mxu1 }
 0x5b0   : > { %v12080_v30 = vpop.f32.mrb[60].mxu1  ;;  %v8973_v7 = vpop.permute.xlu0 %8972 }
 0x5b1   : > { %v4749_v10 = vpop.f32.mrb[61].mxu1  ;;  %v8975_v9 = vunpack.i.h.bf16 %v8973_v7  ;;  %v8974_v33 = vunpack.i.l.bf16 %v8973_v7 }
 0x5b2   : > { %v12082_v45 = vpop.f32.mrb[62].mxu1 }
 0x5b3   : > { %v4752_v8 = vpop.f32.mrb[63].mxu1 }
 0x5b4   : > { %v5499_v8 = vsel %vm5430_vm2, %v5488_v2, %v8975_v9 }
 0x5b8   : > { %v12084_v3 = vpop.f32.mrb[64].mxu1  ;;  %v8978_v56 = vpop.permute.xlu0 %8977 }
 0x5b9   : > { %v4757_v26 = vpop.f32.mrb[65].mxu1  ;;  %v8980_v50 = vunpack.i.h.bf16 %v8978_v56 }
 0x5ba   : > { %v4758_v47 = vpop.f32.mrb[66].mxu1  ;;  %v5498_v26 = vsel %vm5430_vm2, %v5487_v15, %v8974_v33  ;;  %v9761_v33 = vld [vmem:[%s12851_s4 + $0xc0] sm:$0xff]  }
 0x5bb   : > { %v4760_v20 = vpop.f32.mrb[67].mxu1  ;;  %8221 = vmatprep.subr.bf16.mxu0 %v9761_v33 }
 0x5c0   : > { %v4763_v53 = vpop.f32.mrb[68].mxu1  ;;  %v8983_v43 = vpop.permute.xlu0 %8982 }
 0x5c1   : > { %v9001_v41 = vpack.i.bf16 %v4763_v53, %v4758_v47  ;;  %v4765_v24 = vpop.f32.mrb[69].mxu1  ;;  %v8984_v2 = vunpack.i.l.bf16 %v8983_v43 }
 0x5c2   : > { %v4766_v29 = vpop.f32.mrb[70].mxu1  ;;  %v8965_v24 = vunpack.i.h.bf16 %v8963_v0 }
 0x5c3   : > { %v4768_v54 = vpop.f32.mrb[71].mxu1  ;;  %9002 = vrot.lane.b32.xlu1 %v9001_v41, %s9858_s26 }
 0x5c8   : > { %v4771_v48 = vpop.f32.mrb[72].mxu1 }
 0x5c9   : > { %v9006_v46 = vpack.i.bf16 %v4771_v48, %v4766_v29  ;;  %v4773_v12 = vpop.f32.mrb[73].mxu1  ;;  %v8964_v29 = vunpack.i.l.bf16 %v8963_v0  ;;  %v8979_v48 = vunpack.i.l.bf16 %v8978_v56 }
 0x5ca   : > { %v4774_v34 = vpop.f32.mrb[74].mxu1 }
 0x5cb   : > { %v4776_v19 = vpop.f32.mrb[75].mxu1  ;;  %9007 = vrot.lane.b32.xlu1 %v9006_v46, %s9858_s26 }
 0x5cc   : > { %v5490_v19 = vsel %vm5418_vm1, %v11746_v18, %v8965_v24 }
 0x5d0   : > { %v4779_v63 = vpop.f32.mrb[76].mxu1 }
 0x5d1   : > { %v9011_v25 = vpack.i.bf16 %v4779_v63, %v4774_v34  ;;  %v4781_v5 = vpop.f32.mrb[77].mxu1  ;;  %v5489_v63 = vsel %vm5418_vm1, %v11737_v60, %v8964_v29  ;;  %v8969_v60 = vunpack.i.l.bf16 %v12088_v59  ;;  %v5492_v59 = vsel %vm5418_vm1, %v11759_v42, %v8970_v31 }
 0x5d2   : > { %v12090_v16 = vpop.f32.mrb[78].mxu1  ;;  %v5501_v5 = vsel %vm5430_vm2, %v5490_v19, %v8980_v50  ;;  %v5500_v0 = vsel %vm5430_vm2, %v5489_v63, %v8979_v48  ;;  %v9764_v63 = vld [vmem:[%s12851_s4 + $0x88] sm:$0xff]  }
 0x5d3   : > { %v4784_v23 = vpop.f32.mrb[79].mxu1  ;;  %9012 = vrot.lane.b32.xlu1 %v9011_v25, %s9858_s26 }
 0x5d8   : > { %v12093_v37 = vpop.f32.mrb[80].mxu1 }
 0x5d9   : > { %v9036_v62 = vpack.i.bf16 %v12093_v37, %v12090_v16  ;;  %v4789_v14 = vpop.f32.mrb[81].mxu1 }
 0x5da   : > { %v12097_v22 = vpop.f32.mrb[82].mxu1 }
 0x5db   : > { %v4792_v55 = vpop.f32.mrb[83].mxu1 }
 0x5dc   : > { %v9762_v55 = vld [vmem:[%s12851_s4 + $0x80] sm:$0xff]  }
 0x5dd   : > { %v8988_v21 = vpop.permute.xlu0 %8987  ;;  %8222 = vmatpush3.bf16.msra.mxu0 %v9762_v55 }
 0x5de   : > { %v8990_v27 = vunpack.i.h.bf16 %v8988_v21  ;;  %v8989_v10 = vunpack.i.l.bf16 %v8988_v21  ;;  %v8985_v21 = vunpack.i.h.bf16 %v8983_v43 }
 0x5e0   : > { %v12106_v47 = vsel %vm5442_vm3, %v5498_v26, %v8989_v10  ;;  %v12109_v20 = vsel %vm5442_vm3, %v5499_v8, %v8990_v27  ;;  %v12111_v53 = vpop.f32.mrb[84].mxu1  ;;  %v5491_v8 = vsel %vm5418_vm1, %v11750_v11, %v8969_v60  ;;  %v5503_v29 = vsel %vm5430_vm2, %v5492_v59, %v8985_v21  ;;  %v9763_v11 = vld [vmem:[%s12851_s4 + $0xc8] sm:$0xff]   ;;  %v9767_v60 = vld [vmem:[%s12851_s4 + $0xd8] sm:$0xff]  }
 0x5e1   : > { %v5555_v1 = vpack.c.bf16 %v12109_v20, %v12106_v47  ;;  %v9071_v52 = vpack.i.bf16 %v12111_v53, %v12097_v22  ;;  %v4797_v41 = vpop.f32.mrb[85].mxu1  ;;  %v5502_v24 = vsel %vm5430_vm2, %v5491_v8, %v8984_v2  ;;  %8223 = vmatprep.subr.bf16.mxu0 %v9763_v11  ;;  %v9770_v11 = vld [vmem:[%s12851_s4 + $0xa0] sm:$0xff]  }
 0x5e2   : > { %v12117_v54 = vpop.f32.mrb[86].mxu1  ;;  %8224 = vmatpush3.bf16.msra.mxu0 %v9764_v63 }
 0x5e3   : > { %v9106_v46 = vpack.i.bf16 %v11920_v38, %v12117_v54  ;;  %v4800_v12 = vpop.f32.mrb[87].mxu1 }
 0x5e5   : > { %v8993_v34 = vpop.permute.xlu0 %8992 }
 0x5e6   : > { %v8995_v7 = vunpack.i.h.bf16 %v8993_v34  ;;  %v8994_v25 = vunpack.i.l.bf16 %v8993_v34 }
 0x5e8   : > { %v12128_v23 = vsel %vm5442_vm3, %v5500_v0, %v8994_v25  ;;  %v12131_v56 = vsel %vm5442_vm3, %v5501_v5, %v8995_v7  ;;  %v4803_v14 = vpop.f32.mrb[88].mxu1  ;;  %v9765_v7 = vld [vmem:[%s12851_s4 + $0xd0] sm:$0xff]  }
 0x5e9   : > { %v5559_v4 = vpack.c.bf16 %v12131_v56, %v12128_v23  ;;  %v4805_v18 = vpop.f32.mrb[89].mxu1  ;;  %8225 = vmatprep.subr.bf16.mxu0 %v9765_v7 }
 0x5ea   : > { %v4806_v9 = vpop.f32.mrb[90].mxu1 }
 0x5eb   : > { %v9016_v15 = vpack.i.bf16 %v4806_v9, %v4803_v14  ;;  %v4808_v27 = vpop.f32.mrb[91].mxu1  ;;  %v9766_v14 = vld [vmem:[%s12851_s4 + $0x90] sm:$0xff]  }
 0x5ec   : > { %8226 = vmatpush3.bf16.msra.mxu0 %v9766_v14 }
 0x5ed   : > { %9017 = vrot.lane.b32.xlu1 %v9016_v15, %s9859_s12  ;;  %v8998_v10 = vpop.permute.xlu0 %8997  ;;  %v9768_v15 = vld [vmem:[%s12851_s4 + $0x98] sm:$0xff]   ;;  %8227 = vmatprep.subr.bf16.mxu0 %v9767_v60 }
 0x5ee   : > { %v9000_v26 = vunpack.i.h.bf16 %v8998_v10  ;;  %v8999_v41 = vunpack.i.l.bf16 %v8998_v10 }
 0x5f0   : > { %v12151_v43 = vsel %vm5442_vm3, %v5502_v24, %v8999_v41  ;;  %v12154_v50 = vsel %vm5442_vm3, %v5503_v29, %v9000_v26  ;;  %v4811_v48 = vpop.f32.mrb[92].mxu1  ;;  %v9769_v41 = vld [vmem:[%s12851_s4 + $0xe0] sm:$0xff]   ;;  %8228 = vmatpush3.bf16.msra.mxu0 %v9768_v15 }
 0x5f1   : > { %v5563_v12 = vpack.c.bf16 %v12154_v50, %v12151_v43  ;;  %v4813_v42 = vpop.f32.mrb[93].mxu1  ;;  %v9043_v34 = vpop.permute.xlu0 %9042  ;;  %8229 = vmatprep.subr.bf16.mxu0 %v9769_v41 }
 0x5f2   : > { %v4814_v19 = vpop.f32.mrb[94].mxu1  ;;  %v9045_v18 = vunpack.i.h.bf16 %v9043_v34  ;;  %v9044_v31 = vunpack.i.l.bf16 %v9043_v34 }
 0x5f3   : > { %v9021_v25 = vpack.i.bf16 %v4814_v19, %v4811_v48  ;;  %v4816_v5 = vpop.f32.mrb[95].mxu1 }
 0x5f4   : > { %v5494_v27 = vsel %vm5418_vm1, %v11772_v51, %v9045_v18  ;;  %v5493_v10 = vsel %vm5418_vm1, %v11763_v6, %v9044_v31  ;;  %8230 = vmatpush3.bf16.msra.mxu0 %v9770_v11 }
 0x5f5   : > { %9022 = vrot.lane.b32.xlu1 %v9021_v25, %s9859_s12  ;;  %v9058_v0 = vpop.permute.xlu0 %9057 }
 0x5f6   : > { %v9060_v9 = vunpack.i.h.bf16 %v9058_v0  ;;  %v9059_v33 = vunpack.i.l.bf16 %v9058_v0 }
 0x5f8   : > { %v4819_v55 = vpop.f32.mrb[96].mxu1  ;;  %v5504_v24 = vsel %vm5430_vm2, %v5493_v10, %v9059_v33  ;;  %v5505_v29 = vsel %vm5430_vm2, %v5494_v27, %v9060_v9  ;;  %v9771_v27 = vld [vmem:[%s12851_s4 + $0xe8] sm:$0xff]  }
 0x5f9   : > { %v4821_v21 = vpop.f32.mrb[97].mxu1  ;;  %v9063_v2 = vpop.permute.xlu0 %9062  ;;  %v9772_v10 = vld [vmem:[%s12851_s4 + $0xa8] sm:$0xff]   ;;  %8231 = vmatprep.subr.bf16.mxu0 %v9771_v27 }
 0x5fa   : > { %v9065_v59 = vunpack.i.h.bf16 %v9063_v2  ;;  %v9064_v8 = vunpack.i.l.bf16 %v9063_v2  ;;  %v4822_v26 = vpop.f32.mrb[98].mxu1  ;;  %8232 = vmatpush3.bf16.msra.mxu0 %v9772_v10 }
 0x5fb   : > { %v9026_v48 = vpack.i.bf16 %v4822_v26, %v4819_v55  ;;  %v4824_v42 = vpop.f32.mrb[99].mxu1 }
 0x5fc   : > { %v12187_v34 = vsel %vm5442_vm3, %v5504_v24, %v9064_v8  ;;  %v12190_v51 = vsel %vm5442_vm3, %v5505_v29, %v9065_v59  ;;  %v9773_v59 = vld [vmem:[%s12851_s4 + $0xf0] sm:$0xff]  }
 0x5fd   : > { %v5567_v6 = vpack.c.bf16 %v12190_v51, %v12187_v34  ;;  %9027 = vrot.lane.b32.xlu1 %v9026_v48, %s9859_s12  ;;  %v9078_v19 = vpop.permute.xlu0 %9077  ;;  %8233 = vmatprep.subr.bf16.mxu0 %v9773_v59 }
 0x5fe   : > { %v9080_v5 = vunpack.i.h.bf16 %v9078_v19  ;;  %v9079_v0 = vunpack.i.l.bf16 %v9078_v19 }
 0x600   : > { %v12198_v63 = vpop.f32.mrb[100].mxu1  ;;  %v5496_v55 = vsel %vm5418_vm1, %v11787_v28, %v9080_v5  ;;  %v5495_v21 = vsel %vm5418_vm1, %v11776_v40, %v9079_v0 }
 0x601   : > { %v4829_v7 = vpop.f32.mrb[101].mxu1  ;;  %v9093_v25 = vpop.permute.xlu0 %9092 }
 0x602   : > { %v12200_v14 = vpop.f32.mrb[102].mxu1  ;;  %v9095_v18 = vunpack.i.h.bf16 %v9093_v25  ;;  %v9094_v31 = vunpack.i.l.bf16 %v9093_v25 }
 0x603   : > { %v9051_v60 = vpack.i.bf16 %v12200_v14, %v12198_v63  ;;  %v4832_v9 = vpop.f32.mrb[103].mxu1 }
 0x604   : > { %v5506_v8 = vsel %vm5430_vm2, %v5495_v21, %v9094_v31  ;;  %v5507_v28 = vsel %vm5430_vm2, %v5496_v55, %v9095_v18  ;;  %v9774_v18 = vld [vmem:[%s12851_s4 + $0xb0] sm:$0xff]   ;;  %v9775_v9 = vld [vmem:[%s12851_s4 + $0xf8] sm:$0xff]  }
 0x605   : > { %v9098_v33 = vpop.permute.xlu0 %9097  ;;  %8234 = vmatpush3.bf16.msra.mxu0 %v9774_v18  ;;  %v9776_v55 = vld [vmem:[%s12851_s4 + $0xb8] sm:$0xff]  }
 0x606   : > { %v9100_v2 = vunpack.i.h.bf16 %v9098_v33  ;;  %v9099_v15 = vunpack.i.l.bf16 %v9098_v33  ;;  %8235 = vmatprep.subr.bf16.mxu0 %v9775_v9 }
 0x608   : > { %v12220_v40 = vsel %vm5442_vm3, %v5506_v8, %v9099_v15  ;;  %v12223_v26 = vsel %vm5442_vm3, %v5507_v28, %v9100_v2  ;;  %v12225_v41 = vpop.f32.mrb[104].mxu1 }
 0x609   : > { %v5571_v24 = vpack.c.bf16 %v12223_v26, %v12220_v40  ;;  %v4837_v29 = vpop.f32.mrb[105].mxu1  ;;  %v8185_v48 = vpop.f32.mrb[64].mxu0  ;;  %8236 = vmatpush3.bf16.msra.mxu0 %v9776_v55  ;;  %v12363_v40 = vld [vmem:[%s12852_s5] ss:$0 sm:$0xff] }
 0x60a   : > { %v12229_v42 = vpop.f32.mrb[106].mxu1  ;;  %v8186_v19 = vpop.f32.mrb[65].mxu0 }
 0x60b   : > { %v9086_v11 = vpack.i.bf16 %v12229_v42, %v12225_v41  ;;  %v12233_v7 = vadd.f32 %v8186_v19, %v8185_v48  ;;  %v4840_v25 = vpop.f32.mrb[107].mxu1  ;;  %v8188_v5 = vpop.f32.mrb[66].mxu0 }
 0x60c   : > { %v8189_v0 = vpop.f32.mrb[67].mxu0 }
 0x60d   : > { %v12238_v31 = vadd.f32 %v8189_v0, %v8188_v5 }
 0x610   : > { %v4843_v33 = vpop.f32.mrb[108].mxu1 }
 0x611   : > { %v9111_v21 = vpack.i.bf16 %v12042_v39, %v4843_v33  ;;  %v4845_v2 = vpop.f32.mrb[109].mxu1  ;;  %v8191_v15 = vpop.f32.mrb[68].mxu0 }
 0x612   : > { %v4846_v27 = vpop.f32.mrb[110].mxu1  ;;  %v8192_v10 = vpop.f32.mrb[69].mxu0 }
 0x613   : > { %v12247_v59 = vadd.f32 %v8192_v10, %v8191_v15  ;;  %v4848_v8 = vpop.f32.mrb[111].mxu1  ;;  %9112 = vrot.lane.b32.xlu0 %v9111_v21, %s9859_s12  ;;  %v8194_v28 = vpop.f32.mrb[70].mxu0 }
 0x614   : > { %v8195_v29 = vpop.f32.mrb[71].mxu0 }
 0x615   : > { %v12250_v48 = vadd.f32 %v8195_v29, %v8194_v28 }
 0x618   : > { %v4851_v19 = vpop.f32.mrb[112].mxu1 }
 0x619   : > { %v9031_v25 = vpack.i.bf16 %v4851_v19, %v4846_v27  ;;  %v4853_v5 = vpop.f32.mrb[113].mxu1  ;;  %v8197_v0 = vpop.f32.mrb[72].mxu0 }
 0x61a   : > { %v4854_v18 = vpop.f32.mrb[114].mxu1  ;;  %v8198_v39 = vpop.f32.mrb[73].mxu0 }
 0x61b   : > { %v12252_v9 = vadd.f32 %v8198_v39, %v8197_v0  ;;  %v4856_v33 = vpop.f32.mrb[115].mxu1  ;;  %9032 = vrot.lane.b32.xlu1 %v9031_v25, %s9860_s19  ;;  %v8200_v55 = vpop.f32.mrb[74].mxu0 }
 0x61c   : > { %v8201_v2 = vpop.f32.mrb[75].mxu0 }
 0x61d   : > { %v12255_v15 = vadd.f32 %v8201_v2, %v8200_v55 }
 0x61f   : > { %9037 = vrot.lane.b32.xlu1 %v9036_v62, %s9858_s26 }
 0x620   : > { %v4859_v21 = vpop.f32.mrb[116].mxu1 }
 0x621   : > { %v9046_v27 = vpack.i.bf16 %v4859_v21, %v4854_v18  ;;  %v4861_v10 = vpop.f32.mrb[117].mxu1  ;;  %v8203_v8 = vpop.f32.mrb[76].mxu0 }
 0x622   : > { %v4862_v28 = vpop.f32.mrb[118].mxu1  ;;  %v8204_v29 = vpop.f32.mrb[77].mxu0 }
 0x623   : > { %v12261_v19 = vadd.f32 %v8204_v29, %v8203_v8  ;;  %v4864_v5 = vpop.f32.mrb[119].mxu1  ;;  %9047 = vrot.lane.b32.xlu1 %v9046_v27, %s9860_s19  ;;  %v8206_v25 = vpop.f32.mrb[78].mxu0 }
 0x624   : > { %v8207_v0 = vpop.f32.mrb[79].mxu0 }
 0x625   : > { %v12264_v39 = vadd.f32 %v8207_v0, %v8206_v25 }
 0x627   : > { %9052 = vrot.lane.b32.xlu1 %v9051_v60, %s9859_s12 }
 0x628   : > { %v4867_v16 = vpop.f32.mrb[120].mxu1 }
 0x629   : > { %v9066_v37 = vpack.i.bf16 %v4867_v16, %v4862_v28  ;;  %v4869_v62 = vpop.f32.mrb[121].mxu1  ;;  %v8209_v18 = vpop.f32.mrb[80].mxu0 }
 0x62a   : > { %v4870_v33 = vpop.f32.mrb[122].mxu1  ;;  %v8210_v55 = vpop.f32.mrb[81].mxu0 }
 0x62b   : > { %v12270_v2 = vadd.f32 %v8210_v55, %v8209_v18  ;;  %v4872_v21 = vpop.f32.mrb[123].mxu1  ;;  %9067 = vrot.lane.b32.xlu1 %v9066_v37, %s9860_s19  ;;  %v8212_v27 = vpop.f32.mrb[82].mxu0 }
 0x62c   : > { %v8213_v10 = vpop.f32.mrb[83].mxu0 }
 0x62d   : > { %v12273_v8 = vadd.f32 %v8213_v10, %v8212_v27 }
 0x62f   : > { %9072 = vrot.lane.b32.xlu1 %v9071_v52, %s9858_s26 }
 0x630   : > { %v4875_v63 = vpop.f32.mrb[124].mxu1 }
 0x631   : > { %v9081_v14 = vpack.i.bf16 %v4875_v63, %v4870_v33  ;;  %v4877_v60 = vpop.f32.mrb[125].mxu1  ;;  %v8215_v28 = vpop.f32.mrb[84].mxu0 }
 0x632   : > { %v4878_v29 = vpop.f32.mrb[126].mxu1  ;;  %v8216_v5 = vpop.f32.mrb[85].mxu0 }
 0x633   : > { %v12279_v25 = vadd.f32 %v8216_v5, %v8215_v28  ;;  %v4880_v0 = vpop.f32.mrb[127].mxu1  ;;  %9082 = vrot.lane.b32.xlu1 %v9081_v14, %s9860_s19  ;;  %v8218_v16 = vpop.f32.mrb[86].mxu0 }
 0x634   : > { %v8219_v37 = vpop.f32.mrb[87].mxu0 }
 0x635   : > { %v9003_v55 = vpop.permute.xlu1 %9002 }
 0x636   : > { %v9005_v10 = vunpack.i.h.bf16 %v9003_v55  ;;  %v9004_v63 = vunpack.i.l.bf16 %v9003_v55 }
 0x637   : > { %9087 = vrot.lane.b32.xlu1 %v9086_v11, %s9859_s12 }
 0x638   : > { %v4883_v22 = vpop.f32.mrb[128].mxu1  ;;  %v5521_v28 = vsel %vm5418_vm1, %v12065_v57, %v9005_v10  ;;  %v5520_v38 = vsel %vm5418_vm1, %v12063_v58, %v9004_v63 }
 0x639   : > { %v9101_v53 = vpack.i.bf16 %v4883_v22, %v4878_v29  ;;  %v4885_v52 = vpop.f32.mrb[129].mxu1 }
 0x63a   : > { %v4886_v62 = vpop.f32.mrb[130].mxu1 }
 0x63b   : > { %v9116_v18 = vpack.i.bf16 %v12056_v44, %v4886_v62  ;;  %v4888_v33 = vpop.f32.mrb[131].mxu1  ;;  %9102 = vrot.lane.b32.xlu1 %v9101_v53, %s9860_s19 }
 0x63d   : > { %v9008_v21 = vpop.permute.xlu1 %9007 }
 0x63e   : > { %v9010_v53 = vunpack.i.h.bf16 %v9008_v21  ;;  %v9009_v52 = vunpack.i.l.bf16 %v9008_v21 }
 0x63f   : > { %9107 = vrot.lane.b32.xlu1 %v9106_v46, %s9858_s26 }
 0x640   : > { %v5523_v57 = vsel %vm5418_vm1, %v12070_v49, %v9010_v53  ;;  %v5522_v33 = vsel %vm5418_vm1, %v12068_v32, %v9009_v52 }
 0x643   : > { %9117 = vrot.lane.b32.xlu1 %v9116_v18, %s9860_s19  ;;  %s8160_s19 = sshll.u32 %s12914_s10, 5 }
 0x644   : > { %s12826_s15 = scalar_lea.vmem %s12856_s9, %s8160_s19 }
 0x645   : > { %v9013_v41 = vpop.permute.xlu1 %9012 }
 0x646   : > { %v9015_v20 = vunpack.i.h.bf16 %v9013_v41 }
 0x648   : > { %v5525_v49 = vsel %vm5418_vm1, %v12074_v17, %v9015_v20 }
 0x65f   : > { %v9018_v42 = vpop.permute.xlu1 %9017 }
 0x660   : > { %v9020_v14 = vunpack.i.h.bf16 %v9018_v42  ;;  %v9019_v44 = vunpack.i.l.bf16 %v9018_v42 }
 0x662   : > { %v5531_v29 = vsel %vm5430_vm2, %v5520_v38, %v9019_v44  ;;  %v5532_v5 = vsel %vm5430_vm2, %v5521_v28, %v9020_v14 }
 0x667   : > { %v9023_v11 = vpop.permute.xlu1 %9022 }
 0x668   : > { %v9025_v62 = vunpack.i.h.bf16 %v9023_v11  ;;  %v9024_v18 = vunpack.i.l.bf16 %v9023_v11 }
 0x66a   : > { %v5533_v10 = vsel %vm5430_vm2, %v5522_v33, %v9024_v18  ;;  %v5534_v21 = vsel %vm5430_vm2, %v5523_v57, %v9025_v62 }
 0x66f   : > { %v9028_v27 = vpop.permute.xlu1 %9027 }
 0x670   : > { %v9030_v44 = vunpack.i.h.bf16 %v9028_v27 }
 0x685   : > { %v9113_v51 = vpop.permute.xlu0 %9112 }
 0x68d   : > { %v9033_v60 = vpop.permute.xlu1 %9032 }
 0x68e   : > { %v9035_v54 = vunpack.i.h.bf16 %v9033_v60  ;;  %v9034_v46 = vunpack.i.l.bf16 %v9033_v60  ;;  %v9029_v60 = vunpack.i.l.bf16 %v9028_v27 }
 0x690   : > { %v5542_v0 = vsel %vm5442_vm3, %v5531_v29, %v9034_v46  ;;  %v5543_v16 = vsel %vm5442_vm3, %v5532_v5, %v9035_v54 }
 0x691   : > { %v9038_v37 = vpop.permute.xlu1 %9037  ;;  %v5556_v22 = vpack.c.bf16 %v5543_v16, %v5542_v0 }
 0x692   : > { %v9040_v56 = vunpack.i.h.bf16 %v9038_v37 }
 0x693   : > { %5952 = vmatprep.mubr.bf16.mxu0 %v5556_v22 }
 0x694   : > { %5953 = vmatmul.mubr.bf16.vlgmr.msra.gmra.mrb[88].mxu0 %v5555_v1  ;;  %v9014_v1 = vunpack.i.l.bf16 %v9013_v41  ;;  %v5536_v41 = vsel %vm5430_vm2, %v5525_v49, %v9030_v44  ;;  %v5527_v17 = vsel %vm5418_vm1, %v12078_v35, %v9040_v56  ;;  %v9115_v44 = vunpack.i.h.bf16 %v9113_v51 }
 0x695   : > { %v9048_v58 = vpop.permute.xlu1 %9047 }
 0x696   : > { %v9050_v55 = vunpack.i.h.bf16 %v9048_v58  ;;  %v9049_v42 = vunpack.i.l.bf16 %v9048_v58  ;;  %v5524_v28 = vsel %vm5418_vm1, %v12072_v36, %v9014_v1 }
 0x697   : > { %v5535_v46 = vsel %vm5430_vm2, %v5524_v28, %v9029_v60  ;;  %v9114_v60 = vunpack.i.l.bf16 %v9113_v51 }
 0x698   : > { %v5544_v11 = vsel %vm5442_vm3, %v5533_v10, %v9049_v42  ;;  %v5545_v63 = vsel %vm5442_vm3, %v5534_v21, %v9050_v55 }
 0x699   : > { %v9053_v14 = vpop.permute.xlu1 %9052  ;;  %v5560_v47 = vpack.c.bf16 %v5545_v63, %v5544_v11 }
 0x69a   : > { %v9055_v0 = vunpack.i.h.bf16 %v9053_v14  ;;  %v9054_v16 = vunpack.i.l.bf16 %v9053_v14 }
 0x69b   : > { %5960 = vmatprep.mubr.bf16.mxu0 %v5560_v47 }
 0x69c   : > { %5961 = vmatmul.mubr.bf16.gmra.mrb[92].mxu0 %v5559_v4  ;;  %v9039_v4 = vunpack.i.l.bf16 %v9038_v37  ;;  %v5538_v37 = vsel %vm5430_vm2, %v5527_v17, %v9055_v0 }
 0x69d   : > { %v9068_v32 = vpop.permute.xlu1 %9067 }
 0x69e   : > { %v9070_v38 = vunpack.i.h.bf16 %v9068_v32  ;;  %v9069_v54 = vunpack.i.l.bf16 %v9068_v32  ;;  %v5526_v22 = vsel %vm5418_vm1, %v12076_v61, %v9039_v4  ;;  %v5878_v4 = vadd.f32 %v12238_v31, %v12363_v40 }
 0x69f   : > { %v5537_v62 = vsel %vm5430_vm2, %v5526_v22, %v9054_v16 }
 0x6a0   : > { %v5546_v27 = vsel %vm5442_vm3, %v5535_v46, %v9069_v54  ;;  %v5547_v29 = vsel %vm5442_vm3, %v5536_v41, %v9070_v38 }
 0x6a1   : > { %v9073_v5 = vpop.permute.xlu1 %9072  ;;  %v5564_v23 = vpack.c.bf16 %v5547_v29, %v5546_v27  ;;  %v5875_v29 = vadd.f32 %v12233_v7, %v12363_v40 }
 0x6a2   : > { %v9075_v50 = vunpack.i.h.bf16 %v9073_v5 }
 0x6a3   : > { %5968 = vmatprep.mubr.bf16.mxu0 %v5564_v23 }
 0x6a4   : > { %5969 = vmatmul.mubr.bf16.gmra.mrb[96].mxu0 %v5563_v12  ;;  %v9074_v12 = vunpack.i.l.bf16 %v9073_v5  ;;  %v5529_v35 = vsel %vm5418_vm1, %v12082_v45, %v9075_v50 }
 0x6a5   : > { %v9083_v36 = vpop.permute.xlu1 %9082 }
 0x6a6   : > { %v9085_v53 = vunpack.i.h.bf16 %v9083_v36  ;;  %v9084_v52 = vunpack.i.l.bf16 %v9083_v36  ;;  %v5528_v42 = vsel %vm5418_vm1, %v12080_v30, %v9074_v12 }
 0x6a8   : > { %v5548_v18 = vsel %vm5442_vm3, %v5537_v62, %v9084_v52  ;;  %v5549_v58 = vsel %vm5442_vm3, %v5538_v37, %v9085_v53  ;;  %v5883_v62 = vadd.f32 %v12247_v59, %v12363_v40 }
 0x6a9   : > { %v9088_v57 = vpop.permute.xlu1 %9087  ;;  %v5568_v43 = vpack.c.bf16 %v5549_v58, %v5548_v18 }
 0x6aa   : > { %v9090_v33 = vunpack.i.h.bf16 %v9088_v57  ;;  %v9089_v55 = vunpack.i.l.bf16 %v9088_v57  ;;  %v5886_v57 = vadd.f32 %v12250_v48, %v12363_v40 }
 0x6ab   : > { %5976 = vmatprep.mubr.bf16.mxu0 %v5568_v43 }
 0x6ac   : > { %5977 = vmatmul.mubr.bf16.gmra.mrb[100].mxu0 %v5567_v6  ;;  %v5539_v11 = vsel %vm5430_vm2, %v5528_v42, %v9089_v55  ;;  %v5540_v63 = vsel %vm5430_vm2, %v5529_v35, %v9090_v33  ;;  %v5891_v35 = vadd.f32 %v12252_v9, %v12363_v40 }
 0x6ad   : > { %v9103_v61 = vpop.permute.xlu1 %9102 }
 0x6ae   : > { %v9105_v10 = vunpack.i.h.bf16 %v9103_v61  ;;  %v9104_v21 = vunpack.i.l.bf16 %v9103_v61 }
 0x6b0   : > { %v5550_v14 = vsel %vm5442_vm3, %v5539_v11, %v9104_v21  ;;  %v5551_v47 = vsel %vm5442_vm3, %v5540_v63, %v9105_v10  ;;  %v5894_v11 = vadd.f32 %v12255_v15, %v12363_v40 }
 0x6b1   : > { %v9108_v20 = vpop.permute.xlu1 %9107  ;;  %v5572_v34 = vpack.c.bf16 %v5551_v47, %v5550_v14 }
 0x6b2   : > { %v9110_v6 = vunpack.i.h.bf16 %v9108_v20  ;;  %v9109_v1 = vunpack.i.l.bf16 %v9108_v20 }
 0x6b3   : > { %5984 = vmatprep.mubr.bf16.mxu0 %v5572_v34 }
 0x6b4   : > { %v5497_v45 = vsel %vm5418_vm1, %v11793_v13, %v9110_v6  ;;  %v5530_v30 = vsel %vm5418_vm1, %v12084_v3, %v9109_v1  ;;  %5985 = vmatmul.mubr.bf16.gmra.mrb[104].mxu0 %v5571_v24  ;;  %v9777_v3 = vld [vmem:[%s12853_s6] sm:$0xff]   ;;  %v5899_v6 = vadd.f32 %v12261_v19, %v12363_v40 }
 0x6b5   : > { %v9118_v32 = vpop.permute.xlu1 %9117  ;;  %v5508_v38 = vsel %vm5430_vm2, %v5497_v45, %v9115_v44  ;;  %v5541_v54 = vsel %vm5430_vm2, %v5530_v30, %v9114_v60  ;;  %v5902_v44 = vadd.f32 %v12264_v39, %v12363_v40 }
 0x6b6   : > { %v9120_v49 = vunpack.i.h.bf16 %v9118_v32  ;;  %v9119_v28 = vunpack.i.l.bf16 %v9118_v32 }
 0x6b8   : > { %v5519_v46 = vsel %vm5442_vm3, %v5508_v38, %v9120_v49  ;;  %v5552_v13 = vsel %vm5442_vm3, %v5541_v54, %v9119_v28 }
 0x6b9   : > { %v5575_v41 = vpack.c.bf16 %v5519_v46, %v5519_v46  ;;  %v5576_v27 = vpack.c.bf16 %v5552_v13, %v5552_v13  ;;  %v5907_v46 = vadd.f32 %v12270_v2, %v12363_v40 }
 0x6bb   : > { %5992 = vmatprep.mubr.bf16.mxu0 %v5576_v27 }
 0x6bc   : > { %5993 = vmatmul.mubr.bf16.gmra.mrb[108].mxu0 %v5575_v41 }
 0x6bd   : > { %8415 = vmatprep.mubr.msk.bf16.mxu0 %vm6269_vm4, %v9777_v3  ;;  %v5910_v3 = vadd.f32 %v12273_v8, %v12363_v40 }
 0x767   : > { %v8237_v26 = vpop.f32.mrb[88].mxu0 }
 0x768   : > { %v8238_v24 = vpop.f32.mrb[89].mxu0 }
 0x769   : > { %v8239_v5 = vadd.f32 %v8238_v24, %v8237_v26  ;;  %v8240_v23 = vpop.f32.mrb[90].mxu0 }
 0x76a   : > { %v8241_v56 = vpop.f32.mrb[91].mxu0 }
 0x76b   : > { %v5955_v0 = vadd.f32 %v8239_v5, %v5875_v29  ;;  %v8242_v16 = vadd.f32 %v8241_v56, %v8240_v23 }
 0x76d   : > { %v5958_v36 = vadd.f32 %v8242_v16, %v5878_v4  ;;  %v6000_v17 = vmax.f32 %v5955_v0, 0.0  ;;  %v5915_v4 = vadd.f32 %v12279_v25, %v12363_v40  ;;  %v9779_v25 = vld [vmem:[%s12853_s6 + $0x10] sm:$0xff]   ;;  %v9780_v40 = vld [vmem:[%s12853_s6 + $0x18] sm:$0xff]  }
 0x76f   : > { %v6001_v22 = vmax.f32 %v5958_v36, 0.0  ;;  %v8243_v53 = vpop.f32.mrb[92].mxu0 }
 0x770   : > { %v8244_v52 = vpop.f32.mrb[93].mxu0 }
 0x771   : > { %v8245_v37 = vadd.f32 %v8244_v52, %v8243_v53  ;;  %v8246_v18 = vpop.f32.mrb[94].mxu0  ;;  %v6011_v58 = vpack.c.bf16 %v6001_v22, %v6000_v17  ;;  %v9778_v52 = vld [vmem:[%s12853_s6 + $0x8] sm:$0xff]  }
 0x772   : > { %v8247_v7 = vpop.f32.mrb[95].mxu0 }
 0x773   : > { %v5963_v43 = vadd.f32 %v8245_v37, %v5883_v62  ;;  %v8248_v50 = vadd.f32 %v8247_v7, %v8246_v18  ;;  %8403 = vmatprep.subr.bf16.mxu0 %v6011_v58  ;;  %v9781_v62 = vld [vmem:[%s12853_s6 + $0x20] sm:$0xff]   ;;  %v9782_v37 = vld [vmem:[%s12853_s6 + $0x28] sm:$0xff]   ;;  %v9783_v18 = vld [vmem:[%s12853_s6 + $0x30] sm:$0xff]  }
 0x774   : > { %8404 = vmatpush3.bf16.msra.mxu0 %v6011_v58  ;;  %v9784_v58 = vld [vmem:[%s12853_s6 + $0x38] sm:$0xff]   ;;  %v9785_v7 = vld [vmem:[%s12853_s6 + $0x40] sm:$0xff]  }
 0x775   : > { %v5966_v31 = vadd.f32 %v8248_v50, %v5886_v57  ;;  %v6002_v12 = vmax.f32 %v5963_v43, 0.0  ;;  %v9786_v57 = vld [vmem:[%s12853_s6 + $0x48] sm:$0xff]   ;;  %v9787_v43 = vld [vmem:[%s12853_s6 + $0x50] sm:$0xff]   ;;  %v9788_v50 = vld [vmem:[%s12853_s6 + $0x58] sm:$0xff]  }
 0x777   : > { %v6003_v33 = vmax.f32 %v5966_v31, 0.0  ;;  %v8249_v55 = vpop.f32.mrb[96].mxu0  ;;  %v9789_v31 = vld [vmem:[%s12853_s6 + $0x60] sm:$0xff]  }
 0x778   : > { %v8250_v61 = vpop.f32.mrb[97].mxu0 }
 0x779   : > { %v8251_v59 = vadd.f32 %v8250_v61, %v8249_v55  ;;  %v8252_v42 = vpop.f32.mrb[98].mxu0  ;;  %v6012_v10 = vpack.c.bf16 %v6003_v33, %v6002_v12  ;;  %v9790_v12 = vld [vmem:[%s12853_s6 + $0x68] sm:$0xff]   ;;  %v9791_v33 = vld [vmem:[%s12853_s6 + $0x70] sm:$0xff]   ;;  %v9792_v55 = vld [vmem:[%s12853_s6 + $0x78] sm:$0xff]  }
 0x77a   : > { %v8253_v21 = vpop.f32.mrb[99].mxu0  ;;  %v9793_v61 = vld [vmem:[%s12853_s6 + $0x80] sm:$0xff]  }
 0x77b   : > { %v5971_v48 = vadd.f32 %v8251_v59, %v5891_v35  ;;  %v8254_v63 = vadd.f32 %v8253_v21, %v8252_v42  ;;  %8405 = vmatprep.subr.bf16.mxu0 %v6012_v10  ;;  %v9794_v35 = vld [vmem:[%s12853_s6 + $0x88] sm:$0xff]   ;;  %v9795_v59 = vld [vmem:[%s12853_s6 + $0x90] sm:$0xff]   ;;  %v9796_v42 = vld [vmem:[%s12853_s6 + $0x98] sm:$0xff]  }
 0x77c   : > { %8406 = vmatpush3.bf16.msra.mxu0 %v6012_v10  ;;  %v9797_v10 = vld [vmem:[%s12853_s6 + $0xa0] sm:$0xff]   ;;  %v9798_v21 = vld [vmem:[%s12853_s6 + $0xa8] sm:$0xff]  }
 0x77d   : > { %v5974_v14 = vadd.f32 %v8254_v63, %v5894_v11  ;;  %v6004_v47 = vmax.f32 %v5971_v48, 0.0  ;;  %v9799_v11 = vld [vmem:[%s12853_s6 + $0xb0] sm:$0xff]   ;;  %v9800_v48 = vld [vmem:[%s12853_s6 + $0xb8] sm:$0xff]   ;;  %v9801_v63 = vld [vmem:[%s12853_s6 + $0xc0] sm:$0xff]  }
 0x77f   : > { %v6005_v20 = vmax.f32 %v5974_v14, 0.0  ;;  %v8255_v34 = vpop.f32.mrb[100].mxu0  ;;  %v9802_v14 = vld [vmem:[%s12853_s6 + $0xc8] sm:$0xff]  }
 0x780   : > { %v8256_v51 = vpop.f32.mrb[101].mxu0 }
 0x781   : > { %v8257_v9 = vadd.f32 %v8256_v51, %v8255_v34  ;;  %v8258_v1 = vpop.f32.mrb[102].mxu0  ;;  %v6013_v45 = vpack.c.bf16 %v6005_v20, %v6004_v47  ;;  %v9803_v47 = vld [vmem:[%s12853_s6 + $0xd0] sm:$0xff]   ;;  %v9804_v20 = vld [vmem:[%s12853_s6 + $0xd8] sm:$0xff]   ;;  %v9805_v34 = vld [vmem:[%s12853_s6 + $0xe0] sm:$0xff]  }
 0x782   : > { %v8259_v30 = vpop.f32.mrb[103].mxu0  ;;  %v9806_v51 = vld [vmem:[%s12853_s6 + $0xe8] sm:$0xff]  }
 0x783   : > { %v5979_v15 = vadd.f32 %v8257_v9, %v5899_v6  ;;  %v8260_v60 = vadd.f32 %v8259_v30, %v8258_v1  ;;  %8407 = vmatprep.subr.bf16.mxu0 %v6013_v45  ;;  %v9807_v6 = vld [vmem:[%s12853_s6 + $0xf0] sm:$0xff]   ;;  %v9808_v9 = vld [vmem:[%s12853_s6 + $0xf8] sm:$0xff]   ;;  %v9809_v1 = vld [vmem:[%s12853_s6 + $0x100] sm:$0xff]  }
 0x784   : > { %8408 = vmatpush3.bf16.msra.mxu0 %v6013_v45  ;;  %v9810_v45 = vld [vmem:[%s12853_s6 + $0x108] sm:$0xff]   ;;  %v9811_v30 = vld [vmem:[%s12853_s6 + $0x110] sm:$0xff]  }
 0x785   : > { %v5982_v32 = vadd.f32 %v8260_v60, %v5902_v44  ;;  %v6006_v49 = vmax.f32 %v5979_v15, 0.0  ;;  %v9812_v44 = vld [vmem:[%s12853_s6 + $0x118] sm:$0xff]   ;;  %v9813_v15 = vld [vmem:[%s12854_s7 + $0x40] sm:$0xff]  }
 0x786   : > { %v9814_v60 = vld [vmem:[%s12854_s7] sm:$0xff]  }
 0x787   : > { %v6007_v28 = vmax.f32 %v5982_v32, 0.0  ;;  %v8261_v38 = vpop.f32.mrb[104].mxu0  ;;  %v9815_v32 = vld [vmem:[%s12854_s7 + $0x48] sm:$0xff]  }
 0x788   : > { %v8262_v54 = vpop.f32.mrb[105].mxu0 }
 0x789   : > { %v8263_v19 = vadd.f32 %v8262_v54, %v8261_v38  ;;  %v8264_v13 = vpop.f32.mrb[106].mxu0  ;;  %v6014_v41 = vpack.c.bf16 %v6007_v28, %v6006_v49  ;;  %v9816_v49 = vld [vmem:[%s12854_s7 + $0x8] sm:$0xff]   ;;  %v9817_v28 = vld [vmem:[%s12854_s7 + $0x50] sm:$0xff]   ;;  %v9819_v54 = vld [vmem:[%s12854_s7 + $0x58] sm:$0xff]  }
 0x78a   : > { %v8265_v27 = vpop.f32.mrb[107].mxu0  ;;  %v9818_v38 = vld [vmem:[%s12854_s7 + $0x10] sm:$0xff]  }
 0x78b   : > { %v5987_v39 = vadd.f32 %v8263_v19, %v5907_v46  ;;  %v8266_v26 = vadd.f32 %v8265_v27, %v8264_v13  ;;  %8409 = vmatprep.subr.bf16.mxu0 %v6014_v41  ;;  %v9820_v46 = vld [vmem:[%s12854_s7 + $0x18] sm:$0xff]  }
 0x78c   : > { %8410 = vmatpush3.bf16.msra.mxu0 %v6014_v41 }
 0x78d   : > { %v5990_v24 = vadd.f32 %v8266_v26, %v5910_v3  ;;  %v6008_v29 = vmax.f32 %v5987_v39, 0.0 }
 0x78f   : > { %v6009_v5 = vmax.f32 %v5990_v24, 0.0  ;;  %v8267_v23 = vpop.f32.mrb[108].mxu0 }
 0x790   : > { %v8268_v56 = vpop.f32.mrb[109].mxu0 }
 0x791   : > { %v8269_v2 = vadd.f32 %v8268_v56, %v8267_v23  ;;  %v8270_v0 = vpop.f32.mrb[110].mxu0  ;;  %v6015_v16 = vpack.c.bf16 %v6009_v5, %v6008_v29  ;;  %v9821_v5 = vld [vmem:[%s12854_s7 + $0x60] sm:$0xff]  }
 0x792   : > { %v8271_v36 = vpop.f32.mrb[111].mxu0  ;;  %v9822_v23 = vld [vmem:[%s12854_s7 + $0x20] sm:$0xff]  }
 0x793   : > { %v5995_v17 = vadd.f32 %v8269_v2, %v5915_v4  ;;  %8411 = vmatprep.subr.bf16.mxu0 %v6015_v16 }
 0x794   : > { %8412 = vmatpush3.bf16.msra.mxu0 %v6015_v16 }
 0x795   : > { %v6010_v8 = vmax.f32 %v5995_v17, 0.0  ;;  %v9823_v17 = vld [vmem:[%s12854_s7 + $0x68] sm:$0xff]  }
 0x797   : > { %v6016_v22 = vpack.c.bf16 %v6010_v8, %v6010_v8  ;;  %v9824_v8 = vld [vmem:[%s12854_s7 + $0x28] sm:$0xff]  }
 0x799   : > { %8777 = vmatprep.subr.msk.bf16.mxu0 %vm6378_vm5, %v6016_v22  ;;  %v6380_v53 = vsel %vm6378_vm5, %v6016_v22, 0  ;;  %v9825_v22 = vld [vmem:[%s12854_s7 + $0x70] sm:$0xff]  }
 0x79a   : > { %8414 = vmatpush3.bf16.msra.mxu0 %v6380_v53 }
 0x79b   : > { %8315 = vmatprep.subr.bf16.mxu0 %v9813_v15  ;;  %v9829_v15 = vld [vmem:[%s12854_s7 + $0xc0] sm:$0xff]  }
 0x79d   : > { %8416 = vmatmul.mubr.msk.bf16.vlgmr.msra.gmra.mrb[112].mxu0 %vm6269_vm4, %v9778_v52 }
 0x79e   : > { %8419 = vmatprep.mubr.msk.bf16.mxu0 %vm6269_vm4, %v9779_v25  ;;  %8316 = vmatpush3.bf16.msra.mxu0 %v9814_v60 }
 0x79f   : > { %8317 = vmatprep.subr.bf16.mxu0 %v9815_v32 }
 0x7a2   : > { %8318 = vmatpush3.bf16.msra.mxu0 %v9816_v49 }
 0x7a3   : > { %8319 = vmatprep.subr.bf16.mxu0 %v9817_v28 }
 0x7a5   : > { %8420 = vmatmul.mubr.msk.bf16.gmra.mrb[116].mxu0 %vm6269_vm4, %v9780_v40 }
 0x7a6   : > { %8423 = vmatprep.mubr.msk.bf16.mxu0 %vm6269_vm4, %v9781_v62  ;;  %8320 = vmatpush3.bf16.msra.mxu0 %v9818_v38  ;;  %v9826_v62 = vld [vmem:[%s12854_s7 + $0x30] sm:$0xff]  }
 0x7a7   : > { %8321 = vmatprep.subr.bf16.mxu0 %v9819_v54 }
 0x7aa   : > { %8322 = vmatpush3.bf16.msra.mxu0 %v9820_v46 }
 0x7ab   : > { %8323 = vmatprep.subr.bf16.mxu0 %v9821_v5 }
 0x7ad   : > { %8424 = vmatmul.mubr.msk.bf16.gmra.mrb[120].mxu0 %vm6269_vm4, %v9782_v37 }
 0x7ae   : > { %8427 = vmatprep.mubr.msk.bf16.mxu0 %vm6269_vm4, %v9783_v18  ;;  %8324 = vmatpush3.bf16.msra.mxu0 %v9822_v23 }
 0x7af   : > { %8325 = vmatprep.subr.bf16.mxu0 %v9823_v17 }
 0x7b2   : > { %8326 = vmatpush3.bf16.msra.mxu0 %v9824_v8 }
 0x7b3   : > { %8327 = vmatprep.subr.bf16.mxu0 %v9825_v22 }
 0x7b5   : > { %8428 = vmatmul.mubr.msk.bf16.gmra.mrb[124].mxu0 %vm6269_vm4, %v9784_v58 }
 0x7b6   : > { %8431 = vmatprep.mubr.msk.bf16.mxu0 %vm6269_vm4, %v9785_v7  ;;  %8328 = vmatpush3.bf16.msra.mxu0 %v9826_v62 }
 0x7bd   : > { %8432 = vmatmul.mubr.msk.bf16.gmra.mrb[128].mxu0 %vm6269_vm4, %v9786_v57 }
 0x7be   : > { %8435 = vmatprep.mubr.msk.bf16.mxu0 %vm6269_vm4, %v9787_v43 }
 0x7c5   : > { %8436 = vmatmul.mubr.msk.bf16.gmra.mrb[132].mxu0 %vm6269_vm4, %v9788_v50 }
 0x7c6   : > { %8439 = vmatprep.mubr.msk.bf16.mxu0 %vm6269_vm4, %v9789_v31  ;;  %v9827_v31 = vld [vmem:[%s12854_s7 + $0x78] sm:$0xff]  }
 0x7c7   : > { %8329 = vmatprep.subr.bf16.mxu0 %v9827_v31 }
 0x7cd   : > { %8440 = vmatmul.mubr.msk.bf16.gmra.mrb[136].mxu0 %vm6269_vm4, %v9790_v12  ;;  %v9828_v12 = vld [vmem:[%s12854_s7 + $0x38] sm:$0xff]  }
 0x7ce   : > { %8443 = vmatprep.mubr.msk.bf16.mxu0 %vm6269_vm4, %v9791_v33  ;;  %8330 = vmatpush3.bf16.msra.mxu0 %v9828_v12 }
 0x7cf   : > { %8355 = vmatprep.subr.bf16.mxu0 %v9829_v15 }
 0x7d5   : > { %8444 = vmatmul.mubr.msk.bf16.gmra.mrb[140].mxu0 %vm6269_vm4, %v9792_v55 }
 0x7d6   : > { %8447 = vmatprep.mubr.msk.bf16.mxu0 %vm6269_vm4, %v9793_v61 }
 0x7dd   : > { %8448 = vmatmul.mubr.msk.bf16.gmra.mrb[144].mxu0 %vm6269_vm4, %v9794_v35 }
 0x7de   : > { %8451 = vmatprep.mubr.msk.bf16.mxu0 %vm6269_vm4, %v9795_v59 }
 0x7e5   : > { %8452 = vmatmul.mubr.msk.bf16.gmra.mrb[148].mxu0 %vm6269_vm4, %v9796_v42 }
 0x7e6   : > { %8455 = vmatprep.mubr.msk.bf16.mxu0 %vm6269_vm4, %v9797_v10 }
 0x7ed   : > { %8456 = vmatmul.mubr.msk.bf16.gmra.mrb[152].mxu0 %vm6269_vm4, %v9798_v21 }
 0x7ee   : > { %8459 = vmatprep.mubr.msk.bf16.mxu0 %vm6269_vm4, %v9799_v11 }
 0x7f5   : > { %8460 = vmatmul.mubr.msk.bf16.gmra.mrb[156].mxu0 %vm6269_vm4, %v9800_v48 }
 0x7f6   : > { %8463 = vmatprep.mubr.msk.bf16.mxu0 %vm6269_vm4, %v9801_v63 }
 0x7fd   : > { %8464 = vmatmul.mubr.msk.bf16.gmra.mrb[160].mxu0 %vm6269_vm4, %v9802_v14 }
 0x7fe   : > { %8467 = vmatprep.mubr.msk.bf16.mxu0 %vm6269_vm4, %v9803_v47 }
 0x805   : > { %8468 = vmatmul.mubr.msk.bf16.gmra.mrb[164].mxu0 %vm6269_vm4, %v9804_v20 }
 0x806   : > { %8471 = vmatprep.mubr.msk.bf16.mxu0 %vm6269_vm4, %v9805_v34 }
 0x80d   : > { %8472 = vmatmul.mubr.msk.bf16.gmra.mrb[168].mxu0 %vm6269_vm4, %v9806_v51 }
 0x80e   : > { %8475 = vmatprep.mubr.msk.bf16.mxu0 %vm6269_vm4, %v9807_v6 }
 0x815   : > { %8476 = vmatmul.mubr.msk.bf16.gmra.mrb[172].mxu0 %vm6269_vm4, %v9808_v9 }
 0x816   : > { %8479 = vmatprep.mubr.msk.bf16.mxu0 %vm6269_vm4, %v9809_v1 }
 0x81d   : > { %8480 = vmatmul.mubr.msk.bf16.gmra.mrb[176].mxu0 %vm6269_vm4, %v9810_v45 }
 0x81e   : > { %8483 = vmatprep.mubr.msk.bf16.mxu0 %vm6269_vm4, %v9811_v30 }
 0x825   : > { %8484 = vmatmul.mubr.msk.bf16.gmra.mrb[180].mxu0 %vm6269_vm4, %v9812_v44 }
 0x870   : > { %v12551_v19 = vpop.f32.mrb[112].mxu0 }
 0x871   : > { %v12553_v13 = vpop.f32.mrb[113].mxu0 }
 0x872   : > { %v12555_v41 = vpop.f32.mrb[114].mxu0 }
 0x873   : > { %v12557_v27 = vpop.f32.mrb[115].mxu0 }
 0x878   : > { %v12559_v3 = vpop.f32.mrb[116].mxu0 }
 0x879   : > { %v12561_v39 = vpop.f32.mrb[117].mxu0 }
 0x87a   : > { %v12563_v26 = vpop.f32.mrb[118].mxu0 }
 0x87b   : > { %v12565_v24 = vpop.f32.mrb[119].mxu0 }
 0x880   : > { %v8425_v29 = vpop.f32.mrb[120].mxu0 }
 0x881   : > { %v6448_v56 = vpop.f32.mrb[121].mxu0 }
 0x882   : > { %v8426_v4 = vpop.f32.mrb[122].mxu0 }
 0x883   : > { %v9136_v2 = vpack.i.bf16 %v8426_v4, %v8425_v29  ;;  %v6451_v0 = vpop.f32.mrb[123].mxu0 }
 0x884   : > { %v9126_v16 = vpack.i.bf16 %v6451_v0, %v6448_v56 }
 0x886   : > { %9127 = vrot.lane.b32.xlu1 %v9126_v16, %s9859_s12 }
 0x888   : > { %v8429_v36 = vpop.f32.mrb[124].mxu0 }
 0x889   : > { %v6464_v53 = vpop.f32.mrb[125].mxu0 }
 0x88a   : > { %9137 = vrot.lane.b32.xlu1 %v9136_v2, %s9859_s12  ;;  %v8430_v52 = vpop.f32.mrb[126].mxu0 }
 0x88b   : > { %v9156_v25 = vpack.i.bf16 %v8430_v52, %v8429_v36  ;;  %v6467_v40 = vpop.f32.mrb[127].mxu0 }
 0x88c   : > { %v9146_v37 = vpack.i.bf16 %v6467_v40, %v6464_v53 }
 0x88e   : > { %9147 = vrot.lane.b32.xlu1 %v9146_v37, %s9859_s12 }
 0x890   : > { %v12588_v18 = vpop.f32.mrb[128].mxu0 }
 0x891   : > { %v12590_v58 = vpop.f32.mrb[129].mxu0 }
 0x892   : > { %9157 = vrot.lane.b32.xlu1 %v9156_v25, %s9859_s12  ;;  %v12593_v7 = vpop.f32.mrb[130].mxu0 }
 0x893   : > { %v12595_v57 = vpop.f32.mrb[131].mxu0 }
 0x898   : > { %v12597_v43 = vpop.f32.mrb[132].mxu0 }
 0x899   : > { %v12599_v50 = vpop.f32.mrb[133].mxu0 }
 0x89a   : > { %v12607_v33 = vpop.f32.mrb[134].mxu0 }
 0x89b   : > { %v12609_v55 = vpop.f32.mrb[135].mxu0 }
 0x8a0   : > { %v8441_v61 = vpop.f32.mrb[136].mxu0 }
 0x8a1   : > { %v6512_v35 = vpop.f32.mrb[137].mxu0 }
 0x8a2   : > { %v8442_v59 = vpop.f32.mrb[138].mxu0 }
 0x8a3   : > { %v9131_v42 = vpack.i.bf16 %v8442_v59, %v8441_v61  ;;  %v6515_v10 = vpop.f32.mrb[139].mxu0 }
 0x8a4   : > { %v9121_v21 = vpack.i.bf16 %v6515_v10, %v6512_v35 }
 0x8a6   : > { %9122 = vrot.lane.b32.xlu0 %v9121_v21, %s9859_s12 }
 0x8a8   : > { %v8445_v11 = vpop.f32.mrb[140].mxu0 }
 0x8a9   : > { %v6528_v48 = vpop.f32.mrb[141].mxu0 }
 0x8aa   : > { %9132 = vrot.lane.b32.xlu0 %v9131_v42, %s9859_s12  ;;  %v8446_v63 = vpop.f32.mrb[142].mxu0 }
 0x8ab   : > { %v9151_v14 = vpack.i.bf16 %v8446_v63, %v8445_v11  ;;  %v6531_v47 = vpop.f32.mrb[143].mxu0 }
 0x8ac   : > { %v9141_v20 = vpack.i.bf16 %v6531_v47, %v6528_v48 }
 0x8ae   : > { %9142 = vrot.lane.b32.xlu0 %v9141_v20, %s9859_s12 }
 0x8b0   : > { %v12614_v34 = vpop.f32.mrb[144].mxu0 }
 0x8b1   : > { %v12616_v51 = vpop.f32.mrb[145].mxu0 }
 0x8b2   : > { %9152 = vrot.lane.b32.xlu0 %v9151_v14, %s9859_s12  ;;  %v12619_v6 = vpop.f32.mrb[146].mxu0 }
 0x8b3   : > { %v12621_v9 = vpop.f32.mrb[147].mxu0 }
 0x8b8   : > { %v12623_v1 = vpop.f32.mrb[148].mxu0 }
 0x8b9   : > { %v12625_v45 = vpop.f32.mrb[149].mxu0 }
 0x8ba   : > { %v12627_v30 = vpop.f32.mrb[150].mxu0 }
 0x8bb   : > { %v12629_v44 = vpop.f32.mrb[151].mxu0 }
 0x8c0   : > { %v8457_v60 = vpop.f32.mrb[152].mxu0 }
 0x8c1   : > { %v6576_v32 = vpop.f32.mrb[153].mxu0 }
 0x8c2   : > { %v8458_v49 = vpop.f32.mrb[154].mxu0 }
 0x8c3   : > { %v9176_v28 = vpack.i.bf16 %v8458_v49, %v8457_v60  ;;  %v6579_v38 = vpop.f32.mrb[155].mxu0 }
 0x8c4   : > { %v9166_v54 = vpack.i.bf16 %v6579_v38, %v6576_v32 }
 0x8c6   : > { %9167 = vrot.lane.b32.xlu1 %v9166_v54, %s9859_s12 }
 0x8c8   : > { %v8461_v46 = vpop.f32.mrb[156].mxu0 }
 0x8c9   : > { %v6592_v29 = vpop.f32.mrb[157].mxu0 }
 0x8ca   : > { %9177 = vrot.lane.b32.xlu1 %v9176_v28, %s9859_s12  ;;  %v8462_v5 = vpop.f32.mrb[158].mxu0 }
 0x8cb   : > { %v9196_v23 = vpack.i.bf16 %v8462_v5, %v8461_v46  ;;  %v6595_v56 = vpop.f32.mrb[159].mxu0 }
 0x8cc   : > { %v9186_v4 = vpack.i.bf16 %v6595_v56, %v6592_v29 }
 0x8ce   : > { %9187 = vrot.lane.b32.xlu1 %v9186_v4, %s9859_s12 }
 0x8d0   : > { %v12637_v2 = vpop.f32.mrb[160].mxu0 }
 0x8d1   : > { %v12639_v0 = vpop.f32.mrb[161].mxu0 }
 0x8d2   : > { %9197 = vrot.lane.b32.xlu1 %v9196_v23, %s9859_s12  ;;  %v12642_v16 = vpop.f32.mrb[162].mxu0 }
 0x8d3   : > { %v12644_v36 = vpop.f32.mrb[163].mxu0 }
 0x8d8   : > { %v12646_v17 = vpop.f32.mrb[164].mxu0 }
 0x8d9   : > { %v12648_v8 = vpop.f32.mrb[165].mxu0 }
 0x8da   : > { %v12650_v22 = vpop.f32.mrb[166].mxu0 }
 0x8db   : > { %v12652_v53 = vpop.f32.mrb[167].mxu0 }
 0x8e0   : > { %v8473_v52 = vpop.f32.mrb[168].mxu0 }
 0x8e1   : > { %v6640_v25 = vpop.f32.mrb[169].mxu0 }
 0x8e2   : > { %v8474_v40 = vpop.f32.mrb[170].mxu0 }
 0x8e3   : > { %v9171_v62 = vpack.i.bf16 %v8474_v40, %v8473_v52  ;;  %v6643_v37 = vpop.f32.mrb[171].mxu0 }
 0x8e4   : > { %v9161_v31 = vpack.i.bf16 %v6643_v37, %v6640_v25 }
 0x8e6   : > { %9162 = vrot.lane.b32.xlu0 %v9161_v31, %s9859_s12 }
 0x8e8   : > { %v8477_v12 = vpop.f32.mrb[172].mxu0 }
 0x8e9   : > { %v6656_v61 = vpop.f32.mrb[173].mxu0 }
 0x8ea   : > { %9172 = vrot.lane.b32.xlu0 %v9171_v62, %s9859_s12  ;;  %v8478_v35 = vpop.f32.mrb[174].mxu0 }
 0x8eb   : > { %v9191_v59 = vpack.i.bf16 %v8478_v35, %v8477_v12  ;;  %v6659_v42 = vpop.f32.mrb[175].mxu0 }
 0x8ec   : > { %v9181_v10 = vpack.i.bf16 %v6659_v42, %v6656_v61 }
 0x8ee   : > { %9182 = vrot.lane.b32.xlu0 %v9181_v10, %s9859_s12 }
 0x8f0   : > { %v12658_v21 = vpop.f32.mrb[176].mxu0 }
 0x8f1   : > { %v12660_v11 = vpop.f32.mrb[177].mxu0 }
 0x8f2   : > { %9192 = vrot.lane.b32.xlu0 %v9191_v59, %s9859_s12  ;;  %v12662_v63 = vpop.f32.mrb[178].mxu0 }
 0x8f3   : > { %v6872_v20 = vpack.c.bf16 %v12662_v63, %v12658_v21  ;;  %v12666_v15 = vpop.f32.mrb[179].mxu0 }
 0x8f4   : > { %v6867_v60 = vpack.c.bf16 %v12666_v15, %v12660_v11 }
 0x8f8   : > { %v9128_v48 = vpop.permute.xlu1 %9127  ;;  %v12674_v29 = vpop.f32.mrb[180].mxu0 }
 0x8f9   : > { %v9130_v14 = vunpack.i.h.bf16 %v9128_v48  ;;  %v9129_v47 = vunpack.i.l.bf16 %v9128_v48  ;;  %v12680_v56 = vpop.f32.mrb[181].mxu0 }
 0x8fb   : > { %v6832_v32 = vsel %vm5430_vm2, %v12557_v27, %v9130_v14  ;;  %v6831_v49 = vsel %vm5430_vm2, %v12553_v13, %v9129_v47  ;;  %v12682_v27 = vpop.f32.mrb[182].mxu0 }
 0x8fc   : > { %v6863_v28 = vpack.c.bf16 %v6832_v32, %v6831_v49  ;;  %v9138_v38 = vpop.permute.xlu1 %9137  ;;  %v6882_v40 = vpack.c.bf16 %v12682_v27, %v12674_v29  ;;  %v12686_v62 = vpop.f32.mrb[183].mxu0 }
 0x8fd   : > { %v9140_v54 = vunpack.i.h.bf16 %v9138_v38  ;;  %v9139_v46 = vunpack.i.l.bf16 %v9138_v38  ;;  %v6877_v37 = vpack.c.bf16 %v12686_v62, %v12680_v56  ;;  %v9830_v38 = vld [vmem:[%s12854_s7 + $0x80] sm:$0xff]  }
 0x8ff   : > { %v6834_v5 = vsel %vm5430_vm2, %v12555_v41, %v9140_v54  ;;  %v6833_v23 = vsel %vm5430_vm2, %v12551_v19, %v9139_v46 }
 0x900   : > { %v6868_v4 = vpack.c.bf16 %v6834_v5, %v6833_v23  ;;  %v9148_v52 = vpop.permute.xlu1 %9147  ;;  %v9832_v23 = vld [vmem:[%s12854_s7 + $0x88] sm:$0xff]  }
 0x901   : > { %v9150_v25 = vunpack.i.h.bf16 %v9148_v52  ;;  %v9149_v13 = vunpack.i.l.bf16 %v9148_v52 }
 0x903   : > { %v6836_v41 = vsel %vm5430_vm2, %v12565_v24, %v9150_v25  ;;  %v6835_v19 = vsel %vm5430_vm2, %v12561_v39, %v9149_v13 }
 0x904   : > { %v6873_v31 = vpack.c.bf16 %v6836_v41, %v6835_v19  ;;  %v9158_v12 = vpop.permute.xlu1 %9157  ;;  %v9834_v19 = vld [vmem:[%s12854_s7 + $0x90] sm:$0xff]  }
 0x905   : > { %v9160_v61 = vunpack.i.h.bf16 %v9158_v12  ;;  %v9159_v35 = vunpack.i.l.bf16 %v9158_v12 }
 0x907   : > { %v6838_v59 = vsel %vm5430_vm2, %v12563_v26, %v9160_v61  ;;  %v6837_v42 = vsel %vm5430_vm2, %v12559_v3, %v9159_v35  ;;  %v9831_v3 = vld [vmem:[%s12854_s7 + $0xc8] sm:$0xff]   ;;  %v9835_v35 = vld [vmem:[%s12854_s7 + $0xd8] sm:$0xff]  }
 0x908   : > { %v6878_v10 = vpack.c.bf16 %v6838_v59, %v6837_v42  ;;  %v9836_v42 = vld [vmem:[%s12854_s7 + $0x98] sm:$0xff]  }
 0x918   : > { %v9123_v48 = vpop.permute.xlu0 %9122 }
 0x919   : > { %v9125_v14 = vunpack.i.h.bf16 %v9123_v48  ;;  %v9124_v47 = vunpack.i.l.bf16 %v9123_v48  ;;  %v9837_v48 = vld [vmem:[%s12854_s7 + $0xe0] sm:$0xff]  }
 0x91b   : > { %v6839_v24 = vsel %vm5430_vm2, %v12590_v58, %v9124_v47  ;;  %v6840_v39 = vsel %vm5430_vm2, %v12595_v57, %v9125_v14  ;;  %v9841_v14 = vld [vmem:[%s12854_s7 + $0xf0] sm:$0xff]  }
 0x91c   : > { %v9133_v32 = vpop.permute.xlu0 %9132  ;;  %v6864_v49 = vpack.c.bf16 %v6840_v39, %v6839_v24  ;;  %v9842_v47 = vld [vmem:[%s12854_s7 + $0xb0] sm:$0xff]   ;;  %v9844_v39 = vld [vmem:[%s12854_s7 + $0xb8] sm:$0xff]  }
 0x91d   : > { %v9135_v26 = vunpack.i.h.bf16 %v9133_v32  ;;  %v9134_v54 = vunpack.i.l.bf16 %v9133_v32 }
 0x91e   : > { %7222 = vmatprep.mubr.bf16.mxu0 %v6864_v49 }
 0x91f   : > { %7223 = vmatmul.mubr.bf16.vlgmr.msra.gmra.mrb[184].mxu0 %v6863_v28  ;;  %v6841_v58 = vsel %vm5430_vm2, %v12588_v18, %v9134_v54  ;;  %v6842_v57 = vsel %vm5430_vm2, %v12593_v7, %v9135_v26  ;;  %v9833_v28 = vld [vmem:[%s12854_s7 + $0xd0] sm:$0xff]  }
 0x920   : > { %v9143_v46 = vpop.permute.xlu0 %9142  ;;  %v6869_v5 = vpack.c.bf16 %v6842_v57, %v6841_v58  ;;  %8356 = vmatpush3.bf16.msra.mxu0 %v9830_v38  ;;  %v9845_v38 = vld [vmem:[%s12854_s7 + $0x100] sm:$0xff]  }
 0x921   : > { %v9145_v52 = vunpack.i.h.bf16 %v9143_v46  ;;  %v9144_v25 = vunpack.i.l.bf16 %v9143_v46  ;;  %8357 = vmatprep.subr.bf16.mxu0 %v9831_v3 }
 0x922   : > { %7230 = vmatprep.mubr.bf16.mxu0 %v6869_v5 }
 0x923   : > { %v6843_v18 = vsel %vm5430_vm2, %v12599_v50, %v9144_v25  ;;  %v6844_v7 = vsel %vm5430_vm2, %v12609_v55, %v9145_v52 }
 0x924   : > { %v9153_v13 = vpop.permute.xlu0 %9152  ;;  %v6874_v41 = vpack.c.bf16 %v6844_v7, %v6843_v18  ;;  %8358 = vmatpush3.bf16.msra.mxu0 %v9832_v23 }
 0x925   : > { %v9155_v12 = vunpack.i.h.bf16 %v9153_v13  ;;  %v9154_v61 = vunpack.i.l.bf16 %v9153_v13  ;;  %8359 = vmatprep.subr.bf16.mxu0 %v9833_v28 }
 0x927   : > { %7231 = vmatmul.mubr.bf16.gmra.mrb[188].mxu0 %v6868_v4  ;;  %v6845_v50 = vsel %vm5430_vm2, %v12597_v43, %v9154_v61  ;;  %v6846_v55 = vsel %vm5430_vm2, %v12607_v33, %v9155_v12  ;;  %v9838_v43 = vld [vmem:[%s12854_s7 + $0xa0] sm:$0xff]   ;;  %v9839_v33 = vld [vmem:[%s12854_s7 + $0xe8] sm:$0xff]  }
 0x928   : > { %7238 = vmatprep.mubr.bf16.mxu0 %v6874_v41  ;;  %v6879_v59 = vpack.c.bf16 %v6846_v55, %v6845_v50  ;;  %8360 = vmatpush3.bf16.msra.mxu0 %v9834_v19  ;;  %v9840_v4 = vld [vmem:[%s12854_s7 + $0xa8] sm:$0xff]  }
 0x929   : > { %8361 = vmatprep.subr.bf16.mxu0 %v9835_v35 }
 0x92c   : > { %8362 = vmatpush3.bf16.msra.mxu0 %v9836_v42 }
 0x92d   : > { %8363 = vmatprep.subr.bf16.mxu0 %v9837_v48 }
 0x92f   : > { %7239 = vmatmul.mubr.bf16.gmra.mrb[192].mxu0 %v6873_v31  ;;  %v9843_v31 = vld [vmem:[%s12854_s7 + $0xf8] sm:$0xff]  }
 0x930   : > { %7246 = vmatprep.mubr.bf16.mxu0 %v6879_v59  ;;  %8364 = vmatpush3.bf16.msra.mxu0 %v9838_v43 }
 0x931   : > { %8365 = vmatprep.subr.bf16.mxu0 %v9839_v33 }
 0x934   : > { %8366 = vmatpush3.bf16.msra.mxu0 %v9840_v4  ;;  %v9847_v4 = vld [vmem:[%s12854_s7 + $0x110] sm:$0xff]  }
 0x935   : > { %8367 = vmatprep.subr.bf16.mxu0 %v9841_v14 }
 0x937   : > { %7247 = vmatmul.mubr.bf16.gmra.mrb[196].mxu0 %v6878_v10 }
 0x938   : > { %v9168_v24 = vpop.permute.xlu1 %9167  ;;  %8368 = vmatpush3.bf16.msra.mxu0 %v9842_v47 }
 0x939   : > { %v9170_v32 = vunpack.i.h.bf16 %v9168_v24  ;;  %v9169_v49 = vunpack.i.l.bf16 %v9168_v24  ;;  %8369 = vmatprep.subr.bf16.mxu0 %v9843_v31 }
 0x93b   : > { %v6848_v26 = vsel %vm5430_vm2, %v12621_v9, %v9170_v32  ;;  %v6847_v54 = vsel %vm5430_vm2, %v12616_v51, %v9169_v49 }
 0x93c   : > { %v6865_v10 = vpack.c.bf16 %v6848_v26, %v6847_v54  ;;  %v9178_v3 = vpop.permute.xlu1 %9177  ;;  %8370 = vmatpush3.bf16.msra.mxu0 %v9844_v39  ;;  %v9848_v39 = vld [vmem:[%s12854_s7 + $0x118] sm:$0xff]  }
 0x93d   : > { %v9180_v58 = vunpack.i.h.bf16 %v9178_v3  ;;  %v9179_v57 = vunpack.i.l.bf16 %v9178_v3  ;;  %8487 = vmatprep.subr.bf16.mxu0 %v9845_v38 }
 0x93f   : > { %v6850_v46 = vsel %vm5430_vm2, %v12619_v6, %v9180_v58  ;;  %v6849_v5 = vsel %vm5430_vm2, %v12614_v34, %v9179_v57 }
 0x940   : > { %v6870_v23 = vpack.c.bf16 %v6850_v46, %v6849_v5  ;;  %v9188_v52 = vpop.permute.xlu1 %9187 }
 0x941   : > { %v9190_v25 = vunpack.i.h.bf16 %v9188_v52  ;;  %v9189_v28 = vunpack.i.l.bf16 %v9188_v52 }
 0x943   : > { %v6852_v9 = vsel %vm5430_vm2, %v12629_v44, %v9190_v25  ;;  %v6851_v51 = vsel %vm5430_vm2, %v12625_v45, %v9189_v28 }
 0x944   : > { %v6875_v18 = vpack.c.bf16 %v6852_v9, %v6851_v51  ;;  %v9198_v7 = vpop.permute.xlu1 %9197 }
 0x945   : > { %v9200_v13 = vunpack.i.h.bf16 %v9198_v7  ;;  %v9199_v41 = vunpack.i.l.bf16 %v9198_v7 }
 0x947   : > { %v6854_v6 = vsel %vm5430_vm2, %v12627_v30, %v9200_v13  ;;  %v6853_v34 = vsel %vm5430_vm2, %v12623_v1, %v9199_v41  ;;  %v9846_v30 = vld [vmem:[%s12854_s7 + $0x108] sm:$0xff]  }
 0x948   : > { %v6880_v19 = vpack.c.bf16 %v6854_v6, %v6853_v34 }
 0x958   : > { %v9163_v12 = vpop.permute.xlu0 %9162 }
 0x959   : > { %v9165_v61 = vunpack.i.h.bf16 %v9163_v12  ;;  %v9164_v35 = vunpack.i.l.bf16 %v9163_v12 }
 0x95b   : > { %v6855_v44 = vsel %vm5430_vm2, %v12639_v0, %v9164_v35  ;;  %v6856_v45 = vsel %vm5430_vm2, %v12644_v36, %v9165_v61 }
 0x95c   : > { %v9173_v50 = vpop.permute.xlu0 %9172  ;;  %v6866_v55 = vpack.c.bf16 %v6856_v45, %v6855_v44 }
 0x95d   : > { %v9175_v59 = vunpack.i.h.bf16 %v9173_v50  ;;  %v9174_v42 = vunpack.i.l.bf16 %v9173_v50 }
 0x95e   : > { %7287 = vmatprep.mubr.bf16.mxu0 %v6866_v55 }
 0x95f   : > { %7288 = vmatmul.mubr.bf16.vlgmr.msra.gmra.mrb[200].mxu0 %v6865_v10  ;;  %v6857_v1 = vsel %vm5430_vm2, %v12637_v2, %v9174_v42  ;;  %v6858_v48 = vsel %vm5430_vm2, %v12642_v16, %v9175_v59 }
 0x960   : > { %v9183_v0 = vpop.permute.xlu0 %9182  ;;  %v6871_v43 = vpack.c.bf16 %v6858_v48, %v6857_v1  ;;  %8488 = vmatpush3.bf16.msra.mxu0 %v9845_v38 }
 0x961   : > { %v9185_v36 = vunpack.i.h.bf16 %v9183_v0  ;;  %v9184_v33 = vunpack.i.l.bf16 %v9183_v0  ;;  %8489 = vmatprep.subr.bf16.mxu0 %v9846_v30 }
 0x962   : > { %7295 = vmatprep.mubr.bf16.mxu0 %v6871_v43 }
 0x963   : > { %v6859_v14 = vsel %vm5430_vm2, %v12648_v8, %v9184_v33  ;;  %v6860_v2 = vsel %vm5430_vm2, %v12652_v53, %v9185_v36 }
 0x964   : > { %v9193_v47 = vpop.permute.xlu0 %9192  ;;  %v6876_v31 = vpack.c.bf16 %v6860_v2, %v6859_v14  ;;  %8490 = vmatpush3.bf16.msra.mxu0 %v9846_v30 }
 0x965   : > { %v9195_v16 = vunpack.i.h.bf16 %v9193_v47  ;;  %v9194_v24 = vunpack.i.l.bf16 %v9193_v47  ;;  %8491 = vmatprep.subr.bf16.mxu0 %v9847_v4 }
 0x967   : > { %7296 = vmatmul.mubr.bf16.gmra.mrb[204].mxu0 %v6870_v23  ;;  %v6861_v32 = vsel %vm5430_vm2, %v12646_v17, %v9194_v24  ;;  %v6862_v8 = vsel %vm5430_vm2, %v12650_v22, %v9195_v16  ;;  %v8109_v23 = vld [vmem:[%s12855_s8] ss:$0 sm:$0xff] }
 0x968   : > { %7303 = vmatprep.mubr.bf16.mxu0 %v6876_v31  ;;  %v6881_v49 = vpack.c.bf16 %v6862_v8, %v6861_v32  ;;  %8492 = vmatpush3.bf16.msra.mxu0 %v9847_v4 }
 0x969   : > { %8493 = vmatprep.subr.bf16.mxu0 %v9848_v39 }
 0x96c   : > { %8494 = vmatpush3.bf16.msra.mxu0 %v9848_v39 }
 0x96f   : > { %7304 = vmatmul.mubr.bf16.gmra.mrb[208].mxu0 %v6875_v18 }
 0x970   : > { %7311 = vmatprep.mubr.bf16.mxu0 %v6881_v49 }
 0x977   : > { %7312 = vmatmul.mubr.bf16.gmra.mrb[212].mxu0 %v6880_v19 }
 0x978   : > { %8495 = vmatprep.mubr.msk.bf16.mxu0 %vm5430_vm2, %v6867_v60 }
 0x97f   : > { %8496 = vmatmul.mubr.msk.bf16.vlgmr.msra.gmra.mrb[216].mxu0 %vm5430_vm2, %v6872_v20 }
 0x980   : > { %8499 = vmatprep.mubr.msk.bf16.mxu0 %vm5430_vm2, %v6877_v37 }
 0x987   : > { %8500 = vmatmul.mubr.msk.bf16.gmra.mrb[220].mxu0 %vm5430_vm2, %v6882_v40 }
 0x9f2   : > { %v8331_v17 = vpop.f32.mrb[184].mxu0 }
 0x9f3   : > { %v8332_v22 = vpop.f32.mrb[185].mxu0 }
 0x9f4   : > { %v8333_v53 = vadd.f32 %v8332_v22, %v8331_v17  ;;  %v8334_v11 = vpop.f32.mrb[186].mxu0 }
 0x9f5   : > { %v8335_v15 = vpop.f32.mrb[187].mxu0 }
 0x9f6   : > { %v8336_v60 = vadd.f32 %v8335_v15, %v8334_v11  ;;  %v7225_v28 = vadd.f32 %v8333_v53, %v8109_v23 }
 0x9f8   : > { %v7228_v7 = vadd.f32 %v8336_v60, %v8109_v23 }
 0x9fa   : > { %v8337_v38 = vpop.f32.mrb[188].mxu0 }
 0x9fb   : > { %v8338_v21 = vpop.f32.mrb[189].mxu0 }
 0x9fc   : > { %v8339_v63 = vadd.f32 %v8338_v21, %v8337_v38  ;;  %v8340_v20 = vpop.f32.mrb[190].mxu0 }
 0x9fd   : > { %v8341_v26 = vpop.f32.mrb[191].mxu0 }
 0x9fe   : > { %v8342_v54 = vadd.f32 %v8341_v26, %v8340_v20  ;;  %v7233_v12 = vadd.f32 %v8339_v63, %v8109_v23 }
 0xa00   : > { %v7236_v45 = vadd.f32 %v8342_v54, %v8109_v23 }
 0xa02   : > { %v8343_v56 = vpop.f32.mrb[192].mxu0 }
 0xa03   : > { %v8344_v62 = vpop.f32.mrb[193].mxu0 }
 0xa04   : > { %v8345_v37 = vadd.f32 %v8344_v62, %v8343_v56  ;;  %v8346_v10 = vpop.f32.mrb[194].mxu0 }
 0xa05   : > { %v8347_v3 = vpop.f32.mrb[195].mxu0 }
 0xa06   : > { %v8348_v29 = vadd.f32 %v8347_v3, %v8346_v10  ;;  %v7241_v1 = vadd.f32 %v8345_v37, %v8109_v23 }
 0xa08   : > { %v7244_v36 = vadd.f32 %v8348_v29, %v8109_v23 }
 0xa0a   : > { %v8349_v27 = vpop.f32.mrb[196].mxu0 }
 0xa0b   : > { %v8350_v40 = vpop.f32.mrb[197].mxu0 }
 0xa0c   : > { %v8351_v58 = vadd.f32 %v8350_v40, %v8349_v27  ;;  %v8352_v57 = vpop.f32.mrb[198].mxu0 }
 0xa0d   : > { %v8353_v46 = vpop.f32.mrb[199].mxu0 }
 0xa0e   : > { %v8354_v5 = vadd.f32 %v8353_v46, %v8352_v57  ;;  %v7249_v31 = vadd.f32 %v8351_v58, %v8109_v23 }
 0xa10   : > { %v7252_v32 = vadd.f32 %v8354_v5, %v8109_v23 }
 0xa32   : > { %v8371_v52 = vpop.f32.mrb[200].mxu0 }
 0xa33   : > { %v8372_v25 = vpop.f32.mrb[201].mxu0 }
 0xa34   : > { %v8373_v9 = vadd.f32 %v8372_v25, %v8371_v52  ;;  %v8374_v51 = vpop.f32.mrb[202].mxu0 }
 0xa35   : > { %v8375_v18 = vpop.f32.mrb[203].mxu0 }
 0xa36   : > { %v8376_v13 = vadd.f32 %v8375_v18, %v8374_v51  ;;  %v7290_v41 = vadd.f32 %v8373_v9, %v7225_v28 }
 0xa38   : > { %v7293_v6 = vadd.f32 %v8376_v13, %v7228_v7 }
 0xa3a   : > { %v8377_v34 = vpop.f32.mrb[204].mxu0 }
 0xa3b   : > { %v8378_v19 = vpop.f32.mrb[205].mxu0 }
 0xa3c   : > { %v8379_v61 = vadd.f32 %v8378_v19, %v8377_v34  ;;  %v8380_v35 = vpop.f32.mrb[206].mxu0 }
 0xa3d   : > { %v8381_v44 = vpop.f32.mrb[207].mxu0 }
 0xa3e   : > { %v8382_v50 = vadd.f32 %v8381_v44, %v8380_v35  ;;  %v7298_v55 = vadd.f32 %v8379_v61, %v7233_v12 }
 0xa40   : > { %v7301_v59 = vadd.f32 %v8382_v50, %v7236_v45 }
 0xa42   : > { %v8383_v42 = vpop.f32.mrb[208].mxu0 }
 0xa43   : > { %v8384_v30 = vpop.f32.mrb[209].mxu0 }
 0xa44   : > { %v8385_v48 = vadd.f32 %v8384_v30, %v8383_v42  ;;  %v8386_v0 = vpop.f32.mrb[210].mxu0 }
 0xa45   : > { %v8387_v43 = vpop.f32.mrb[211].mxu0 }
 0xa46   : > { %v8388_v33 = vadd.f32 %v8387_v43, %v8386_v0  ;;  %v7306_v4 = vadd.f32 %v8385_v48, %v7241_v1 }
 0xa48   : > { %v7309_v14 = vadd.f32 %v8388_v33, %v7244_v36 }
 0xa4a   : > { %v8389_v2 = vpop.f32.mrb[212].mxu0 }
 0xa4b   : > { %v8390_v47 = vpop.f32.mrb[213].mxu0 }
 0xa4c   : > { %v8391_v16 = vadd.f32 %v8390_v47, %v8389_v2  ;;  %v8392_v24 = vpop.f32.mrb[214].mxu0 }
 0xa4d   : > { %v8393_v39 = vpop.f32.mrb[215].mxu0 }
 0xa4e   : > { %v8394_v8 = vadd.f32 %v8393_v39, %v8392_v24  ;;  %v7314_v49 = vadd.f32 %v8391_v16, %v7249_v31 }
 0xa50   : > { %v7317_v17 = vadd.f32 %v8394_v8, %v7252_v32 }
 0xa52   : > { %v8497_v22 = vpop.f32.mrb[216].mxu0 }
 0xa53   : > { %v7363_v53 = vadd.f32 %v8497_v22, %v7298_v55  ;;  %v7354_v11 = vpop.f32.mrb[217].mxu0 }
 0xa54   : > { %v7355_v15 = vadd.f32 %v7354_v11, %v7290_v41  ;;  %v8498_v60 = vpop.f32.mrb[218].mxu0 }
 0xa55   : > { %v7387_v38 = vmax.f32 %v7363_v53, 0.0  ;;  %v7366_v21 = vadd.f32 %v8498_v60, %v7301_v59  ;;  %v7357_v63 = vpop.f32.mrb[219].mxu0 }
 0xa56   : > { %v7385_v20 = vmax.f32 %v7355_v15, 0.0  ;;  %v7358_v26 = vadd.f32 %v7357_v63, %v7293_v6 }
 0xa57   : > { %v8163_v54 = vpack.c.bf16 %v7387_v38, %v7387_v38  ;;  %v7388_v56 = vmax.f32 %v7366_v21, 0.0 }
 0xa58   : > { %v8161_v62 = vpack.c.bf16 %v7385_v20, %v7385_v20  ;;  %v7386_v37 = vmax.f32 %v7358_v26, 0.0 }
 0xa59   : > { %7428 = vst.msk [vmem:[%s12826_s15 + $0x8] sm:$0xf] %vm7425_vm6, %v8163_v54  ;;  %v8164_v10 = vpack.c.bf16 %v7388_v56, %v7388_v56 }
 0xa5a   : > { %7426 = vst.msk [vmem:[%s12826_s15] sm:$0xf] %vm7425_vm6, %v8161_v62  ;;  %v8162_v3 = vpack.c.bf16 %v7386_v37, %v7386_v37  ;;  %v8501_v29 = vpop.f32.mrb[220].mxu0 }
 0xa5b   : > { %7429 = vst.msk [vmem:[%s12826_s15 + $0xc] sm:$0xf] %vm7425_vm6, %v8164_v10  ;;  %v7379_v27 = vadd.f32 %v8501_v29, %v7314_v49  ;;  %v7370_v40 = vpop.f32.mrb[221].mxu0 }
 0xa5c   : > { %7427 = vst.msk [vmem:[%s12826_s15 + $0x4] sm:$0xf] %vm7425_vm6, %v8162_v3  ;;  %v7371_v58 = vadd.f32 %v7370_v40, %v7306_v4  ;;  %v8502_v57 = vpop.f32.mrb[222].mxu0 }
 0xa5d   : > { %v7391_v46 = vmax.f32 %v7379_v27, 0.0  ;;  %v7382_v5 = vadd.f32 %v8502_v57, %v7317_v17  ;;  %v7373_v23 = vpop.f32.mrb[223].mxu0 }
 0xa5e   : > { %v7389_v52 = vmax.f32 %v7371_v58, 0.0  ;;  %v7374_v25 = vadd.f32 %v7373_v23, %v7309_v14 }
 0xa5f   : > { %v8167_v28 = vpack.c.bf16 %v7391_v46, %v7391_v46  ;;  %v7392_v9 = vmax.f32 %v7382_v5, 0.0 }
 0xa60   : > { %v8165_v51 = vpack.c.bf16 %v7389_v52, %v7389_v52  ;;  %v7390_v18 = vmax.f32 %v7374_v25, 0.0 }
 0xa61   : > { %7432 = vst.msk [vmem:[%s12826_s15 + $0x18] sm:$0xf] %vm7425_vm6, %v8167_v28  ;;  %v8168_v7 = vpack.c.bf16 %v7392_v9, %v7392_v9 }
 0xa62   : > { %7430 = vst.msk [vmem:[%s12826_s15 + $0x10] sm:$0xf] %vm7425_vm6, %v8165_v51  ;;  %v8166_v13 = vpack.c.bf16 %v7390_v18, %v7390_v18 }
 0xa63   : > { %7433 = vst.msk [vmem:[%s12826_s15 + $0x1c] sm:$0xf] %vm7425_vm6, %v8168_v7 }
 0xa64   : > { %7431 = vst.msk [vmem:[%s12826_s15 + $0x14] sm:$0xf] %vm7425_vm6, %v8166_v13 }
 0xa65 PF: > { %s19_s30 = sadd.s32 1, %s9855_s30  }
 0xa66   : > { %p16_p4 = scmp.ge.s32.totalorder %s19_s30, 4  }
 0xa68   :  { %18 = sbr.rel (!%p16_p4) target bundleno = 1 (0x1), region = 86 }

// kernel: atari_net_forward.3
= control target key start
LH: loop header
LB: loop body
LE: loop exit
PB: predicated region body
PF: predicated region fallthrough
CT: control target
= control target key end

     0   :  { %v1052_v36 = vlaneseq  ;;  %v10928_v37 = vmov 1966171168   ;;  %s14333_s0 = inlined_call_operand.vmem [shape: bf16[2,4096], index: 0, kind: input, shape index: {}]   ;;  %s14334_s1 = inlined_call_operand.vmem [shape: bf16[4096,512], index: 1, kind: input, shape index: {}]   ;;  %s14335_s2 = inlined_call_operand.vmem [shape: f32[1,512], index: 2, kind: input, shape index: {}]   ;;  %s14336_s3 = inlined_call_operand.vmem [shape: bf16[512,6], index: 3, kind: input, shape index: {}]   ;;  %s14337_s4 = inlined_call_operand.vmem [shape: f32[1,6], index: 4, kind: input, shape index: {}]   ;;  %s14338_s5 = inlined_call_operand.hbm [shape: f32[2,6], index: 5, kind: output, shape index: {}]  }
   0x1   :  { %v9330_v0 = vld [vmem:[%s14334_s1 + $0x4] ss:$16 sps:$4 sm:$0xff]   ;;  %v9332_v1 = vld [vmem:[%s14334_s1 + $0xc] ss:$16 sps:$4 sm:$0xff]   ;;  %v9334_v2 = vld [vmem:[%s14334_s1] ss:$16 sps:$4 sm:$0xff]   ;;  %v1078_v38 = vunpack.c.l.s4 %v10928_v37 }
   0x2   :  { %6424 = vmatprep.subr.bf16.mxu0 %v9330_v0  ;;  %v9335_v3 = vld [vmem:[%s14334_s1 + $0x8] ss:$16 sps:$4 sm:$0xff]   ;;  %7080 = vmatprep.subr.bf16.mxu1 %v9332_v1  ;;  %v9336_v4 = vld [vmem:[%s14334_s1 + $0x24] ss:$16 sps:$4 sm:$0xff]   ;;  %v9338_v5 = vld [vmem:[%s14334_s1 + $0x2c] ss:$16 sps:$4 sm:$0xff]  }
   0x3   :  { %6425 = vmatpush1.bf16.msra.mxu0 %v9334_v2  ;;  %7081 = vmatpush1.bf16.msra.mxu1 %v9335_v3  ;;  %v9340_v6 = vld [vmem:[%s14334_s1 + $0x20] ss:$16 sps:$4 sm:$0xff]   ;;  %v9341_v7 = vld [vmem:[%s14334_s1 + $0x28] ss:$16 sps:$4 sm:$0xff]   ;;  %v9342_v8 = vld [vmem:[%s14334_s1 + $0x44] ss:$16 sps:$4 sm:$0xff]   ;;  %v1079_v43 = vunpack.c.0.s8 %v1078_v38 }
   0x4   :  { %6426 = vmatprep.subr.bf16.mxu0 %v9336_v4  ;;  %7082 = vmatprep.subr.bf16.mxu1 %v9338_v5  ;;  %v9344_v9 = vld [vmem:[%s14334_s1 + $0x4c] ss:$16 sps:$4 sm:$0xff]   ;;  %v9346_v10 = vld [vmem:[%s14334_s1 + $0x40] ss:$16 sps:$4 sm:$0xff]   ;;  %v9347_v11 = vld [vmem:[%s14334_s1 + $0x48] ss:$16 sps:$4 sm:$0xff]  }
   0x5   :  { %v9348_v12 = vld [vmem:[%s14334_s1 + $0x64] ss:$16 sps:$4 sm:$0xff]   ;;  %v9350_v13 = vld [vmem:[%s14334_s1 + $0x6c] ss:$16 sps:$4 sm:$0xff]   ;;  %v9352_v14 = vld [vmem:[%s14334_s1 + $0x60] ss:$16 sps:$4 sm:$0xff]  }
   0x6   :  { %v9353_v15 = vld [vmem:[%s14334_s1 + $0x68] ss:$16 sps:$4 sm:$0xff]   ;;  %v9354_v16 = vld [vmem:[%s14334_s1 + $0x84] ss:$16 sps:$4 sm:$0xff]   ;;  %v9356_v17 = vld [vmem:[%s14334_s1 + $0x8c] ss:$16 sps:$4 sm:$0xff]  }
   0x7   :  { %6427 = vmatpush1.bf16.msra.mxu0 %v9340_v6  ;;  %7083 = vmatpush1.bf16.msra.mxu1 %v9341_v7  ;;  %v9358_v18 = vld [vmem:[%s14334_s1 + $0x80] ss:$16 sps:$4 sm:$0xff]   ;;  %v9359_v19 = vld [vmem:[%s14334_s1 + $0x88] ss:$16 sps:$4 sm:$0xff]   ;;  %v9360_v20 = vld [vmem:[%s14334_s1 + $0xa4] ss:$16 sps:$4 sm:$0xff]  }
   0x8   :  { %6428 = vmatprep.subr.bf16.mxu0 %v9342_v8  ;;  %7084 = vmatprep.subr.bf16.mxu1 %v9344_v9  ;;  %v9362_v21 = vld [vmem:[%s14334_s1 + $0xac] ss:$16 sps:$4 sm:$0xff]   ;;  %v9364_v22 = vld [vmem:[%s14334_s1 + $0xa0] ss:$16 sps:$4 sm:$0xff]   ;;  %v9365_v23 = vld [vmem:[%s14334_s1 + $0xa8] ss:$16 sps:$4 sm:$0xff]  }
   0x9   :  { %v9366_v24 = vld [vmem:[%s14334_s1 + $0xc4] ss:$16 sps:$4 sm:$0xff]   ;;  %v9368_v25 = vld [vmem:[%s14334_s1 + $0xcc] ss:$16 sps:$4 sm:$0xff]   ;;  %v9370_v26 = vld [vmem:[%s14334_s1 + $0xc0] ss:$16 sps:$4 sm:$0xff]  }
   0xa   :  { %v9371_v27 = vld [vmem:[%s14334_s1 + $0xc8] ss:$16 sps:$4 sm:$0xff]   ;;  %v9372_v28 = vld [vmem:[%s14334_s1 + $0xe4] ss:$16 sps:$4 sm:$0xff]   ;;  %v9374_v29 = vld [vmem:[%s14334_s1 + $0xec] ss:$16 sps:$4 sm:$0xff]  }
   0xb   :  { %6429 = vmatpush1.bf16.msra.mxu0 %v9346_v10  ;;  %7085 = vmatpush1.bf16.msra.mxu1 %v9347_v11  ;;  %v9376_v30 = vld [vmem:[%s14334_s1 + $0xe0] ss:$16 sps:$4 sm:$0xff]   ;;  %v9377_v31 = vld [vmem:[%s14334_s1 + $0xe8] ss:$16 sps:$4 sm:$0xff]   ;;  %v9378_v32 = vld [vmem:[%s14334_s1 + $0x104] ss:$16 sps:$4 sm:$0xff]  }
   0xc   :  { %6430 = vmatprep.subr.bf16.mxu0 %v9348_v12  ;;  %7086 = vmatprep.subr.bf16.mxu1 %v9350_v13  ;;  %v9380_v33 = vld [vmem:[%s14334_s1 + $0x10c] ss:$16 sps:$4 sm:$0xff]   ;;  %v9382_v34 = vld [vmem:[%s14334_s1 + $0x100] ss:$16 sps:$4 sm:$0xff]   ;;  %v9383_v35 = vld [vmem:[%s14334_s1 + $0x108] ss:$16 sps:$4 sm:$0xff]  }
   0xd   :  { %v9384_v39 = vld [vmem:[%s14334_s1 + $0x124] ss:$16 sps:$4 sm:$0xff]   ;;  %v9386_v40 = vld [vmem:[%s14334_s1 + $0x12c] ss:$16 sps:$4 sm:$0xff]   ;;  %v9388_v41 = vld [vmem:[%s14334_s1 + $0x120] ss:$16 sps:$4 sm:$0xff]  }
   0xe   :  { %v11077_v42 = vshrl.u32 %v1052_v36, 7  ;;  %v9389_v44 = vld [vmem:[%s14334_s1 + $0x128] ss:$16 sps:$4 sm:$0xff]   ;;  %v9390_v45 = vld [vmem:[%s14334_s1 + $0x144] ss:$16 sps:$4 sm:$0xff]  }
   0xf   :  { %6431 = vmatpush1.bf16.msra.mxu0 %v9352_v14  ;;  %7087 = vmatpush1.bf16.msra.mxu1 %v9353_v15  ;;  %v9392_v46 = vld [vmem:[%s14334_s1 + $0x14c] ss:$16 sps:$4 sm:$0xff]   ;;  %v9394_v47 = vld [vmem:[%s14334_s1 + $0x140] ss:$16 sps:$4 sm:$0xff]   ;;  %v9395_v48 = vld [vmem:[%s14334_s1 + $0x148] ss:$16 sps:$4 sm:$0xff]  }
  0x10   :  { %6432 = vmatprep.subr.bf16.mxu0 %v9354_v16  ;;  %7088 = vmatprep.subr.bf16.mxu1 %v9356_v17  ;;  %v11095_v49 = vsub.s32 %v1079_v43, %v11077_v42  ;;  %v9396_v50 = vld [vmem:[%s14334_s1 + $0x164] ss:$16 sps:$4 sm:$0xff]   ;;  %v9398_v51 = vld [vmem:[%s14334_s1 + $0x16c] ss:$16 sps:$4 sm:$0xff]   ;;  %v9400_v53 = vld [vmem:[%s14334_s1 + $0x160] ss:$16 sps:$4 sm:$0xff]  }
  0x11   :  { %v11106_v52 = vld [vmem:[%s14333_s0] sm:$0xff]  ;;  %v9401_v55 = vld [vmem:[%s14334_s1 + $0x168] ss:$16 sps:$4 sm:$0xff]   ;;  %v9404_v57 = vld [vmem:[%s14334_s1 + $0x18c] ss:$16 sps:$4 sm:$0xff]  }
  0x12   :  { %v1083_v54 = vrot.slane %v11106_v52, %v11095_v49  ;;  %v9402_v56 = vld [vmem:[%s14334_s1 + $0x184] ss:$16 sps:$4 sm:$0xff]   ;;  %v9406_v59 = vld [vmem:[%s14334_s1 + $0x180] ss:$16 sps:$4 sm:$0xff]   ;;  %v9407_v61 = vld [vmem:[%s14334_s1 + $0x188] ss:$16 sps:$4 sm:$0xff]  }
  0x13   :  { %6433 = vmatpush1.bf16.msra.mxu0 %v9358_v18  ;;  %7089 = vmatpush1.bf16.msra.mxu1 %v9359_v19  ;;  %v9408_v62 = vld [vmem:[%s14334_s1 + $0x1a4] ss:$16 sps:$4 sm:$0xff]   ;;  %v9410_v63 = vld [vmem:[%s14334_s1 + $0x1ac] ss:$16 sps:$4 sm:$0xff]   ;;  %v9412_v0 = vld [vmem:[%s14334_s1 + $0x1a0] ss:$16 sps:$4 sm:$0xff]  }
  0x14   :  { %6434 = vmatprep.subr.bf16.mxu0 %v9360_v20  ;;  %7090 = vmatprep.subr.bf16.mxu1 %v9362_v21  ;;  %v1091_v58 = vcombine.high %v1083_v54, %v1083_v54  ;;  %v9413_v1 = vld [vmem:[%s14334_s1 + $0x1a8] ss:$16 sps:$4 sm:$0xff]   ;;  %v9414_v2 = vld [vmem:[%s14334_s1 + $0x1c4] ss:$16 sps:$4 sm:$0xff]   ;;  %v9416_v3 = vld [vmem:[%s14334_s1 + $0x1cc] ss:$16 sps:$4 sm:$0xff]   ;;  %v11175_v13 = vrot.slane %v1083_v54, %v11095_v49 }
  0x15   :  { %v9418_v4 = vld [vmem:[%s14334_s1 + $0x1c0] ss:$16 sps:$4 sm:$0xff]   ;;  %v9419_v5 = vld [vmem:[%s14334_s1 + $0x1c8] ss:$16 sps:$4 sm:$0xff]   ;;  %v9420_v6 = vld [vmem:[%s14334_s1 + $0x1e4] ss:$16 sps:$4 sm:$0xff]  }
  0x16   :  { %v1113_v60 = vrot.slane %v1091_v58, %v11095_v49  ;;  %v9422_v7 = vld [vmem:[%s14334_s1 + $0x1ec] ss:$16 sps:$4 sm:$0xff]   ;;  %v9424_v8 = vld [vmem:[%s14334_s1 + $0x1e0] ss:$16 sps:$4 sm:$0xff]   ;;  %v9425_v9 = vld [vmem:[%s14334_s1 + $0x1e8] ss:$16 sps:$4 sm:$0xff]  }
  0x17   :  { %6435 = vmatpush1.bf16.msra.mxu0 %v9364_v22  ;;  %7091 = vmatpush1.bf16.msra.mxu1 %v9365_v23  ;;  %v9428_v10 = vld [vmem:[%s14334_s1 + $0x204] ss:$16 sps:$4 sm:$0xff]   ;;  %v9431_v11 = vld [vmem:[%s14334_s1 + $0x20c] ss:$16 sps:$4 sm:$0xff]   ;;  %v9426_v12 = vld [vmem:[%s14334_s1 + $0x200] ss:$16 sps:$4 sm:$0xff]  }
  0x18   :  { %6436 = vmatprep.subr.bf16.mxu0 %v9366_v24  ;;  %7092 = vmatprep.subr.bf16.mxu1 %v9368_v25  ;;  %v9429_v14 = vld [vmem:[%s14334_s1 + $0x208] ss:$16 sps:$4 sm:$0xff]   ;;  %v9434_v15 = vld [vmem:[%s14334_s1 + $0x224] ss:$16 sps:$4 sm:$0xff]   ;;  %v9437_v16 = vld [vmem:[%s14334_s1 + $0x22c] ss:$16 sps:$4 sm:$0xff]   ;;  %v1123_v17 = vcombine.high %v1113_v60, %v1113_v60 }
  0x19   :  { %6456 = vmatprep.mubr.bf16.mxu0 %v1113_v60  ;;  %7112 = vmatprep.mubr.bf16.mxu1 %v1113_v60  ;;  %v9432_v18 = vld [vmem:[%s14334_s1 + $0x220] ss:$16 sps:$4 sm:$0xff]   ;;  %v9435_v19 = vld [vmem:[%s14334_s1 + $0x228] ss:$16 sps:$4 sm:$0xff]   ;;  %v9440_v20 = vld [vmem:[%s14334_s1 + $0x244] ss:$16 sps:$4 sm:$0xff]  }
  0x1a   :  { %v9443_v21 = vld [vmem:[%s14334_s1 + $0x24c] ss:$16 sps:$4 sm:$0xff]   ;;  %v9438_v22 = vld [vmem:[%s14334_s1 + $0x240] ss:$16 sps:$4 sm:$0xff]   ;;  %v9441_v23 = vld [vmem:[%s14334_s1 + $0x248] ss:$16 sps:$4 sm:$0xff]  }
  0x1b   :  { %6437 = vmatpush1.bf16.msra.mxu0 %v9370_v26  ;;  %7093 = vmatpush1.bf16.msra.mxu1 %v9371_v27  ;;  %v9446_v24 = vld [vmem:[%s14334_s1 + $0x264] ss:$16 sps:$4 sm:$0xff]   ;;  %v9449_v25 = vld [vmem:[%s14334_s1 + $0x26c] ss:$16 sps:$4 sm:$0xff]   ;;  %v9444_v26 = vld [vmem:[%s14334_s1 + $0x260] ss:$16 sps:$4 sm:$0xff]  }
  0x1c   :  { %6438 = vmatprep.subr.bf16.mxu0 %v9372_v28  ;;  %7094 = vmatprep.subr.bf16.mxu1 %v9374_v29  ;;  %v9447_v27 = vld [vmem:[%s14334_s1 + $0x268] ss:$16 sps:$4 sm:$0xff]   ;;  %v9452_v28 = vld [vmem:[%s14334_s1 + $0x284] ss:$16 sps:$4 sm:$0xff]   ;;  %v9455_v29 = vld [vmem:[%s14334_s1 + $0x28c] ss:$16 sps:$4 sm:$0xff]  }
  0x1d   :  { %v9464_v36 = vld [vmem:[%s14334_s1 + $0x2c4] ss:$16 sps:$4 sm:$0xff]   ;;  %v9467_v37 = vld [vmem:[%s14334_s1 + $0x2cc] ss:$16 sps:$4 sm:$0xff]   ;;  %v9462_v38 = vld [vmem:[%s14334_s1 + $0x2c0] ss:$16 sps:$4 sm:$0xff]  }
  0x1e   :  { %v9468_v43 = vld [vmem:[%s14334_s1 + $0x2e0] ss:$16 sps:$4 sm:$0xff]   ;;  %v9483_v54 = vld [vmem:[%s14334_s1 + $0x328] ss:$16 sps:$4 sm:$0xff]   ;;  %v9497_v60 = vld [vmem:[%s14334_s1 + $0x36c] ss:$16 sps:$4 sm:$0xff]  }
  0x1f   :  { %6439 = vmatpush1.bf16.msra.mxu0 %v9376_v30  ;;  %7095 = vmatpush1.bf16.msra.mxu1 %v9377_v31  ;;  %v9450_v30 = vld [vmem:[%s14334_s1 + $0x280] ss:$16 sps:$4 sm:$0xff]   ;;  %v9453_v31 = vld [vmem:[%s14334_s1 + $0x288] ss:$16 sps:$4 sm:$0xff]  }
  0x20   :  { %6440 = vmatprep.subr.bf16.mxu0 %v9378_v32  ;;  %7096 = vmatprep.subr.bf16.mxu1 %v9380_v33  ;;  %v9458_v32 = vld [vmem:[%s14334_s1 + $0x2a4] ss:$16 sps:$4 sm:$0xff]   ;;  %v9461_v33 = vld [vmem:[%s14334_s1 + $0x2ac] ss:$16 sps:$4 sm:$0xff]   ;;  %v9489_v58 = vld [vmem:[%s14334_s1 + $0x348] ss:$16 sps:$4 sm:$0xff]  }
  0x23   :  { %6441 = vmatpush1.bf16.msra.mxu0 %v9382_v34  ;;  %7097 = vmatpush1.bf16.msra.mxu1 %v9383_v35  ;;  %v9456_v34 = vld [vmem:[%s14334_s1 + $0x2a0] ss:$16 sps:$4 sm:$0xff]   ;;  %v9459_v35 = vld [vmem:[%s14334_s1 + $0x2a8] ss:$16 sps:$4 sm:$0xff]  }
  0x24   :  { %6442 = vmatprep.subr.bf16.mxu0 %v9384_v39  ;;  %7098 = vmatprep.subr.bf16.mxu1 %v9386_v40  ;;  %v9465_v39 = vld [vmem:[%s14334_s1 + $0x2c8] ss:$16 sps:$4 sm:$0xff]   ;;  %v9470_v40 = vld [vmem:[%s14334_s1 + $0x2e4] ss:$16 sps:$4 sm:$0xff]  }
  0x27   :  { %6443 = vmatpush1.bf16.msra.mxu0 %v9388_v41  ;;  %7099 = vmatpush1.bf16.msra.mxu1 %v9389_v44  ;;  %v9473_v41 = vld [vmem:[%s14334_s1 + $0x2ec] ss:$16 sps:$4 sm:$0xff]   ;;  %v9471_v44 = vld [vmem:[%s14334_s1 + $0x2e8] ss:$16 sps:$4 sm:$0xff]  }
  0x28   :  { %6444 = vmatprep.subr.bf16.mxu0 %v9390_v45  ;;  %7100 = vmatprep.subr.bf16.mxu1 %v9392_v46  ;;  %v9476_v45 = vld [vmem:[%s14334_s1 + $0x304] ss:$16 sps:$4 sm:$0xff]   ;;  %v9479_v46 = vld [vmem:[%s14334_s1 + $0x30c] ss:$16 sps:$4 sm:$0xff]  }
  0x2b   :  { %6445 = vmatpush1.bf16.msra.mxu0 %v9394_v47  ;;  %7101 = vmatpush1.bf16.msra.mxu1 %v9395_v48  ;;  %v9474_v47 = vld [vmem:[%s14334_s1 + $0x300] ss:$16 sps:$4 sm:$0xff]   ;;  %v9477_v48 = vld [vmem:[%s14334_s1 + $0x308] ss:$16 sps:$4 sm:$0xff]  }
  0x2c   :  { %6446 = vmatprep.subr.bf16.mxu0 %v9396_v50  ;;  %7102 = vmatprep.subr.bf16.mxu1 %v9398_v51  ;;  %v9482_v50 = vld [vmem:[%s14334_s1 + $0x324] ss:$16 sps:$4 sm:$0xff]   ;;  %v9485_v51 = vld [vmem:[%s14334_s1 + $0x32c] ss:$16 sps:$4 sm:$0xff]  }
  0x2f   :  { %6447 = vmatpush1.bf16.msra.mxu0 %v9400_v53  ;;  %7103 = vmatpush1.bf16.msra.mxu1 %v9401_v55  ;;  %v9480_v53 = vld [vmem:[%s14334_s1 + $0x320] ss:$16 sps:$4 sm:$0xff]   ;;  %v9488_v55 = vld [vmem:[%s14334_s1 + $0x344] ss:$16 sps:$4 sm:$0xff]  }
  0x30   :  { %6448 = vmatprep.subr.bf16.mxu0 %v9402_v56  ;;  %7104 = vmatprep.subr.bf16.mxu1 %v9404_v57  ;;  %v9491_v56 = vld [vmem:[%s14334_s1 + $0x34c] ss:$16 sps:$4 sm:$0xff]   ;;  %v9486_v57 = vld [vmem:[%s14334_s1 + $0x340] ss:$16 sps:$4 sm:$0xff]  }
  0x33   :  { %6449 = vmatpush1.bf16.msra.mxu0 %v9406_v59  ;;  %7105 = vmatpush1.bf16.msra.mxu1 %v9407_v61  ;;  %v9494_v59 = vld [vmem:[%s14334_s1 + $0x364] ss:$16 sps:$4 sm:$0xff]   ;;  %v9492_v61 = vld [vmem:[%s14334_s1 + $0x360] ss:$16 sps:$4 sm:$0xff]  }
  0x34   :  { %6450 = vmatprep.subr.bf16.mxu0 %v9408_v62  ;;  %7106 = vmatprep.subr.bf16.mxu1 %v9410_v63  ;;  %v9495_v62 = vld [vmem:[%s14334_s1 + $0x368] ss:$16 sps:$4 sm:$0xff]   ;;  %v9500_v63 = vld [vmem:[%s14334_s1 + $0x384] ss:$16 sps:$4 sm:$0xff]  }
  0x37   :  { %6451 = vmatpush1.bf16.msra.mxu0 %v9412_v0  ;;  %7107 = vmatpush1.bf16.msra.mxu1 %v9413_v1  ;;  %v9503_v0 = vld [vmem:[%s14334_s1 + $0x38c] ss:$16 sps:$4 sm:$0xff]   ;;  %v9498_v1 = vld [vmem:[%s14334_s1 + $0x380] ss:$16 sps:$4 sm:$0xff]  }
  0x38   :  { %6452 = vmatprep.subr.bf16.mxu0 %v9414_v2  ;;  %7108 = vmatprep.subr.bf16.mxu1 %v9416_v3  ;;  %v9501_v2 = vld [vmem:[%s14334_s1 + $0x388] ss:$16 sps:$4 sm:$0xff]   ;;  %v9506_v3 = vld [vmem:[%s14334_s1 + $0x3a4] ss:$16 sps:$4 sm:$0xff]  }
  0x3b   :  { %6453 = vmatpush1.bf16.msra.mxu0 %v9418_v4  ;;  %7109 = vmatpush1.bf16.msra.mxu1 %v9419_v5  ;;  %v9509_v4 = vld [vmem:[%s14334_s1 + $0x3ac] ss:$16 sps:$4 sm:$0xff]   ;;  %v9504_v5 = vld [vmem:[%s14334_s1 + $0x3a0] ss:$16 sps:$4 sm:$0xff]  }
  0x3c   :  { %6454 = vmatprep.subr.bf16.mxu0 %v9420_v6  ;;  %7110 = vmatprep.subr.bf16.mxu1 %v9422_v7  ;;  %v9507_v6 = vld [vmem:[%s14334_s1 + $0x3a8] ss:$16 sps:$4 sm:$0xff]   ;;  %v9512_v7 = vld [vmem:[%s14334_s1 + $0x3c4] ss:$16 sps:$4 sm:$0xff]  }
  0x3f   :  { %6455 = vmatpush1.bf16.msra.mxu0 %v9424_v8  ;;  %7111 = vmatpush1.bf16.msra.mxu1 %v9425_v9  ;;  %v9515_v8 = vld [vmem:[%s14334_s1 + $0x3cc] ss:$16 sps:$4 sm:$0xff]   ;;  %v1076_v9 = vcombine.high %v11106_v52, %v11106_v52 }
  0x40   :  { %6465 = vmatprep.subr.bf16.mxu0 %v9428_v10  ;;  %7121 = vmatprep.subr.bf16.mxu1 %v9431_v11  ;;  %v9510_v10 = vld [vmem:[%s14334_s1 + $0x3c0] ss:$16 sps:$4 sm:$0xff]   ;;  %v9513_v11 = vld [vmem:[%s14334_s1 + $0x3c8] ss:$16 sps:$4 sm:$0xff]   ;;  %v9521_v52 = vld [vmem:[%s14334_s1 + $0x3ec] ss:$16 sps:$4 sm:$0xff]  }
  0x42   :  { %6457 = vmatmul.mubr.bf16.vlgmr.msra.gmra.mrb[0].mxu0 %v11175_v13  ;;  %7113 = vmatmul.mubr.bf16.vlgmr.msra.gmra.mrb[0].mxu1 %v11175_v13 }
  0x43   :  { %6466 = vmatpush1.bf16.msra.mxu0 %v9426_v12  ;;  %7122 = vmatpush1.bf16.msra.mxu1 %v9429_v14  ;;  %v9518_v12 = vld [vmem:[%s14334_s1 + $0x3e4] ss:$16 sps:$4 sm:$0xff]   ;;  %v11359_v14 = vrot.slane %v1076_v9, %v11095_v49  ;;  %v9597_v9 = vld [vmem:[%s14334_s1 + $0x588] ss:$16 sps:$4 sm:$0xff]  }
  0x44   :  { %6467 = vmatprep.subr.bf16.mxu0 %v9434_v15  ;;  %7123 = vmatprep.subr.bf16.mxu1 %v9437_v16  ;;  %v9516_v15 = vld [vmem:[%s14334_s1 + $0x3e0] ss:$16 sps:$4 sm:$0xff]   ;;  %v9519_v16 = vld [vmem:[%s14334_s1 + $0x3e8] ss:$16 sps:$4 sm:$0xff]  }
  0x45   :  { %6497 = vmatprep.mubr.bf16.mxu0 %v1123_v17  ;;  %7153 = vmatprep.mubr.bf16.mxu1 %v1123_v17  ;;  %v9524_v17 = vld [vmem:[%s14334_s1 + $0x404] ss:$16 sps:$4 sm:$0xff]  }
  0x47   :  { %6468 = vmatpush1.bf16.msra.mxu0 %v9432_v18  ;;  %7124 = vmatpush1.bf16.msra.mxu1 %v9435_v19  ;;  %v9527_v18 = vld [vmem:[%s14334_s1 + $0x40c] ss:$16 sps:$4 sm:$0xff]   ;;  %v1092_v19 = vcombine.high %v11359_v14, %v11359_v14 }
  0x48   :  { %6469 = vmatprep.subr.bf16.mxu0 %v9440_v20  ;;  %7125 = vmatprep.subr.bf16.mxu1 %v9443_v21  ;;  %v9522_v20 = vld [vmem:[%s14334_s1 + $0x400] ss:$16 sps:$4 sm:$0xff]   ;;  %v1121_v21 = vcombine.high %v11175_v13, %v11175_v13 }
  0x49   :  { %v9528_v13 = vld [vmem:[%s14334_s1 + $0x420] ss:$16 sps:$4 sm:$0xff]  }
  0x4b   :  { %6470 = vmatpush1.bf16.msra.mxu0 %v9438_v22  ;;  %7126 = vmatpush1.bf16.msra.mxu1 %v9441_v23  ;;  %v9525_v22 = vld [vmem:[%s14334_s1 + $0x408] ss:$16 sps:$4 sm:$0xff]   ;;  %v9530_v23 = vld [vmem:[%s14334_s1 + $0x424] ss:$16 sps:$4 sm:$0xff]  }
  0x4c   :  { %6471 = vmatprep.subr.bf16.mxu0 %v9446_v24  ;;  %7127 = vmatprep.subr.bf16.mxu1 %v9449_v25  ;;  %v9533_v24 = vld [vmem:[%s14334_s1 + $0x42c] ss:$16 sps:$4 sm:$0xff]   ;;  %v11390_v25 = vrot.slane %v1092_v19, %v11095_v49  ;;  %v9614_v19 = vld [vmem:[%s14334_s1 + $0x5e4] ss:$16 sps:$4 sm:$0xff]  }
  0x4f   :  { %6472 = vmatpush1.bf16.msra.mxu0 %v9444_v26  ;;  %7128 = vmatpush1.bf16.msra.mxu1 %v9447_v27  ;;  %v9531_v26 = vld [vmem:[%s14334_s1 + $0x428] ss:$16 sps:$4 sm:$0xff]   ;;  %v9536_v27 = vld [vmem:[%s14334_s1 + $0x444] ss:$16 sps:$4 sm:$0xff]  }
  0x50   :  { %6473 = vmatprep.subr.bf16.mxu0 %v9452_v28  ;;  %7129 = vmatprep.subr.bf16.mxu1 %v9455_v29  ;;  %v9539_v28 = vld [vmem:[%s14334_s1 + $0x44c] ss:$16 sps:$4 sm:$0xff]   ;;  %v9534_v29 = vld [vmem:[%s14334_s1 + $0x440] ss:$16 sps:$4 sm:$0xff]  }
  0x53   :  { %6474 = vmatpush1.bf16.msra.mxu0 %v9450_v30  ;;  %7130 = vmatpush1.bf16.msra.mxu1 %v9453_v31  ;;  %v9537_v30 = vld [vmem:[%s14334_s1 + $0x448] ss:$16 sps:$4 sm:$0xff]   ;;  %v9542_v31 = vld [vmem:[%s14334_s1 + $0x464] ss:$16 sps:$4 sm:$0xff]  }
  0x54   :  { %6475 = vmatprep.subr.bf16.mxu0 %v9458_v32  ;;  %7131 = vmatprep.subr.bf16.mxu1 %v9461_v33  ;;  %v9545_v32 = vld [vmem:[%s14334_s1 + $0x46c] ss:$16 sps:$4 sm:$0xff]   ;;  %v9540_v33 = vld [vmem:[%s14334_s1 + $0x460] ss:$16 sps:$4 sm:$0xff]  }
  0x57   :  { %6476 = vmatpush1.bf16.msra.mxu0 %v9456_v34  ;;  %7132 = vmatpush1.bf16.msra.mxu1 %v9459_v35  ;;  %v9543_v34 = vld [vmem:[%s14334_s1 + $0x468] ss:$16 sps:$4 sm:$0xff]   ;;  %v9548_v35 = vld [vmem:[%s14334_s1 + $0x484] ss:$16 sps:$4 sm:$0xff]  }
  0x58   :  { %6477 = vmatprep.subr.bf16.mxu0 %v9464_v36  ;;  %7133 = vmatprep.subr.bf16.mxu1 %v9467_v37  ;;  %v9551_v36 = vld [vmem:[%s14334_s1 + $0x48c] ss:$16 sps:$4 sm:$0xff]   ;;  %v9546_v37 = vld [vmem:[%s14334_s1 + $0x480] ss:$16 sps:$4 sm:$0xff]  }
  0x5b   :  { %6478 = vmatpush1.bf16.msra.mxu0 %v9462_v38  ;;  %7134 = vmatpush1.bf16.msra.mxu1 %v9465_v39  ;;  %v9549_v38 = vld [vmem:[%s14334_s1 + $0x488] ss:$16 sps:$4 sm:$0xff]   ;;  %v9554_v39 = vld [vmem:[%s14334_s1 + $0x4a4] ss:$16 sps:$4 sm:$0xff]  }
  0x5c   :  { %6479 = vmatprep.subr.bf16.mxu0 %v9470_v40  ;;  %7135 = vmatprep.subr.bf16.mxu1 %v9473_v41  ;;  %v9557_v40 = vld [vmem:[%s14334_s1 + $0x4ac] ss:$16 sps:$4 sm:$0xff]   ;;  %v9552_v41 = vld [vmem:[%s14334_s1 + $0x4a0] ss:$16 sps:$4 sm:$0xff]  }
  0x5f   :  { %6480 = vmatpush1.bf16.msra.mxu0 %v9468_v43  ;;  %7136 = vmatpush1.bf16.msra.mxu1 %v9471_v44  ;;  %v9555_v43 = vld [vmem:[%s14334_s1 + $0x4a8] ss:$16 sps:$4 sm:$0xff]   ;;  %v9560_v44 = vld [vmem:[%s14334_s1 + $0x4c4] ss:$16 sps:$4 sm:$0xff]  }
  0x60   :  { %6481 = vmatprep.subr.bf16.mxu0 %v9476_v45  ;;  %7137 = vmatprep.subr.bf16.mxu1 %v9479_v46  ;;  %v9563_v45 = vld [vmem:[%s14334_s1 + $0x4cc] ss:$16 sps:$4 sm:$0xff]   ;;  %v9558_v46 = vld [vmem:[%s14334_s1 + $0x4c0] ss:$16 sps:$4 sm:$0xff]  }
  0x63   :  { %6482 = vmatpush1.bf16.msra.mxu0 %v9474_v47  ;;  %7138 = vmatpush1.bf16.msra.mxu1 %v9477_v48  ;;  %v9561_v47 = vld [vmem:[%s14334_s1 + $0x4c8] ss:$16 sps:$4 sm:$0xff]   ;;  %v9566_v48 = vld [vmem:[%s14334_s1 + $0x4e4] ss:$16 sps:$4 sm:$0xff]  }
  0x64   :  { %6483 = vmatprep.subr.bf16.mxu0 %v9482_v50  ;;  %7139 = vmatprep.subr.bf16.mxu1 %v9485_v51  ;;  %v9569_v50 = vld [vmem:[%s14334_s1 + $0x4ec] ss:$16 sps:$4 sm:$0xff]   ;;  %v9564_v51 = vld [vmem:[%s14334_s1 + $0x4e0] ss:$16 sps:$4 sm:$0xff]  }
  0x67   :  { %6484 = vmatpush1.bf16.msra.mxu0 %v9480_v53  ;;  %7140 = vmatpush1.bf16.msra.mxu1 %v9483_v54  ;;  %v9567_v53 = vld [vmem:[%s14334_s1 + $0x4e8] ss:$16 sps:$4 sm:$0xff]   ;;  %v9572_v54 = vld [vmem:[%s14334_s1 + $0x504] ss:$16 sps:$4 sm:$0xff]  }
  0x68   :  { %6485 = vmatprep.subr.bf16.mxu0 %v9488_v55  ;;  %7141 = vmatprep.subr.bf16.mxu1 %v9491_v56  ;;  %v9575_v55 = vld [vmem:[%s14334_s1 + $0x50c] ss:$16 sps:$4 sm:$0xff]   ;;  %v9570_v56 = vld [vmem:[%s14334_s1 + $0x500] ss:$16 sps:$4 sm:$0xff]  }
  0x6b   :  { %6486 = vmatpush1.bf16.msra.mxu0 %v9486_v57  ;;  %7142 = vmatpush1.bf16.msra.mxu1 %v9489_v58  ;;  %v9573_v57 = vld [vmem:[%s14334_s1 + $0x508] ss:$16 sps:$4 sm:$0xff]   ;;  %v9578_v58 = vld [vmem:[%s14334_s1 + $0x524] ss:$16 sps:$4 sm:$0xff]  }
  0x6c   :  { %6487 = vmatprep.subr.bf16.mxu0 %v9494_v59  ;;  %7143 = vmatprep.subr.bf16.mxu1 %v9497_v60  ;;  %v9581_v59 = vld [vmem:[%s14334_s1 + $0x52c] ss:$16 sps:$4 sm:$0xff]   ;;  %v9576_v60 = vld [vmem:[%s14334_s1 + $0x520] ss:$16 sps:$4 sm:$0xff]  }
  0x6f   :  { %6488 = vmatpush1.bf16.msra.mxu0 %v9492_v61  ;;  %7144 = vmatpush1.bf16.msra.mxu1 %v9495_v62  ;;  %v9579_v61 = vld [vmem:[%s14334_s1 + $0x528] ss:$16 sps:$4 sm:$0xff]   ;;  %v9584_v62 = vld [vmem:[%s14334_s1 + $0x544] ss:$16 sps:$4 sm:$0xff]  }
  0x70   :  { %6489 = vmatprep.subr.bf16.mxu0 %v9500_v63  ;;  %7145 = vmatprep.subr.bf16.mxu1 %v9503_v0  ;;  %v9587_v63 = vld [vmem:[%s14334_s1 + $0x54c] ss:$16 sps:$4 sm:$0xff]   ;;  %v9582_v0 = vld [vmem:[%s14334_s1 + $0x540] ss:$16 sps:$4 sm:$0xff]  }
  0x73   :  { %6490 = vmatpush1.bf16.msra.mxu0 %v9498_v1  ;;  %7146 = vmatpush1.bf16.msra.mxu1 %v9501_v2  ;;  %v9585_v1 = vld [vmem:[%s14334_s1 + $0x548] ss:$16 sps:$4 sm:$0xff]   ;;  %v9590_v2 = vld [vmem:[%s14334_s1 + $0x564] ss:$16 sps:$4 sm:$0xff]  }
  0x74   :  { %6491 = vmatprep.subr.bf16.mxu0 %v9506_v3  ;;  %7147 = vmatprep.subr.bf16.mxu1 %v9509_v4  ;;  %v9593_v3 = vld [vmem:[%s14334_s1 + $0x56c] ss:$16 sps:$4 sm:$0xff]   ;;  %v9588_v4 = vld [vmem:[%s14334_s1 + $0x560] ss:$16 sps:$4 sm:$0xff]  }
  0x77   :  { %6492 = vmatpush1.bf16.msra.mxu0 %v9504_v5  ;;  %7148 = vmatpush1.bf16.msra.mxu1 %v9507_v6  ;;  %v9591_v5 = vld [vmem:[%s14334_s1 + $0x568] ss:$16 sps:$4 sm:$0xff]   ;;  %v9596_v6 = vld [vmem:[%s14334_s1 + $0x584] ss:$16 sps:$4 sm:$0xff]  }
  0x78   :  { %6493 = vmatprep.subr.bf16.mxu0 %v9512_v7  ;;  %7149 = vmatprep.subr.bf16.mxu1 %v9515_v8  ;;  %v9599_v7 = vld [vmem:[%s14334_s1 + $0x58c] ss:$16 sps:$4 sm:$0xff]   ;;  %v9594_v8 = vld [vmem:[%s14334_s1 + $0x580] ss:$16 sps:$4 sm:$0xff]  }
  0x7b   :  { %6494 = vmatpush1.bf16.msra.mxu0 %v9510_v10  ;;  %7150 = vmatpush1.bf16.msra.mxu1 %v9513_v11  ;;  %v9602_v10 = vld [vmem:[%s14334_s1 + $0x5a4] ss:$16 sps:$4 sm:$0xff]   ;;  %v9605_v11 = vld [vmem:[%s14334_s1 + $0x5ac] ss:$16 sps:$4 sm:$0xff]  }
  0x7c   :  { %6495 = vmatprep.subr.bf16.mxu0 %v9518_v12  ;;  %7151 = vmatprep.subr.bf16.mxu1 %v9521_v52  ;;  %v9600_v12 = vld [vmem:[%s14334_s1 + $0x5a0] ss:$16 sps:$4 sm:$0xff]   ;;  %v9603_v52 = vld [vmem:[%s14334_s1 + $0x5a8] ss:$16 sps:$4 sm:$0xff]  }
  0x7f   :  { %6496 = vmatpush1.bf16.msra.mxu0 %v9516_v15  ;;  %7152 = vmatpush1.bf16.msra.mxu1 %v9519_v16  ;;  %v9608_v15 = vld [vmem:[%s14334_s1 + $0x5c4] ss:$16 sps:$4 sm:$0xff]   ;;  %v9611_v16 = vld [vmem:[%s14334_s1 + $0x5cc] ss:$16 sps:$4 sm:$0xff]  }
  0x80   :  { %6506 = vmatprep.subr.bf16.mxu0 %v9524_v17  ;;  %7162 = vmatprep.subr.bf16.mxu1 %v9527_v18  ;;  %v9606_v17 = vld [vmem:[%s14334_s1 + $0x5c0] ss:$16 sps:$4 sm:$0xff]   ;;  %v9609_v18 = vld [vmem:[%s14334_s1 + $0x5c8] ss:$16 sps:$4 sm:$0xff]  }
  0x82   :  { %6498 = vmatmul.mubr.bf16.vlgmr.msra.gmra.mrb[0].mxu0 %v1121_v21  ;;  %7154 = vmatmul.mubr.bf16.vlgmr.msra.gmra.mrb[0].mxu1 %v1121_v21  ;;  %v9612_v21 = vld [vmem:[%s14334_s1 + $0x5e0] ss:$16 sps:$4 sm:$0xff]  }
  0x83   :  { %6507 = vmatpush1.bf16.msra.mxu0 %v9522_v20  ;;  %7163 = vmatpush1.bf16.msra.mxu1 %v9525_v22  ;;  %v9617_v20 = vld [vmem:[%s14334_s1 + $0x5ec] ss:$16 sps:$4 sm:$0xff]   ;;  %v9615_v22 = vld [vmem:[%s14334_s1 + $0x5e8] ss:$16 sps:$4 sm:$0xff]  }
  0x84   :  { %6508 = vmatprep.subr.bf16.mxu0 %v9530_v23  ;;  %7164 = vmatprep.subr.bf16.mxu1 %v9533_v24  ;;  %v9621_v23 = vld [vmem:[%s14334_s1 + $0x604] ss:$16 sps:$4 sm:$0xff]   ;;  %v9624_v24 = vld [vmem:[%s14334_s1 + $0x60c] ss:$16 sps:$4 sm:$0xff]  }
  0x85   :  { %6538 = vmatprep.mubr.bf16.mxu0 %v11390_v25  ;;  %7194 = vmatprep.mubr.bf16.mxu1 %v11390_v25 }
  0x87   :  { %6509 = vmatpush1.bf16.msra.mxu0 %v9528_v13  ;;  %7165 = vmatpush1.bf16.msra.mxu1 %v9531_v26  ;;  %v9619_v13 = vld [vmem:[%s14334_s1 + $0x600] ss:$16 sps:$4 sm:$0xff]   ;;  %v11579_v26 = vrot.slane %v11359_v14, %v11095_v49  ;;  %v1124_v14 = vcombine.high %v11390_v25, %v11390_v25  ;;  %v9633_v25 = vld [vmem:[%s14334_s1 + $0x644] ss:$16 sps:$4 sm:$0xff]  }
  0x88   :  { %6510 = vmatprep.subr.bf16.mxu0 %v9536_v27  ;;  %7166 = vmatprep.subr.bf16.mxu1 %v9539_v28  ;;  %v9622_v27 = vld [vmem:[%s14334_s1 + $0x608] ss:$16 sps:$4 sm:$0xff]   ;;  %v9627_v28 = vld [vmem:[%s14334_s1 + $0x624] ss:$16 sps:$4 sm:$0xff]  }
  0x8b   :  { %6511 = vmatpush1.bf16.msra.mxu0 %v9534_v29  ;;  %7167 = vmatpush1.bf16.msra.mxu1 %v9537_v30  ;;  %v9630_v29 = vld [vmem:[%s14334_s1 + $0x62c] ss:$16 sps:$4 sm:$0xff]   ;;  %v9625_v30 = vld [vmem:[%s14334_s1 + $0x620] ss:$16 sps:$4 sm:$0xff]  }
  0x8c   :  { %6512 = vmatprep.subr.bf16.mxu0 %v9542_v31  ;;  %7168 = vmatprep.subr.bf16.mxu1 %v9545_v32  ;;  %v9628_v31 = vld [vmem:[%s14334_s1 + $0x628] ss:$16 sps:$4 sm:$0xff]   ;;  %v9636_v32 = vld [vmem:[%s14334_s1 + $0x64c] ss:$16 sps:$4 sm:$0xff]  }
  0x8f   :  { %6513 = vmatpush1.bf16.msra.mxu0 %v9540_v33  ;;  %7169 = vmatpush1.bf16.msra.mxu1 %v9543_v34  ;;  %v9631_v33 = vld [vmem:[%s14334_s1 + $0x640] ss:$16 sps:$4 sm:$0xff]   ;;  %v9634_v34 = vld [vmem:[%s14334_s1 + $0x648] ss:$16 sps:$4 sm:$0xff]  }
  0x90   :  { %6514 = vmatprep.subr.bf16.mxu0 %v9548_v35  ;;  %7170 = vmatprep.subr.bf16.mxu1 %v9551_v36  ;;  %v9639_v35 = vld [vmem:[%s14334_s1 + $0x664] ss:$16 sps:$4 sm:$0xff]   ;;  %v9642_v36 = vld [vmem:[%s14334_s1 + $0x66c] ss:$16 sps:$4 sm:$0xff]  }
  0x93   :  { %6515 = vmatpush1.bf16.msra.mxu0 %v9546_v37  ;;  %7171 = vmatpush1.bf16.msra.mxu1 %v9549_v38  ;;  %v9637_v37 = vld [vmem:[%s14334_s1 + $0x660] ss:$16 sps:$4 sm:$0xff]   ;;  %v9640_v38 = vld [vmem:[%s14334_s1 + $0x668] ss:$16 sps:$4 sm:$0xff]  }
  0x94   :  { %6516 = vmatprep.subr.bf16.mxu0 %v9554_v39  ;;  %7172 = vmatprep.subr.bf16.mxu1 %v9557_v40  ;;  %v9645_v39 = vld [vmem:[%s14334_s1 + $0x684] ss:$16 sps:$4 sm:$0xff]   ;;  %v9648_v40 = vld [vmem:[%s14334_s1 + $0x68c] ss:$16 sps:$4 sm:$0xff]  }
  0x97   :  { %6517 = vmatpush1.bf16.msra.mxu0 %v9552_v41  ;;  %7173 = vmatpush1.bf16.msra.mxu1 %v9555_v43  ;;  %v9643_v41 = vld [vmem:[%s14334_s1 + $0x680] ss:$16 sps:$4 sm:$0xff]   ;;  %v9646_v43 = vld [vmem:[%s14334_s1 + $0x688] ss:$16 sps:$4 sm:$0xff]  }
  0x98   :  { %6518 = vmatprep.subr.bf16.mxu0 %v9560_v44  ;;  %7174 = vmatprep.subr.bf16.mxu1 %v9563_v45  ;;  %v9651_v44 = vld [vmem:[%s14334_s1 + $0x6a4] ss:$16 sps:$4 sm:$0xff]   ;;  %v9654_v45 = vld [vmem:[%s14334_s1 + $0x6ac] ss:$16 sps:$4 sm:$0xff]  }
  0x9b   :  { %6519 = vmatpush1.bf16.msra.mxu0 %v9558_v46  ;;  %7175 = vmatpush1.bf16.msra.mxu1 %v9561_v47  ;;  %v9649_v46 = vld [vmem:[%s14334_s1 + $0x6a0] ss:$16 sps:$4 sm:$0xff]   ;;  %v9652_v47 = vld [vmem:[%s14334_s1 + $0x6a8] ss:$16 sps:$4 sm:$0xff]  }
  0x9c   :  { %6520 = vmatprep.subr.bf16.mxu0 %v9566_v48  ;;  %7176 = vmatprep.subr.bf16.mxu1 %v9569_v50  ;;  %v9657_v48 = vld [vmem:[%s14334_s1 + $0x6c4] ss:$16 sps:$4 sm:$0xff]   ;;  %v9660_v50 = vld [vmem:[%s14334_s1 + $0x6cc] ss:$16 sps:$4 sm:$0xff]  }
  0x9f   :  { %6521 = vmatpush1.bf16.msra.mxu0 %v9564_v51  ;;  %7177 = vmatpush1.bf16.msra.mxu1 %v9567_v53  ;;  %v9655_v51 = vld [vmem:[%s14334_s1 + $0x6c0] ss:$16 sps:$4 sm:$0xff]   ;;  %v9658_v53 = vld [vmem:[%s14334_s1 + $0x6c8] ss:$16 sps:$4 sm:$0xff]  }
  0xa0   :  { %6522 = vmatprep.subr.bf16.mxu0 %v9572_v54  ;;  %7178 = vmatprep.subr.bf16.mxu1 %v9575_v55  ;;  %v9663_v54 = vld [vmem:[%s14334_s1 + $0x6e4] ss:$16 sps:$4 sm:$0xff]   ;;  %v9666_v55 = vld [vmem:[%s14334_s1 + $0x6ec] ss:$16 sps:$4 sm:$0xff]  }
  0xa3   :  { %6523 = vmatpush1.bf16.msra.mxu0 %v9570_v56  ;;  %7179 = vmatpush1.bf16.msra.mxu1 %v9573_v57  ;;  %v9661_v56 = vld [vmem:[%s14334_s1 + $0x6e0] ss:$16 sps:$4 sm:$0xff]   ;;  %v9664_v57 = vld [vmem:[%s14334_s1 + $0x6e8] ss:$16 sps:$4 sm:$0xff]  }
  0xa4   :  { %6524 = vmatprep.subr.bf16.mxu0 %v9578_v58  ;;  %7180 = vmatprep.subr.bf16.mxu1 %v9581_v59  ;;  %v9669_v58 = vld [vmem:[%s14334_s1 + $0x704] ss:$16 sps:$4 sm:$0xff]   ;;  %v9672_v59 = vld [vmem:[%s14334_s1 + $0x70c] ss:$16 sps:$4 sm:$0xff]  }
  0xa7   :  { %6525 = vmatpush1.bf16.msra.mxu0 %v9576_v60  ;;  %7181 = vmatpush1.bf16.msra.mxu1 %v9579_v61  ;;  %v9667_v60 = vld [vmem:[%s14334_s1 + $0x700] ss:$16 sps:$4 sm:$0xff]   ;;  %v9670_v61 = vld [vmem:[%s14334_s1 + $0x708] ss:$16 sps:$4 sm:$0xff]  }
  0xa8   :  { %6526 = vmatprep.subr.bf16.mxu0 %v9584_v62  ;;  %7182 = vmatprep.subr.bf16.mxu1 %v9587_v63  ;;  %v9675_v62 = vld [vmem:[%s14334_s1 + $0x724] ss:$16 sps:$4 sm:$0xff]   ;;  %v9678_v63 = vld [vmem:[%s14334_s1 + $0x72c] ss:$16 sps:$4 sm:$0xff]  }
  0xab   :  { %6527 = vmatpush1.bf16.msra.mxu0 %v9582_v0  ;;  %7183 = vmatpush1.bf16.msra.mxu1 %v9585_v1  ;;  %v9673_v0 = vld [vmem:[%s14334_s1 + $0x720] ss:$16 sps:$4 sm:$0xff]   ;;  %v9676_v1 = vld [vmem:[%s14334_s1 + $0x728] ss:$16 sps:$4 sm:$0xff]  }
  0xac   :  { %6528 = vmatprep.subr.bf16.mxu0 %v9590_v2  ;;  %7184 = vmatprep.subr.bf16.mxu1 %v9593_v3  ;;  %v9681_v2 = vld [vmem:[%s14334_s1 + $0x744] ss:$16 sps:$4 sm:$0xff]   ;;  %v9684_v3 = vld [vmem:[%s14334_s1 + $0x74c] ss:$16 sps:$4 sm:$0xff]  }
  0xaf   :  { %6529 = vmatpush1.bf16.msra.mxu0 %v9588_v4  ;;  %7185 = vmatpush1.bf16.msra.mxu1 %v9591_v5  ;;  %v9679_v4 = vld [vmem:[%s14334_s1 + $0x740] ss:$16 sps:$4 sm:$0xff]   ;;  %v9682_v5 = vld [vmem:[%s14334_s1 + $0x748] ss:$16 sps:$4 sm:$0xff]  }
  0xb0   :  { %6530 = vmatprep.subr.bf16.mxu0 %v9596_v6  ;;  %7186 = vmatprep.subr.bf16.mxu1 %v9599_v7  ;;  %v9687_v6 = vld [vmem:[%s14334_s1 + $0x764] ss:$16 sps:$4 sm:$0xff]   ;;  %v9690_v7 = vld [vmem:[%s14334_s1 + $0x76c] ss:$16 sps:$4 sm:$0xff]  }
  0xb3   :  { %6531 = vmatpush1.bf16.msra.mxu0 %v9594_v8  ;;  %7187 = vmatpush1.bf16.msra.mxu1 %v9597_v9  ;;  %v9685_v8 = vld [vmem:[%s14334_s1 + $0x760] ss:$16 sps:$4 sm:$0xff]   ;;  %v9688_v9 = vld [vmem:[%s14334_s1 + $0x768] ss:$16 sps:$4 sm:$0xff]  }
  0xb4   :  { %6532 = vmatprep.subr.bf16.mxu0 %v9602_v10  ;;  %7188 = vmatprep.subr.bf16.mxu1 %v9605_v11  ;;  %v9693_v10 = vld [vmem:[%s14334_s1 + $0x784] ss:$16 sps:$4 sm:$0xff]   ;;  %v9696_v11 = vld [vmem:[%s14334_s1 + $0x78c] ss:$16 sps:$4 sm:$0xff]  }
  0xb7   :  { %6533 = vmatpush1.bf16.msra.mxu0 %v9600_v12  ;;  %7189 = vmatpush1.bf16.msra.mxu1 %v9603_v52  ;;  %v9691_v12 = vld [vmem:[%s14334_s1 + $0x780] ss:$16 sps:$4 sm:$0xff]   ;;  %v9694_v52 = vld [vmem:[%s14334_s1 + $0x788] ss:$16 sps:$4 sm:$0xff]  }
  0xb8   :  { %6534 = vmatprep.subr.bf16.mxu0 %v9608_v15  ;;  %7190 = vmatprep.subr.bf16.mxu1 %v9611_v16  ;;  %v9699_v15 = vld [vmem:[%s14334_s1 + $0x7a4] ss:$16 sps:$4 sm:$0xff]   ;;  %v9702_v16 = vld [vmem:[%s14334_s1 + $0x7ac] ss:$16 sps:$4 sm:$0xff]  }
  0xbb   :  { %6535 = vmatpush1.bf16.msra.mxu0 %v9606_v17  ;;  %7191 = vmatpush1.bf16.msra.mxu1 %v9609_v18  ;;  %v9697_v17 = vld [vmem:[%s14334_s1 + $0x7a0] ss:$16 sps:$4 sm:$0xff]   ;;  %v9700_v18 = vld [vmem:[%s14334_s1 + $0x7a8] ss:$16 sps:$4 sm:$0xff]  }
  0xbc   :  { %6536 = vmatprep.subr.bf16.mxu0 %v9614_v19  ;;  %7192 = vmatprep.subr.bf16.mxu1 %v9617_v20  ;;  %v9705_v19 = vld [vmem:[%s14334_s1 + $0x7c4] ss:$16 sps:$4 sm:$0xff]   ;;  %v9708_v20 = vld [vmem:[%s14334_s1 + $0x7cc] ss:$16 sps:$4 sm:$0xff]  }
  0xbf   :  { %6537 = vmatpush1.bf16.msra.mxu0 %v9612_v21  ;;  %7193 = vmatpush1.bf16.msra.mxu1 %v9615_v22  ;;  %v11753_v21 = vld.sshfl [vmem:[%s14333_s0 + $0x8] sm:$0xff pattern:$0x75316420]  ;;  %v9703_v22 = vld [vmem:[%s14334_s1 + $0x7c0] ss:$16 sps:$4 sm:$0xff]  }
  0xc0   :  { %6547 = vmatprep.subr.bf16.mxu0 %v9621_v23  ;;  %7203 = vmatprep.subr.bf16.mxu1 %v9624_v24  ;;  %v9706_v23 = vld [vmem:[%s14334_s1 + $0x7c8] ss:$16 sps:$4 sm:$0xff]   ;;  %v9711_v24 = vld [vmem:[%s14334_s1 + $0x7e4] ss:$16 sps:$4 sm:$0xff]  }
  0xc2   :  { %6539 = vmatmul.mubr.bf16.vlgmr.msra.gmra.mrb[0].mxu0 %v11579_v26  ;;  %7195 = vmatmul.mubr.bf16.vlgmr.msra.gmra.mrb[0].mxu1 %v11579_v26 }
  0xc3   :  { %6548 = vmatpush1.bf16.msra.mxu0 %v9619_v13  ;;  %7204 = vmatpush1.bf16.msra.mxu1 %v9622_v27  ;;  %v9714_v13 = vld [vmem:[%s14334_s1 + $0x7ec] ss:$16 sps:$4 sm:$0xff]   ;;  %v9709_v27 = vld [vmem:[%s14334_s1 + $0x7e0] ss:$16 sps:$4 sm:$0xff]  }
  0xc4   :  { %6549 = vmatprep.subr.bf16.mxu0 %v9627_v28  ;;  %7205 = vmatprep.subr.bf16.mxu1 %v9630_v29  ;;  %v9712_v28 = vld [vmem:[%s14334_s1 + $0x7e8] ss:$16 sps:$4 sm:$0xff]   ;;  %v9717_v29 = vld [vmem:[%s14334_s1 + $0x804] ss:$16 sps:$4 sm:$0xff]  }
  0xc5   :  { %6579 = vmatprep.mubr.bf16.mxu0 %v1124_v14  ;;  %7235 = vmatprep.mubr.bf16.mxu1 %v1124_v14  ;;  %v9720_v14 = vld [vmem:[%s14334_s1 + $0x80c] ss:$16 sps:$4 sm:$0xff]  }
  0xc7   :  { %6550 = vmatpush1.bf16.msra.mxu0 %v9625_v30  ;;  %7206 = vmatpush1.bf16.msra.mxu1 %v9628_v31  ;;  %v1140_v30 = vcombine.high %v11753_v21, %v11753_v21  ;;  %v1122_v31 = vcombine.high %v11579_v26, %v11579_v26  ;;  %v9726_v26 = vld [vmem:[%s14334_s1 + $0x82c] ss:$16 sps:$4 sm:$0xff]  }
  0xc8   :  { %6551 = vmatprep.subr.bf16.mxu0 %v9633_v25  ;;  %7207 = vmatprep.subr.bf16.mxu1 %v9636_v32  ;;  %v9715_v25 = vld [vmem:[%s14334_s1 + $0x800] ss:$16 sps:$4 sm:$0xff]   ;;  %v9718_v32 = vld [vmem:[%s14334_s1 + $0x808] ss:$16 sps:$4 sm:$0xff]  }
  0xcb   :  { %6552 = vmatpush1.bf16.msra.mxu0 %v9631_v33  ;;  %7208 = vmatpush1.bf16.msra.mxu1 %v9634_v34  ;;  %v9723_v33 = vld [vmem:[%s14334_s1 + $0x824] ss:$16 sps:$4 sm:$0xff]   ;;  %v11796_v34 = vrot.slane %v1140_v30, %v11095_v49 }
  0xcc   :  { %6553 = vmatprep.subr.bf16.mxu0 %v9639_v35  ;;  %7209 = vmatprep.subr.bf16.mxu1 %v9642_v36  ;;  %v9721_v35 = vld [vmem:[%s14334_s1 + $0x820] ss:$16 sps:$4 sm:$0xff]   ;;  %v9724_v36 = vld [vmem:[%s14334_s1 + $0x828] ss:$16 sps:$4 sm:$0xff]   ;;  %v9807_v30 = vld [vmem:[%s14334_s1 + $0x9e4] ss:$16 sps:$4 sm:$0xff]  }
  0xcf   :  { %6554 = vmatpush1.bf16.msra.mxu0 %v9637_v37  ;;  %7210 = vmatpush1.bf16.msra.mxu1 %v9640_v38  ;;  %v9729_v37 = vld [vmem:[%s14334_s1 + $0x844] ss:$16 sps:$4 sm:$0xff]   ;;  %v9732_v38 = vld [vmem:[%s14334_s1 + $0x84c] ss:$16 sps:$4 sm:$0xff]  }
  0xd0   :  { %6555 = vmatprep.subr.bf16.mxu0 %v9645_v39  ;;  %7211 = vmatprep.subr.bf16.mxu1 %v9648_v40  ;;  %v9727_v39 = vld [vmem:[%s14334_s1 + $0x840] ss:$16 sps:$4 sm:$0xff]   ;;  %v9730_v40 = vld [vmem:[%s14334_s1 + $0x848] ss:$16 sps:$4 sm:$0xff]  }
  0xd3   :  { %6556 = vmatpush1.bf16.msra.mxu0 %v9643_v41  ;;  %7212 = vmatpush1.bf16.msra.mxu1 %v9646_v43  ;;  %v9735_v41 = vld [vmem:[%s14334_s1 + $0x864] ss:$16 sps:$4 sm:$0xff]   ;;  %v9738_v43 = vld [vmem:[%s14334_s1 + $0x86c] ss:$16 sps:$4 sm:$0xff]  }
  0xd4   :  { %6557 = vmatprep.subr.bf16.mxu0 %v9651_v44  ;;  %7213 = vmatprep.subr.bf16.mxu1 %v9654_v45  ;;  %v9733_v44 = vld [vmem:[%s14334_s1 + $0x860] ss:$16 sps:$4 sm:$0xff]   ;;  %v9736_v45 = vld [vmem:[%s14334_s1 + $0x868] ss:$16 sps:$4 sm:$0xff]  }
  0xd7   :  { %6558 = vmatpush1.bf16.msra.mxu0 %v9649_v46  ;;  %7214 = vmatpush1.bf16.msra.mxu1 %v9652_v47  ;;  %v9741_v46 = vld [vmem:[%s14334_s1 + $0x884] ss:$16 sps:$4 sm:$0xff]   ;;  %v9744_v47 = vld [vmem:[%s14334_s1 + $0x88c] ss:$16 sps:$4 sm:$0xff]  }
  0xd8   :  { %6559 = vmatprep.subr.bf16.mxu0 %v9657_v48  ;;  %7215 = vmatprep.subr.bf16.mxu1 %v9660_v50  ;;  %v9739_v48 = vld [vmem:[%s14334_s1 + $0x880] ss:$16 sps:$4 sm:$0xff]   ;;  %v9742_v50 = vld [vmem:[%s14334_s1 + $0x888] ss:$16 sps:$4 sm:$0xff]  }
  0xdb   :  { %6560 = vmatpush1.bf16.msra.mxu0 %v9655_v51  ;;  %7216 = vmatpush1.bf16.msra.mxu1 %v9658_v53  ;;  %v9747_v51 = vld [vmem:[%s14334_s1 + $0x8a4] ss:$16 sps:$4 sm:$0xff]   ;;  %v9750_v53 = vld [vmem:[%s14334_s1 + $0x8ac] ss:$16 sps:$4 sm:$0xff]  }
  0xdc   :  { %6561 = vmatprep.subr.bf16.mxu0 %v9663_v54  ;;  %7217 = vmatprep.subr.bf16.mxu1 %v9666_v55  ;;  %v9745_v54 = vld [vmem:[%s14334_s1 + $0x8a0] ss:$16 sps:$4 sm:$0xff]   ;;  %v9748_v55 = vld [vmem:[%s14334_s1 + $0x8a8] ss:$16 sps:$4 sm:$0xff]  }
  0xdf   :  { %6562 = vmatpush1.bf16.msra.mxu0 %v9661_v56  ;;  %7218 = vmatpush1.bf16.msra.mxu1 %v9664_v57  ;;  %v9753_v56 = vld [vmem:[%s14334_s1 + $0x8c4] ss:$16 sps:$4 sm:$0xff]   ;;  %v9756_v57 = vld [vmem:[%s14334_s1 + $0x8cc] ss:$16 sps:$4 sm:$0xff]  }
  0xe0   :  { %6563 = vmatprep.subr.bf16.mxu0 %v9669_v58  ;;  %7219 = vmatprep.subr.bf16.mxu1 %v9672_v59  ;;  %v9751_v58 = vld [vmem:[%s14334_s1 + $0x8c0] ss:$16 sps:$4 sm:$0xff]   ;;  %v9754_v59 = vld [vmem:[%s14334_s1 + $0x8c8] ss:$16 sps:$4 sm:$0xff]  }
  0xe3   :  { %6564 = vmatpush1.bf16.msra.mxu0 %v9667_v60  ;;  %7220 = vmatpush1.bf16.msra.mxu1 %v9670_v61  ;;  %v9759_v60 = vld [vmem:[%s14334_s1 + $0x8e4] ss:$16 sps:$4 sm:$0xff]   ;;  %v9762_v61 = vld [vmem:[%s14334_s1 + $0x8ec] ss:$16 sps:$4 sm:$0xff]  }
  0xe4   :  { %6565 = vmatprep.subr.bf16.mxu0 %v9675_v62  ;;  %7221 = vmatprep.subr.bf16.mxu1 %v9678_v63  ;;  %v9757_v62 = vld [vmem:[%s14334_s1 + $0x8e0] ss:$16 sps:$4 sm:$0xff]   ;;  %v9760_v63 = vld [vmem:[%s14334_s1 + $0x8e8] ss:$16 sps:$4 sm:$0xff]  }
  0xe7   :  { %6566 = vmatpush1.bf16.msra.mxu0 %v9673_v0  ;;  %7222 = vmatpush1.bf16.msra.mxu1 %v9676_v1  ;;  %v9765_v0 = vld [vmem:[%s14334_s1 + $0x904] ss:$16 sps:$4 sm:$0xff]   ;;  %v9768_v1 = vld [vmem:[%s14334_s1 + $0x90c] ss:$16 sps:$4 sm:$0xff]  }
  0xe8   :  { %6567 = vmatprep.subr.bf16.mxu0 %v9681_v2  ;;  %7223 = vmatprep.subr.bf16.mxu1 %v9684_v3  ;;  %v9763_v2 = vld [vmem:[%s14334_s1 + $0x900] ss:$16 sps:$4 sm:$0xff]   ;;  %v9766_v3 = vld [vmem:[%s14334_s1 + $0x908] ss:$16 sps:$4 sm:$0xff]  }
  0xeb   :  { %6568 = vmatpush1.bf16.msra.mxu0 %v9679_v4  ;;  %7224 = vmatpush1.bf16.msra.mxu1 %v9682_v5  ;;  %v9771_v4 = vld [vmem:[%s14334_s1 + $0x924] ss:$16 sps:$4 sm:$0xff]   ;;  %v9774_v5 = vld [vmem:[%s14334_s1 + $0x92c] ss:$16 sps:$4 sm:$0xff]  }
  0xec   :  { %6569 = vmatprep.subr.bf16.mxu0 %v9687_v6  ;;  %7225 = vmatprep.subr.bf16.mxu1 %v9690_v7  ;;  %v9769_v6 = vld [vmem:[%s14334_s1 + $0x920] ss:$16 sps:$4 sm:$0xff]   ;;  %v9772_v7 = vld [vmem:[%s14334_s1 + $0x928] ss:$16 sps:$4 sm:$0xff]  }
  0xef   :  { %6570 = vmatpush1.bf16.msra.mxu0 %v9685_v8  ;;  %7226 = vmatpush1.bf16.msra.mxu1 %v9688_v9  ;;  %v9777_v8 = vld [vmem:[%s14334_s1 + $0x944] ss:$16 sps:$4 sm:$0xff]   ;;  %v9780_v9 = vld [vmem:[%s14334_s1 + $0x94c] ss:$16 sps:$4 sm:$0xff]  }
  0xf0   :  { %6571 = vmatprep.subr.bf16.mxu0 %v9693_v10  ;;  %7227 = vmatprep.subr.bf16.mxu1 %v9696_v11  ;;  %v9775_v10 = vld [vmem:[%s14334_s1 + $0x940] ss:$16 sps:$4 sm:$0xff]   ;;  %v9778_v11 = vld [vmem:[%s14334_s1 + $0x948] ss:$16 sps:$4 sm:$0xff]  }
  0xf3   :  { %6572 = vmatpush1.bf16.msra.mxu0 %v9691_v12  ;;  %7228 = vmatpush1.bf16.msra.mxu1 %v9694_v52  ;;  %v9783_v12 = vld [vmem:[%s14334_s1 + $0x964] ss:$16 sps:$4 sm:$0xff]   ;;  %v9786_v52 = vld [vmem:[%s14334_s1 + $0x96c] ss:$16 sps:$4 sm:$0xff]  }
  0xf4   :  { %6573 = vmatprep.subr.bf16.mxu0 %v9699_v15  ;;  %7229 = vmatprep.subr.bf16.mxu1 %v9702_v16  ;;  %v9781_v15 = vld [vmem:[%s14334_s1 + $0x960] ss:$16 sps:$4 sm:$0xff]   ;;  %v9784_v16 = vld [vmem:[%s14334_s1 + $0x968] ss:$16 sps:$4 sm:$0xff]  }
  0xf7   :  { %6574 = vmatpush1.bf16.msra.mxu0 %v9697_v17  ;;  %7230 = vmatpush1.bf16.msra.mxu1 %v9700_v18  ;;  %v9789_v17 = vld [vmem:[%s14334_s1 + $0x984] ss:$16 sps:$4 sm:$0xff]   ;;  %v9792_v18 = vld [vmem:[%s14334_s1 + $0x98c] ss:$16 sps:$4 sm:$0xff]  }
  0xf8   :  { %6575 = vmatprep.subr.bf16.mxu0 %v9705_v19  ;;  %7231 = vmatprep.subr.bf16.mxu1 %v9708_v20  ;;  %v9787_v19 = vld [vmem:[%s14334_s1 + $0x980] ss:$16 sps:$4 sm:$0xff]   ;;  %v9790_v20 = vld [vmem:[%s14334_s1 + $0x988] ss:$16 sps:$4 sm:$0xff]  }
  0xfb   :  { %6576 = vmatpush1.bf16.msra.mxu0 %v9703_v22  ;;  %7232 = vmatpush1.bf16.msra.mxu1 %v9706_v23  ;;  %v9795_v22 = vld [vmem:[%s14334_s1 + $0x9a4] ss:$16 sps:$4 sm:$0xff]   ;;  %v9798_v23 = vld [vmem:[%s14334_s1 + $0x9ac] ss:$16 sps:$4 sm:$0xff]  }
  0xfc   :  { %6577 = vmatprep.subr.bf16.mxu0 %v9711_v24  ;;  %7233 = vmatprep.subr.bf16.mxu1 %v9714_v13  ;;  %v9793_v24 = vld [vmem:[%s14334_s1 + $0x9a0] ss:$16 sps:$4 sm:$0xff]   ;;  %v9796_v13 = vld [vmem:[%s14334_s1 + $0x9a8] ss:$16 sps:$4 sm:$0xff]  }
  0xff   :  { %6578 = vmatpush1.bf16.msra.mxu0 %v9709_v27  ;;  %7234 = vmatpush1.bf16.msra.mxu1 %v9712_v28  ;;  %v9801_v27 = vld [vmem:[%s14334_s1 + $0x9c4] ss:$16 sps:$4 sm:$0xff]   ;;  %v9804_v28 = vld [vmem:[%s14334_s1 + $0x9cc] ss:$16 sps:$4 sm:$0xff]  }
 0x100   :  { %6588 = vmatprep.subr.bf16.mxu0 %v9717_v29  ;;  %7244 = vmatprep.subr.bf16.mxu1 %v9720_v14  ;;  %v9799_v29 = vld [vmem:[%s14334_s1 + $0x9c0] ss:$16 sps:$4 sm:$0xff]   ;;  %v9802_v14 = vld [vmem:[%s14334_s1 + $0x9c8] ss:$16 sps:$4 sm:$0xff]  }
 0x102   :  { %6580 = vmatmul.mubr.bf16.vlgmr.msra.gmra.mrb[0].mxu0 %v1122_v31  ;;  %7236 = vmatmul.mubr.bf16.vlgmr.msra.gmra.mrb[0].mxu1 %v1122_v31  ;;  %v9810_v31 = vld [vmem:[%s14334_s1 + $0x9ec] ss:$16 sps:$4 sm:$0xff]  }
 0x103   :  { %6589 = vmatpush1.bf16.msra.mxu0 %v9715_v25  ;;  %7245 = vmatpush1.bf16.msra.mxu1 %v9718_v32  ;;  %v9805_v25 = vld [vmem:[%s14334_s1 + $0x9e0] ss:$16 sps:$4 sm:$0xff]   ;;  %v9808_v32 = vld [vmem:[%s14334_s1 + $0x9e8] ss:$16 sps:$4 sm:$0xff]  }
 0x104   :  { %6590 = vmatprep.subr.bf16.mxu0 %v9723_v33  ;;  %7246 = vmatprep.subr.bf16.mxu1 %v9726_v26  ;;  %v9813_v33 = vld [vmem:[%s14334_s1 + $0xa04] ss:$16 sps:$4 sm:$0xff]   ;;  %v9816_v26 = vld [vmem:[%s14334_s1 + $0xa0c] ss:$16 sps:$4 sm:$0xff]  }
 0x105   :  { %6620 = vmatprep.mubr.bf16.mxu0 %v11796_v34  ;;  %7276 = vmatprep.mubr.bf16.mxu1 %v11796_v34 }
 0x107   :  { %6591 = vmatpush1.bf16.msra.mxu0 %v9721_v35  ;;  %7247 = vmatpush1.bf16.msra.mxu1 %v9724_v36  ;;  %v11982_v35 = vrot.slane %v11753_v21, %v11095_v49  ;;  %v9811_v36 = vld [vmem:[%s14334_s1 + $0xa00] ss:$16 sps:$4 sm:$0xff]   ;;  %v9822_v21 = vld [vmem:[%s14334_s1 + $0xa2c] ss:$16 sps:$4 sm:$0xff]  }
 0x108   :  { %6592 = vmatprep.subr.bf16.mxu0 %v9729_v37  ;;  %7248 = vmatprep.subr.bf16.mxu1 %v9732_v38  ;;  %v9814_v37 = vld [vmem:[%s14334_s1 + $0xa08] ss:$16 sps:$4 sm:$0xff]   ;;  %v9819_v38 = vld [vmem:[%s14334_s1 + $0xa24] ss:$16 sps:$4 sm:$0xff]  }
 0x10b   :  { %6593 = vmatpush1.bf16.msra.mxu0 %v9727_v39  ;;  %7249 = vmatpush1.bf16.msra.mxu1 %v9730_v40  ;;  %v1172_v39 = vcombine.high %v11796_v34, %v11796_v34  ;;  %v9817_v40 = vld [vmem:[%s14334_s1 + $0xa20] ss:$16 sps:$4 sm:$0xff]   ;;  %v9825_v34 = vld [vmem:[%s14334_s1 + $0xa44] ss:$16 sps:$4 sm:$0xff]  }
 0x10c   :  { %6594 = vmatprep.subr.bf16.mxu0 %v9735_v41  ;;  %7250 = vmatprep.subr.bf16.mxu1 %v9738_v43  ;;  %v9820_v41 = vld [vmem:[%s14334_s1 + $0xa28] ss:$16 sps:$4 sm:$0xff]   ;;  %v9828_v43 = vld [vmem:[%s14334_s1 + $0xa4c] ss:$16 sps:$4 sm:$0xff]  }
 0x10f   :  { %6595 = vmatpush1.bf16.msra.mxu0 %v9733_v44  ;;  %7251 = vmatpush1.bf16.msra.mxu1 %v9736_v45  ;;  %v9823_v44 = vld [vmem:[%s14334_s1 + $0xa40] ss:$16 sps:$4 sm:$0xff]   ;;  %v9826_v45 = vld [vmem:[%s14334_s1 + $0xa48] ss:$16 sps:$4 sm:$0xff]  }
 0x110   :  { %6596 = vmatprep.subr.bf16.mxu0 %v9741_v46  ;;  %7252 = vmatprep.subr.bf16.mxu1 %v9744_v47  ;;  %v9831_v46 = vld [vmem:[%s14334_s1 + $0xa64] ss:$16 sps:$4 sm:$0xff]   ;;  %v9834_v47 = vld [vmem:[%s14334_s1 + $0xa6c] ss:$16 sps:$4 sm:$0xff]  }
 0x113   :  { %6597 = vmatpush1.bf16.msra.mxu0 %v9739_v48  ;;  %7253 = vmatpush1.bf16.msra.mxu1 %v9742_v50  ;;  %v9829_v48 = vld [vmem:[%s14334_s1 + $0xa60] ss:$16 sps:$4 sm:$0xff]   ;;  %v9832_v50 = vld [vmem:[%s14334_s1 + $0xa68] ss:$16 sps:$4 sm:$0xff]  }
 0x114   :  { %6598 = vmatprep.subr.bf16.mxu0 %v9747_v51  ;;  %7254 = vmatprep.subr.bf16.mxu1 %v9750_v53  ;;  %v9837_v51 = vld [vmem:[%s14334_s1 + $0xa84] ss:$16 sps:$4 sm:$0xff]   ;;  %v9840_v53 = vld [vmem:[%s14334_s1 + $0xa8c] ss:$16 sps:$4 sm:$0xff]  }
 0x117   :  { %6599 = vmatpush1.bf16.msra.mxu0 %v9745_v54  ;;  %7255 = vmatpush1.bf16.msra.mxu1 %v9748_v55  ;;  %v9835_v54 = vld [vmem:[%s14334_s1 + $0xa80] ss:$16 sps:$4 sm:$0xff]   ;;  %v9838_v55 = vld [vmem:[%s14334_s1 + $0xa88] ss:$16 sps:$4 sm:$0xff]  }
 0x118   :  { %6600 = vmatprep.subr.bf16.mxu0 %v9753_v56  ;;  %7256 = vmatprep.subr.bf16.mxu1 %v9756_v57  ;;  %v9843_v56 = vld [vmem:[%s14334_s1 + $0xaa4] ss:$16 sps:$4 sm:$0xff]   ;;  %v9846_v57 = vld [vmem:[%s14334_s1 + $0xaac] ss:$16 sps:$4 sm:$0xff]  }
 0x11b   :  { %6601 = vmatpush1.bf16.msra.mxu0 %v9751_v58  ;;  %7257 = vmatpush1.bf16.msra.mxu1 %v9754_v59  ;;  %v9841_v58 = vld [vmem:[%s14334_s1 + $0xaa0] ss:$16 sps:$4 sm:$0xff]   ;;  %v9844_v59 = vld [vmem:[%s14334_s1 + $0xaa8] ss:$16 sps:$4 sm:$0xff]  }
 0x11c   :  { %6602 = vmatprep.subr.bf16.mxu0 %v9759_v60  ;;  %7258 = vmatprep.subr.bf16.mxu1 %v9762_v61  ;;  %v9849_v60 = vld [vmem:[%s14334_s1 + $0xac4] ss:$16 sps:$4 sm:$0xff]   ;;  %v9852_v61 = vld [vmem:[%s14334_s1 + $0xacc] ss:$16 sps:$4 sm:$0xff]  }
 0x11f   :  { %6603 = vmatpush1.bf16.msra.mxu0 %v9757_v62  ;;  %7259 = vmatpush1.bf16.msra.mxu1 %v9760_v63  ;;  %v9847_v62 = vld [vmem:[%s14334_s1 + $0xac0] ss:$16 sps:$4 sm:$0xff]   ;;  %v9850_v63 = vld [vmem:[%s14334_s1 + $0xac8] ss:$16 sps:$4 sm:$0xff]  }
 0x120   :  { %6604 = vmatprep.subr.bf16.mxu0 %v9765_v0  ;;  %7260 = vmatprep.subr.bf16.mxu1 %v9768_v1  ;;  %v9855_v0 = vld [vmem:[%s14334_s1 + $0xae4] ss:$16 sps:$4 sm:$0xff]   ;;  %v9858_v1 = vld [vmem:[%s14334_s1 + $0xaec] ss:$16 sps:$4 sm:$0xff]  }
 0x123   :  { %6605 = vmatpush1.bf16.msra.mxu0 %v9763_v2  ;;  %7261 = vmatpush1.bf16.msra.mxu1 %v9766_v3  ;;  %v9853_v2 = vld [vmem:[%s14334_s1 + $0xae0] ss:$16 sps:$4 sm:$0xff]   ;;  %v9856_v3 = vld [vmem:[%s14334_s1 + $0xae8] ss:$16 sps:$4 sm:$0xff]  }
 0x124   :  { %6606 = vmatprep.subr.bf16.mxu0 %v9771_v4  ;;  %7262 = vmatprep.subr.bf16.mxu1 %v9774_v5  ;;  %v9861_v4 = vld [vmem:[%s14334_s1 + $0xb04] ss:$16 sps:$4 sm:$0xff]   ;;  %v9864_v5 = vld [vmem:[%s14334_s1 + $0xb0c] ss:$16 sps:$4 sm:$0xff]  }
 0x127   :  { %6607 = vmatpush1.bf16.msra.mxu0 %v9769_v6  ;;  %7263 = vmatpush1.bf16.msra.mxu1 %v9772_v7  ;;  %v9859_v6 = vld [vmem:[%s14334_s1 + $0xb00] ss:$16 sps:$4 sm:$0xff]   ;;  %v9862_v7 = vld [vmem:[%s14334_s1 + $0xb08] ss:$16 sps:$4 sm:$0xff]  }
 0x128   :  { %6608 = vmatprep.subr.bf16.mxu0 %v9777_v8  ;;  %7264 = vmatprep.subr.bf16.mxu1 %v9780_v9  ;;  %v9867_v8 = vld [vmem:[%s14334_s1 + $0xb24] ss:$16 sps:$4 sm:$0xff]   ;;  %v9870_v9 = vld [vmem:[%s14334_s1 + $0xb2c] ss:$16 sps:$4 sm:$0xff]  }
 0x12b   :  { %6609 = vmatpush1.bf16.msra.mxu0 %v9775_v10  ;;  %7265 = vmatpush1.bf16.msra.mxu1 %v9778_v11  ;;  %v9865_v10 = vld [vmem:[%s14334_s1 + $0xb20] ss:$16 sps:$4 sm:$0xff]   ;;  %v9868_v11 = vld [vmem:[%s14334_s1 + $0xb28] ss:$16 sps:$4 sm:$0xff]  }
 0x12c   :  { %6610 = vmatprep.subr.bf16.mxu0 %v9783_v12  ;;  %7266 = vmatprep.subr.bf16.mxu1 %v9786_v52  ;;  %v9873_v12 = vld [vmem:[%s14334_s1 + $0xb44] ss:$16 sps:$4 sm:$0xff]   ;;  %v9876_v52 = vld [vmem:[%s14334_s1 + $0xb4c] ss:$16 sps:$4 sm:$0xff]  }
 0x12f   :  { %6611 = vmatpush1.bf16.msra.mxu0 %v9781_v15  ;;  %7267 = vmatpush1.bf16.msra.mxu1 %v9784_v16  ;;  %v9871_v15 = vld [vmem:[%s14334_s1 + $0xb40] ss:$16 sps:$4 sm:$0xff]   ;;  %v9874_v16 = vld [vmem:[%s14334_s1 + $0xb48] ss:$16 sps:$4 sm:$0xff]  }
 0x130   :  { %6612 = vmatprep.subr.bf16.mxu0 %v9789_v17  ;;  %7268 = vmatprep.subr.bf16.mxu1 %v9792_v18  ;;  %v9879_v17 = vld [vmem:[%s14334_s1 + $0xb64] ss:$16 sps:$4 sm:$0xff]   ;;  %v9882_v18 = vld [vmem:[%s14334_s1 + $0xb6c] ss:$16 sps:$4 sm:$0xff]  }
 0x133   :  { %6613 = vmatpush1.bf16.msra.mxu0 %v9787_v19  ;;  %7269 = vmatpush1.bf16.msra.mxu1 %v9790_v20  ;;  %v9877_v19 = vld [vmem:[%s14334_s1 + $0xb60] ss:$16 sps:$4 sm:$0xff]   ;;  %v9880_v20 = vld [vmem:[%s14334_s1 + $0xb68] ss:$16 sps:$4 sm:$0xff]  }
 0x134   :  { %6614 = vmatprep.subr.bf16.mxu0 %v9795_v22  ;;  %7270 = vmatprep.subr.bf16.mxu1 %v9798_v23  ;;  %v9885_v22 = vld [vmem:[%s14334_s1 + $0xb84] ss:$16 sps:$4 sm:$0xff]   ;;  %v9888_v23 = vld [vmem:[%s14334_s1 + $0xb8c] ss:$16 sps:$4 sm:$0xff]  }
 0x137   :  { %6615 = vmatpush1.bf16.msra.mxu0 %v9793_v24  ;;  %7271 = vmatpush1.bf16.msra.mxu1 %v9796_v13  ;;  %v9883_v24 = vld [vmem:[%s14334_s1 + $0xb80] ss:$16 sps:$4 sm:$0xff]   ;;  %v9886_v13 = vld [vmem:[%s14334_s1 + $0xb88] ss:$16 sps:$4 sm:$0xff]  }
 0x138   :  { %6616 = vmatprep.subr.bf16.mxu0 %v9801_v27  ;;  %7272 = vmatprep.subr.bf16.mxu1 %v9804_v28  ;;  %v9891_v27 = vld [vmem:[%s14334_s1 + $0xba4] ss:$16 sps:$4 sm:$0xff]   ;;  %v9894_v28 = vld [vmem:[%s14334_s1 + $0xbac] ss:$16 sps:$4 sm:$0xff]  }
 0x13b   :  { %6617 = vmatpush1.bf16.msra.mxu0 %v9799_v29  ;;  %7273 = vmatpush1.bf16.msra.mxu1 %v9802_v14  ;;  %v9889_v29 = vld [vmem:[%s14334_s1 + $0xba0] ss:$16 sps:$4 sm:$0xff]   ;;  %v9892_v14 = vld [vmem:[%s14334_s1 + $0xba8] ss:$16 sps:$4 sm:$0xff]  }
 0x13c   :  { %6618 = vmatprep.subr.bf16.mxu0 %v9807_v30  ;;  %7274 = vmatprep.subr.bf16.mxu1 %v9810_v31  ;;  %v9897_v30 = vld [vmem:[%s14334_s1 + $0xbc4] ss:$16 sps:$4 sm:$0xff]   ;;  %v9900_v31 = vld [vmem:[%s14334_s1 + $0xbcc] ss:$16 sps:$4 sm:$0xff]  }
 0x13f   :  { %6619 = vmatpush1.bf16.msra.mxu0 %v9805_v25  ;;  %7275 = vmatpush1.bf16.msra.mxu1 %v9808_v32  ;;  %v10902_v25 = vld [vmem:[%s14333_s0 + $0x8] sm:$0xff] }
 0x140   :  { %6629 = vmatprep.subr.bf16.mxu0 %v9813_v33  ;;  %7285 = vmatprep.subr.bf16.mxu1 %v9816_v26  ;;  %v1125_v32 = vcombine.high %v10902_v25, %v10902_v25  ;;  %v9895_v33 = vld [vmem:[%s14334_s1 + $0xbc0] ss:$16 sps:$4 sm:$0xff]   ;;  %v9898_v26 = vld [vmem:[%s14334_s1 + $0xbc8] ss:$16 sps:$4 sm:$0xff]  }
 0x141   :  { %v9979_v25 = vld [vmem:[%s14334_s1 + $0xd80] ss:$16 sps:$4 sm:$0xff]  }
 0x142   :  { %6621 = vmatmul.mubr.bf16.vlgmr.msra.gmra.mrb[0].mxu0 %v11982_v35  ;;  %7277 = vmatmul.mubr.bf16.vlgmr.msra.gmra.mrb[0].mxu1 %v11982_v35 }
 0x143   :  { %6630 = vmatpush1.bf16.msra.mxu0 %v9811_v36  ;;  %7286 = vmatpush1.bf16.msra.mxu1 %v9814_v37  ;;  %v9903_v36 = vld [vmem:[%s14334_s1 + $0xbe4] ss:$16 sps:$4 sm:$0xff]   ;;  %v9906_v37 = vld [vmem:[%s14334_s1 + $0xbec] ss:$16 sps:$4 sm:$0xff]  }
 0x144   :  { %6631 = vmatprep.subr.bf16.mxu0 %v9819_v38  ;;  %7287 = vmatprep.subr.bf16.mxu1 %v9822_v21  ;;  %v12172_v38 = vrot.slane %v1125_v32, %v11095_v49  ;;  %v9901_v21 = vld [vmem:[%s14334_s1 + $0xbe0] ss:$16 sps:$4 sm:$0xff]   ;;  %v9982_v32 = vld [vmem:[%s14334_s1 + $0xd88] ss:$16 sps:$4 sm:$0xff]  }
 0x145   :  { %6661 = vmatprep.mubr.bf16.mxu0 %v1172_v39  ;;  %7317 = vmatprep.mubr.bf16.mxu1 %v1172_v39  ;;  %v9904_v39 = vld [vmem:[%s14334_s1 + $0xbe8] ss:$16 sps:$4 sm:$0xff]  }
 0x147   :  { %6632 = vmatpush1.bf16.msra.mxu0 %v9817_v40  ;;  %7288 = vmatpush1.bf16.msra.mxu1 %v9820_v41  ;;  %v9909_v40 = vld [vmem:[%s14334_s1 + $0xc04] ss:$16 sps:$4 sm:$0xff]   ;;  %v9912_v41 = vld [vmem:[%s14334_s1 + $0xc0c] ss:$16 sps:$4 sm:$0xff]  }
 0x148   :  { %6633 = vmatprep.subr.bf16.mxu0 %v9825_v34  ;;  %7289 = vmatprep.subr.bf16.mxu1 %v9828_v43  ;;  %v1141_v34 = vcombine.high %v12172_v38, %v12172_v38  ;;  %v1170_v43 = vcombine.high %v11982_v35, %v11982_v35  ;;  %v9918_v35 = vld [vmem:[%s14334_s1 + $0xc2c] ss:$16 sps:$4 sm:$0xff]  }
 0x14b   :  { %6634 = vmatpush1.bf16.msra.mxu0 %v9823_v44  ;;  %7290 = vmatpush1.bf16.msra.mxu1 %v9826_v45  ;;  %v9907_v44 = vld [vmem:[%s14334_s1 + $0xc00] ss:$16 sps:$4 sm:$0xff]   ;;  %v9910_v45 = vld [vmem:[%s14334_s1 + $0xc08] ss:$16 sps:$4 sm:$0xff]  }
 0x14c   :  { %6635 = vmatprep.subr.bf16.mxu0 %v9831_v46  ;;  %7291 = vmatprep.subr.bf16.mxu1 %v9834_v47  ;;  %v9915_v46 = vld [vmem:[%s14334_s1 + $0xc24] ss:$16 sps:$4 sm:$0xff]   ;;  %v12203_v47 = vrot.slane %v1141_v34, %v11095_v49 }
 0x14d   :  { %v9999_v34 = vld [vmem:[%s14334_s1 + $0xde4] ss:$16 sps:$4 sm:$0xff]  }
 0x14f   :  { %6636 = vmatpush1.bf16.msra.mxu0 %v9829_v48  ;;  %7292 = vmatpush1.bf16.msra.mxu1 %v9832_v50  ;;  %v9913_v48 = vld [vmem:[%s14334_s1 + $0xc20] ss:$16 sps:$4 sm:$0xff]   ;;  %v9916_v50 = vld [vmem:[%s14334_s1 + $0xc28] ss:$16 sps:$4 sm:$0xff]  }
 0x150   :  { %6637 = vmatprep.subr.bf16.mxu0 %v9837_v51  ;;  %7293 = vmatprep.subr.bf16.mxu1 %v9840_v53  ;;  %v9921_v51 = vld [vmem:[%s14334_s1 + $0xc44] ss:$16 sps:$4 sm:$0xff]   ;;  %v9924_v53 = vld [vmem:[%s14334_s1 + $0xc4c] ss:$16 sps:$4 sm:$0xff]  }
 0x153   :  { %6638 = vmatpush1.bf16.msra.mxu0 %v9835_v54  ;;  %7294 = vmatpush1.bf16.msra.mxu1 %v9838_v55  ;;  %v9919_v54 = vld [vmem:[%s14334_s1 + $0xc40] ss:$16 sps:$4 sm:$0xff]   ;;  %v9922_v55 = vld [vmem:[%s14334_s1 + $0xc48] ss:$16 sps:$4 sm:$0xff]  }
 0x154   :  { %6639 = vmatprep.subr.bf16.mxu0 %v9843_v56  ;;  %7295 = vmatprep.subr.bf16.mxu1 %v9846_v57  ;;  %v9927_v56 = vld [vmem:[%s14334_s1 + $0xc64] ss:$16 sps:$4 sm:$0xff]   ;;  %v9930_v57 = vld [vmem:[%s14334_s1 + $0xc6c] ss:$16 sps:$4 sm:$0xff]  }
 0x157   :  { %6640 = vmatpush1.bf16.msra.mxu0 %v9841_v58  ;;  %7296 = vmatpush1.bf16.msra.mxu1 %v9844_v59  ;;  %v9925_v58 = vld [vmem:[%s14334_s1 + $0xc60] ss:$16 sps:$4 sm:$0xff]   ;;  %v9928_v59 = vld [vmem:[%s14334_s1 + $0xc68] ss:$16 sps:$4 sm:$0xff]  }
 0x158   :  { %6641 = vmatprep.subr.bf16.mxu0 %v9849_v60  ;;  %7297 = vmatprep.subr.bf16.mxu1 %v9852_v61  ;;  %v9933_v60 = vld [vmem:[%s14334_s1 + $0xc84] ss:$16 sps:$4 sm:$0xff]   ;;  %v9936_v61 = vld [vmem:[%s14334_s1 + $0xc8c] ss:$16 sps:$4 sm:$0xff]  }
 0x15b   :  { %6642 = vmatpush1.bf16.msra.mxu0 %v9847_v62  ;;  %7298 = vmatpush1.bf16.msra.mxu1 %v9850_v63  ;;  %v9931_v62 = vld [vmem:[%s14334_s1 + $0xc80] ss:$16 sps:$4 sm:$0xff]   ;;  %v9934_v63 = vld [vmem:[%s14334_s1 + $0xc88] ss:$16 sps:$4 sm:$0xff]  }
 0x15c   :  { %6643 = vmatprep.subr.bf16.mxu0 %v9855_v0  ;;  %7299 = vmatprep.subr.bf16.mxu1 %v9858_v1  ;;  %v9939_v0 = vld [vmem:[%s14334_s1 + $0xca4] ss:$16 sps:$4 sm:$0xff]   ;;  %v9942_v1 = vld [vmem:[%s14334_s1 + $0xcac] ss:$16 sps:$4 sm:$0xff]  }
 0x15f   :  { %6644 = vmatpush1.bf16.msra.mxu0 %v9853_v2  ;;  %7300 = vmatpush1.bf16.msra.mxu1 %v9856_v3  ;;  %v9937_v2 = vld [vmem:[%s14334_s1 + $0xca0] ss:$16 sps:$4 sm:$0xff]   ;;  %v9940_v3 = vld [vmem:[%s14334_s1 + $0xca8] ss:$16 sps:$4 sm:$0xff]  }
 0x160   :  { %6645 = vmatprep.subr.bf16.mxu0 %v9861_v4  ;;  %7301 = vmatprep.subr.bf16.mxu1 %v9864_v5  ;;  %v9945_v4 = vld [vmem:[%s14334_s1 + $0xcc4] ss:$16 sps:$4 sm:$0xff]   ;;  %v9948_v5 = vld [vmem:[%s14334_s1 + $0xccc] ss:$16 sps:$4 sm:$0xff]  }
 0x163   :  { %6646 = vmatpush1.bf16.msra.mxu0 %v9859_v6  ;;  %7302 = vmatpush1.bf16.msra.mxu1 %v9862_v7  ;;  %v9943_v6 = vld [vmem:[%s14334_s1 + $0xcc0] ss:$16 sps:$4 sm:$0xff]   ;;  %v9946_v7 = vld [vmem:[%s14334_s1 + $0xcc8] ss:$16 sps:$4 sm:$0xff]  }
 0x164   :  { %6647 = vmatprep.subr.bf16.mxu0 %v9867_v8  ;;  %7303 = vmatprep.subr.bf16.mxu1 %v9870_v9  ;;  %v9951_v8 = vld [vmem:[%s14334_s1 + $0xce4] ss:$16 sps:$4 sm:$0xff]   ;;  %v9954_v9 = vld [vmem:[%s14334_s1 + $0xcec] ss:$16 sps:$4 sm:$0xff]  }
 0x167   :  { %6648 = vmatpush1.bf16.msra.mxu0 %v9865_v10  ;;  %7304 = vmatpush1.bf16.msra.mxu1 %v9868_v11  ;;  %v9949_v10 = vld [vmem:[%s14334_s1 + $0xce0] ss:$16 sps:$4 sm:$0xff]   ;;  %v9952_v11 = vld [vmem:[%s14334_s1 + $0xce8] ss:$16 sps:$4 sm:$0xff]  }
 0x168   :  { %6649 = vmatprep.subr.bf16.mxu0 %v9873_v12  ;;  %7305 = vmatprep.subr.bf16.mxu1 %v9876_v52  ;;  %v9957_v12 = vld [vmem:[%s14334_s1 + $0xd04] ss:$16 sps:$4 sm:$0xff]   ;;  %v9960_v52 = vld [vmem:[%s14334_s1 + $0xd0c] ss:$16 sps:$4 sm:$0xff]  }
 0x16b   :  { %6650 = vmatpush1.bf16.msra.mxu0 %v9871_v15  ;;  %7306 = vmatpush1.bf16.msra.mxu1 %v9874_v16  ;;  %v9955_v15 = vld [vmem:[%s14334_s1 + $0xd00] ss:$16 sps:$4 sm:$0xff]   ;;  %v9958_v16 = vld [vmem:[%s14334_s1 + $0xd08] ss:$16 sps:$4 sm:$0xff]  }
 0x16c   :  { %6651 = vmatprep.subr.bf16.mxu0 %v9879_v17  ;;  %7307 = vmatprep.subr.bf16.mxu1 %v9882_v18  ;;  %v9963_v17 = vld [vmem:[%s14334_s1 + $0xd24] ss:$16 sps:$4 sm:$0xff]   ;;  %v9966_v18 = vld [vmem:[%s14334_s1 + $0xd2c] ss:$16 sps:$4 sm:$0xff]  }
 0x16f   :  { %6652 = vmatpush1.bf16.msra.mxu0 %v9877_v19  ;;  %7308 = vmatpush1.bf16.msra.mxu1 %v9880_v20  ;;  %v9961_v19 = vld [vmem:[%s14334_s1 + $0xd20] ss:$16 sps:$4 sm:$0xff]   ;;  %v9964_v20 = vld [vmem:[%s14334_s1 + $0xd28] ss:$16 sps:$4 sm:$0xff]  }
 0x170   :  { %6653 = vmatprep.subr.bf16.mxu0 %v9885_v22  ;;  %7309 = vmatprep.subr.bf16.mxu1 %v9888_v23  ;;  %v9969_v22 = vld [vmem:[%s14334_s1 + $0xd44] ss:$16 sps:$4 sm:$0xff]   ;;  %v9972_v23 = vld [vmem:[%s14334_s1 + $0xd4c] ss:$16 sps:$4 sm:$0xff]  }
 0x173   :  { %6654 = vmatpush1.bf16.msra.mxu0 %v9883_v24  ;;  %7310 = vmatpush1.bf16.msra.mxu1 %v9886_v13  ;;  %v9967_v24 = vld [vmem:[%s14334_s1 + $0xd40] ss:$16 sps:$4 sm:$0xff]   ;;  %v9970_v13 = vld [vmem:[%s14334_s1 + $0xd48] ss:$16 sps:$4 sm:$0xff]  }
 0x174   :  { %6655 = vmatprep.subr.bf16.mxu0 %v9891_v27  ;;  %7311 = vmatprep.subr.bf16.mxu1 %v9894_v28  ;;  %v9975_v27 = vld [vmem:[%s14334_s1 + $0xd64] ss:$16 sps:$4 sm:$0xff]   ;;  %v9978_v28 = vld [vmem:[%s14334_s1 + $0xd6c] ss:$16 sps:$4 sm:$0xff]  }
 0x177   :  { %6656 = vmatpush1.bf16.msra.mxu0 %v9889_v29  ;;  %7312 = vmatpush1.bf16.msra.mxu1 %v9892_v14  ;;  %v9973_v29 = vld [vmem:[%s14334_s1 + $0xd60] ss:$16 sps:$4 sm:$0xff]   ;;  %v9976_v14 = vld [vmem:[%s14334_s1 + $0xd68] ss:$16 sps:$4 sm:$0xff]  }
 0x178   :  { %6657 = vmatprep.subr.bf16.mxu0 %v9897_v30  ;;  %7313 = vmatprep.subr.bf16.mxu1 %v9900_v31  ;;  %v9981_v30 = vld [vmem:[%s14334_s1 + $0xd84] ss:$16 sps:$4 sm:$0xff]   ;;  %v9984_v31 = vld [vmem:[%s14334_s1 + $0xd8c] ss:$16 sps:$4 sm:$0xff]  }
 0x17b   :  { %6658 = vmatpush1.bf16.msra.mxu0 %v9895_v33  ;;  %7314 = vmatpush1.bf16.msra.mxu1 %v9898_v26  ;;  %v9987_v33 = vld [vmem:[%s14334_s1 + $0xda4] ss:$16 sps:$4 sm:$0xff]   ;;  %v9990_v26 = vld [vmem:[%s14334_s1 + $0xdac] ss:$16 sps:$4 sm:$0xff]  }
 0x17c   :  { %6659 = vmatprep.subr.bf16.mxu0 %v9903_v36  ;;  %7315 = vmatprep.subr.bf16.mxu1 %v9906_v37  ;;  %v9985_v36 = vld [vmem:[%s14334_s1 + $0xda0] ss:$16 sps:$4 sm:$0xff]   ;;  %v9988_v37 = vld [vmem:[%s14334_s1 + $0xda8] ss:$16 sps:$4 sm:$0xff]  }
 0x17f   :  { %6660 = vmatpush1.bf16.msra.mxu0 %v9901_v21  ;;  %7316 = vmatpush1.bf16.msra.mxu1 %v9904_v39  ;;  %v9993_v21 = vld [vmem:[%s14334_s1 + $0xdc4] ss:$16 sps:$4 sm:$0xff]   ;;  %v9996_v39 = vld [vmem:[%s14334_s1 + $0xdcc] ss:$16 sps:$4 sm:$0xff]  }
 0x180   :  { %6670 = vmatprep.subr.bf16.mxu0 %v9909_v40  ;;  %7326 = vmatprep.subr.bf16.mxu1 %v9912_v41  ;;  %v9991_v40 = vld [vmem:[%s14334_s1 + $0xdc0] ss:$16 sps:$4 sm:$0xff]   ;;  %v9994_v41 = vld [vmem:[%s14334_s1 + $0xdc8] ss:$16 sps:$4 sm:$0xff]  }
 0x182   :  { %6662 = vmatmul.mubr.bf16.vlgmr.msra.gmra.mrb[0].mxu0 %v1170_v43  ;;  %7318 = vmatmul.mubr.bf16.vlgmr.msra.gmra.mrb[0].mxu1 %v1170_v43  ;;  %v10002_v43 = vld [vmem:[%s14334_s1 + $0xdec] ss:$16 sps:$4 sm:$0xff]  }
 0x183   :  { %6671 = vmatpush1.bf16.msra.mxu0 %v9907_v44  ;;  %7327 = vmatpush1.bf16.msra.mxu1 %v9910_v45  ;;  %v9997_v44 = vld [vmem:[%s14334_s1 + $0xde0] ss:$16 sps:$4 sm:$0xff]   ;;  %v10000_v45 = vld [vmem:[%s14334_s1 + $0xde8] ss:$16 sps:$4 sm:$0xff]  }
 0x184   :  { %6672 = vmatprep.subr.bf16.mxu0 %v9915_v46  ;;  %7328 = vmatprep.subr.bf16.mxu1 %v9918_v35  ;;  %v10006_v46 = vld [vmem:[%s14334_s1 + $0xe04] ss:$16 sps:$4 sm:$0xff]   ;;  %v10009_v35 = vld [vmem:[%s14334_s1 + $0xe0c] ss:$16 sps:$4 sm:$0xff]  }
 0x185   :  { %6702 = vmatprep.mubr.bf16.mxu0 %v12203_v47  ;;  %7358 = vmatprep.mubr.bf16.mxu1 %v12203_v47 }
 0x187   :  { %6673 = vmatpush1.bf16.msra.mxu0 %v9913_v48  ;;  %7329 = vmatpush1.bf16.msra.mxu1 %v9916_v50  ;;  %v12389_v48 = vrot.slane %v12172_v38, %v11095_v49  ;;  %v10004_v50 = vld [vmem:[%s14334_s1 + $0xe00] ss:$16 sps:$4 sm:$0xff]   ;;  %v10015_v38 = vld [vmem:[%s14334_s1 + $0xe2c] ss:$16 sps:$4 sm:$0xff]  }
 0x188   :  { %6674 = vmatprep.subr.bf16.mxu0 %v9921_v51  ;;  %7330 = vmatprep.subr.bf16.mxu1 %v9924_v53  ;;  %v10007_v51 = vld [vmem:[%s14334_s1 + $0xe08] ss:$16 sps:$4 sm:$0xff]   ;;  %v10012_v53 = vld [vmem:[%s14334_s1 + $0xe24] ss:$16 sps:$4 sm:$0xff]  }
 0x18b   :  { %6675 = vmatpush1.bf16.msra.mxu0 %v9919_v54  ;;  %7331 = vmatpush1.bf16.msra.mxu1 %v9922_v55  ;;  %v1173_v54 = vcombine.high %v12203_v47, %v12203_v47  ;;  %v10010_v55 = vld [vmem:[%s14334_s1 + $0xe20] ss:$16 sps:$4 sm:$0xff]   ;;  %v10018_v47 = vld [vmem:[%s14334_s1 + $0xe44] ss:$16 sps:$4 sm:$0xff]  }
 0x18c   :  { %6676 = vmatprep.subr.bf16.mxu0 %v9927_v56  ;;  %7332 = vmatprep.subr.bf16.mxu1 %v9930_v57  ;;  %v10013_v56 = vld [vmem:[%s14334_s1 + $0xe28] ss:$16 sps:$4 sm:$0xff]   ;;  %v10021_v57 = vld [vmem:[%s14334_s1 + $0xe4c] ss:$16 sps:$4 sm:$0xff]  }
 0x18f   :  { %6677 = vmatpush1.bf16.msra.mxu0 %v9925_v58  ;;  %7333 = vmatpush1.bf16.msra.mxu1 %v9928_v59  ;;  %v10016_v58 = vld [vmem:[%s14334_s1 + $0xe40] ss:$16 sps:$4 sm:$0xff]   ;;  %v10019_v59 = vld [vmem:[%s14334_s1 + $0xe48] ss:$16 sps:$4 sm:$0xff]  }
 0x190   :  { %6678 = vmatprep.subr.bf16.mxu0 %v9933_v60  ;;  %7334 = vmatprep.subr.bf16.mxu1 %v9936_v61  ;;  %v10024_v60 = vld [vmem:[%s14334_s1 + $0xe64] ss:$16 sps:$4 sm:$0xff]   ;;  %v10027_v61 = vld [vmem:[%s14334_s1 + $0xe6c] ss:$16 sps:$4 sm:$0xff]  }
 0x193   :  { %6679 = vmatpush1.bf16.msra.mxu0 %v9931_v62  ;;  %7335 = vmatpush1.bf16.msra.mxu1 %v9934_v63  ;;  %v10022_v62 = vld [vmem:[%s14334_s1 + $0xe60] ss:$16 sps:$4 sm:$0xff]   ;;  %v10025_v63 = vld [vmem:[%s14334_s1 + $0xe68] ss:$16 sps:$4 sm:$0xff]  }
 0x194   :  { %6680 = vmatprep.subr.bf16.mxu0 %v9939_v0  ;;  %7336 = vmatprep.subr.bf16.mxu1 %v9942_v1  ;;  %v10030_v0 = vld [vmem:[%s14334_s1 + $0xe84] ss:$16 sps:$4 sm:$0xff]   ;;  %v10033_v1 = vld [vmem:[%s14334_s1 + $0xe8c] ss:$16 sps:$4 sm:$0xff]  }
 0x197   :  { %6681 = vmatpush1.bf16.msra.mxu0 %v9937_v2  ;;  %7337 = vmatpush1.bf16.msra.mxu1 %v9940_v3  ;;  %v10028_v2 = vld [vmem:[%s14334_s1 + $0xe80] ss:$16 sps:$4 sm:$0xff]   ;;  %v10031_v3 = vld [vmem:[%s14334_s1 + $0xe88] ss:$16 sps:$4 sm:$0xff]  }
 0x198   :  { %6682 = vmatprep.subr.bf16.mxu0 %v9945_v4  ;;  %7338 = vmatprep.subr.bf16.mxu1 %v9948_v5  ;;  %v10036_v4 = vld [vmem:[%s14334_s1 + $0xea4] ss:$16 sps:$4 sm:$0xff]   ;;  %v10039_v5 = vld [vmem:[%s14334_s1 + $0xeac] ss:$16 sps:$4 sm:$0xff]  }
 0x19b   :  { %6683 = vmatpush1.bf16.msra.mxu0 %v9943_v6  ;;  %7339 = vmatpush1.bf16.msra.mxu1 %v9946_v7  ;;  %v10034_v6 = vld [vmem:[%s14334_s1 + $0xea0] ss:$16 sps:$4 sm:$0xff]   ;;  %v10037_v7 = vld [vmem:[%s14334_s1 + $0xea8] ss:$16 sps:$4 sm:$0xff]  }
 0x19c   :  { %6684 = vmatprep.subr.bf16.mxu0 %v9951_v8  ;;  %7340 = vmatprep.subr.bf16.mxu1 %v9954_v9  ;;  %v10042_v8 = vld [vmem:[%s14334_s1 + $0xec4] ss:$16 sps:$4 sm:$0xff]   ;;  %v10045_v9 = vld [vmem:[%s14334_s1 + $0xecc] ss:$16 sps:$4 sm:$0xff]  }
 0x19f   :  { %6685 = vmatpush1.bf16.msra.mxu0 %v9949_v10  ;;  %7341 = vmatpush1.bf16.msra.mxu1 %v9952_v11  ;;  %v10040_v10 = vld [vmem:[%s14334_s1 + $0xec0] ss:$16 sps:$4 sm:$0xff]   ;;  %v10043_v11 = vld [vmem:[%s14334_s1 + $0xec8] ss:$16 sps:$4 sm:$0xff]  }
 0x1a0   :  { %6686 = vmatprep.subr.bf16.mxu0 %v9957_v12  ;;  %7342 = vmatprep.subr.bf16.mxu1 %v9960_v52  ;;  %v10048_v12 = vld [vmem:[%s14334_s1 + $0xee4] ss:$16 sps:$4 sm:$0xff]   ;;  %v10051_v52 = vld [vmem:[%s14334_s1 + $0xeec] ss:$16 sps:$4 sm:$0xff]  }
 0x1a3   :  { %6687 = vmatpush1.bf16.msra.mxu0 %v9955_v15  ;;  %7343 = vmatpush1.bf16.msra.mxu1 %v9958_v16  ;;  %v10046_v15 = vld [vmem:[%s14334_s1 + $0xee0] ss:$16 sps:$4 sm:$0xff]   ;;  %v10049_v16 = vld [vmem:[%s14334_s1 + $0xee8] ss:$16 sps:$4 sm:$0xff]  }
 0x1a4   :  { %6688 = vmatprep.subr.bf16.mxu0 %v9963_v17  ;;  %7344 = vmatprep.subr.bf16.mxu1 %v9966_v18  ;;  %v10054_v17 = vld [vmem:[%s14334_s1 + $0xf04] ss:$16 sps:$4 sm:$0xff]   ;;  %v10057_v18 = vld [vmem:[%s14334_s1 + $0xf0c] ss:$16 sps:$4 sm:$0xff]  }
 0x1a7   :  { %6689 = vmatpush1.bf16.msra.mxu0 %v9961_v19  ;;  %7345 = vmatpush1.bf16.msra.mxu1 %v9964_v20  ;;  %v10052_v19 = vld [vmem:[%s14334_s1 + $0xf00] ss:$16 sps:$4 sm:$0xff]   ;;  %v10055_v20 = vld [vmem:[%s14334_s1 + $0xf08] ss:$16 sps:$4 sm:$0xff]  }
 0x1a8   :  { %6690 = vmatprep.subr.bf16.mxu0 %v9969_v22  ;;  %7346 = vmatprep.subr.bf16.mxu1 %v9972_v23  ;;  %v10060_v22 = vld [vmem:[%s14334_s1 + $0xf24] ss:$16 sps:$4 sm:$0xff]   ;;  %v10063_v23 = vld [vmem:[%s14334_s1 + $0xf2c] ss:$16 sps:$4 sm:$0xff]  }
 0x1ab   :  { %6691 = vmatpush1.bf16.msra.mxu0 %v9967_v24  ;;  %7347 = vmatpush1.bf16.msra.mxu1 %v9970_v13  ;;  %v10058_v24 = vld [vmem:[%s14334_s1 + $0xf20] ss:$16 sps:$4 sm:$0xff]   ;;  %v10061_v13 = vld [vmem:[%s14334_s1 + $0xf28] ss:$16 sps:$4 sm:$0xff]  }
 0x1ac   :  { %6692 = vmatprep.subr.bf16.mxu0 %v9975_v27  ;;  %7348 = vmatprep.subr.bf16.mxu1 %v9978_v28  ;;  %v10066_v27 = vld [vmem:[%s14334_s1 + $0xf44] ss:$16 sps:$4 sm:$0xff]   ;;  %v10069_v28 = vld [vmem:[%s14334_s1 + $0xf4c] ss:$16 sps:$4 sm:$0xff]  }
 0x1af   :  { %6693 = vmatpush1.bf16.msra.mxu0 %v9973_v29  ;;  %7349 = vmatpush1.bf16.msra.mxu1 %v9976_v14  ;;  %v10064_v29 = vld [vmem:[%s14334_s1 + $0xf40] ss:$16 sps:$4 sm:$0xff]   ;;  %v10067_v14 = vld [vmem:[%s14334_s1 + $0xf48] ss:$16 sps:$4 sm:$0xff]  }
 0x1b0   :  { %6694 = vmatprep.subr.bf16.mxu0 %v9981_v30  ;;  %7350 = vmatprep.subr.bf16.mxu1 %v9984_v31  ;;  %v10072_v30 = vld [vmem:[%s14334_s1 + $0xf64] ss:$16 sps:$4 sm:$0xff]   ;;  %v10075_v31 = vld [vmem:[%s14334_s1 + $0xf6c] ss:$16 sps:$4 sm:$0xff]  }
 0x1b3   :  { %6695 = vmatpush1.bf16.msra.mxu0 %v9979_v25  ;;  %7351 = vmatpush1.bf16.msra.mxu1 %v9982_v32  ;;  %v10070_v25 = vld [vmem:[%s14334_s1 + $0xf60] ss:$16 sps:$4 sm:$0xff]   ;;  %v10073_v32 = vld [vmem:[%s14334_s1 + $0xf68] ss:$16 sps:$4 sm:$0xff]  }
 0x1b4   :  { %6696 = vmatprep.subr.bf16.mxu0 %v9987_v33  ;;  %7352 = vmatprep.subr.bf16.mxu1 %v9990_v26  ;;  %v10078_v33 = vld [vmem:[%s14334_s1 + $0xf84] ss:$16 sps:$4 sm:$0xff]   ;;  %v10081_v26 = vld [vmem:[%s14334_s1 + $0xf8c] ss:$16 sps:$4 sm:$0xff]  }
 0x1b7   :  { %6697 = vmatpush1.bf16.msra.mxu0 %v9985_v36  ;;  %7353 = vmatpush1.bf16.msra.mxu1 %v9988_v37  ;;  %v10076_v36 = vld [vmem:[%s14334_s1 + $0xf80] ss:$16 sps:$4 sm:$0xff]   ;;  %v10079_v37 = vld [vmem:[%s14334_s1 + $0xf88] ss:$16 sps:$4 sm:$0xff]  }
 0x1b8   :  { %6698 = vmatprep.subr.bf16.mxu0 %v9993_v21  ;;  %7354 = vmatprep.subr.bf16.mxu1 %v9996_v39  ;;  %v10084_v21 = vld [vmem:[%s14334_s1 + $0xfa4] ss:$16 sps:$4 sm:$0xff]   ;;  %v10087_v39 = vld [vmem:[%s14334_s1 + $0xfac] ss:$16 sps:$4 sm:$0xff]  }
 0x1bb   :  { %6699 = vmatpush1.bf16.msra.mxu0 %v9991_v40  ;;  %7355 = vmatpush1.bf16.msra.mxu1 %v9994_v41  ;;  %v10082_v40 = vld [vmem:[%s14334_s1 + $0xfa0] ss:$16 sps:$4 sm:$0xff]   ;;  %v10085_v41 = vld [vmem:[%s14334_s1 + $0xfa8] ss:$16 sps:$4 sm:$0xff]  }
 0x1bc   :  { %6700 = vmatprep.subr.bf16.mxu0 %v9999_v34  ;;  %7356 = vmatprep.subr.bf16.mxu1 %v10002_v43  ;;  %v10090_v34 = vld [vmem:[%s14334_s1 + $0xfc4] ss:$16 sps:$4 sm:$0xff]   ;;  %v10093_v43 = vld [vmem:[%s14334_s1 + $0xfcc] ss:$16 sps:$4 sm:$0xff]  }
 0x1bf   :  { %6701 = vmatpush1.bf16.msra.mxu0 %v9997_v44  ;;  %7357 = vmatpush1.bf16.msra.mxu1 %v10000_v45  ;;  %v12566_v44 = vld [vmem:[%s14333_s0 + $0x10] sm:$0xff] }
 0x1c0   :  { %6711 = vmatprep.subr.bf16.mxu0 %v10006_v46  ;;  %7367 = vmatprep.subr.bf16.mxu1 %v10009_v35  ;;  %v10088_v45 = vld [vmem:[%s14334_s1 + $0xfc0] ss:$16 sps:$4 sm:$0xff]   ;;  %v10091_v46 = vld [vmem:[%s14334_s1 + $0xfc8] ss:$16 sps:$4 sm:$0xff]   ;;  %v10096_v35 = vld [vmem:[%s14334_s1 + $0xfe4] ss:$16 sps:$4 sm:$0xff]  }
 0x1c2   :  { %6703 = vmatmul.mubr.bf16.vlgmr.msra.gmra.mrb[0].mxu0 %v12389_v48  ;;  %7359 = vmatmul.mubr.bf16.vlgmr.msra.gmra.mrb[0].mxu1 %v12389_v48 }
 0x1c3   :  { %6712 = vmatpush1.bf16.msra.mxu0 %v10004_v50  ;;  %7368 = vmatpush1.bf16.msra.mxu1 %v10007_v51  ;;  %v10099_v50 = vld [vmem:[%s14334_s1 + $0xfec] ss:$16 sps:$4 sm:$0xff]   ;;  %v12582_v51 = vrot.slane %v12566_v44, %v11095_v49 }
 0x1c4   :  { %6713 = vmatprep.subr.bf16.mxu0 %v10012_v53  ;;  %7369 = vmatprep.subr.bf16.mxu1 %v10015_v38  ;;  %v10094_v53 = vld [vmem:[%s14334_s1 + $0xfe0] ss:$16 sps:$4 sm:$0xff]   ;;  %v10097_v38 = vld [vmem:[%s14334_s1 + $0xfe8] ss:$16 sps:$4 sm:$0xff]  }
 0x1c5   :  { %6743 = vmatprep.mubr.bf16.mxu0 %v1173_v54  ;;  %7399 = vmatprep.mubr.bf16.mxu1 %v1173_v54  ;;  %v10102_v54 = vld [vmem:[%s14334_s1 + $0x1004] ss:$16 sps:$4 sm:$0xff]  }
 0x1c7   :  { %6714 = vmatpush1.bf16.msra.mxu0 %v10010_v55  ;;  %7370 = vmatpush1.bf16.msra.mxu1 %v10013_v56  ;;  %v10105_v55 = vld [vmem:[%s14334_s1 + $0x100c] ss:$16 sps:$4 sm:$0xff]   ;;  %v1189_v56 = vcombine.high %v12582_v51, %v12582_v51 }
 0x1c8   :  { %6715 = vmatprep.subr.bf16.mxu0 %v10018_v47  ;;  %7371 = vmatprep.subr.bf16.mxu1 %v10021_v57  ;;  %v1171_v47 = vcombine.high %v12389_v48, %v12389_v48  ;;  %v10100_v57 = vld [vmem:[%s14334_s1 + $0x1000] ss:$16 sps:$4 sm:$0xff]   ;;  %v10111_v48 = vld [vmem:[%s14334_s1 + $0x102c] ss:$16 sps:$4 sm:$0xff]  }
 0x1cb   :  { %6716 = vmatpush1.bf16.msra.mxu0 %v10016_v58  ;;  %7372 = vmatpush1.bf16.msra.mxu1 %v10019_v59  ;;  %v10103_v58 = vld [vmem:[%s14334_s1 + $0x1008] ss:$16 sps:$4 sm:$0xff]   ;;  %v10108_v59 = vld [vmem:[%s14334_s1 + $0x1024] ss:$16 sps:$4 sm:$0xff]  }
 0x1cc   :  { %6717 = vmatprep.subr.bf16.mxu0 %v10024_v60  ;;  %7373 = vmatprep.subr.bf16.mxu1 %v10027_v61  ;;  %v12613_v60 = vrot.slane %v1189_v56, %v11095_v49  ;;  %v10106_v61 = vld [vmem:[%s14334_s1 + $0x1020] ss:$16 sps:$4 sm:$0xff]   ;;  %v10187_v56 = vld [vmem:[%s14334_s1 + $0x11c8] ss:$16 sps:$4 sm:$0xff]  }
 0x1cf   :  { %6718 = vmatpush1.bf16.msra.mxu0 %v10022_v62  ;;  %7374 = vmatpush1.bf16.msra.mxu1 %v10025_v63  ;;  %v10109_v62 = vld [vmem:[%s14334_s1 + $0x1028] ss:$16 sps:$4 sm:$0xff]   ;;  %v10114_v63 = vld [vmem:[%s14334_s1 + $0x1044] ss:$16 sps:$4 sm:$0xff]  }
 0x1d0   :  { %6719 = vmatprep.subr.bf16.mxu0 %v10030_v0  ;;  %7375 = vmatprep.subr.bf16.mxu1 %v10033_v1  ;;  %v10117_v0 = vld [vmem:[%s14334_s1 + $0x104c] ss:$16 sps:$4 sm:$0xff]   ;;  %v10112_v1 = vld [vmem:[%s14334_s1 + $0x1040] ss:$16 sps:$4 sm:$0xff]  }
 0x1d3   :  { %6720 = vmatpush1.bf16.msra.mxu0 %v10028_v2  ;;  %7376 = vmatpush1.bf16.msra.mxu1 %v10031_v3  ;;  %v10115_v2 = vld [vmem:[%s14334_s1 + $0x1048] ss:$16 sps:$4 sm:$0xff]   ;;  %v10120_v3 = vld [vmem:[%s14334_s1 + $0x1064] ss:$16 sps:$4 sm:$0xff]  }
 0x1d4   :  { %6721 = vmatprep.subr.bf16.mxu0 %v10036_v4  ;;  %7377 = vmatprep.subr.bf16.mxu1 %v10039_v5  ;;  %v10123_v4 = vld [vmem:[%s14334_s1 + $0x106c] ss:$16 sps:$4 sm:$0xff]   ;;  %v10118_v5 = vld [vmem:[%s14334_s1 + $0x1060] ss:$16 sps:$4 sm:$0xff]  }
 0x1d7   :  { %6722 = vmatpush1.bf16.msra.mxu0 %v10034_v6  ;;  %7378 = vmatpush1.bf16.msra.mxu1 %v10037_v7  ;;  %v10121_v6 = vld [vmem:[%s14334_s1 + $0x1068] ss:$16 sps:$4 sm:$0xff]   ;;  %v10126_v7 = vld [vmem:[%s14334_s1 + $0x1084] ss:$16 sps:$4 sm:$0xff]  }
 0x1d8   :  { %6723 = vmatprep.subr.bf16.mxu0 %v10042_v8  ;;  %7379 = vmatprep.subr.bf16.mxu1 %v10045_v9  ;;  %v10129_v8 = vld [vmem:[%s14334_s1 + $0x108c] ss:$16 sps:$4 sm:$0xff]   ;;  %v10124_v9 = vld [vmem:[%s14334_s1 + $0x1080] ss:$16 sps:$4 sm:$0xff]  }
 0x1db   :  { %6724 = vmatpush1.bf16.msra.mxu0 %v10040_v10  ;;  %7380 = vmatpush1.bf16.msra.mxu1 %v10043_v11  ;;  %v10127_v10 = vld [vmem:[%s14334_s1 + $0x1088] ss:$16 sps:$4 sm:$0xff]   ;;  %v10132_v11 = vld [vmem:[%s14334_s1 + $0x10a4] ss:$16 sps:$4 sm:$0xff]  }
 0x1dc   :  { %6725 = vmatprep.subr.bf16.mxu0 %v10048_v12  ;;  %7381 = vmatprep.subr.bf16.mxu1 %v10051_v52  ;;  %v10135_v12 = vld [vmem:[%s14334_s1 + $0x10ac] ss:$16 sps:$4 sm:$0xff]   ;;  %v10130_v52 = vld [vmem:[%s14334_s1 + $0x10a0] ss:$16 sps:$4 sm:$0xff]  }
 0x1df   :  { %6726 = vmatpush1.bf16.msra.mxu0 %v10046_v15  ;;  %7382 = vmatpush1.bf16.msra.mxu1 %v10049_v16  ;;  %v10133_v15 = vld [vmem:[%s14334_s1 + $0x10a8] ss:$16 sps:$4 sm:$0xff]   ;;  %v10138_v16 = vld [vmem:[%s14334_s1 + $0x10c4] ss:$16 sps:$4 sm:$0xff]  }
 0x1e0   :  { %6727 = vmatprep.subr.bf16.mxu0 %v10054_v17  ;;  %7383 = vmatprep.subr.bf16.mxu1 %v10057_v18  ;;  %v10141_v17 = vld [vmem:[%s14334_s1 + $0x10cc] ss:$16 sps:$4 sm:$0xff]   ;;  %v10136_v18 = vld [vmem:[%s14334_s1 + $0x10c0] ss:$16 sps:$4 sm:$0xff]  }
 0x1e3   :  { %6728 = vmatpush1.bf16.msra.mxu0 %v10052_v19  ;;  %7384 = vmatpush1.bf16.msra.mxu1 %v10055_v20  ;;  %v10139_v19 = vld [vmem:[%s14334_s1 + $0x10c8] ss:$16 sps:$4 sm:$0xff]   ;;  %v10144_v20 = vld [vmem:[%s14334_s1 + $0x10e4] ss:$16 sps:$4 sm:$0xff]  }
 0x1e4   :  { %6729 = vmatprep.subr.bf16.mxu0 %v10060_v22  ;;  %7385 = vmatprep.subr.bf16.mxu1 %v10063_v23  ;;  %v10147_v22 = vld [vmem:[%s14334_s1 + $0x10ec] ss:$16 sps:$4 sm:$0xff]   ;;  %v10142_v23 = vld [vmem:[%s14334_s1 + $0x10e0] ss:$16 sps:$4 sm:$0xff]  }
 0x1e7   :  { %6730 = vmatpush1.bf16.msra.mxu0 %v10058_v24  ;;  %7386 = vmatpush1.bf16.msra.mxu1 %v10061_v13  ;;  %v10145_v24 = vld [vmem:[%s14334_s1 + $0x10e8] ss:$16 sps:$4 sm:$0xff]   ;;  %v10150_v13 = vld [vmem:[%s14334_s1 + $0x1104] ss:$16 sps:$4 sm:$0xff]  }
 0x1e8   :  { %6731 = vmatprep.subr.bf16.mxu0 %v10066_v27  ;;  %7387 = vmatprep.subr.bf16.mxu1 %v10069_v28  ;;  %v10153_v27 = vld [vmem:[%s14334_s1 + $0x110c] ss:$16 sps:$4 sm:$0xff]   ;;  %v10148_v28 = vld [vmem:[%s14334_s1 + $0x1100] ss:$16 sps:$4 sm:$0xff]  }
 0x1eb   :  { %6732 = vmatpush1.bf16.msra.mxu0 %v10064_v29  ;;  %7388 = vmatpush1.bf16.msra.mxu1 %v10067_v14  ;;  %v10151_v29 = vld [vmem:[%s14334_s1 + $0x1108] ss:$16 sps:$4 sm:$0xff]   ;;  %v10156_v14 = vld [vmem:[%s14334_s1 + $0x1124] ss:$16 sps:$4 sm:$0xff]  }
 0x1ec   :  { %6733 = vmatprep.subr.bf16.mxu0 %v10072_v30  ;;  %7389 = vmatprep.subr.bf16.mxu1 %v10075_v31  ;;  %v10159_v30 = vld [vmem:[%s14334_s1 + $0x112c] ss:$16 sps:$4 sm:$0xff]   ;;  %v10154_v31 = vld [vmem:[%s14334_s1 + $0x1120] ss:$16 sps:$4 sm:$0xff]  }
 0x1ef   :  { %6734 = vmatpush1.bf16.msra.mxu0 %v10070_v25  ;;  %7390 = vmatpush1.bf16.msra.mxu1 %v10073_v32  ;;  %v10157_v25 = vld [vmem:[%s14334_s1 + $0x1128] ss:$16 sps:$4 sm:$0xff]   ;;  %v10162_v32 = vld [vmem:[%s14334_s1 + $0x1144] ss:$16 sps:$4 sm:$0xff]  }
 0x1f0   :  { %6735 = vmatprep.subr.bf16.mxu0 %v10078_v33  ;;  %7391 = vmatprep.subr.bf16.mxu1 %v10081_v26  ;;  %v10165_v33 = vld [vmem:[%s14334_s1 + $0x114c] ss:$16 sps:$4 sm:$0xff]   ;;  %v10160_v26 = vld [vmem:[%s14334_s1 + $0x1140] ss:$16 sps:$4 sm:$0xff]  }
 0x1f3   :  { %6736 = vmatpush1.bf16.msra.mxu0 %v10076_v36  ;;  %7392 = vmatpush1.bf16.msra.mxu1 %v10079_v37  ;;  %v10163_v36 = vld [vmem:[%s14334_s1 + $0x1148] ss:$16 sps:$4 sm:$0xff]   ;;  %v10168_v37 = vld [vmem:[%s14334_s1 + $0x1164] ss:$16 sps:$4 sm:$0xff]  }
 0x1f4   :  { %6737 = vmatprep.subr.bf16.mxu0 %v10084_v21  ;;  %7393 = vmatprep.subr.bf16.mxu1 %v10087_v39  ;;  %v10171_v21 = vld [vmem:[%s14334_s1 + $0x116c] ss:$16 sps:$4 sm:$0xff]   ;;  %v10166_v39 = vld [vmem:[%s14334_s1 + $0x1160] ss:$16 sps:$4 sm:$0xff]  }
 0x1f7   :  { %6738 = vmatpush1.bf16.msra.mxu0 %v10082_v40  ;;  %7394 = vmatpush1.bf16.msra.mxu1 %v10085_v41  ;;  %v10169_v40 = vld [vmem:[%s14334_s1 + $0x1168] ss:$16 sps:$4 sm:$0xff]   ;;  %v10174_v41 = vld [vmem:[%s14334_s1 + $0x1184] ss:$16 sps:$4 sm:$0xff]  }
 0x1f8   :  { %6739 = vmatprep.subr.bf16.mxu0 %v10090_v34  ;;  %7395 = vmatprep.subr.bf16.mxu1 %v10093_v43  ;;  %v10177_v34 = vld [vmem:[%s14334_s1 + $0x118c] ss:$16 sps:$4 sm:$0xff]   ;;  %v10172_v43 = vld [vmem:[%s14334_s1 + $0x1180] ss:$16 sps:$4 sm:$0xff]  }
 0x1fb   :  { %6740 = vmatpush1.bf16.msra.mxu0 %v10088_v45  ;;  %7396 = vmatpush1.bf16.msra.mxu1 %v10091_v46  ;;  %v10175_v45 = vld [vmem:[%s14334_s1 + $0x1188] ss:$16 sps:$4 sm:$0xff]   ;;  %v10180_v46 = vld [vmem:[%s14334_s1 + $0x11a4] ss:$16 sps:$4 sm:$0xff]  }
 0x1fc   :  { %6741 = vmatprep.subr.bf16.mxu0 %v10096_v35  ;;  %7397 = vmatprep.subr.bf16.mxu1 %v10099_v50  ;;  %v10183_v35 = vld [vmem:[%s14334_s1 + $0x11ac] ss:$16 sps:$4 sm:$0xff]   ;;  %v10178_v50 = vld [vmem:[%s14334_s1 + $0x11a0] ss:$16 sps:$4 sm:$0xff]  }
 0x1ff   :  { %6742 = vmatpush1.bf16.msra.mxu0 %v10094_v53  ;;  %7398 = vmatpush1.bf16.msra.mxu1 %v10097_v38  ;;  %v10181_v53 = vld [vmem:[%s14334_s1 + $0x11a8] ss:$16 sps:$4 sm:$0xff]   ;;  %v10186_v38 = vld [vmem:[%s14334_s1 + $0x11c4] ss:$16 sps:$4 sm:$0xff]  }
 0x200   :  { %6752 = vmatprep.subr.bf16.mxu0 %v10102_v54  ;;  %7408 = vmatprep.subr.bf16.mxu1 %v10105_v55  ;;  %v10189_v54 = vld [vmem:[%s14334_s1 + $0x11cc] ss:$16 sps:$4 sm:$0xff]   ;;  %v10184_v55 = vld [vmem:[%s14334_s1 + $0x11c0] ss:$16 sps:$4 sm:$0xff]  }
 0x202   :  { %6744 = vmatmul.mubr.bf16.vlgmr.msra.gmra.mrb[0].mxu0 %v1171_v47  ;;  %7400 = vmatmul.mubr.bf16.vlgmr.msra.gmra.mrb[0].mxu1 %v1171_v47  ;;  %v10192_v47 = vld [vmem:[%s14334_s1 + $0x11e4] ss:$16 sps:$4 sm:$0xff]  }
 0x203   :  { %6753 = vmatpush1.bf16.msra.mxu0 %v10100_v57  ;;  %7409 = vmatpush1.bf16.msra.mxu1 %v10103_v58  ;;  %v10195_v57 = vld [vmem:[%s14334_s1 + $0x11ec] ss:$16 sps:$4 sm:$0xff]   ;;  %v10190_v58 = vld [vmem:[%s14334_s1 + $0x11e0] ss:$16 sps:$4 sm:$0xff]  }
 0x204   :  { %6754 = vmatprep.subr.bf16.mxu0 %v10108_v59  ;;  %7410 = vmatprep.subr.bf16.mxu1 %v10111_v48  ;;  %v10193_v59 = vld [vmem:[%s14334_s1 + $0x11e8] ss:$16 sps:$4 sm:$0xff]   ;;  %v10198_v48 = vld [vmem:[%s14334_s1 + $0x1204] ss:$16 sps:$4 sm:$0xff]  }
 0x205   :  { %6784 = vmatprep.mubr.bf16.mxu0 %v12613_v60  ;;  %7440 = vmatprep.mubr.bf16.mxu1 %v12613_v60 }
 0x207   :  { %6755 = vmatpush1.bf16.msra.mxu0 %v10106_v61  ;;  %7411 = vmatpush1.bf16.msra.mxu1 %v10109_v62  ;;  %v10201_v61 = vld [vmem:[%s14334_s1 + $0x120c] ss:$16 sps:$4 sm:$0xff]   ;;  %v12799_v62 = vrot.slane %v12582_v51, %v11095_v49 }
 0x208   :  { %6756 = vmatprep.subr.bf16.mxu0 %v10114_v63  ;;  %7412 = vmatprep.subr.bf16.mxu1 %v10117_v0  ;;  %v10196_v63 = vld [vmem:[%s14334_s1 + $0x1200] ss:$16 sps:$4 sm:$0xff]   ;;  %v10199_v0 = vld [vmem:[%s14334_s1 + $0x1208] ss:$16 sps:$4 sm:$0xff]   ;;  %v10207_v51 = vld [vmem:[%s14334_s1 + $0x122c] ss:$16 sps:$4 sm:$0xff]  }
 0x20b   :  { %6757 = vmatpush1.bf16.msra.mxu0 %v10112_v1  ;;  %7413 = vmatpush1.bf16.msra.mxu1 %v10115_v2  ;;  %v10204_v1 = vld [vmem:[%s14334_s1 + $0x1224] ss:$16 sps:$4 sm:$0xff]   ;;  %v1221_v2 = vcombine.high %v12613_v60, %v12613_v60 }
 0x20c   :  { %6758 = vmatprep.subr.bf16.mxu0 %v10120_v3  ;;  %7414 = vmatprep.subr.bf16.mxu1 %v10123_v4  ;;  %v10202_v3 = vld [vmem:[%s14334_s1 + $0x1220] ss:$16 sps:$4 sm:$0xff]   ;;  %v10205_v4 = vld [vmem:[%s14334_s1 + $0x1228] ss:$16 sps:$4 sm:$0xff]   ;;  %v10210_v60 = vld [vmem:[%s14334_s1 + $0x1244] ss:$16 sps:$4 sm:$0xff]  }
 0x20f   :  { %6759 = vmatpush1.bf16.msra.mxu0 %v10118_v5  ;;  %7415 = vmatpush1.bf16.msra.mxu1 %v10121_v6  ;;  %v10213_v5 = vld [vmem:[%s14334_s1 + $0x124c] ss:$16 sps:$4 sm:$0xff]   ;;  %v10208_v6 = vld [vmem:[%s14334_s1 + $0x1240] ss:$16 sps:$4 sm:$0xff]  }
 0x210   :  { %6760 = vmatprep.subr.bf16.mxu0 %v10126_v7  ;;  %7416 = vmatprep.subr.bf16.mxu1 %v10129_v8  ;;  %v10211_v7 = vld [vmem:[%s14334_s1 + $0x1248] ss:$16 sps:$4 sm:$0xff]   ;;  %v10216_v8 = vld [vmem:[%s14334_s1 + $0x1264] ss:$16 sps:$4 sm:$0xff]  }
 0x213   :  { %6761 = vmatpush1.bf16.msra.mxu0 %v10124_v9  ;;  %7417 = vmatpush1.bf16.msra.mxu1 %v10127_v10  ;;  %v10219_v9 = vld [vmem:[%s14334_s1 + $0x126c] ss:$16 sps:$4 sm:$0xff]   ;;  %v10214_v10 = vld [vmem:[%s14334_s1 + $0x1260] ss:$16 sps:$4 sm:$0xff]  }
 0x214   :  { %6762 = vmatprep.subr.bf16.mxu0 %v10132_v11  ;;  %7418 = vmatprep.subr.bf16.mxu1 %v10135_v12  ;;  %v10217_v11 = vld [vmem:[%s14334_s1 + $0x1268] ss:$16 sps:$4 sm:$0xff]   ;;  %v10222_v12 = vld [vmem:[%s14334_s1 + $0x1284] ss:$16 sps:$4 sm:$0xff]  }
 0x217   :  { %6763 = vmatpush1.bf16.msra.mxu0 %v10130_v52  ;;  %7419 = vmatpush1.bf16.msra.mxu1 %v10133_v15  ;;  %v10225_v52 = vld [vmem:[%s14334_s1 + $0x128c] ss:$16 sps:$4 sm:$0xff]   ;;  %v10220_v15 = vld [vmem:[%s14334_s1 + $0x1280] ss:$16 sps:$4 sm:$0xff]  }
 0x218   :  { %6764 = vmatprep.subr.bf16.mxu0 %v10138_v16  ;;  %7420 = vmatprep.subr.bf16.mxu1 %v10141_v17  ;;  %v10223_v16 = vld [vmem:[%s14334_s1 + $0x1288] ss:$16 sps:$4 sm:$0xff]   ;;  %v10228_v17 = vld [vmem:[%s14334_s1 + $0x12a4] ss:$16 sps:$4 sm:$0xff]  }
 0x21b   :  { %6765 = vmatpush1.bf16.msra.mxu0 %v10136_v18  ;;  %7421 = vmatpush1.bf16.msra.mxu1 %v10139_v19  ;;  %v10231_v18 = vld [vmem:[%s14334_s1 + $0x12ac] ss:$16 sps:$4 sm:$0xff]   ;;  %v10226_v19 = vld [vmem:[%s14334_s1 + $0x12a0] ss:$16 sps:$4 sm:$0xff]  }
 0x21c   :  { %6766 = vmatprep.subr.bf16.mxu0 %v10144_v20  ;;  %7422 = vmatprep.subr.bf16.mxu1 %v10147_v22  ;;  %v10229_v20 = vld [vmem:[%s14334_s1 + $0x12a8] ss:$16 sps:$4 sm:$0xff]   ;;  %v10234_v22 = vld [vmem:[%s14334_s1 + $0x12c4] ss:$16 sps:$4 sm:$0xff]  }
 0x21f   :  { %6767 = vmatpush1.bf16.msra.mxu0 %v10142_v23  ;;  %7423 = vmatpush1.bf16.msra.mxu1 %v10145_v24  ;;  %v10237_v23 = vld [vmem:[%s14334_s1 + $0x12cc] ss:$16 sps:$4 sm:$0xff]   ;;  %v10232_v24 = vld [vmem:[%s14334_s1 + $0x12c0] ss:$16 sps:$4 sm:$0xff]  }
 0x220   :  { %6768 = vmatprep.subr.bf16.mxu0 %v10150_v13  ;;  %7424 = vmatprep.subr.bf16.mxu1 %v10153_v27  ;;  %v10235_v13 = vld [vmem:[%s14334_s1 + $0x12c8] ss:$16 sps:$4 sm:$0xff]   ;;  %v10240_v27 = vld [vmem:[%s14334_s1 + $0x12e4] ss:$16 sps:$4 sm:$0xff]  }
 0x223   :  { %6769 = vmatpush1.bf16.msra.mxu0 %v10148_v28  ;;  %7425 = vmatpush1.bf16.msra.mxu1 %v10151_v29  ;;  %v10243_v28 = vld [vmem:[%s14334_s1 + $0x12ec] ss:$16 sps:$4 sm:$0xff]   ;;  %v10238_v29 = vld [vmem:[%s14334_s1 + $0x12e0] ss:$16 sps:$4 sm:$0xff]  }
 0x224   :  { %6770 = vmatprep.subr.bf16.mxu0 %v10156_v14  ;;  %7426 = vmatprep.subr.bf16.mxu1 %v10159_v30  ;;  %v10241_v14 = vld [vmem:[%s14334_s1 + $0x12e8] ss:$16 sps:$4 sm:$0xff]   ;;  %v10246_v30 = vld [vmem:[%s14334_s1 + $0x1304] ss:$16 sps:$4 sm:$0xff]  }
 0x227   :  { %6771 = vmatpush1.bf16.msra.mxu0 %v10154_v31  ;;  %7427 = vmatpush1.bf16.msra.mxu1 %v10157_v25  ;;  %v10249_v31 = vld [vmem:[%s14334_s1 + $0x130c] ss:$16 sps:$4 sm:$0xff]   ;;  %v10244_v25 = vld [vmem:[%s14334_s1 + $0x1300] ss:$16 sps:$4 sm:$0xff]  }
 0x228   :  { %6772 = vmatprep.subr.bf16.mxu0 %v10162_v32  ;;  %7428 = vmatprep.subr.bf16.mxu1 %v10165_v33  ;;  %v10247_v32 = vld [vmem:[%s14334_s1 + $0x1308] ss:$16 sps:$4 sm:$0xff]   ;;  %v10252_v33 = vld [vmem:[%s14334_s1 + $0x1324] ss:$16 sps:$4 sm:$0xff]  }
 0x22b   :  { %6773 = vmatpush1.bf16.msra.mxu0 %v10160_v26  ;;  %7429 = vmatpush1.bf16.msra.mxu1 %v10163_v36  ;;  %v10255_v26 = vld [vmem:[%s14334_s1 + $0x132c] ss:$16 sps:$4 sm:$0xff]  }
 0x22c   :  { %6774 = vmatprep.subr.bf16.mxu0 %v10168_v37  ;;  %7430 = vmatprep.subr.bf16.mxu1 %v10171_v21 }
 0x22f   :  { %6775 = vmatpush1.bf16.msra.mxu0 %v10166_v39  ;;  %7431 = vmatpush1.bf16.msra.mxu1 %v10169_v40 }
 0x230   :  { %6776 = vmatprep.subr.bf16.mxu0 %v10174_v41  ;;  %7432 = vmatprep.subr.bf16.mxu1 %v10177_v34 }
 0x233   :  { %6777 = vmatpush1.bf16.msra.mxu0 %v10172_v43  ;;  %7433 = vmatpush1.bf16.msra.mxu1 %v10175_v45 }
 0x234   :  { %6778 = vmatprep.subr.bf16.mxu0 %v10180_v46  ;;  %7434 = vmatprep.subr.bf16.mxu1 %v10183_v35 }
 0x237   :  { %6779 = vmatpush1.bf16.msra.mxu0 %v10178_v50  ;;  %7435 = vmatpush1.bf16.msra.mxu1 %v10181_v53 }
 0x238   :  { %6780 = vmatprep.subr.bf16.mxu0 %v10186_v38  ;;  %7436 = vmatprep.subr.bf16.mxu1 %v10189_v54 }
 0x23b   :  { %6781 = vmatpush1.bf16.msra.mxu0 %v10184_v55  ;;  %7437 = vmatpush1.bf16.msra.mxu1 %v10187_v56 }
 0x23c   :  { %6782 = vmatprep.subr.bf16.mxu0 %v10192_v47  ;;  %7438 = vmatprep.subr.bf16.mxu1 %v10195_v57 }
 0x23f   :  { %6783 = vmatpush1.bf16.msra.mxu0 %v10190_v58  ;;  %7439 = vmatpush1.bf16.msra.mxu1 %v10193_v59 }
 0x240   :  { %6793 = vmatprep.subr.bf16.mxu0 %v10198_v48  ;;  %7449 = vmatprep.subr.bf16.mxu1 %v10201_v61 }
 0x242   :  { %6785 = vmatmul.mubr.bf16.vlgmr.msra.gmra.mrb[0].mxu0 %v12799_v62  ;;  %7441 = vmatmul.mubr.bf16.vlgmr.msra.gmra.mrb[0].mxu1 %v12799_v62 }
 0x243   :  { %6794 = vmatpush1.bf16.msra.mxu0 %v10196_v63  ;;  %7450 = vmatpush1.bf16.msra.mxu1 %v10199_v0 }
 0x244   :  { %6795 = vmatprep.subr.bf16.mxu0 %v10204_v1  ;;  %7451 = vmatprep.subr.bf16.mxu1 %v10207_v51 }
 0x245   :  { %6825 = vmatprep.mubr.bf16.mxu0 %v1221_v2  ;;  %7481 = vmatprep.mubr.bf16.mxu1 %v1221_v2 }
 0x247   :  { %6796 = vmatpush1.bf16.msra.mxu0 %v10202_v3  ;;  %7452 = vmatpush1.bf16.msra.mxu1 %v10205_v4 }
 0x248   :  { %6797 = vmatprep.subr.bf16.mxu0 %v10210_v60  ;;  %7453 = vmatprep.subr.bf16.mxu1 %v10213_v5 }
 0x24b   :  { %6798 = vmatpush1.bf16.msra.mxu0 %v10208_v6  ;;  %7454 = vmatpush1.bf16.msra.mxu1 %v10211_v7 }
 0x24c   :  { %6799 = vmatprep.subr.bf16.mxu0 %v10216_v8  ;;  %7455 = vmatprep.subr.bf16.mxu1 %v10219_v9 }
 0x24f   :  { %6800 = vmatpush1.bf16.msra.mxu0 %v10214_v10  ;;  %7456 = vmatpush1.bf16.msra.mxu1 %v10217_v11 }
 0x250   :  { %6801 = vmatprep.subr.bf16.mxu0 %v10222_v12  ;;  %7457 = vmatprep.subr.bf16.mxu1 %v10225_v52 }
 0x253   :  { %6802 = vmatpush1.bf16.msra.mxu0 %v10220_v15  ;;  %7458 = vmatpush1.bf16.msra.mxu1 %v10223_v16 }
 0x254   :  { %6803 = vmatprep.subr.bf16.mxu0 %v10228_v17  ;;  %7459 = vmatprep.subr.bf16.mxu1 %v10231_v18 }
 0x257   :  { %6804 = vmatpush1.bf16.msra.mxu0 %v10226_v19  ;;  %7460 = vmatpush1.bf16.msra.mxu1 %v10229_v20 }
 0x258   :  { %6805 = vmatprep.subr.bf16.mxu0 %v10234_v22  ;;  %7461 = vmatprep.subr.bf16.mxu1 %v10237_v23 }
 0x25b   :  { %6806 = vmatpush1.bf16.msra.mxu0 %v10232_v24  ;;  %7462 = vmatpush1.bf16.msra.mxu1 %v10235_v13 }
 0x25c   :  { %6807 = vmatprep.subr.bf16.mxu0 %v10240_v27  ;;  %7463 = vmatprep.subr.bf16.mxu1 %v10243_v28 }
 0x25f   :  { %6808 = vmatpush1.bf16.msra.mxu0 %v10238_v29  ;;  %7464 = vmatpush1.bf16.msra.mxu1 %v10241_v14 }
 0x260   :  { %6809 = vmatprep.subr.bf16.mxu0 %v10246_v30  ;;  %7465 = vmatprep.subr.bf16.mxu1 %v10249_v31 }
 0x261   :  { %10 = vsyncpa [#allocation3], 0  ;;  %v10250_v36 = vld [vmem:[%s14334_s1 + $0x1320] ss:$16 sps:$4 sm:$0xff]   ;;  %v10253_v37 = vld [vmem:[%s14334_s1 + $0x1328] ss:$16 sps:$4 sm:$0xff]   ;;  %v1174_v59 = vcombine.high %v12566_v44, %v12566_v44  ;;  %v1219_v60 = vcombine.high %v12799_v62, %v12799_v62 }
 0x262   :  { %v10258_v21 = vld [vmem:[%s14334_s1 + $0x1344] ss:$16 sps:$4 sm:$0xff]   ;;  %v10261_v39 = vld [vmem:[%s14334_s1 + $0x134c] ss:$16 sps:$4 sm:$0xff]   ;;  %v10256_v40 = vld [vmem:[%s14334_s1 + $0x1340] ss:$16 sps:$4 sm:$0xff]  }
 0x263   :  { %6810 = vmatpush1.bf16.msra.mxu0 %v10244_v25  ;;  %7466 = vmatpush1.bf16.msra.mxu1 %v10247_v32  ;;  %v10259_v41 = vld [vmem:[%s14334_s1 + $0x1348] ss:$16 sps:$4 sm:$0xff]   ;;  %v10264_v34 = vld [vmem:[%s14334_s1 + $0x1364] ss:$16 sps:$4 sm:$0xff]   ;;  %v10267_v43 = vld [vmem:[%s14334_s1 + $0x136c] ss:$16 sps:$4 sm:$0xff]   ;;  %v12988_v0 = vrot.slane %v1174_v59, %v11095_v49 }
 0x264   :  { %6811 = vmatprep.subr.bf16.mxu0 %v10252_v33  ;;  %7467 = vmatprep.subr.bf16.mxu1 %v10255_v26  ;;  %v10262_v45 = vld [vmem:[%s14334_s1 + $0x1360] ss:$16 sps:$4 sm:$0xff]   ;;  %v10265_v46 = vld [vmem:[%s14334_s1 + $0x1368] ss:$16 sps:$4 sm:$0xff]   ;;  %v10270_v35 = vld [vmem:[%s14334_s1 + $0x1384] ss:$16 sps:$4 sm:$0xff]  }
 0x265   :  { %v10273_v50 = vld [vmem:[%s14334_s1 + $0x138c] ss:$16 sps:$4 sm:$0xff]   ;;  %v10268_v53 = vld [vmem:[%s14334_s1 + $0x1380] ss:$16 sps:$4 sm:$0xff]   ;;  %v10271_v38 = vld [vmem:[%s14334_s1 + $0x1388] ss:$16 sps:$4 sm:$0xff]   ;;  %v1190_v4 = vcombine.high %v12988_v0, %v12988_v0 }
 0x266   :  { %v10276_v54 = vld [vmem:[%s14334_s1 + $0x13a4] ss:$16 sps:$4 sm:$0xff]   ;;  %v10279_v55 = vld [vmem:[%s14334_s1 + $0x13ac] ss:$16 sps:$4 sm:$0xff]   ;;  %v10274_v56 = vld [vmem:[%s14334_s1 + $0x13a0] ss:$16 sps:$4 sm:$0xff]  }
 0x267   :  { %6812 = vmatpush1.bf16.msra.mxu0 %v10250_v36  ;;  %7468 = vmatpush1.bf16.msra.mxu1 %v10253_v37  ;;  %v10277_v47 = vld [vmem:[%s14334_s1 + $0x13a8] ss:$16 sps:$4 sm:$0xff]   ;;  %v10282_v57 = vld [vmem:[%s14334_s1 + $0x13c4] ss:$16 sps:$4 sm:$0xff]   ;;  %v10285_v58 = vld [vmem:[%s14334_s1 + $0x13cc] ss:$16 sps:$4 sm:$0xff]   ;;  %v13019_v8 = vrot.slane %v1190_v4, %v11095_v49 }
 0x268   :  { %6813 = vmatprep.subr.bf16.mxu0 %v10258_v21  ;;  %7469 = vmatprep.subr.bf16.mxu1 %v10261_v39  ;;  %v10280_v48 = vld [vmem:[%s14334_s1 + $0x13c0] ss:$16 sps:$4 sm:$0xff]   ;;  %v10283_v61 = vld [vmem:[%s14334_s1 + $0x13c8] ss:$16 sps:$4 sm:$0xff]   ;;  %v10288_v63 = vld [vmem:[%s14334_s1 + $0x13e4] ss:$16 sps:$4 sm:$0xff]  }
 0x269   :  { %v10291_v44 = vld [vmem:[%s14334_s1 + $0x13ec] ss:$16 sps:$4 sm:$0xff]   ;;  %v10286_v1 = vld [vmem:[%s14334_s1 + $0x13e0] ss:$16 sps:$4 sm:$0xff]   ;;  %v10289_v51 = vld [vmem:[%s14334_s1 + $0x13e8] ss:$16 sps:$4 sm:$0xff]  }
 0x26a   :  { %v10294_v2 = vld [vmem:[%s14334_s1 + $0x1404] ss:$16 sps:$4 sm:$0xff]   ;;  %v10297_v3 = vld [vmem:[%s14334_s1 + $0x140c] ss:$16 sps:$4 sm:$0xff]   ;;  %v10292_v5 = vld [vmem:[%s14334_s1 + $0x1400] ss:$16 sps:$4 sm:$0xff]  }
 0x26b   :  { %6814 = vmatpush1.bf16.msra.mxu0 %v10256_v40  ;;  %7470 = vmatpush1.bf16.msra.mxu1 %v10259_v41  ;;  %v10295_v6 = vld [vmem:[%s14334_s1 + $0x1408] ss:$16 sps:$4 sm:$0xff]   ;;  %v10300_v7 = vld [vmem:[%s14334_s1 + $0x1424] ss:$16 sps:$4 sm:$0xff]   ;;  %v10303_v62 = vld [vmem:[%s14334_s1 + $0x142c] ss:$16 sps:$4 sm:$0xff]  }
 0x26c   :  { %6815 = vmatprep.subr.bf16.mxu0 %v10264_v34  ;;  %7471 = vmatprep.subr.bf16.mxu1 %v10267_v43  ;;  %v10298_v9 = vld [vmem:[%s14334_s1 + $0x1420] ss:$16 sps:$4 sm:$0xff]   ;;  %v10301_v10 = vld [vmem:[%s14334_s1 + $0x1428] ss:$16 sps:$4 sm:$0xff]   ;;  %v10306_v11 = vld [vmem:[%s14334_s1 + $0x1444] ss:$16 sps:$4 sm:$0xff]  }
 0x26d   :  { %v10309_v12 = vld [vmem:[%s14334_s1 + $0x144c] ss:$16 sps:$4 sm:$0xff]   ;;  %v10304_v52 = vld [vmem:[%s14334_s1 + $0x1440] ss:$16 sps:$4 sm:$0xff]   ;;  %v10307_v15 = vld [vmem:[%s14334_s1 + $0x1448] ss:$16 sps:$4 sm:$0xff]  }
 0x26e   :  { %v10312_v16 = vld [vmem:[%s14334_s1 + $0x1464] ss:$16 sps:$4 sm:$0xff]   ;;  %v10315_v17 = vld [vmem:[%s14334_s1 + $0x146c] ss:$16 sps:$4 sm:$0xff]   ;;  %v10310_v18 = vld [vmem:[%s14334_s1 + $0x1460] ss:$16 sps:$4 sm:$0xff]  }
 0x26f   :  { %6816 = vmatpush1.bf16.msra.mxu0 %v10262_v45  ;;  %7472 = vmatpush1.bf16.msra.mxu1 %v10265_v46  ;;  %v10313_v19 = vld [vmem:[%s14334_s1 + $0x1468] ss:$16 sps:$4 sm:$0xff]   ;;  %v10318_v20 = vld [vmem:[%s14334_s1 + $0x1484] ss:$16 sps:$4 sm:$0xff]   ;;  %v10321_v22 = vld [vmem:[%s14334_s1 + $0x148c] ss:$16 sps:$4 sm:$0xff]  }
 0x270   :  { %6817 = vmatprep.subr.bf16.mxu0 %v10270_v35  ;;  %7473 = vmatprep.subr.bf16.mxu1 %v10273_v50  ;;  %v10316_v23 = vld [vmem:[%s14334_s1 + $0x1480] ss:$16 sps:$4 sm:$0xff]   ;;  %v10319_v24 = vld [vmem:[%s14334_s1 + $0x1488] ss:$16 sps:$4 sm:$0xff]   ;;  %v10324_v13 = vld [vmem:[%s14334_s1 + $0x14a4] ss:$16 sps:$4 sm:$0xff]  }
 0x271   :  { %v10327_v27 = vld [vmem:[%s14334_s1 + $0x14ac] ss:$16 sps:$4 sm:$0xff]   ;;  %v10322_v28 = vld [vmem:[%s14334_s1 + $0x14a0] ss:$16 sps:$4 sm:$0xff]   ;;  %v10325_v29 = vld [vmem:[%s14334_s1 + $0x14a8] ss:$16 sps:$4 sm:$0xff]  }
 0x272   :  { %v10330_v14 = vld [vmem:[%s14334_s1 + $0x14c4] ss:$16 sps:$4 sm:$0xff]   ;;  %v10333_v30 = vld [vmem:[%s14334_s1 + $0x14cc] ss:$16 sps:$4 sm:$0xff]   ;;  %v10328_v31 = vld [vmem:[%s14334_s1 + $0x14c0] ss:$16 sps:$4 sm:$0xff]  }
 0x273   :  { %6818 = vmatpush1.bf16.msra.mxu0 %v10268_v53  ;;  %7474 = vmatpush1.bf16.msra.mxu1 %v10271_v38  ;;  %v10331_v25 = vld [vmem:[%s14334_s1 + $0x14c8] ss:$16 sps:$4 sm:$0xff]   ;;  %v10336_v32 = vld [vmem:[%s14334_s1 + $0x14e4] ss:$16 sps:$4 sm:$0xff]   ;;  %v10339_v33 = vld [vmem:[%s14334_s1 + $0x14ec] ss:$16 sps:$4 sm:$0xff]  }
 0x274   :  { %6819 = vmatprep.subr.bf16.mxu0 %v10276_v54  ;;  %7475 = vmatprep.subr.bf16.mxu1 %v10279_v55  ;;  %v10334_v26 = vld [vmem:[%s14334_s1 + $0x14e0] ss:$16 sps:$4 sm:$0xff]   ;;  %v10337_v36 = vld [vmem:[%s14334_s1 + $0x14e8] ss:$16 sps:$4 sm:$0xff]   ;;  %v10342_v37 = vld [vmem:[%s14334_s1 + $0x1504] ss:$16 sps:$4 sm:$0xff]  }
 0x275   :  { %v10345_v21 = vld [vmem:[%s14334_s1 + $0x150c] ss:$16 sps:$4 sm:$0xff]   ;;  %v10340_v39 = vld [vmem:[%s14334_s1 + $0x1500] ss:$16 sps:$4 sm:$0xff]   ;;  %v10343_v40 = vld [vmem:[%s14334_s1 + $0x1508] ss:$16 sps:$4 sm:$0xff]  }
 0x276   :  { %v10348_v41 = vld [vmem:[%s14334_s1 + $0x1524] ss:$16 sps:$4 sm:$0xff]   ;;  %v10351_v34 = vld [vmem:[%s14334_s1 + $0x152c] ss:$16 sps:$4 sm:$0xff]   ;;  %v10346_v43 = vld [vmem:[%s14334_s1 + $0x1520] ss:$16 sps:$4 sm:$0xff]  }
 0x277   :  { %6820 = vmatpush1.bf16.msra.mxu0 %v10274_v56  ;;  %7476 = vmatpush1.bf16.msra.mxu1 %v10277_v47  ;;  %v10349_v45 = vld [vmem:[%s14334_s1 + $0x1528] ss:$16 sps:$4 sm:$0xff]   ;;  %v10354_v46 = vld [vmem:[%s14334_s1 + $0x1544] ss:$16 sps:$4 sm:$0xff]   ;;  %v10357_v35 = vld [vmem:[%s14334_s1 + $0x154c] ss:$16 sps:$4 sm:$0xff]  }
 0x278   :  { %6821 = vmatprep.subr.bf16.mxu0 %v10282_v57  ;;  %7477 = vmatprep.subr.bf16.mxu1 %v10285_v58  ;;  %v10352_v50 = vld [vmem:[%s14334_s1 + $0x1540] ss:$16 sps:$4 sm:$0xff]   ;;  %v10355_v53 = vld [vmem:[%s14334_s1 + $0x1548] ss:$16 sps:$4 sm:$0xff]   ;;  %v10360_v38 = vld [vmem:[%s14334_s1 + $0x1564] ss:$16 sps:$4 sm:$0xff]  }
 0x279   :  { %v10363_v54 = vld [vmem:[%s14334_s1 + $0x156c] ss:$16 sps:$4 sm:$0xff]   ;;  %v10358_v55 = vld [vmem:[%s14334_s1 + $0x1560] ss:$16 sps:$4 sm:$0xff]   ;;  %v10361_v56 = vld [vmem:[%s14334_s1 + $0x1568] ss:$16 sps:$4 sm:$0xff]  }
 0x27a   :  { %v10366_v47 = vld [vmem:[%s14334_s1 + $0x1584] ss:$16 sps:$4 sm:$0xff]   ;;  %v10369_v57 = vld [vmem:[%s14334_s1 + $0x158c] ss:$16 sps:$4 sm:$0xff]   ;;  %v10364_v58 = vld [vmem:[%s14334_s1 + $0x1580] ss:$16 sps:$4 sm:$0xff]  }
 0x27b   :  { %6822 = vmatpush1.bf16.msra.mxu0 %v10280_v48  ;;  %7478 = vmatpush1.bf16.msra.mxu1 %v10283_v61  ;;  %v10367_v59 = vld [vmem:[%s14334_s1 + $0x1588] ss:$16 sps:$4 sm:$0xff]   ;;  %v10372_v48 = vld [vmem:[%s14334_s1 + $0x15a4] ss:$16 sps:$4 sm:$0xff]   ;;  %v10375_v61 = vld [vmem:[%s14334_s1 + $0x15ac] ss:$16 sps:$4 sm:$0xff]  }
 0x27c   :  { %6823 = vmatprep.subr.bf16.mxu0 %v10288_v63  ;;  %7479 = vmatprep.subr.bf16.mxu1 %v10291_v44  ;;  %v10370_v63 = vld [vmem:[%s14334_s1 + $0x15a0] ss:$16 sps:$4 sm:$0xff]   ;;  %v10373_v44 = vld [vmem:[%s14334_s1 + $0x15a8] ss:$16 sps:$4 sm:$0xff]   ;;  %v10384_v4 = vld [vmem:[%s14334_s1 + $0x15e4] ss:$16 sps:$4 sm:$0xff]  }
 0x27d   :  { %s10929_s16 = smov [#allocation2]   ;;  %vm8087_vm0 = vcmask 41984  }
 0x27e   :  { %s8095_s17 = sshll.u32 %s10929_s16, 4  ;;  %s8096_s17 = int_to_ptr.vmem [resolvable:$true] %s8095_s17 }
 0x27f   :  { %6824 = vmatpush1.bf16.msra.mxu0 %v10286_v1  ;;  %7480 = vmatpush1.bf16.msra.mxu1 %v10289_v51  ;;  %v10378_v1 = vld [vmem:[%s14334_s1 + $0x15c4] ss:$16 sps:$4 sm:$0xff]   ;;  %v10381_v51 = vld [vmem:[%s14334_s1 + $0x15cc] ss:$16 sps:$4 sm:$0xff]   ;;  %s10904_s18 = scalar_lea.vmem %s8096_s17, 32  ;;  %p10909_p1 = scmp.lt.s32.totalorder %s8096_s17, %s8096_s17 }
 0x280   :  { %6834 = vmatprep.subr.bf16.mxu0 %v10294_v2  ;;  %7490 = vmatprep.subr.bf16.mxu1 %v10297_v3  ;;  %v10376_v2 = vld [vmem:[%s14334_s1 + $0x15c0] ss:$16 sps:$4 sm:$0xff]   ;;  %v10379_v3 = vld [vmem:[%s14334_s1 + $0x15c8] ss:$16 sps:$4 sm:$0xff]   ;;  %p10905_p0 = scmp.ne.s32.totalorder %s8096_s17, %s10904_s18  ;;  %p10910_p2 = scmp.lt.s32.totalorder %s10904_s18, %s10904_s18 }
 0x282   :  { %6826 = vmatmul.mubr.bf16.vlgmr.msra.gmra.mrb[0].mxu0 %v1219_v60  ;;  %7482 = vmatmul.mubr.bf16.vlgmr.msra.gmra.mrb[0].mxu1 %v1219_v60  ;;  %v10387_v60 = vld [vmem:[%s14334_s1 + $0x15ec] ss:$16 sps:$4 sm:$0xff]   ;;  %p10911_p3 = por %p10910_p2, %p10909_p1 }
 0x283   :  { %6835 = vmatpush1.bf16.msra.mxu0 %v10292_v5  ;;  %7491 = vmatpush1.bf16.msra.mxu1 %v10295_v6  ;;  %v10382_v5 = vld [vmem:[%s14334_s1 + $0x15e0] ss:$16 sps:$4 sm:$0xff]   ;;  %v10385_v6 = vld [vmem:[%s14334_s1 + $0x15e8] ss:$16 sps:$4 sm:$0xff]  }
 0x284   :  { %6836 = vmatprep.subr.bf16.mxu0 %v10300_v7  ;;  %7492 = vmatprep.subr.bf16.mxu1 %v10303_v62  ;;  %v10391_v7 = vld [vmem:[%s14334_s1 + $0x1604] ss:$16 sps:$4 sm:$0xff]   ;;  %v10394_v62 = vld [vmem:[%s14334_s1 + $0x160c] ss:$16 sps:$4 sm:$0xff]   ;;  %p10912_p4 = pnand %p10911_p3, %p10905_p0 }
 0x285   :  { %6866 = vmatprep.mubr.bf16.mxu0 %v13019_v8  ;;  %7522 = vmatprep.mubr.bf16.mxu1 %v13019_v8 }
 0x287   :  { %6837 = vmatpush1.bf16.msra.mxu0 %v10298_v9  ;;  %7493 = vmatpush1.bf16.msra.mxu1 %v10301_v10  ;;  %v13205_v9 = vrot.slane %v12988_v0, %v11095_v49  ;;  %v10389_v10 = vld [vmem:[%s14334_s1 + $0x1600] ss:$16 sps:$4 sm:$0xff]   ;;  %v10400_v0 = vld [vmem:[%s14334_s1 + $0x162c] ss:$16 sps:$4 sm:$0xff]  }
 0x288   :  { %6838 = vmatprep.subr.bf16.mxu0 %v10306_v11  ;;  %7494 = vmatprep.subr.bf16.mxu1 %v10309_v12  ;;  %v10392_v11 = vld [vmem:[%s14334_s1 + $0x1608] ss:$16 sps:$4 sm:$0xff]   ;;  %v10397_v12 = vld [vmem:[%s14334_s1 + $0x1624] ss:$16 sps:$4 sm:$0xff]  }
 0x28b   :  { %6839 = vmatpush1.bf16.msra.mxu0 %v10304_v52  ;;  %7495 = vmatpush1.bf16.msra.mxu1 %v10307_v15  ;;  %v1222_v52 = vcombine.high %v13019_v8, %v13019_v8  ;;  %v10395_v15 = vld [vmem:[%s14334_s1 + $0x1620] ss:$16 sps:$4 sm:$0xff]   ;;  %v10403_v8 = vld [vmem:[%s14334_s1 + $0x1644] ss:$16 sps:$4 sm:$0xff]  }
 0x28c   :  { %6840 = vmatprep.subr.bf16.mxu0 %v10312_v16  ;;  %7496 = vmatprep.subr.bf16.mxu1 %v10315_v17  ;;  %v10398_v16 = vld [vmem:[%s14334_s1 + $0x1628] ss:$16 sps:$4 sm:$0xff]   ;;  %v10406_v17 = vld [vmem:[%s14334_s1 + $0x164c] ss:$16 sps:$4 sm:$0xff]  }
 0x28f   :  { %6841 = vmatpush1.bf16.msra.mxu0 %v10310_v18  ;;  %7497 = vmatpush1.bf16.msra.mxu1 %v10313_v19  ;;  %v10401_v18 = vld [vmem:[%s14334_s1 + $0x1640] ss:$16 sps:$4 sm:$0xff]   ;;  %v10404_v19 = vld [vmem:[%s14334_s1 + $0x1648] ss:$16 sps:$4 sm:$0xff]  }
 0x290   :  { %6842 = vmatprep.subr.bf16.mxu0 %v10318_v20  ;;  %7498 = vmatprep.subr.bf16.mxu1 %v10321_v22  ;;  %v10409_v20 = vld [vmem:[%s14334_s1 + $0x1664] ss:$16 sps:$4 sm:$0xff]   ;;  %v10412_v22 = vld [vmem:[%s14334_s1 + $0x166c] ss:$16 sps:$4 sm:$0xff]  }
 0x293   :  { %6843 = vmatpush1.bf16.msra.mxu0 %v10316_v23  ;;  %7499 = vmatpush1.bf16.msra.mxu1 %v10319_v24  ;;  %v10407_v23 = vld [vmem:[%s14334_s1 + $0x1660] ss:$16 sps:$4 sm:$0xff]   ;;  %v10410_v24 = vld [vmem:[%s14334_s1 + $0x1668] ss:$16 sps:$4 sm:$0xff]  }
 0x294   :  { %6844 = vmatprep.subr.bf16.mxu0 %v10324_v13  ;;  %7500 = vmatprep.subr.bf16.mxu1 %v10327_v27  ;;  %v10415_v13 = vld [vmem:[%s14334_s1 + $0x1684] ss:$16 sps:$4 sm:$0xff]   ;;  %v10418_v27 = vld [vmem:[%s14334_s1 + $0x168c] ss:$16 sps:$4 sm:$0xff]  }
 0x297   :  { %6845 = vmatpush1.bf16.msra.mxu0 %v10322_v28  ;;  %7501 = vmatpush1.bf16.msra.mxu1 %v10325_v29  ;;  %v10413_v28 = vld [vmem:[%s14334_s1 + $0x1680] ss:$16 sps:$4 sm:$0xff]   ;;  %v10416_v29 = vld [vmem:[%s14334_s1 + $0x1688] ss:$16 sps:$4 sm:$0xff]  }
 0x298   :  { %6846 = vmatprep.subr.bf16.mxu0 %v10330_v14  ;;  %7502 = vmatprep.subr.bf16.mxu1 %v10333_v30  ;;  %v10421_v14 = vld [vmem:[%s14334_s1 + $0x16a4] ss:$16 sps:$4 sm:$0xff]   ;;  %v10424_v30 = vld [vmem:[%s14334_s1 + $0x16ac] ss:$16 sps:$4 sm:$0xff]  }
 0x29b   :  { %6847 = vmatpush1.bf16.msra.mxu0 %v10328_v31  ;;  %7503 = vmatpush1.bf16.msra.mxu1 %v10331_v25  ;;  %v10419_v31 = vld [vmem:[%s14334_s1 + $0x16a0] ss:$16 sps:$4 sm:$0xff]   ;;  %v10422_v25 = vld [vmem:[%s14334_s1 + $0x16a8] ss:$16 sps:$4 sm:$0xff]  }
 0x29c   :  { %6848 = vmatprep.subr.bf16.mxu0 %v10336_v32  ;;  %7504 = vmatprep.subr.bf16.mxu1 %v10339_v33  ;;  %v10427_v32 = vld [vmem:[%s14334_s1 + $0x16c4] ss:$16 sps:$4 sm:$0xff]   ;;  %v10430_v33 = vld [vmem:[%s14334_s1 + $0x16cc] ss:$16 sps:$4 sm:$0xff]  }
 0x29f   :  { %6849 = vmatpush1.bf16.msra.mxu0 %v10334_v26  ;;  %7505 = vmatpush1.bf16.msra.mxu1 %v10337_v36  ;;  %v10425_v26 = vld [vmem:[%s14334_s1 + $0x16c0] ss:$16 sps:$4 sm:$0xff]   ;;  %v10428_v36 = vld [vmem:[%s14334_s1 + $0x16c8] ss:$16 sps:$4 sm:$0xff]  }
 0x2a0   :  { %6850 = vmatprep.subr.bf16.mxu0 %v10342_v37  ;;  %7506 = vmatprep.subr.bf16.mxu1 %v10345_v21  ;;  %v10433_v37 = vld [vmem:[%s14334_s1 + $0x16e4] ss:$16 sps:$4 sm:$0xff]   ;;  %v10436_v21 = vld [vmem:[%s14334_s1 + $0x16ec] ss:$16 sps:$4 sm:$0xff]  }
 0x2a3   :  { %6851 = vmatpush1.bf16.msra.mxu0 %v10340_v39  ;;  %7507 = vmatpush1.bf16.msra.mxu1 %v10343_v40  ;;  %v10431_v39 = vld [vmem:[%s14334_s1 + $0x16e0] ss:$16 sps:$4 sm:$0xff]   ;;  %v10434_v40 = vld [vmem:[%s14334_s1 + $0x16e8] ss:$16 sps:$4 sm:$0xff]  }
 0x2a4   :  { %6852 = vmatprep.subr.bf16.mxu0 %v10348_v41  ;;  %7508 = vmatprep.subr.bf16.mxu1 %v10351_v34  ;;  %v10439_v41 = vld [vmem:[%s14334_s1 + $0x1704] ss:$16 sps:$4 sm:$0xff]   ;;  %v10442_v34 = vld [vmem:[%s14334_s1 + $0x170c] ss:$16 sps:$4 sm:$0xff]  }
 0x2a7   :  { %6853 = vmatpush1.bf16.msra.mxu0 %v10346_v43  ;;  %7509 = vmatpush1.bf16.msra.mxu1 %v10349_v45  ;;  %v10437_v43 = vld [vmem:[%s14334_s1 + $0x1700] ss:$16 sps:$4 sm:$0xff]   ;;  %v10440_v45 = vld [vmem:[%s14334_s1 + $0x1708] ss:$16 sps:$4 sm:$0xff]  }
 0x2a8   :  { %6854 = vmatprep.subr.bf16.mxu0 %v10354_v46  ;;  %7510 = vmatprep.subr.bf16.mxu1 %v10357_v35  ;;  %v10445_v46 = vld [vmem:[%s14334_s1 + $0x1724] ss:$16 sps:$4 sm:$0xff]   ;;  %v10448_v35 = vld [vmem:[%s14334_s1 + $0x172c] ss:$16 sps:$4 sm:$0xff]  }
 0x2ab   :  { %6855 = vmatpush1.bf16.msra.mxu0 %v10352_v50  ;;  %7511 = vmatpush1.bf16.msra.mxu1 %v10355_v53  ;;  %v10443_v50 = vld [vmem:[%s14334_s1 + $0x1720] ss:$16 sps:$4 sm:$0xff]   ;;  %v10446_v53 = vld [vmem:[%s14334_s1 + $0x1728] ss:$16 sps:$4 sm:$0xff]  }
 0x2ac   :  { %6856 = vmatprep.subr.bf16.mxu0 %v10360_v38  ;;  %7512 = vmatprep.subr.bf16.mxu1 %v10363_v54  ;;  %v10451_v38 = vld [vmem:[%s14334_s1 + $0x1744] ss:$16 sps:$4 sm:$0xff]   ;;  %v10454_v54 = vld [vmem:[%s14334_s1 + $0x174c] ss:$16 sps:$4 sm:$0xff]  }
 0x2af   :  { %6857 = vmatpush1.bf16.msra.mxu0 %v10358_v55  ;;  %7513 = vmatpush1.bf16.msra.mxu1 %v10361_v56  ;;  %v10449_v55 = vld [vmem:[%s14334_s1 + $0x1740] ss:$16 sps:$4 sm:$0xff]   ;;  %v10452_v56 = vld [vmem:[%s14334_s1 + $0x1748] ss:$16 sps:$4 sm:$0xff]  }
 0x2b0   :  { %6858 = vmatprep.subr.bf16.mxu0 %v10366_v47  ;;  %7514 = vmatprep.subr.bf16.mxu1 %v10369_v57  ;;  %v10457_v47 = vld [vmem:[%s14334_s1 + $0x1764] ss:$16 sps:$4 sm:$0xff]   ;;  %v10460_v57 = vld [vmem:[%s14334_s1 + $0x176c] ss:$16 sps:$4 sm:$0xff]  }
 0x2b3   :  { %6859 = vmatpush1.bf16.msra.mxu0 %v10364_v58  ;;  %7515 = vmatpush1.bf16.msra.mxu1 %v10367_v59  ;;  %v10455_v58 = vld [vmem:[%s14334_s1 + $0x1760] ss:$16 sps:$4 sm:$0xff]   ;;  %v10458_v59 = vld [vmem:[%s14334_s1 + $0x1768] ss:$16 sps:$4 sm:$0xff]  }
 0x2b4   :  { %6860 = vmatprep.subr.bf16.mxu0 %v10372_v48  ;;  %7516 = vmatprep.subr.bf16.mxu1 %v10375_v61  ;;  %v10463_v48 = vld [vmem:[%s14334_s1 + $0x1784] ss:$16 sps:$4 sm:$0xff]   ;;  %v10466_v61 = vld [vmem:[%s14334_s1 + $0x178c] ss:$16 sps:$4 sm:$0xff]  }
 0x2b7   :  { %6861 = vmatpush1.bf16.msra.mxu0 %v10370_v63  ;;  %7517 = vmatpush1.bf16.msra.mxu1 %v10373_v44  ;;  %v10461_v63 = vld [vmem:[%s14334_s1 + $0x1780] ss:$16 sps:$4 sm:$0xff]   ;;  %v10464_v44 = vld [vmem:[%s14334_s1 + $0x1788] ss:$16 sps:$4 sm:$0xff]  }
 0x2b8   :  { %6862 = vmatprep.subr.bf16.mxu0 %v10378_v1  ;;  %7518 = vmatprep.subr.bf16.mxu1 %v10381_v51  ;;  %v10469_v1 = vld [vmem:[%s14334_s1 + $0x17a4] ss:$16 sps:$4 sm:$0xff]   ;;  %v10472_v51 = vld [vmem:[%s14334_s1 + $0x17ac] ss:$16 sps:$4 sm:$0xff]  }
 0x2bb   :  { %6863 = vmatpush1.bf16.msra.mxu0 %v10376_v2  ;;  %7519 = vmatpush1.bf16.msra.mxu1 %v10379_v3  ;;  %v10467_v2 = vld [vmem:[%s14334_s1 + $0x17a0] ss:$16 sps:$4 sm:$0xff]   ;;  %v10470_v3 = vld [vmem:[%s14334_s1 + $0x17a8] ss:$16 sps:$4 sm:$0xff]  }
 0x2bc   :  { %6864 = vmatprep.subr.bf16.mxu0 %v10384_v4  ;;  %7520 = vmatprep.subr.bf16.mxu1 %v10387_v60  ;;  %v10475_v4 = vld [vmem:[%s14334_s1 + $0x17c4] ss:$16 sps:$4 sm:$0xff]   ;;  %v10478_v60 = vld [vmem:[%s14334_s1 + $0x17cc] ss:$16 sps:$4 sm:$0xff]  }
 0x2bf   :  { %6865 = vmatpush1.bf16.msra.mxu0 %v10382_v5  ;;  %7521 = vmatpush1.bf16.msra.mxu1 %v10385_v6  ;;  %v13382_v5 = vld [vmem:[%s14333_s0 + $0x18] sm:$0xff]  ;;  %v10473_v6 = vld [vmem:[%s14334_s1 + $0x17c0] ss:$16 sps:$4 sm:$0xff]  }
 0x2c0   :  { %6875 = vmatprep.subr.bf16.mxu0 %v10391_v7  ;;  %7531 = vmatprep.subr.bf16.mxu1 %v10394_v62  ;;  %v10476_v7 = vld [vmem:[%s14334_s1 + $0x17c8] ss:$16 sps:$4 sm:$0xff]   ;;  %v10481_v62 = vld [vmem:[%s14334_s1 + $0x17e4] ss:$16 sps:$4 sm:$0xff]  }
 0x2c2   :  { %6867 = vmatmul.mubr.bf16.vlgmr.msra.gmra.mrb[0].mxu0 %v13205_v9  ;;  %7523 = vmatmul.mubr.bf16.vlgmr.msra.gmra.mrb[0].mxu1 %v13205_v9 }
 0x2c3   :  { %6876 = vmatpush1.bf16.msra.mxu0 %v10389_v10  ;;  %7532 = vmatpush1.bf16.msra.mxu1 %v10392_v11  ;;  %v10484_v10 = vld [vmem:[%s14334_s1 + $0x17ec] ss:$16 sps:$4 sm:$0xff]   ;;  %v13398_v11 = vrot.slane %v13382_v5, %v11095_v49 }
 0x2c4   :  { %6877 = vmatprep.subr.bf16.mxu0 %v10397_v12  ;;  %7533 = vmatprep.subr.bf16.mxu1 %v10400_v0  ;;  %v10479_v12 = vld [vmem:[%s14334_s1 + $0x17e0] ss:$16 sps:$4 sm:$0xff]   ;;  %v10482_v0 = vld [vmem:[%s14334_s1 + $0x17e8] ss:$16 sps:$4 sm:$0xff]  }
 0x2c5   :  { %6907 = vmatprep.mubr.bf16.mxu0 %v1222_v52  ;;  %7563 = vmatprep.mubr.bf16.mxu1 %v1222_v52  ;;  %v10487_v52 = vld [vmem:[%s14334_s1 + $0x1804] ss:$16 sps:$4 sm:$0xff]  }
 0x2c7   :  { %6878 = vmatpush1.bf16.msra.mxu0 %v10395_v15  ;;  %7534 = vmatpush1.bf16.msra.mxu1 %v10398_v16  ;;  %v10490_v15 = vld [vmem:[%s14334_s1 + $0x180c] ss:$16 sps:$4 sm:$0xff]   ;;  %v1238_v16 = vcombine.high %v13398_v11, %v13398_v11 }
 0x2c8   :  { %6879 = vmatprep.subr.bf16.mxu0 %v10403_v8  ;;  %7535 = vmatprep.subr.bf16.mxu1 %v10406_v17  ;;  %v1220_v8 = vcombine.high %v13205_v9, %v13205_v9  ;;  %v10485_v17 = vld [vmem:[%s14334_s1 + $0x1800] ss:$16 sps:$4 sm:$0xff]   ;;  %v10496_v9 = vld [vmem:[%s14334_s1 + $0x182c] ss:$16 sps:$4 sm:$0xff]  }
 0x2cb   :  { %6880 = vmatpush1.bf16.msra.mxu0 %v10401_v18  ;;  %7536 = vmatpush1.bf16.msra.mxu1 %v10404_v19  ;;  %v10488_v18 = vld [vmem:[%s14334_s1 + $0x1808] ss:$16 sps:$4 sm:$0xff]   ;;  %v10493_v19 = vld [vmem:[%s14334_s1 + $0x1824] ss:$16 sps:$4 sm:$0xff]  }
 0x2cc   :  { %6881 = vmatprep.subr.bf16.mxu0 %v10409_v20  ;;  %7537 = vmatprep.subr.bf16.mxu1 %v10412_v22  ;;  %v13429_v20 = vrot.slane %v1238_v16, %v11095_v49  ;;  %v10491_v22 = vld [vmem:[%s14334_s1 + $0x1820] ss:$16 sps:$4 sm:$0xff]   ;;  %v10572_v16 = vld [vmem:[%s14334_s1 + $0x19c8] ss:$16 sps:$4 sm:$0xff]  }
 0x2cf   :  { %6882 = vmatpush1.bf16.msra.mxu0 %v10407_v23  ;;  %7538 = vmatpush1.bf16.msra.mxu1 %v10410_v24  ;;  %v10494_v23 = vld [vmem:[%s14334_s1 + $0x1828] ss:$16 sps:$4 sm:$0xff]   ;;  %v10499_v24 = vld [vmem:[%s14334_s1 + $0x1844] ss:$16 sps:$4 sm:$0xff]  }
 0x2d0   :  { %6883 = vmatprep.subr.bf16.mxu0 %v10415_v13  ;;  %7539 = vmatprep.subr.bf16.mxu1 %v10418_v27  ;;  %v10502_v13 = vld [vmem:[%s14334_s1 + $0x184c] ss:$16 sps:$4 sm:$0xff]   ;;  %v10497_v27 = vld [vmem:[%s14334_s1 + $0x1840] ss:$16 sps:$4 sm:$0xff]  }
 0x2d3   :  { %6884 = vmatpush1.bf16.msra.mxu0 %v10413_v28  ;;  %7540 = vmatpush1.bf16.msra.mxu1 %v10416_v29  ;;  %v10500_v28 = vld [vmem:[%s14334_s1 + $0x1848] ss:$16 sps:$4 sm:$0xff]   ;;  %v10505_v29 = vld [vmem:[%s14334_s1 + $0x1864] ss:$16 sps:$4 sm:$0xff]  }
 0x2d4   :  { %6885 = vmatprep.subr.bf16.mxu0 %v10421_v14  ;;  %7541 = vmatprep.subr.bf16.mxu1 %v10424_v30  ;;  %v10508_v14 = vld [vmem:[%s14334_s1 + $0x186c] ss:$16 sps:$4 sm:$0xff]   ;;  %v10503_v30 = vld [vmem:[%s14334_s1 + $0x1860] ss:$16 sps:$4 sm:$0xff]  }
 0x2d7   :  { %6886 = vmatpush1.bf16.msra.mxu0 %v10419_v31  ;;  %7542 = vmatpush1.bf16.msra.mxu1 %v10422_v25  ;;  %v10506_v31 = vld [vmem:[%s14334_s1 + $0x1868] ss:$16 sps:$4 sm:$0xff]   ;;  %v10511_v25 = vld [vmem:[%s14334_s1 + $0x1884] ss:$16 sps:$4 sm:$0xff]  }
 0x2d8   :  { %6887 = vmatprep.subr.bf16.mxu0 %v10427_v32  ;;  %7543 = vmatprep.subr.bf16.mxu1 %v10430_v33  ;;  %v10514_v32 = vld [vmem:[%s14334_s1 + $0x188c] ss:$16 sps:$4 sm:$0xff]   ;;  %v10509_v33 = vld [vmem:[%s14334_s1 + $0x1880] ss:$16 sps:$4 sm:$0xff]  }
 0x2db   :  { %6888 = vmatpush1.bf16.msra.mxu0 %v10425_v26  ;;  %7544 = vmatpush1.bf16.msra.mxu1 %v10428_v36  ;;  %v10512_v26 = vld [vmem:[%s14334_s1 + $0x1888] ss:$16 sps:$4 sm:$0xff]   ;;  %v10517_v36 = vld [vmem:[%s14334_s1 + $0x18a4] ss:$16 sps:$4 sm:$0xff]  }
 0x2dc   :  { %6889 = vmatprep.subr.bf16.mxu0 %v10433_v37  ;;  %7545 = vmatprep.subr.bf16.mxu1 %v10436_v21  ;;  %v10520_v37 = vld [vmem:[%s14334_s1 + $0x18ac] ss:$16 sps:$4 sm:$0xff]   ;;  %v10515_v21 = vld [vmem:[%s14334_s1 + $0x18a0] ss:$16 sps:$4 sm:$0xff]  }
 0x2df   :  { %6890 = vmatpush1.bf16.msra.mxu0 %v10431_v39  ;;  %7546 = vmatpush1.bf16.msra.mxu1 %v10434_v40  ;;  %v10518_v39 = vld [vmem:[%s14334_s1 + $0x18a8] ss:$16 sps:$4 sm:$0xff]   ;;  %v10523_v40 = vld [vmem:[%s14334_s1 + $0x18c4] ss:$16 sps:$4 sm:$0xff]  }
 0x2e0   :  { %6891 = vmatprep.subr.bf16.mxu0 %v10439_v41  ;;  %7547 = vmatprep.subr.bf16.mxu1 %v10442_v34  ;;  %v10526_v41 = vld [vmem:[%s14334_s1 + $0x18cc] ss:$16 sps:$4 sm:$0xff]   ;;  %v10521_v34 = vld [vmem:[%s14334_s1 + $0x18c0] ss:$16 sps:$4 sm:$0xff]  }
 0x2e3   :  { %6892 = vmatpush1.bf16.msra.mxu0 %v10437_v43  ;;  %7548 = vmatpush1.bf16.msra.mxu1 %v10440_v45  ;;  %v10524_v43 = vld [vmem:[%s14334_s1 + $0x18c8] ss:$16 sps:$4 sm:$0xff]   ;;  %v10529_v45 = vld [vmem:[%s14334_s1 + $0x18e4] ss:$16 sps:$4 sm:$0xff]  }
 0x2e4   :  { %6893 = vmatprep.subr.bf16.mxu0 %v10445_v46  ;;  %7549 = vmatprep.subr.bf16.mxu1 %v10448_v35  ;;  %v10532_v46 = vld [vmem:[%s14334_s1 + $0x18ec] ss:$16 sps:$4 sm:$0xff]   ;;  %v10527_v35 = vld [vmem:[%s14334_s1 + $0x18e0] ss:$16 sps:$4 sm:$0xff]  }
 0x2e7   :  { %6894 = vmatpush1.bf16.msra.mxu0 %v10443_v50  ;;  %7550 = vmatpush1.bf16.msra.mxu1 %v10446_v53  ;;  %v10530_v50 = vld [vmem:[%s14334_s1 + $0x18e8] ss:$16 sps:$4 sm:$0xff]   ;;  %v10535_v53 = vld [vmem:[%s14334_s1 + $0x1904] ss:$16 sps:$4 sm:$0xff]  }
 0x2e8   :  { %6895 = vmatprep.subr.bf16.mxu0 %v10451_v38  ;;  %7551 = vmatprep.subr.bf16.mxu1 %v10454_v54  ;;  %v10538_v38 = vld [vmem:[%s14334_s1 + $0x190c] ss:$16 sps:$4 sm:$0xff]   ;;  %v10533_v54 = vld [vmem:[%s14334_s1 + $0x1900] ss:$16 sps:$4 sm:$0xff]  }
 0x2eb   :  { %6896 = vmatpush1.bf16.msra.mxu0 %v10449_v55  ;;  %7552 = vmatpush1.bf16.msra.mxu1 %v10452_v56  ;;  %v10536_v55 = vld [vmem:[%s14334_s1 + $0x1908] ss:$16 sps:$4 sm:$0xff]   ;;  %v10541_v56 = vld [vmem:[%s14334_s1 + $0x1924] ss:$16 sps:$4 sm:$0xff]  }
 0x2ec   :  { %6897 = vmatprep.subr.bf16.mxu0 %v10457_v47  ;;  %7553 = vmatprep.subr.bf16.mxu1 %v10460_v57  ;;  %v10544_v47 = vld [vmem:[%s14334_s1 + $0x192c] ss:$16 sps:$4 sm:$0xff]   ;;  %v10539_v57 = vld [vmem:[%s14334_s1 + $0x1920] ss:$16 sps:$4 sm:$0xff]  }
 0x2ef   :  { %6898 = vmatpush1.bf16.msra.mxu0 %v10455_v58  ;;  %7554 = vmatpush1.bf16.msra.mxu1 %v10458_v59  ;;  %v10542_v58 = vld [vmem:[%s14334_s1 + $0x1928] ss:$16 sps:$4 sm:$0xff]   ;;  %v10547_v59 = vld [vmem:[%s14334_s1 + $0x1944] ss:$16 sps:$4 sm:$0xff]  }
 0x2f0   :  { %6899 = vmatprep.subr.bf16.mxu0 %v10463_v48  ;;  %7555 = vmatprep.subr.bf16.mxu1 %v10466_v61  ;;  %v10550_v48 = vld [vmem:[%s14334_s1 + $0x194c] ss:$16 sps:$4 sm:$0xff]   ;;  %v10545_v61 = vld [vmem:[%s14334_s1 + $0x1940] ss:$16 sps:$4 sm:$0xff]  }
 0x2f3   :  { %6900 = vmatpush1.bf16.msra.mxu0 %v10461_v63  ;;  %7556 = vmatpush1.bf16.msra.mxu1 %v10464_v44  ;;  %v10548_v63 = vld [vmem:[%s14334_s1 + $0x1948] ss:$16 sps:$4 sm:$0xff]   ;;  %v10553_v44 = vld [vmem:[%s14334_s1 + $0x1964] ss:$16 sps:$4 sm:$0xff]  }
 0x2f4   :  { %6901 = vmatprep.subr.bf16.mxu0 %v10469_v1  ;;  %7557 = vmatprep.subr.bf16.mxu1 %v10472_v51  ;;  %v10556_v1 = vld [vmem:[%s14334_s1 + $0x196c] ss:$16 sps:$4 sm:$0xff]   ;;  %v10551_v51 = vld [vmem:[%s14334_s1 + $0x1960] ss:$16 sps:$4 sm:$0xff]  }
 0x2f7   :  { %6902 = vmatpush1.bf16.msra.mxu0 %v10467_v2  ;;  %7558 = vmatpush1.bf16.msra.mxu1 %v10470_v3  ;;  %v10554_v2 = vld [vmem:[%s14334_s1 + $0x1968] ss:$16 sps:$4 sm:$0xff]   ;;  %v10559_v3 = vld [vmem:[%s14334_s1 + $0x1984] ss:$16 sps:$4 sm:$0xff]  }
 0x2f8   :  { %6903 = vmatprep.subr.bf16.mxu0 %v10475_v4  ;;  %7559 = vmatprep.subr.bf16.mxu1 %v10478_v60  ;;  %v10562_v4 = vld [vmem:[%s14334_s1 + $0x198c] ss:$16 sps:$4 sm:$0xff]   ;;  %v10557_v60 = vld [vmem:[%s14334_s1 + $0x1980] ss:$16 sps:$4 sm:$0xff]  }
 0x2fb   :  { %6904 = vmatpush1.bf16.msra.mxu0 %v10473_v6  ;;  %7560 = vmatpush1.bf16.msra.mxu1 %v10476_v7  ;;  %v10560_v6 = vld [vmem:[%s14334_s1 + $0x1988] ss:$16 sps:$4 sm:$0xff]   ;;  %v10565_v7 = vld [vmem:[%s14334_s1 + $0x19a4] ss:$16 sps:$4 sm:$0xff]  }
 0x2fc   :  { %6905 = vmatprep.subr.bf16.mxu0 %v10481_v62  ;;  %7561 = vmatprep.subr.bf16.mxu1 %v10484_v10  ;;  %v10568_v62 = vld [vmem:[%s14334_s1 + $0x19ac] ss:$16 sps:$4 sm:$0xff]   ;;  %v10563_v10 = vld [vmem:[%s14334_s1 + $0x19a0] ss:$16 sps:$4 sm:$0xff]  }
 0x2ff   :  { %6906 = vmatpush1.bf16.msra.mxu0 %v10479_v12  ;;  %7562 = vmatpush1.bf16.msra.mxu1 %v10482_v0  ;;  %v10566_v12 = vld [vmem:[%s14334_s1 + $0x19a8] ss:$16 sps:$4 sm:$0xff]   ;;  %v10571_v0 = vld [vmem:[%s14334_s1 + $0x19c4] ss:$16 sps:$4 sm:$0xff]  }
 0x300   :  { %6916 = vmatprep.subr.bf16.mxu0 %v10487_v52  ;;  %7572 = vmatprep.subr.bf16.mxu1 %v10490_v15  ;;  %v10574_v52 = vld [vmem:[%s14334_s1 + $0x19cc] ss:$16 sps:$4 sm:$0xff]   ;;  %v10569_v15 = vld [vmem:[%s14334_s1 + $0x19c0] ss:$16 sps:$4 sm:$0xff]  }
 0x302   :  { %6908 = vmatmul.mubr.bf16.vlgmr.msra.gmra.mrb[0].mxu0 %v1220_v8  ;;  %7564 = vmatmul.mubr.bf16.vlgmr.msra.gmra.mrb[0].mxu1 %v1220_v8  ;;  %v10577_v8 = vld [vmem:[%s14334_s1 + $0x19e4] ss:$16 sps:$4 sm:$0xff]  }
 0x303   :  { %6917 = vmatpush1.bf16.msra.mxu0 %v10485_v17  ;;  %7573 = vmatpush1.bf16.msra.mxu1 %v10488_v18  ;;  %v10580_v17 = vld [vmem:[%s14334_s1 + $0x19ec] ss:$16 sps:$4 sm:$0xff]   ;;  %v10575_v18 = vld [vmem:[%s14334_s1 + $0x19e0] ss:$16 sps:$4 sm:$0xff]  }
 0x304   :  { %6918 = vmatprep.subr.bf16.mxu0 %v10493_v19  ;;  %7574 = vmatprep.subr.bf16.mxu1 %v10496_v9  ;;  %v10578_v19 = vld [vmem:[%s14334_s1 + $0x19e8] ss:$16 sps:$4 sm:$0xff]   ;;  %v10583_v9 = vld [vmem:[%s14334_s1 + $0x1a04] ss:$16 sps:$4 sm:$0xff]  }
 0x305   :  { %6948 = vmatprep.mubr.bf16.mxu0 %v13429_v20  ;;  %7604 = vmatprep.mubr.bf16.mxu1 %v13429_v20 }
 0x307   :  { %6919 = vmatpush1.bf16.msra.mxu0 %v10491_v22  ;;  %7575 = vmatpush1.bf16.msra.mxu1 %v10494_v23  ;;  %v10586_v22 = vld [vmem:[%s14334_s1 + $0x1a0c] ss:$16 sps:$4 sm:$0xff]   ;;  %v13615_v23 = vrot.slane %v13398_v11, %v11095_v49 }
 0x308   :  { %6920 = vmatprep.subr.bf16.mxu0 %v10499_v24  ;;  %7576 = vmatprep.subr.bf16.mxu1 %v10502_v13  ;;  %v10581_v24 = vld [vmem:[%s14334_s1 + $0x1a00] ss:$16 sps:$4 sm:$0xff]   ;;  %v10584_v13 = vld [vmem:[%s14334_s1 + $0x1a08] ss:$16 sps:$4 sm:$0xff]   ;;  %v10592_v11 = vld [vmem:[%s14334_s1 + $0x1a2c] ss:$16 sps:$4 sm:$0xff]  }
 0x30b   :  { %6921 = vmatpush1.bf16.msra.mxu0 %v10497_v27  ;;  %7577 = vmatpush1.bf16.msra.mxu1 %v10500_v28  ;;  %v10589_v27 = vld [vmem:[%s14334_s1 + $0x1a24] ss:$16 sps:$4 sm:$0xff]   ;;  %v1270_v28 = vcombine.high %v13429_v20, %v13429_v20 }
 0x30c   :  { %6922 = vmatprep.subr.bf16.mxu0 %v10505_v29  ;;  %7578 = vmatprep.subr.bf16.mxu1 %v10508_v14  ;;  %v10587_v29 = vld [vmem:[%s14334_s1 + $0x1a20] ss:$16 sps:$4 sm:$0xff]   ;;  %v10590_v14 = vld [vmem:[%s14334_s1 + $0x1a28] ss:$16 sps:$4 sm:$0xff]   ;;  %v10595_v20 = vld [vmem:[%s14334_s1 + $0x1a44] ss:$16 sps:$4 sm:$0xff]  }
 0x30f   :  { %6923 = vmatpush1.bf16.msra.mxu0 %v10503_v30  ;;  %7579 = vmatpush1.bf16.msra.mxu1 %v10506_v31  ;;  %v10598_v30 = vld [vmem:[%s14334_s1 + $0x1a4c] ss:$16 sps:$4 sm:$0xff]   ;;  %v10593_v31 = vld [vmem:[%s14334_s1 + $0x1a40] ss:$16 sps:$4 sm:$0xff]  }
 0x310   :  { %6924 = vmatprep.subr.bf16.mxu0 %v10511_v25  ;;  %7580 = vmatprep.subr.bf16.mxu1 %v10514_v32  ;;  %v10596_v25 = vld [vmem:[%s14334_s1 + $0x1a48] ss:$16 sps:$4 sm:$0xff]   ;;  %v10601_v32 = vld [vmem:[%s14334_s1 + $0x1a64] ss:$16 sps:$4 sm:$0xff]  }
 0x313   :  { %6925 = vmatpush1.bf16.msra.mxu0 %v10509_v33  ;;  %7581 = vmatpush1.bf16.msra.mxu1 %v10512_v26  ;;  %v10604_v33 = vld [vmem:[%s14334_s1 + $0x1a6c] ss:$16 sps:$4 sm:$0xff]   ;;  %v10599_v26 = vld [vmem:[%s14334_s1 + $0x1a60] ss:$16 sps:$4 sm:$0xff]  }
 0x314   :  { %6926 = vmatprep.subr.bf16.mxu0 %v10517_v36  ;;  %7582 = vmatprep.subr.bf16.mxu1 %v10520_v37  ;;  %v10602_v36 = vld [vmem:[%s14334_s1 + $0x1a68] ss:$16 sps:$4 sm:$0xff]   ;;  %v10607_v37 = vld [vmem:[%s14334_s1 + $0x1a84] ss:$16 sps:$4 sm:$0xff]  }
 0x317   :  { %6927 = vmatpush1.bf16.msra.mxu0 %v10515_v21  ;;  %7583 = vmatpush1.bf16.msra.mxu1 %v10518_v39  ;;  %v10610_v21 = vld [vmem:[%s14334_s1 + $0x1a8c] ss:$16 sps:$4 sm:$0xff]   ;;  %v10605_v39 = vld [vmem:[%s14334_s1 + $0x1a80] ss:$16 sps:$4 sm:$0xff]  }
 0x318   :  { %6928 = vmatprep.subr.bf16.mxu0 %v10523_v40  ;;  %7584 = vmatprep.subr.bf16.mxu1 %v10526_v41  ;;  %v10608_v40 = vld [vmem:[%s14334_s1 + $0x1a88] ss:$16 sps:$4 sm:$0xff]   ;;  %v10613_v41 = vld [vmem:[%s14334_s1 + $0x1aa4] ss:$16 sps:$4 sm:$0xff]  }
 0x31b   :  { %6929 = vmatpush1.bf16.msra.mxu0 %v10521_v34  ;;  %7585 = vmatpush1.bf16.msra.mxu1 %v10524_v43  ;;  %v10616_v34 = vld [vmem:[%s14334_s1 + $0x1aac] ss:$16 sps:$4 sm:$0xff]   ;;  %v10611_v43 = vld [vmem:[%s14334_s1 + $0x1aa0] ss:$16 sps:$4 sm:$0xff]  }
 0x31c   :  { %6930 = vmatprep.subr.bf16.mxu0 %v10529_v45  ;;  %7586 = vmatprep.subr.bf16.mxu1 %v10532_v46  ;;  %v10614_v45 = vld [vmem:[%s14334_s1 + $0x1aa8] ss:$16 sps:$4 sm:$0xff]   ;;  %v10619_v46 = vld [vmem:[%s14334_s1 + $0x1ac4] ss:$16 sps:$4 sm:$0xff]  }
 0x31f   :  { %6931 = vmatpush1.bf16.msra.mxu0 %v10527_v35  ;;  %7587 = vmatpush1.bf16.msra.mxu1 %v10530_v50  ;;  %v10622_v35 = vld [vmem:[%s14334_s1 + $0x1acc] ss:$16 sps:$4 sm:$0xff]   ;;  %v10617_v50 = vld [vmem:[%s14334_s1 + $0x1ac0] ss:$16 sps:$4 sm:$0xff]  }
 0x320   :  { %6932 = vmatprep.subr.bf16.mxu0 %v10535_v53  ;;  %7588 = vmatprep.subr.bf16.mxu1 %v10538_v38  ;;  %v10620_v53 = vld [vmem:[%s14334_s1 + $0x1ac8] ss:$16 sps:$4 sm:$0xff]   ;;  %v10625_v38 = vld [vmem:[%s14334_s1 + $0x1ae4] ss:$16 sps:$4 sm:$0xff]  }
 0x323   :  { %6933 = vmatpush1.bf16.msra.mxu0 %v10533_v54  ;;  %7589 = vmatpush1.bf16.msra.mxu1 %v10536_v55  ;;  %v10628_v54 = vld [vmem:[%s14334_s1 + $0x1aec] ss:$16 sps:$4 sm:$0xff]   ;;  %v10623_v55 = vld [vmem:[%s14334_s1 + $0x1ae0] ss:$16 sps:$4 sm:$0xff]  }
 0x324   :  { %6934 = vmatprep.subr.bf16.mxu0 %v10541_v56  ;;  %7590 = vmatprep.subr.bf16.mxu1 %v10544_v47  ;;  %v10626_v56 = vld [vmem:[%s14334_s1 + $0x1ae8] ss:$16 sps:$4 sm:$0xff]   ;;  %v10631_v47 = vld [vmem:[%s14334_s1 + $0x1b04] ss:$16 sps:$4 sm:$0xff]  }
 0x327   :  { %6935 = vmatpush1.bf16.msra.mxu0 %v10539_v57  ;;  %7591 = vmatpush1.bf16.msra.mxu1 %v10542_v58  ;;  %v10634_v57 = vld [vmem:[%s14334_s1 + $0x1b0c] ss:$16 sps:$4 sm:$0xff]   ;;  %v10629_v58 = vld [vmem:[%s14334_s1 + $0x1b00] ss:$16 sps:$4 sm:$0xff]  }
 0x328   :  { %6936 = vmatprep.subr.bf16.mxu0 %v10547_v59  ;;  %7592 = vmatprep.subr.bf16.mxu1 %v10550_v48  ;;  %v10632_v59 = vld [vmem:[%s14334_s1 + $0x1b08] ss:$16 sps:$4 sm:$0xff]   ;;  %v10637_v48 = vld [vmem:[%s14334_s1 + $0x1b24] ss:$16 sps:$4 sm:$0xff]  }
 0x32b   :  { %6937 = vmatpush1.bf16.msra.mxu0 %v10545_v61  ;;  %7593 = vmatpush1.bf16.msra.mxu1 %v10548_v63  ;;  %v10640_v61 = vld [vmem:[%s14334_s1 + $0x1b2c] ss:$16 sps:$4 sm:$0xff]   ;;  %v10635_v63 = vld [vmem:[%s14334_s1 + $0x1b20] ss:$16 sps:$4 sm:$0xff]  }
 0x32c   :  { %6938 = vmatprep.subr.bf16.mxu0 %v10553_v44  ;;  %7594 = vmatprep.subr.bf16.mxu1 %v10556_v1  ;;  %v10638_v44 = vld [vmem:[%s14334_s1 + $0x1b28] ss:$16 sps:$4 sm:$0xff]   ;;  %v10643_v1 = vld [vmem:[%s14334_s1 + $0x1b44] ss:$16 sps:$4 sm:$0xff]  }
 0x32f   :  { %6939 = vmatpush1.bf16.msra.mxu0 %v10551_v51  ;;  %7595 = vmatpush1.bf16.msra.mxu1 %v10554_v2  ;;  %v10646_v51 = vld [vmem:[%s14334_s1 + $0x1b4c] ss:$16 sps:$4 sm:$0xff]   ;;  %v10641_v2 = vld [vmem:[%s14334_s1 + $0x1b40] ss:$16 sps:$4 sm:$0xff]  }
 0x330   :  { %6940 = vmatprep.subr.bf16.mxu0 %v10559_v3  ;;  %7596 = vmatprep.subr.bf16.mxu1 %v10562_v4  ;;  %v10644_v3 = vld [vmem:[%s14334_s1 + $0x1b48] ss:$16 sps:$4 sm:$0xff]   ;;  %v10649_v4 = vld [vmem:[%s14334_s1 + $0x1b64] ss:$16 sps:$4 sm:$0xff]  }
 0x333   :  { %6941 = vmatpush1.bf16.msra.mxu0 %v10557_v60  ;;  %7597 = vmatpush1.bf16.msra.mxu1 %v10560_v6  ;;  %v10652_v60 = vld [vmem:[%s14334_s1 + $0x1b6c] ss:$16 sps:$4 sm:$0xff]   ;;  %v10647_v6 = vld [vmem:[%s14334_s1 + $0x1b60] ss:$16 sps:$4 sm:$0xff]  }
 0x334   :  { %6942 = vmatprep.subr.bf16.mxu0 %v10565_v7  ;;  %7598 = vmatprep.subr.bf16.mxu1 %v10568_v62  ;;  %v10650_v7 = vld [vmem:[%s14334_s1 + $0x1b68] ss:$16 sps:$4 sm:$0xff]   ;;  %v10655_v62 = vld [vmem:[%s14334_s1 + $0x1b84] ss:$16 sps:$4 sm:$0xff]  }
 0x337   :  { %6943 = vmatpush1.bf16.msra.mxu0 %v10563_v10  ;;  %7599 = vmatpush1.bf16.msra.mxu1 %v10566_v12  ;;  %v10658_v10 = vld [vmem:[%s14334_s1 + $0x1b8c] ss:$16 sps:$4 sm:$0xff]   ;;  %v10653_v12 = vld [vmem:[%s14334_s1 + $0x1b80] ss:$16 sps:$4 sm:$0xff]  }
 0x338   :  { %6944 = vmatprep.subr.bf16.mxu0 %v10571_v0  ;;  %7600 = vmatprep.subr.bf16.mxu1 %v10574_v52  ;;  %v10656_v0 = vld [vmem:[%s14334_s1 + $0x1b88] ss:$16 sps:$4 sm:$0xff]   ;;  %v10661_v52 = vld [vmem:[%s14334_s1 + $0x1ba4] ss:$16 sps:$4 sm:$0xff]  }
 0x33b   :  { %6945 = vmatpush1.bf16.msra.mxu0 %v10569_v15  ;;  %7601 = vmatpush1.bf16.msra.mxu1 %v10572_v16  ;;  %v10664_v15 = vld [vmem:[%s14334_s1 + $0x1bac] ss:$16 sps:$4 sm:$0xff]   ;;  %v10659_v16 = vld [vmem:[%s14334_s1 + $0x1ba0] ss:$16 sps:$4 sm:$0xff]  }
 0x33c   :  { %6946 = vmatprep.subr.bf16.mxu0 %v10577_v8  ;;  %7602 = vmatprep.subr.bf16.mxu1 %v10580_v17  ;;  %v10662_v8 = vld [vmem:[%s14334_s1 + $0x1ba8] ss:$16 sps:$4 sm:$0xff]   ;;  %v10667_v17 = vld [vmem:[%s14334_s1 + $0x1bc4] ss:$16 sps:$4 sm:$0xff]  }
 0x33f   :  { %6947 = vmatpush1.bf16.msra.mxu0 %v10575_v18  ;;  %7603 = vmatpush1.bf16.msra.mxu1 %v10578_v19  ;;  %v10670_v18 = vld [vmem:[%s14334_s1 + $0x1bcc] ss:$16 sps:$4 sm:$0xff]   ;;  %v1223_v19 = vcombine.high %v13382_v5, %v13382_v5 }
 0x340   :  { %6957 = vmatprep.subr.bf16.mxu0 %v10583_v9  ;;  %7613 = vmatprep.subr.bf16.mxu1 %v10586_v22  ;;  %v10665_v9 = vld [vmem:[%s14334_s1 + $0x1bc0] ss:$16 sps:$4 sm:$0xff]   ;;  %v10668_v22 = vld [vmem:[%s14334_s1 + $0x1bc8] ss:$16 sps:$4 sm:$0xff]   ;;  %v10676_v5 = vld [vmem:[%s14334_s1 + $0x1bec] ss:$16 sps:$4 sm:$0xff]  }
 0x342   :  { %6949 = vmatmul.mubr.bf16.vlgmr.msra.gmra.mrb[0].mxu0 %v13615_v23  ;;  %7605 = vmatmul.mubr.bf16.vlgmr.msra.gmra.mrb[0].mxu1 %v13615_v23 }
 0x343   :  { %6958 = vmatpush1.bf16.msra.mxu0 %v10581_v24  ;;  %7614 = vmatpush1.bf16.msra.mxu1 %v10584_v13  ;;  %v10673_v24 = vld [vmem:[%s14334_s1 + $0x1be4] ss:$16 sps:$4 sm:$0xff]   ;;  %v13804_v13 = vrot.slane %v1223_v19, %v11095_v49  ;;  %v10752_v19 = vld [vmem:[%s14334_s1 + $0x1d88] ss:$16 sps:$4 sm:$0xff]  }
 0x344   :  { %6959 = vmatprep.subr.bf16.mxu0 %v10589_v27  ;;  %7615 = vmatprep.subr.bf16.mxu1 %v10592_v11  ;;  %v10671_v27 = vld [vmem:[%s14334_s1 + $0x1be0] ss:$16 sps:$4 sm:$0xff]   ;;  %v10674_v11 = vld [vmem:[%s14334_s1 + $0x1be8] ss:$16 sps:$4 sm:$0xff]  }
 0x345   :  { %6989 = vmatprep.mubr.bf16.mxu0 %v1270_v28  ;;  %7645 = vmatprep.mubr.bf16.mxu1 %v1270_v28  ;;  %v10679_v28 = vld [vmem:[%s14334_s1 + $0x1c04] ss:$16 sps:$4 sm:$0xff]  }
 0x347   :  { %6960 = vmatpush1.bf16.msra.mxu0 %v10587_v29  ;;  %7616 = vmatpush1.bf16.msra.mxu1 %v10590_v14  ;;  %v10682_v29 = vld [vmem:[%s14334_s1 + $0x1c0c] ss:$16 sps:$4 sm:$0xff]   ;;  %v1239_v14 = vcombine.high %v13804_v13, %v13804_v13 }
 0x348   :  { %6961 = vmatprep.subr.bf16.mxu0 %v10595_v20  ;;  %7617 = vmatprep.subr.bf16.mxu1 %v10598_v30  ;;  %v1268_v20 = vcombine.high %v13615_v23, %v13615_v23  ;;  %v10677_v30 = vld [vmem:[%s14334_s1 + $0x1c00] ss:$16 sps:$4 sm:$0xff]   ;;  %v10688_v23 = vld [vmem:[%s14334_s1 + $0x1c2c] ss:$16 sps:$4 sm:$0xff]  }
 0x34b   :  { %6962 = vmatpush1.bf16.msra.mxu0 %v10593_v31  ;;  %7618 = vmatpush1.bf16.msra.mxu1 %v10596_v25  ;;  %v10680_v31 = vld [vmem:[%s14334_s1 + $0x1c08] ss:$16 sps:$4 sm:$0xff]   ;;  %v10685_v25 = vld [vmem:[%s14334_s1 + $0x1c24] ss:$16 sps:$4 sm:$0xff]  }
 0x34c   :  { %6963 = vmatprep.subr.bf16.mxu0 %v10601_v32  ;;  %7619 = vmatprep.subr.bf16.mxu1 %v10604_v33  ;;  %v13835_v32 = vrot.slane %v1239_v14, %v11095_v49  ;;  %v10683_v33 = vld [vmem:[%s14334_s1 + $0x1c20] ss:$16 sps:$4 sm:$0xff]   ;;  %v10769_v14 = vld [vmem:[%s14334_s1 + $0x1de4] ss:$16 sps:$4 sm:$0xff]  }
 0x34f   :  { %6964 = vmatpush1.bf16.msra.mxu0 %v10599_v26  ;;  %7620 = vmatpush1.bf16.msra.mxu1 %v10602_v36  ;;  %v10686_v26 = vld [vmem:[%s14334_s1 + $0x1c28] ss:$16 sps:$4 sm:$0xff]   ;;  %v10691_v36 = vld [vmem:[%s14334_s1 + $0x1c44] ss:$16 sps:$4 sm:$0xff]  }
 0x350   :  { %6965 = vmatprep.subr.bf16.mxu0 %v10607_v37  ;;  %7621 = vmatprep.subr.bf16.mxu1 %v10610_v21  ;;  %v10694_v37 = vld [vmem:[%s14334_s1 + $0x1c4c] ss:$16 sps:$4 sm:$0xff]   ;;  %v10689_v21 = vld [vmem:[%s14334_s1 + $0x1c40] ss:$16 sps:$4 sm:$0xff]  }
 0x353   :  { %6966 = vmatpush1.bf16.msra.mxu0 %v10605_v39  ;;  %7622 = vmatpush1.bf16.msra.mxu1 %v10608_v40  ;;  %v10692_v39 = vld [vmem:[%s14334_s1 + $0x1c48] ss:$16 sps:$4 sm:$0xff]   ;;  %v10697_v40 = vld [vmem:[%s14334_s1 + $0x1c64] ss:$16 sps:$4 sm:$0xff]  }
 0x354   :  { %6967 = vmatprep.subr.bf16.mxu0 %v10613_v41  ;;  %7623 = vmatprep.subr.bf16.mxu1 %v10616_v34  ;;  %v10700_v41 = vld [vmem:[%s14334_s1 + $0x1c6c] ss:$16 sps:$4 sm:$0xff]   ;;  %v10695_v34 = vld [vmem:[%s14334_s1 + $0x1c60] ss:$16 sps:$4 sm:$0xff]  }
 0x357   :  { %6968 = vmatpush1.bf16.msra.mxu0 %v10611_v43  ;;  %7624 = vmatpush1.bf16.msra.mxu1 %v10614_v45  ;;  %v10698_v43 = vld [vmem:[%s14334_s1 + $0x1c68] ss:$16 sps:$4 sm:$0xff]   ;;  %v10703_v45 = vld [vmem:[%s14334_s1 + $0x1c84] ss:$16 sps:$4 sm:$0xff]  }
 0x358   :  { %6969 = vmatprep.subr.bf16.mxu0 %v10619_v46  ;;  %7625 = vmatprep.subr.bf16.mxu1 %v10622_v35  ;;  %v10706_v46 = vld [vmem:[%s14334_s1 + $0x1c8c] ss:$16 sps:$4 sm:$0xff]   ;;  %v10701_v35 = vld [vmem:[%s14334_s1 + $0x1c80] ss:$16 sps:$4 sm:$0xff]  }
 0x35b   :  { %6970 = vmatpush1.bf16.msra.mxu0 %v10617_v50  ;;  %7626 = vmatpush1.bf16.msra.mxu1 %v10620_v53  ;;  %v10704_v50 = vld [vmem:[%s14334_s1 + $0x1c88] ss:$16 sps:$4 sm:$0xff]   ;;  %v10709_v53 = vld [vmem:[%s14334_s1 + $0x1ca4] ss:$16 sps:$4 sm:$0xff]  }
 0x35c   :  { %6971 = vmatprep.subr.bf16.mxu0 %v10625_v38  ;;  %7627 = vmatprep.subr.bf16.mxu1 %v10628_v54  ;;  %v10712_v38 = vld [vmem:[%s14334_s1 + $0x1cac] ss:$16 sps:$4 sm:$0xff]   ;;  %v10707_v54 = vld [vmem:[%s14334_s1 + $0x1ca0] ss:$16 sps:$4 sm:$0xff]  }
 0x35f   :  { %6972 = vmatpush1.bf16.msra.mxu0 %v10623_v55  ;;  %7628 = vmatpush1.bf16.msra.mxu1 %v10626_v56  ;;  %v10710_v55 = vld [vmem:[%s14334_s1 + $0x1ca8] ss:$16 sps:$4 sm:$0xff]   ;;  %v10715_v56 = vld [vmem:[%s14334_s1 + $0x1cc4] ss:$16 sps:$4 sm:$0xff]  }
 0x360   :  { %6973 = vmatprep.subr.bf16.mxu0 %v10631_v47  ;;  %7629 = vmatprep.subr.bf16.mxu1 %v10634_v57  ;;  %v10718_v47 = vld [vmem:[%s14334_s1 + $0x1ccc] ss:$16 sps:$4 sm:$0xff]   ;;  %v10713_v57 = vld [vmem:[%s14334_s1 + $0x1cc0] ss:$16 sps:$4 sm:$0xff]  }
 0x363   :  { %6974 = vmatpush1.bf16.msra.mxu0 %v10629_v58  ;;  %7630 = vmatpush1.bf16.msra.mxu1 %v10632_v59  ;;  %v10716_v58 = vld [vmem:[%s14334_s1 + $0x1cc8] ss:$16 sps:$4 sm:$0xff]   ;;  %v10721_v59 = vld [vmem:[%s14334_s1 + $0x1ce4] ss:$16 sps:$4 sm:$0xff]  }
 0x364   :  { %6975 = vmatprep.subr.bf16.mxu0 %v10637_v48  ;;  %7631 = vmatprep.subr.bf16.mxu1 %v10640_v61  ;;  %v10724_v48 = vld [vmem:[%s14334_s1 + $0x1cec] ss:$16 sps:$4 sm:$0xff]   ;;  %v10719_v61 = vld [vmem:[%s14334_s1 + $0x1ce0] ss:$16 sps:$4 sm:$0xff]  }
 0x367   :  { %6976 = vmatpush1.bf16.msra.mxu0 %v10635_v63  ;;  %7632 = vmatpush1.bf16.msra.mxu1 %v10638_v44  ;;  %v10722_v63 = vld [vmem:[%s14334_s1 + $0x1ce8] ss:$16 sps:$4 sm:$0xff]   ;;  %v10727_v44 = vld [vmem:[%s14334_s1 + $0x1d04] ss:$16 sps:$4 sm:$0xff]  }
 0x368   :  { %6977 = vmatprep.subr.bf16.mxu0 %v10643_v1  ;;  %7633 = vmatprep.subr.bf16.mxu1 %v10646_v51  ;;  %v10730_v1 = vld [vmem:[%s14334_s1 + $0x1d0c] ss:$16 sps:$4 sm:$0xff]   ;;  %v10725_v51 = vld [vmem:[%s14334_s1 + $0x1d00] ss:$16 sps:$4 sm:$0xff]  }
 0x36b   :  { %6978 = vmatpush1.bf16.msra.mxu0 %v10641_v2  ;;  %7634 = vmatpush1.bf16.msra.mxu1 %v10644_v3  ;;  %v10728_v2 = vld [vmem:[%s14334_s1 + $0x1d08] ss:$16 sps:$4 sm:$0xff]   ;;  %v10733_v3 = vld [vmem:[%s14334_s1 + $0x1d24] ss:$16 sps:$4 sm:$0xff]  }
 0x36c   :  { %6979 = vmatprep.subr.bf16.mxu0 %v10649_v4  ;;  %7635 = vmatprep.subr.bf16.mxu1 %v10652_v60  ;;  %v10736_v4 = vld [vmem:[%s14334_s1 + $0x1d2c] ss:$16 sps:$4 sm:$0xff]   ;;  %v10731_v60 = vld [vmem:[%s14334_s1 + $0x1d20] ss:$16 sps:$4 sm:$0xff]  }
 0x36f   :  { %6980 = vmatpush1.bf16.msra.mxu0 %v10647_v6  ;;  %7636 = vmatpush1.bf16.msra.mxu1 %v10650_v7  ;;  %v10734_v6 = vld [vmem:[%s14334_s1 + $0x1d28] ss:$16 sps:$4 sm:$0xff]   ;;  %v10739_v7 = vld [vmem:[%s14334_s1 + $0x1d44] ss:$16 sps:$4 sm:$0xff]  }
 0x370   :  { %6981 = vmatprep.subr.bf16.mxu0 %v10655_v62  ;;  %7637 = vmatprep.subr.bf16.mxu1 %v10658_v10  ;;  %v10742_v62 = vld [vmem:[%s14334_s1 + $0x1d4c] ss:$16 sps:$4 sm:$0xff]   ;;  %v10737_v10 = vld [vmem:[%s14334_s1 + $0x1d40] ss:$16 sps:$4 sm:$0xff]  }
 0x373   :  { %6982 = vmatpush1.bf16.msra.mxu0 %v10653_v12  ;;  %7638 = vmatpush1.bf16.msra.mxu1 %v10656_v0  ;;  %v10740_v12 = vld [vmem:[%s14334_s1 + $0x1d48] ss:$16 sps:$4 sm:$0xff]   ;;  %v10745_v0 = vld [vmem:[%s14334_s1 + $0x1d64] ss:$16 sps:$4 sm:$0xff]  }
 0x374   :  { %6983 = vmatprep.subr.bf16.mxu0 %v10661_v52  ;;  %7639 = vmatprep.subr.bf16.mxu1 %v10664_v15  ;;  %v10748_v52 = vld [vmem:[%s14334_s1 + $0x1d6c] ss:$16 sps:$4 sm:$0xff]   ;;  %v10743_v15 = vld [vmem:[%s14334_s1 + $0x1d60] ss:$16 sps:$4 sm:$0xff]  }
 0x377   :  { %6984 = vmatpush1.bf16.msra.mxu0 %v10659_v16  ;;  %7640 = vmatpush1.bf16.msra.mxu1 %v10662_v8  ;;  %v10746_v16 = vld [vmem:[%s14334_s1 + $0x1d68] ss:$16 sps:$4 sm:$0xff]   ;;  %v10751_v8 = vld [vmem:[%s14334_s1 + $0x1d84] ss:$16 sps:$4 sm:$0xff]  }
 0x378   :  { %6985 = vmatprep.subr.bf16.mxu0 %v10667_v17  ;;  %7641 = vmatprep.subr.bf16.mxu1 %v10670_v18  ;;  %v10754_v17 = vld [vmem:[%s14334_s1 + $0x1d8c] ss:$16 sps:$4 sm:$0xff]   ;;  %v10749_v18 = vld [vmem:[%s14334_s1 + $0x1d80] ss:$16 sps:$4 sm:$0xff]  }
 0x37b   :  { %6986 = vmatpush1.bf16.msra.mxu0 %v10665_v9  ;;  %7642 = vmatpush1.bf16.msra.mxu1 %v10668_v22  ;;  %v10757_v9 = vld [vmem:[%s14334_s1 + $0x1da4] ss:$16 sps:$4 sm:$0xff]   ;;  %v10760_v22 = vld [vmem:[%s14334_s1 + $0x1dac] ss:$16 sps:$4 sm:$0xff]  }
 0x37c   :  { %6987 = vmatprep.subr.bf16.mxu0 %v10673_v24  ;;  %7643 = vmatprep.subr.bf16.mxu1 %v10676_v5  ;;  %v10755_v24 = vld [vmem:[%s14334_s1 + $0x1da0] ss:$16 sps:$4 sm:$0xff]   ;;  %v10758_v5 = vld [vmem:[%s14334_s1 + $0x1da8] ss:$16 sps:$4 sm:$0xff]  }
 0x37f   :  { %6988 = vmatpush1.bf16.msra.mxu0 %v10671_v27  ;;  %7644 = vmatpush1.bf16.msra.mxu1 %v10674_v11  ;;  %v10763_v27 = vld [vmem:[%s14334_s1 + $0x1dc4] ss:$16 sps:$4 sm:$0xff]   ;;  %v10766_v11 = vld [vmem:[%s14334_s1 + $0x1dcc] ss:$16 sps:$4 sm:$0xff]  }
 0x380   :  { %6998 = vmatprep.subr.bf16.mxu0 %v10679_v28  ;;  %7654 = vmatprep.subr.bf16.mxu1 %v10682_v29  ;;  %v10761_v28 = vld [vmem:[%s14334_s1 + $0x1dc0] ss:$16 sps:$4 sm:$0xff]   ;;  %v10764_v29 = vld [vmem:[%s14334_s1 + $0x1dc8] ss:$16 sps:$4 sm:$0xff]  }
 0x382   :  { %6990 = vmatmul.mubr.bf16.vlgmr.msra.gmra.mrb[0].mxu0 %v1268_v20  ;;  %7646 = vmatmul.mubr.bf16.vlgmr.msra.gmra.mrb[0].mxu1 %v1268_v20  ;;  %v10772_v20 = vld [vmem:[%s14334_s1 + $0x1dec] ss:$16 sps:$4 sm:$0xff]  }
 0x383   :  { %6999 = vmatpush1.bf16.msra.mxu0 %v10677_v30  ;;  %7655 = vmatpush1.bf16.msra.mxu1 %v10680_v31  ;;  %v10767_v30 = vld [vmem:[%s14334_s1 + $0x1de0] ss:$16 sps:$4 sm:$0xff]   ;;  %v10770_v31 = vld [vmem:[%s14334_s1 + $0x1de8] ss:$16 sps:$4 sm:$0xff]  }
 0x384   :  { %7000 = vmatprep.subr.bf16.mxu0 %v10685_v25  ;;  %7656 = vmatprep.subr.bf16.mxu1 %v10688_v23  ;;  %v10776_v25 = vld [vmem:[%s14334_s1 + $0x1e04] ss:$16 sps:$4 sm:$0xff]   ;;  %v10779_v23 = vld [vmem:[%s14334_s1 + $0x1e0c] ss:$16 sps:$4 sm:$0xff]  }
 0x385   :  { %7030 = vmatprep.mubr.bf16.mxu0 %v13835_v32  ;;  %7686 = vmatprep.mubr.bf16.mxu1 %v13835_v32 }
 0x387   :  { %7001 = vmatpush1.bf16.msra.mxu0 %v10683_v33  ;;  %7657 = vmatpush1.bf16.msra.mxu1 %v10686_v26  ;;  %v14021_v33 = vrot.slane %v13804_v13, %v11095_v49  ;;  %v10774_v26 = vld [vmem:[%s14334_s1 + $0x1e00] ss:$16 sps:$4 sm:$0xff]   ;;  %v10785_v49 = vld [vmem:[%s14334_s1 + $0x1e2c] ss:$16 sps:$4 sm:$0xff]   ;;  %v1271_v13 = vcombine.high %v13835_v32, %v13835_v32  ;;  %v10788_v32 = vld [vmem:[%s14334_s1 + $0x1e44] ss:$16 sps:$4 sm:$0xff]  }
 0x388   :  { %7002 = vmatprep.subr.bf16.mxu0 %v10691_v36  ;;  %7658 = vmatprep.subr.bf16.mxu1 %v10694_v37  ;;  %v10777_v36 = vld [vmem:[%s14334_s1 + $0x1e08] ss:$16 sps:$4 sm:$0xff]   ;;  %v10782_v37 = vld [vmem:[%s14334_s1 + $0x1e24] ss:$16 sps:$4 sm:$0xff]  }
 0x38b   :  { %7003 = vmatpush1.bf16.msra.mxu0 %v10689_v21  ;;  %7659 = vmatpush1.bf16.msra.mxu1 %v10692_v39  ;;  %v10780_v21 = vld [vmem:[%s14334_s1 + $0x1e20] ss:$16 sps:$4 sm:$0xff]   ;;  %v10783_v39 = vld [vmem:[%s14334_s1 + $0x1e28] ss:$16 sps:$4 sm:$0xff]  }
 0x38c   :  { %7004 = vmatprep.subr.bf16.mxu0 %v10697_v40  ;;  %7660 = vmatprep.subr.bf16.mxu1 %v10700_v41  ;;  %v10791_v40 = vld [vmem:[%s14334_s1 + $0x1e4c] ss:$16 sps:$4 sm:$0xff]   ;;  %v10786_v41 = vld [vmem:[%s14334_s1 + $0x1e40] ss:$16 sps:$4 sm:$0xff]  }
 0x38f   :  { %7005 = vmatpush1.bf16.msra.mxu0 %v10695_v34  ;;  %7661 = vmatpush1.bf16.msra.mxu1 %v10698_v43  ;;  %v10789_v34 = vld [vmem:[%s14334_s1 + $0x1e48] ss:$16 sps:$4 sm:$0xff]   ;;  %v10794_v43 = vld [vmem:[%s14334_s1 + $0x1e64] ss:$16 sps:$4 sm:$0xff]  }
 0x390   :  { %7006 = vmatprep.subr.bf16.mxu0 %v10703_v45  ;;  %7662 = vmatprep.subr.bf16.mxu1 %v10706_v46  ;;  %v10797_v45 = vld [vmem:[%s14334_s1 + $0x1e6c] ss:$16 sps:$4 sm:$0xff]   ;;  %v10792_v46 = vld [vmem:[%s14334_s1 + $0x1e60] ss:$16 sps:$4 sm:$0xff]  }
 0x393   :  { %7007 = vmatpush1.bf16.msra.mxu0 %v10701_v35  ;;  %7663 = vmatpush1.bf16.msra.mxu1 %v10704_v50  ;;  %v10795_v35 = vld [vmem:[%s14334_s1 + $0x1e68] ss:$16 sps:$4 sm:$0xff]   ;;  %v10800_v50 = vld [vmem:[%s14334_s1 + $0x1e84] ss:$16 sps:$4 sm:$0xff]  }
 0x394   :  { %7008 = vmatprep.subr.bf16.mxu0 %v10709_v53  ;;  %7664 = vmatprep.subr.bf16.mxu1 %v10712_v38  ;;  %v10803_v53 = vld [vmem:[%s14334_s1 + $0x1e8c] ss:$16 sps:$4 sm:$0xff]   ;;  %v10798_v38 = vld [vmem:[%s14334_s1 + $0x1e80] ss:$16 sps:$4 sm:$0xff]  }
 0x397   :  { %7009 = vmatpush1.bf16.msra.mxu0 %v10707_v54  ;;  %7665 = vmatpush1.bf16.msra.mxu1 %v10710_v55  ;;  %v10801_v54 = vld [vmem:[%s14334_s1 + $0x1e88] ss:$16 sps:$4 sm:$0xff]   ;;  %v10806_v55 = vld [vmem:[%s14334_s1 + $0x1ea4] ss:$16 sps:$4 sm:$0xff]  }
 0x398   :  { %7010 = vmatprep.subr.bf16.mxu0 %v10715_v56  ;;  %7666 = vmatprep.subr.bf16.mxu1 %v10718_v47  ;;  %v10809_v56 = vld [vmem:[%s14334_s1 + $0x1eac] ss:$16 sps:$4 sm:$0xff]   ;;  %v10804_v47 = vld [vmem:[%s14334_s1 + $0x1ea0] ss:$16 sps:$4 sm:$0xff]  }
 0x39b   :  { %7011 = vmatpush1.bf16.msra.mxu0 %v10713_v57  ;;  %7667 = vmatpush1.bf16.msra.mxu1 %v10716_v58  ;;  %v10807_v57 = vld [vmem:[%s14334_s1 + $0x1ea8] ss:$16 sps:$4 sm:$0xff]   ;;  %v10812_v58 = vld [vmem:[%s14334_s1 + $0x1ec4] ss:$16 sps:$4 sm:$0xff]  }
 0x39c   :  { %7012 = vmatprep.subr.bf16.mxu0 %v10721_v59  ;;  %7668 = vmatprep.subr.bf16.mxu1 %v10724_v48  ;;  %v10815_v59 = vld [vmem:[%s14334_s1 + $0x1ecc] ss:$16 sps:$4 sm:$0xff]   ;;  %v10810_v48 = vld [vmem:[%s14334_s1 + $0x1ec0] ss:$16 sps:$4 sm:$0xff]  }
 0x39f   :  { %7013 = vmatpush1.bf16.msra.mxu0 %v10719_v61  ;;  %7669 = vmatpush1.bf16.msra.mxu1 %v10722_v63  ;;  %v10813_v61 = vld [vmem:[%s14334_s1 + $0x1ec8] ss:$16 sps:$4 sm:$0xff]   ;;  %v10818_v63 = vld [vmem:[%s14334_s1 + $0x1ee4] ss:$16 sps:$4 sm:$0xff]  }
 0x3a0   :  { %7014 = vmatprep.subr.bf16.mxu0 %v10727_v44  ;;  %7670 = vmatprep.subr.bf16.mxu1 %v10730_v1  ;;  %v10821_v44 = vld [vmem:[%s14334_s1 + $0x1eec] ss:$16 sps:$4 sm:$0xff]   ;;  %v10816_v1 = vld [vmem:[%s14334_s1 + $0x1ee0] ss:$16 sps:$4 sm:$0xff]  }
 0x3a3   :  { %7015 = vmatpush1.bf16.msra.mxu0 %v10725_v51  ;;  %7671 = vmatpush1.bf16.msra.mxu1 %v10728_v2  ;;  %v10819_v51 = vld [vmem:[%s14334_s1 + $0x1ee8] ss:$16 sps:$4 sm:$0xff]   ;;  %v10824_v2 = vld [vmem:[%s14334_s1 + $0x1f04] ss:$16 sps:$4 sm:$0xff]  }
 0x3a4   :  { %7016 = vmatprep.subr.bf16.mxu0 %v10733_v3  ;;  %7672 = vmatprep.subr.bf16.mxu1 %v10736_v4  ;;  %v10827_v3 = vld [vmem:[%s14334_s1 + $0x1f0c] ss:$16 sps:$4 sm:$0xff]   ;;  %v10822_v4 = vld [vmem:[%s14334_s1 + $0x1f00] ss:$16 sps:$4 sm:$0xff]  }
 0x3a7   :  { %7017 = vmatpush1.bf16.msra.mxu0 %v10731_v60  ;;  %7673 = vmatpush1.bf16.msra.mxu1 %v10734_v6  ;;  %v10825_v60 = vld [vmem:[%s14334_s1 + $0x1f08] ss:$16 sps:$4 sm:$0xff]   ;;  %v10830_v6 = vld [vmem:[%s14334_s1 + $0x1f24] ss:$16 sps:$4 sm:$0xff]  }
 0x3a8   :  { %7018 = vmatprep.subr.bf16.mxu0 %v10739_v7  ;;  %7674 = vmatprep.subr.bf16.mxu1 %v10742_v62  ;;  %v10833_v7 = vld [vmem:[%s14334_s1 + $0x1f2c] ss:$16 sps:$4 sm:$0xff]   ;;  %v10828_v62 = vld [vmem:[%s14334_s1 + $0x1f20] ss:$16 sps:$4 sm:$0xff]  }
 0x3ab   :  { %7019 = vmatpush1.bf16.msra.mxu0 %v10737_v10  ;;  %7675 = vmatpush1.bf16.msra.mxu1 %v10740_v12  ;;  %v10831_v10 = vld [vmem:[%s14334_s1 + $0x1f28] ss:$16 sps:$4 sm:$0xff]   ;;  %v10836_v12 = vld [vmem:[%s14334_s1 + $0x1f44] ss:$16 sps:$4 sm:$0xff]  }
 0x3ac   :  { %7020 = vmatprep.subr.bf16.mxu0 %v10745_v0  ;;  %7676 = vmatprep.subr.bf16.mxu1 %v10748_v52  ;;  %v10839_v0 = vld [vmem:[%s14334_s1 + $0x1f4c] ss:$16 sps:$4 sm:$0xff]   ;;  %v10834_v52 = vld [vmem:[%s14334_s1 + $0x1f40] ss:$16 sps:$4 sm:$0xff]  }
 0x3af   :  { %7021 = vmatpush1.bf16.msra.mxu0 %v10743_v15  ;;  %7677 = vmatpush1.bf16.msra.mxu1 %v10746_v16  ;;  %v10837_v15 = vld [vmem:[%s14334_s1 + $0x1f48] ss:$16 sps:$4 sm:$0xff]   ;;  %v10842_v16 = vld [vmem:[%s14334_s1 + $0x1f64] ss:$16 sps:$4 sm:$0xff]  }
 0x3b0   :  { %7022 = vmatprep.subr.bf16.mxu0 %v10751_v8  ;;  %7678 = vmatprep.subr.bf16.mxu1 %v10754_v17  ;;  %v10845_v8 = vld [vmem:[%s14334_s1 + $0x1f6c] ss:$16 sps:$4 sm:$0xff]   ;;  %v10840_v17 = vld [vmem:[%s14334_s1 + $0x1f60] ss:$16 sps:$4 sm:$0xff]  }
 0x3b3   :  { %7023 = vmatpush1.bf16.msra.mxu0 %v10749_v18  ;;  %7679 = vmatpush1.bf16.msra.mxu1 %v10752_v19  ;;  %v10843_v18 = vld [vmem:[%s14334_s1 + $0x1f68] ss:$16 sps:$4 sm:$0xff]   ;;  %v10848_v19 = vld [vmem:[%s14334_s1 + $0x1f84] ss:$16 sps:$4 sm:$0xff]  }
 0x3b4   :  { %7024 = vmatprep.subr.bf16.mxu0 %v10757_v9  ;;  %7680 = vmatprep.subr.bf16.mxu1 %v10760_v22  ;;  %v10851_v9 = vld [vmem:[%s14334_s1 + $0x1f8c] ss:$16 sps:$4 sm:$0xff]   ;;  %v10846_v22 = vld [vmem:[%s14334_s1 + $0x1f80] ss:$16 sps:$4 sm:$0xff]  }
 0x3b7   :  { %7025 = vmatpush1.bf16.msra.mxu0 %v10755_v24  ;;  %7681 = vmatpush1.bf16.msra.mxu1 %v10758_v5  ;;  %v10849_v24 = vld [vmem:[%s14334_s1 + $0x1f88] ss:$16 sps:$4 sm:$0xff]   ;;  %v10854_v5 = vld [vmem:[%s14334_s1 + $0x1fa4] ss:$16 sps:$4 sm:$0xff]  }
 0x3b8   :  { %7026 = vmatprep.subr.bf16.mxu0 %v10763_v27  ;;  %7682 = vmatprep.subr.bf16.mxu1 %v10766_v11  ;;  %v10857_v27 = vld [vmem:[%s14334_s1 + $0x1fac] ss:$16 sps:$4 sm:$0xff]   ;;  %v10852_v11 = vld [vmem:[%s14334_s1 + $0x1fa0] ss:$16 sps:$4 sm:$0xff]  }
 0x3bb   :  { %7027 = vmatpush1.bf16.msra.mxu0 %v10761_v28  ;;  %7683 = vmatpush1.bf16.msra.mxu1 %v10764_v29  ;;  %v10855_v28 = vld [vmem:[%s14334_s1 + $0x1fa8] ss:$16 sps:$4 sm:$0xff]   ;;  %v10860_v29 = vld [vmem:[%s14334_s1 + $0x1fc4] ss:$16 sps:$4 sm:$0xff]  }
 0x3bc   :  { %7028 = vmatprep.subr.bf16.mxu0 %v10769_v14  ;;  %7684 = vmatprep.subr.bf16.mxu1 %v10772_v20  ;;  %v10863_v14 = vld [vmem:[%s14334_s1 + $0x1fcc] ss:$16 sps:$4 sm:$0xff]   ;;  %v10858_v20 = vld [vmem:[%s14334_s1 + $0x1fc0] ss:$16 sps:$4 sm:$0xff]  }
 0x3bf   :  { %7029 = vmatpush1.bf16.msra.mxu0 %v10767_v30  ;;  %7685 = vmatpush1.bf16.msra.mxu1 %v10770_v31  ;;  %v10861_v30 = vld [vmem:[%s14334_s1 + $0x1fc8] ss:$16 sps:$4 sm:$0xff]   ;;  %v10866_v31 = vld [vmem:[%s14334_s1 + $0x1fe4] ss:$16 sps:$4 sm:$0xff]  }
 0x3c0   :  { %7039 = vmatprep.subr.bf16.mxu0 %v10776_v25  ;;  %7695 = vmatprep.subr.bf16.mxu1 %v10779_v23  ;;  %v10869_v25 = vld [vmem:[%s14334_s1 + $0x1fec] ss:$16 sps:$4 sm:$0xff]   ;;  %v10864_v23 = vld [vmem:[%s14334_s1 + $0x1fe0] ss:$16 sps:$4 sm:$0xff]  }
 0x3c2   :  { %7031 = vmatmul.mubr.bf16.vlgmr.msra.gmra.mrb[0].mxu0 %v14021_v33  ;;  %7687 = vmatmul.mubr.bf16.vlgmr.msra.gmra.mrb[0].mxu1 %v14021_v33 }
 0x3c3   :  { %7040 = vmatpush1.bf16.msra.mxu0 %v10774_v26  ;;  %7696 = vmatpush1.bf16.msra.mxu1 %v10777_v36  ;;  %v10867_v26 = vld [vmem:[%s14334_s1 + $0x1fe8] ss:$16 sps:$4 sm:$0xff]   ;;  %v10870_v36 = vld [vmem:[%s14336_s3 + $0x40] sm:$0xff]  }
 0x3c4   :  { %7041 = vmatprep.subr.bf16.mxu0 %v10782_v37  ;;  %7697 = vmatprep.subr.bf16.mxu1 %v10785_v49  ;;  %v10871_v37 = vld [vmem:[%s14336_s3 + $0xc0] sm:$0xff]   ;;  %v1269_v49 = vcombine.high %v14021_v33, %v14021_v33  ;;  %v10875_v33 = vld [vmem:[%s14336_s3 + $0xc8] sm:$0xff]  }
 0x3c5   :  { %7071 = vmatprep.mubr.bf16.mxu0 %v1271_v13  ;;  %7727 = vmatprep.mubr.bf16.mxu1 %v1271_v13  ;;  %v10872_v13 = vld [vmem:[%s14336_s3] sm:$0xff]  }
 0x3c7   :  { %7042 = vmatpush1.bf16.msra.mxu0 %v10780_v21  ;;  %7698 = vmatpush1.bf16.msra.mxu1 %v10783_v39  ;;  %v10873_v21 = vld [vmem:[%s14336_s3 + $0x80] sm:$0xff]   ;;  %v10874_v39 = vld [vmem:[%s14336_s3 + $0x48] sm:$0xff]  }
 0x3c8   :  { %7043 = vmatprep.subr.bf16.mxu0 %v10788_v32  ;;  %7699 = vmatprep.subr.bf16.mxu1 %v10791_v40  ;;  %v10876_v32 = vld [vmem:[%s14336_s3 + $0x8] sm:$0xff]  }
 0x3c9   :  { %v10877_v40 = vld [vmem:[%s14336_s3 + $0x88] sm:$0xff]  }
 0x3cb   :  { %7044 = vmatpush1.bf16.msra.mxu0 %v10786_v41  ;;  %7700 = vmatpush1.bf16.msra.mxu1 %v10789_v34  ;;  %v10878_v41 = vld [vmem:[%s14336_s3 + $0x50] sm:$0xff]  }
 0x3cc   :  { %7045 = vmatprep.subr.bf16.mxu0 %v10794_v43  ;;  %7701 = vmatprep.subr.bf16.mxu1 %v10797_v45  ;;  %v10879_v34 = vld [vmem:[%s14336_s3 + $0xd0] sm:$0xff]  }
 0x3cd   :  { %v10880_v43 = vld [vmem:[%s14336_s3 + $0x10] sm:$0xff]  }
 0x3ce   :  { %v10881_v45 = vld [vmem:[%s14336_s3 + $0x90] sm:$0xff]  }
 0x3cf   :  { %7046 = vmatpush1.bf16.msra.mxu0 %v10792_v46  ;;  %7702 = vmatpush1.bf16.msra.mxu1 %v10795_v35  ;;  %v10882_v46 = vld [vmem:[%s14336_s3 + $0x58] sm:$0xff]  }
 0x3d0   :  { %7047 = vmatprep.subr.bf16.mxu0 %v10800_v50  ;;  %7703 = vmatprep.subr.bf16.mxu1 %v10803_v53  ;;  %v10883_v35 = vld [vmem:[%s14336_s3 + $0xd8] sm:$0xff]  }
 0x3d1   :  { %v10884_v50 = vld [vmem:[%s14336_s3 + $0x18] sm:$0xff]  }
 0x3d2   :  { %v10885_v53 = vld [vmem:[%s14336_s3 + $0x98] sm:$0xff]  }
 0x3d3   :  { %7048 = vmatpush1.bf16.msra.mxu0 %v10798_v38  ;;  %7704 = vmatpush1.bf16.msra.mxu1 %v10801_v54  ;;  %v10886_v38 = vld [vmem:[%s14336_s3 + $0x60] sm:$0xff]  }
 0x3d4   :  { %7049 = vmatprep.subr.bf16.mxu0 %v10806_v55  ;;  %7705 = vmatprep.subr.bf16.mxu1 %v10809_v56  ;;  %v10887_v54 = vld [vmem:[%s14336_s3 + $0xe0] sm:$0xff]  }
 0x3d5   :  { %v10888_v55 = vld [vmem:[%s14336_s3 + $0x20] sm:$0xff]  }
 0x3d6   :  { %v10889_v56 = vld [vmem:[%s14336_s3 + $0xa0] sm:$0xff]  }
 0x3d7   :  { %7050 = vmatpush1.bf16.msra.mxu0 %v10804_v47  ;;  %7706 = vmatpush1.bf16.msra.mxu1 %v10807_v57  ;;  %v10890_v47 = vld [vmem:[%s14336_s3 + $0x68] sm:$0xff]  }
 0x3d8   :  { %7051 = vmatprep.subr.bf16.mxu0 %v10812_v58  ;;  %7707 = vmatprep.subr.bf16.mxu1 %v10815_v59  ;;  %v10891_v57 = vld [vmem:[%s14336_s3 + $0xe8] sm:$0xff]  }
 0x3d9   :  { %v10892_v58 = vld [vmem:[%s14336_s3 + $0x28] sm:$0xff]  }
 0x3da   :  { %v10893_v59 = vld [vmem:[%s14336_s3 + $0xa8] sm:$0xff]  }
 0x3db   :  { %7052 = vmatpush1.bf16.msra.mxu0 %v10810_v48  ;;  %7708 = vmatpush1.bf16.msra.mxu1 %v10813_v61  ;;  %v10894_v48 = vld [vmem:[%s14336_s3 + $0x70] sm:$0xff]  }
 0x3dc   :  { %7053 = vmatprep.subr.bf16.mxu0 %v10818_v63  ;;  %7709 = vmatprep.subr.bf16.mxu1 %v10821_v44  ;;  %v10895_v61 = vld [vmem:[%s14336_s3 + $0xf0] sm:$0xff]  }
 0x3dd   :  { %v10896_v63 = vld [vmem:[%s14336_s3 + $0x30] sm:$0xff]  }
 0x3de   :  { %v10897_v44 = vld [vmem:[%s14336_s3 + $0xb0] sm:$0xff]  }
 0x3df   :  { %7054 = vmatpush1.bf16.msra.mxu0 %v10816_v1  ;;  %7710 = vmatpush1.bf16.msra.mxu1 %v10819_v51  ;;  %v10898_v1 = vld [vmem:[%s14336_s3 + $0x78] sm:$0xff]  }
 0x3e0   :  { %7055 = vmatprep.subr.bf16.mxu0 %v10824_v2  ;;  %7711 = vmatprep.subr.bf16.mxu1 %v10827_v3  ;;  %v10899_v51 = vld [vmem:[%s14336_s3 + $0xf8] sm:$0xff]  }
 0x3e1   :  { %v10900_v2 = vld [vmem:[%s14336_s3 + $0x38] sm:$0xff]  }
 0x3e2   :  { %v10901_v3 = vld [vmem:[%s14336_s3 + $0xb8] sm:$0xff]  }
 0x3e3   :  { %7056 = vmatpush1.bf16.msra.mxu0 %v10822_v4  ;;  %7712 = vmatpush1.bf16.msra.mxu1 %v10825_v60  ;;  %v1054_v4 = vsub.s32 0, %v11077_v42  ;;  %v1062_v60 = vsub.s32 2, %v11077_v42 }
 0x3e4   :  { %7057 = vmatprep.subr.bf16.mxu0 %v10830_v6  ;;  %7713 = vmatprep.subr.bf16.mxu1 %v10833_v7  ;;  %v1050_v6 = vld [vmem:[%s14335_s2] sm:$0xf]  ;;  %v1058_v7 = vsub.s32 1, %v11077_v42 }
 0x3e7   :  { %7058 = vmatpush1.bf16.msra.mxu0 %v10828_v62  ;;  %7714 = vmatpush1.bf16.msra.mxu1 %v10831_v10  ;;  %v1066_v62 = vsub.s32 3, %v11077_v42  ;;  %v1055_v10 = vrot.slane %v1050_v6, %v1054_v4 }
 0x3e8   :  { %7059 = vmatprep.subr.bf16.mxu0 %v10836_v12  ;;  %7715 = vmatprep.subr.bf16.mxu1 %v10839_v0  ;;  %v1063_v12 = vrot.slane %v1050_v6, %v1062_v60  ;;  %v1059_v0 = vrot.slane %v1050_v6, %v1058_v7 }
 0x3eb   :  { %7060 = vmatpush1.bf16.msra.mxu0 %v10834_v52  ;;  %7716 = vmatpush1.bf16.msra.mxu1 %v10837_v15  ;;  %v1067_v52 = vrot.slane %v1050_v6, %v1066_v62 }
 0x3ec   :  { %7061 = vmatprep.subr.bf16.mxu0 %v10842_v16  ;;  %7717 = vmatprep.subr.bf16.mxu1 %v10845_v8 }
 0x3ef   :  { %7062 = vmatpush1.bf16.msra.mxu0 %v10840_v17  ;;  %7718 = vmatpush1.bf16.msra.mxu1 %v10843_v18 }
 0x3f0   :  { %7063 = vmatprep.subr.bf16.mxu0 %v10848_v19  ;;  %7719 = vmatprep.subr.bf16.mxu1 %v10851_v9 }
 0x3f3   :  { %7064 = vmatpush1.bf16.msra.mxu0 %v10846_v22  ;;  %7720 = vmatpush1.bf16.msra.mxu1 %v10849_v24 }
 0x3f4   :  { %7065 = vmatprep.subr.bf16.mxu0 %v10854_v5  ;;  %7721 = vmatprep.subr.bf16.mxu1 %v10857_v27 }
 0x3f7   :  { %7066 = vmatpush1.bf16.msra.mxu0 %v10852_v11  ;;  %7722 = vmatpush1.bf16.msra.mxu1 %v10855_v28 }
 0x3f8   :  { %7067 = vmatprep.subr.bf16.mxu0 %v10860_v29  ;;  %7723 = vmatprep.subr.bf16.mxu1 %v10863_v14 }
 0x3fb   :  { %7068 = vmatpush1.bf16.msra.mxu0 %v10858_v20  ;;  %7724 = vmatpush1.bf16.msra.mxu1 %v10861_v30 }
 0x3fc   :  { %7069 = vmatprep.subr.bf16.mxu0 %v10866_v31  ;;  %7725 = vmatprep.subr.bf16.mxu1 %v10869_v25 }
 0x3ff   :  { %7070 = vmatpush1.bf16.msra.mxu0 %v10864_v23  ;;  %7726 = vmatpush1.bf16.msra.mxu1 %v10867_v26 }
 0x400   :  { %9160 = vmatprep.subr.bf16.mxu0 %v10870_v36  ;;  %9182 = vmatprep.subr.bf16.mxu1 %v10871_v37  ;;  %v9127_v36 = vld [vmem:[%s14337_s4] ss:$0 sm:$0xff] }
 0x402   :  { %7072 = vmatmul.mubr.bf16.vlgmr.msra.gmra.mrb[0].mxu0 %v1269_v49  ;;  %7728 = vmatmul.mubr.bf16.vlgmr.msra.gmra.mrb[0].mxu1 %v1269_v49 }
 0x403   :  { %9161 = vmatpush3.bf16.msra.mxu0 %v10872_v13  ;;  %9183 = vmatpush3.bf16.msra.mxu1 %v10873_v21 }
 0x404   :  { %9162 = vmatprep.subr.bf16.mxu0 %v10874_v39  ;;  %9184 = vmatprep.subr.bf16.mxu1 %v10875_v33 }
 0x407   :  { %9163 = vmatpush3.bf16.msra.mxu0 %v10876_v32  ;;  %9185 = vmatpush3.bf16.msra.mxu1 %v10877_v40 }
 0x408   :  { %9164 = vmatprep.subr.bf16.mxu0 %v10878_v41  ;;  %9186 = vmatprep.subr.bf16.mxu1 %v10879_v34 }
 0x40b   :  { %9165 = vmatpush3.bf16.msra.mxu0 %v10880_v43  ;;  %9187 = vmatpush3.bf16.msra.mxu1 %v10881_v45 }
 0x40c   :  { %9166 = vmatprep.subr.bf16.mxu0 %v10882_v46  ;;  %9188 = vmatprep.subr.bf16.mxu1 %v10883_v35 }
 0x40f   :  { %9167 = vmatpush3.bf16.msra.mxu0 %v10884_v50  ;;  %9189 = vmatpush3.bf16.msra.mxu1 %v10885_v53 }
 0x410   :  { %9168 = vmatprep.subr.bf16.mxu0 %v10886_v38  ;;  %9190 = vmatprep.subr.bf16.mxu1 %v10887_v54 }
 0x413   :  { %9169 = vmatpush3.bf16.msra.mxu0 %v10888_v55  ;;  %9191 = vmatpush3.bf16.msra.mxu1 %v10889_v56 }
 0x414   :  { %9170 = vmatprep.subr.bf16.mxu0 %v10890_v47  ;;  %9192 = vmatprep.subr.bf16.mxu1 %v10891_v57 }
 0x417   :  { %9171 = vmatpush3.bf16.msra.mxu0 %v10892_v58  ;;  %9193 = vmatpush3.bf16.msra.mxu1 %v10893_v59 }
 0x418   :  { %9172 = vmatprep.subr.bf16.mxu0 %v10894_v48  ;;  %9194 = vmatprep.subr.bf16.mxu1 %v10895_v61 }
 0x41b   :  { %9173 = vmatpush3.bf16.msra.mxu0 %v10896_v63  ;;  %9195 = vmatpush3.bf16.msra.mxu1 %v10897_v44 }
 0x41c   :  { %9174 = vmatprep.subr.bf16.mxu0 %v10898_v1  ;;  %9196 = vmatprep.subr.bf16.mxu1 %v10899_v51 }
 0x41f   :  { %9175 = vmatpush3.bf16.msra.mxu0 %v10900_v2  ;;  %9197 = vmatpush3.bf16.msra.mxu1 %v10901_v3 }
 0x4d5   :  { %v7073_v15 = vpop.f32.mrb[0].mxu0  ;;  %v7729_v16 = vpop.f32.mrb[0].mxu1 }
 0x4d6   :  { %v9204_v8 = vadd.f32 %v7073_v15, %v1055_v10  ;;  %v9206_v17 = vadd.f32 %v7729_v16, %v1063_v12  ;;  %v7075_v18 = vpop.f32.mrb[1].mxu0  ;;  %v7731_v19 = vpop.f32.mrb[1].mxu1 }
 0x4d7   :  { %v9205_v9 = vadd.f32 %v7075_v18, %v1059_v0  ;;  %v9207_v22 = vadd.f32 %v7731_v19, %v1067_v52  ;;  %v7077_v24 = vpop.f32.mrb[2].mxu0  ;;  %v7733_v5 = vpop.f32.mrb[2].mxu1 }
 0x4d8   :  { %v7736_v27 = vmax.f32 %v9204_v8, 0.0  ;;  %v7738_v11 = vmax.f32 %v9206_v17, 0.0  ;;  %v7078_v28 = vpop.f32.mrb[3].mxu0  ;;  %v7734_v29 = vpop.f32.mrb[3].mxu1 }
 0x4d9   :  { %v7737_v14 = vmax.f32 %v9205_v9, 0.0  ;;  %v7739_v42 = vmax.f32 %v9207_v22, 0.0 }
 0x4da   :  { %v7740_v31 = vpack.c.bf16 %v7736_v27, %v7736_v27  ;;  %v7742_v25 = vpack.c.bf16 %v7738_v11, %v7738_v11 }
 0x4db   :  { %v7741_v20 = vpack.c.bf16 %v7737_v14, %v7737_v14  ;;  %v7743_v30 = vpack.c.bf16 %v7739_v42, %v7739_v42 }
 0x4dd   :  { %8039 = vmatprep.mubr.bf16.mxu0 %v7741_v20  ;;  %8079 = vmatprep.mubr.bf16.mxu1 %v7743_v30 }
 0x4de   :  { %8040 = vmatmul.mubr.bf16.vlgmr.msra.gmra.mrb[4].mxu0 %v7740_v31  ;;  %8080 = vmatmul.mubr.bf16.vlgmr.msra.gmra.mrb[4].mxu1 %v7742_v25 }
 0x5b1   :  { %v9176_v23 = vpop.f32.mrb[4].mxu0  ;;  %v9198_v26 = vpop.f32.mrb[4].mxu1 }
 0x5b2   :  { %v9177_v37 = vpop.f32.mrb[5].mxu0  ;;  %v9199_v49 = vpop.f32.mrb[5].mxu1 }
 0x5b3   :  { %v9178_v13 = vadd.f32 %v9177_v37, %v9176_v23  ;;  %v9200_v21 = vadd.f32 %v9199_v49, %v9198_v26  ;;  %v9179_v39 = vpop.f32.mrb[6].mxu0  ;;  %v9201_v33 = vpop.f32.mrb[6].mxu1 }
 0x5b4   :  { %v9180_v32 = vpop.f32.mrb[7].mxu0  ;;  %v9202_v40 = vpop.f32.mrb[7].mxu1 }
 0x5b5   :  { %v8042_v41 = vadd.f32 %v9178_v13, %v9127_v36 }
 0x5b7   :  { %v8082_v34 = vadd.f32 %v9200_v21, %v8042_v41 }
 0x5b9   :  { %8088 = vst.msk [vmem:[#allocation2] sm:$0x3] %vm8087_vm0, %v8082_v34 }
 0x5ba   :  { %10915 = shalt.err (!%p10912_p4)
}
 0x5bb   :  { %s10916_s20 = scalar_lea.hbm %s14338_s5, 32 }
 0x5bc   :  { %p10917_p5 = scmp.ne.s32.totalorder %s14338_s5, %s10916_s20  ;;  %p10920_p6 = scmp.lt.u32.totalorder %s10916_s20, %s14338_s5 }
 0x5be   :  { %p10922_p7 = pnand %p10920_p6, %p10917_p5 }
 0x5c0   :  { %10925 = shalt.err (!%p10922_p7)
}
 0x5c1   :  { %8098 = dma.vmem_to_hbm [thread:$0]  %s8096_s17, 32, %s14338_s5, [#allocation3]  }
 0x5c2   :  { %10926 = dma.done.wait [#allocation3], 32  }
 0x5c3   :  { %10927 = vsyncadd [#allocation3], 4294967264 }
 0x5c4   :  { %8102 = vsyncpa [#allocation3], 1 }

</bundles_post_ra>
